<compile_context>
chip_gen: v5e
topology: v5e:2x2
jax: 0.10.0
libtpu: 0.0.40
codegen_flags: <defaults>
</compile_context>

<pallas_src>
import functools

import jax
import jax.numpy as jnp
from jax.experimental import pallas as pl
from jax.experimental.pallas import tpu as pltpu

D_IN, D_H1, D_H2, D_OUT = 784, 512, 256, 1
LANES = 128  # lane-dense output width


def _discriminator_kernel(x_ref, w1_ref, b1_ref, w2_ref, b2_ref, w3_ref, b3_ref,
                          o_ref):
    """Whole MLP for one batch tile; all weights resident in VMEM."""
    # Layer 1: Linear(784 -> 512). bf16 MXU inputs (x already bf16), f32 acc.
    h1 = jnp.dot(x_ref[...], w1_ref[...], preferred_element_type=jnp.float32)
    h1 = h1 + b1_ref[...]
    h1 = jnp.where(h1 > 0, h1, 0.2 * h1)  # f32 LeakyReLU (v5e-safe epilogue)

    # Layer 2: Linear(512 -> 256). bf16 MXU inputs, f32 accumulation.
    h2 = jnp.dot(h1.astype(jnp.bfloat16), w2_ref[...],
                 preferred_element_type=jnp.float32)
    h2 = h2 + b2_ref[...]
    h2 = jnp.where(h2 > 0, h2, 0.2 * h2)

    # Layer 3: Linear(256 -> 1) as VPU multiply + lane reduction (no N=1 matmul).
    logit = jnp.sum(h2 * w3_ref[...], axis=-1, keepdims=True) + b3_ref[0, 0]
    prob = jax.nn.sigmoid(logit)                                   # (TB, 1) f32

    # Lane-dense store: broadcast across 128 lanes -> full unmasked vst,
    # wide contiguous writeback DMA. Wrapper slices [:, :1].
    o_ref[...] = jnp.broadcast_to(prob, o_ref.shape).astype(o_ref.dtype)


def _select_tile_b(batch, requested):
    """Batch rows per grid step.

    Aims for >= 2 grid steps whenever the batch allows it (so the 'parallel'
    batch axis can occupy both v7x TensorCores), never exceeds `requested`,
    and keeps the tile a multiple of 16 (bf16 sublane packing).
    """
    half = -(-batch // 2)                 # cdiv(batch, 2)
    half = ((half + 15) // 16) * 16       # round up to 16
    return max(16, min(requested, half))


@functools.partial(jax.jit, static_argnames=("tile_b",))
def discriminator_forward(img, params, *, tile_b=1024):
    """img: (B, 784) float32 -> (B, 1) float32 probabilities.

    tile_b: max batch rows per grid step (multiple of 16). 1024-2048 is a good
    choice on v6e/v7x with bf16 inputs; 256-512 is plenty on v5e (MXU-bound)
    and stays well inside its 16 MiB default scoped-VMEM limit. The actual
    tile is auto-capped to ~ceil(B/2) so the grid has >= 2 steps when possible.
    """
    w1, b1, w2, b2, w3, b3 = params
    B = img.shape[0]
    assert img.shape[1] == D_IN
    assert tile_b % 16 == 0, "tile_b must be a multiple of 16 (bf16 sublanes)"

    tb = _select_tile_b(B, tile_b)
    num_tiles = -(-B // tb)               # cdiv
    b_pad = num_tiles * tb

    # Single fused cast(+pad) of the input: no feature-dim padding, no extra
    # f32 copy of x materialized in HBM. Padded rows are zeros (sliced off).
    x = img.astype(jnp.bfloat16)
    if b_pad != B:
        x = jnp.pad(x, ((0, b_pad - B), (0, 0)))

    # MXU-layer weights in bf16 (halved DMA traffic / VMEM); biases + w3 row
    # stay f32 for the f32 epilogue.
    w1b = w1.astype(jnp.bfloat16)
    w2b = w2.astype(jnp.bfloat16)

    full = lambda i: (0, 0)  # weights/biases: same full block every grid step

    out = pl.pallas_call(
        _discriminator_kernel,
        out_shape=jax.ShapeDtypeStruct((b_pad, LANES), jnp.float32),
        grid_spec=pltpu.PrefetchScalarGridSpec(
            num_scalar_prefetch=0,
            grid=(num_tiles,),
            in_specs=[
                pl.BlockSpec((tb, D_IN), lambda i: (i, 0)),         # x tile (bf16)
                pl.BlockSpec((D_IN, D_H1), full),                   # W1 (bf16)
                pl.BlockSpec((1, D_H1), full),                      # b1 (f32)
                pl.BlockSpec((D_H1, D_H2), full),                   # W2 (bf16)
                pl.BlockSpec((1, D_H2), full),                      # b2 (f32)
                pl.BlockSpec((1, D_H2), full),                      # w3 row (f32)
                pl.BlockSpec(memory_space=pltpu.MemorySpace.SMEM),  # b3 scalar
            ],
            out_specs=pl.BlockSpec((tb, LANES), lambda i: (i, 0)),
        ),
        compiler_params=pltpu.CompilerParams(
            dimension_semantics=("parallel",)),  # batch tiles shard across TCs (v7x)
    )(x, w1b, b1, w2b, b2, w3, b3)

    return out[:B, :D_OUT]


def init_params(key):
    """Deterministic init matching torch.nn.Linear default U(-1/sqrt(fan_in), +).

    Weights stored as (in_features, out_features) (transposed vs. torch) except
    the last layer, kept as a (1, 256) row for the in-kernel VPU reduction.
    """
    ks = jax.random.split(key, 6)

    def uniform(k, shape, fan_in):
        bound = 1.0 / jnp.sqrt(fan_in)
        return jax.random.uniform(k, shape, jnp.float32, -bound, bound)

    w1 = uniform(ks[0], (D_IN, D_H1), D_IN)
    b1 = uniform(ks[1], (1, D_H1), D_IN)
    w2 = uniform(ks[2], (D_H1, D_H2), D_H1)
    b2 = uniform(ks[3], (1, D_H2), D_H1)
    w3 = uniform(ks[4], (1, D_H2), D_H2)      # row layout (1, 256)
    b3 = uniform(ks[5], (1, 1), D_H2)
    return (w1, b1, w2, b2, w3, b3)


def reference_forward(img, params):
    """Pure-JAX f32 reference of the torch Discriminator forward."""
    w1, b1, w2, b2, w3, b3 = params
    h = img @ w1 + b1
    h = jnp.where(h > 0, h, 0.2 * h)
    h = h @ w2 + b2
    h = jnp.where(h > 0, h, 0.2 * h)
    return jax.nn.sigmoid(h @ w3.T + b3)


if __name__ == "__main__":
    key = jax.random.PRNGKey(0)
    k_img, k_par = jax.random.split(key)

    B = 300  # not a tile multiple: exercises batch-pad + >=2-step grid paths
    img = jax.random.normal(k_img, (B, D_IN), jnp.float32)
    params = init_params(k_par)

    out = discriminator_forward(img, params)   # auto tile_b -> 160, grid of 2
    out = jax.block_until_ready(out)

    ref = reference_forward(img, params)
    assert out.shape == (B, 1)
    # bf16 MXU inputs (x, W1, W2) => loosened tolerance; outputs are sigmoid
    # probabilities in [0, 1].
    assert jnp.allclose(out, ref, atol=2e-2, rtol=2e-2), "mismatch vs JAX reference"

    print("KERNEL_OK")
</pallas_src>

<mosaic_0001>
module attributes {stable_mosaic.version = 11 : i64} {
  func.func @_discriminator_kernel(%arg0: i32, %arg1: memref<160x784xbf16, #tpu.memory_space<vmem>>, %arg2: memref<784x512xbf16, #tpu.memory_space<vmem>>, %arg3: memref<1x512xf32, #tpu.memory_space<vmem>>, %arg4: memref<512x256xbf16, #tpu.memory_space<vmem>>, %arg5: memref<1x256xf32, #tpu.memory_space<vmem>>, %arg6: memref<1x256xf32, #tpu.memory_space<vmem>>, %arg7: memref<1x1xf32, #tpu.memory_space<smem>>, %arg8: memref<160x128xf32, #tpu.memory_space<vmem>>) attributes {dimension_semantics = [#tpu.dimension_semantics<parallel>], iteration_bounds = array<i64: 2>, scalar_prefetch = 0 : i64, scratch_operands = 0 : i64, tpu.core_type = #tpu.core_type<tc>, window_params = [{transform_indices = @transform_0, window_bounds = array<i64: 160, 784>}, {pipeline_mode = #tpu.pipeline_mode<synchronous>, transform_indices = @transform_1, window_bounds = array<i64: 784, 512>}, {pipeline_mode = #tpu.pipeline_mode<synchronous>, transform_indices = @transform_2, window_bounds = array<i64: 1, 512>}, {pipeline_mode = #tpu.pipeline_mode<synchronous>, transform_indices = @transform_3, window_bounds = array<i64: 512, 256>}, {pipeline_mode = #tpu.pipeline_mode<synchronous>, transform_indices = @transform_4, window_bounds = array<i64: 1, 256>}, {pipeline_mode = #tpu.pipeline_mode<synchronous>, transform_indices = @transform_5, window_bounds = array<i64: 1, 256>}, {transform_indices = @transform_6, window_bounds = array<i64: 1, 1>}, {transform_indices = @transform_7, window_bounds = array<i64: 160, 128>}]} {
    %c0 = arith.constant 0 : index
    %c0_0 = arith.constant 0 : index
    %0 = vector.load %arg1[%c0, %c0_0] : memref<160x784xbf16, #tpu.memory_space<vmem>>, vector<160x784xbf16>
    %c0_1 = arith.constant 0 : index
    %c0_2 = arith.constant 0 : index
    %1 = vector.load %arg2[%c0_1, %c0_2] : memref<784x512xbf16, #tpu.memory_space<vmem>>, vector<784x512xbf16>
    %cst = arith.constant dense<0.000000e+00> : vector<160x512xf32>
    %2 = tpu.matmul %0, %1, %cst {dimension_numbers = #tpu.dot_dimension_numbers<[1], [0], [0], [1], [0, 0, 1, 1], [], []>} : vector<160x784xbf16>, vector<784x512xbf16>, vector<160x512xf32> -> vector<160x512xf32>
    %c0_3 = arith.constant 0 : index
    %c0_4 = arith.constant 0 : index
    %3 = vector.load %arg3[%c0_3, %c0_4] : memref<1x512xf32, #tpu.memory_space<vmem>>, vector<1x512xf32>
    %4 = vector.broadcast %3 : vector<1x512xf32> to vector<160x512xf32>
    %5 = arith.addf %2, %4 : vector<160x512xf32>
    %cst_5 = arith.constant 0.000000e+00 : f32
    %6 = vector.broadcast %cst_5 : f32 to vector<160x512xf32>
    %7 = arith.cmpf ogt, %5, %6 : vector<160x512xf32>
    %cst_6 = arith.constant 2.000000e-01 : f32
    %8 = vector.broadcast %cst_6 : f32 to vector<160x512xf32>
    %9 = arith.mulf %8, %5 : vector<160x512xf32>
    %10 = arith.select %7, %5, %9 : vector<160x512xi1>, vector<160x512xf32>
    %11 = arith.truncf %10 : vector<160x512xf32> to vector<160x512xbf16>
    %c0_7 = arith.constant 0 : index
    %c0_8 = arith.constant 0 : index
    %12 = vector.load %arg4[%c0_7, %c0_8] : memref<512x256xbf16, #tpu.memory_space<vmem>>, vector<512x256xbf16>
    %cst_9 = arith.constant dense<0.000000e+00> : vector<160x256xf32>
    %13 = tpu.matmul %11, %12, %cst_9 {dimension_numbers = #tpu.dot_dimension_numbers<[1], [0], [0], [1], [0, 0, 1, 1], [], []>} : vector<160x512xbf16>, vector<512x256xbf16>, vector<160x256xf32> -> vector<160x256xf32>
    %c0_10 = arith.constant 0 : index
    %c0_11 = arith.constant 0 : index
    %14 = vector.load %arg5[%c0_10, %c0_11] : memref<1x256xf32, #tpu.memory_space<vmem>>, vector<1x256xf32>
    %15 = vector.broadcast %14 : vector<1x256xf32> to vector<160x256xf32>
    %16 = arith.addf %13, %15 : vector<160x256xf32>
    %cst_12 = arith.constant 0.000000e+00 : f32
    %17 = vector.broadcast %cst_12 : f32 to vector<160x256xf32>
    %18 = arith.cmpf ogt, %16, %17 : vector<160x256xf32>
    %cst_13 = arith.constant 2.000000e-01 : f32
    %19 = vector.broadcast %cst_13 : f32 to vector<160x256xf32>
    %20 = arith.mulf %19, %16 : vector<160x256xf32>
    %21 = arith.select %18, %16, %20 : vector<160x256xi1>, vector<160x256xf32>
    %c0_14 = arith.constant 0 : index
    %c0_15 = arith.constant 0 : index
    %22 = vector.load %arg6[%c0_14, %c0_15] : memref<1x256xf32, #tpu.memory_space<vmem>>, vector<1x256xf32>
    %23 = vector.broadcast %22 : vector<1x256xf32> to vector<160x256xf32>
    %24 = arith.mulf %21, %23 : vector<160x256xf32>
    %cst_16 = arith.constant dense<0.000000e+00> : vector<160xf32>
    %25 = vector.multi_reduction <add>, %24, %cst_16 [1] : vector<160x256xf32> to vector<160xf32>
    %26 = vector.shape_cast %25 : vector<160xf32> to vector<160x1xf32>
    %c0_17 = arith.constant 0 : index
    %c0_18 = arith.constant 0 : index
    %27 = memref.load %arg7[%c0_17, %c0_18] : memref<1x1xf32, #tpu.memory_space<smem>>
    %28 = vector.broadcast %27 : f32 to vector<160x1xf32>
    %29 = arith.addf %26, %28 : vector<160x1xf32>
    %30 = arith.negf %29 : vector<160x1xf32>
    %31 = math.exp %30 : vector<160x1xf32>
    %cst_19 = arith.constant 1.000000e+00 : f32
    %32 = vector.broadcast %cst_19 : f32 to vector<160x1xf32>
    %33 = arith.addf %32, %31 : vector<160x1xf32>
    %34 = arith.divf %32, %33 : vector<160x1xf32>
    %35 = vector.shape_cast %34 : vector<160x1xf32> to vector<160x1xf32>
    %36 = vector.broadcast %35 : vector<160x1xf32> to vector<160x128xf32>
    %c0_20 = arith.constant 0 : index
    %c0_21 = arith.constant 0 : index
    %37 = vector.load %arg8[%c0_20, %c0_21] : memref<160x128xf32, #tpu.memory_space<vmem>>, vector<160x128xf32>
    tpu.vector_store %arg8[%c0_20, %c0_21], %36 {strides = array<i32>} : memref<160x128xf32, #tpu.memory_space<vmem>>, vector<160x128xf32>,
    return
  }
  func.func @transform_0(%arg0: i32) -> (i32, i32) {
    %c0_i32 = arith.constant 0 : i32
    %c0_i32_0 = arith.constant 0 : i32
    return %arg0, %c0_i32 : i32, i32
  }
  func.func @transform_1(%arg0: i32) -> (i32, i32) {
    %c0_i32 = arith.constant 0 : i32
    %c0_i32_0 = arith.constant 0 : i32
    %c0_i32_1 = arith.constant 0 : i32
    return %c0_i32, %c0_i32_0 : i32, i32
  }
  func.func @transform_2(%arg0: i32) -> (i32, i32) {
    %c0_i32 = arith.constant 0 : i32
    %c0_i32_0 = arith.constant 0 : i32
    %c0_i32_1 = arith.constant 0 : i32
    return %c0_i32, %c0_i32_0 : i32, i32
  }
  func.func @transform_3(%arg0: i32) -> (i32, i32) {
    %c0_i32 = arith.constant 0 : i32
    %c0_i32_0 = arith.constant 0 : i32
    %c0_i32_1 = arith.constant 0 : i32
    return %c0_i32, %c0_i32_0 : i32, i32
  }
  func.func @transform_4(%arg0: i32) -> (i32, i32) {
    %c0_i32 = arith.constant 0 : i32
    %c0_i32_0 = arith.constant 0 : i32
    %c0_i32_1 = arith.constant 0 : i32
    return %c0_i32, %c0_i32_0 : i32, i32
  }
  func.func @transform_5(%arg0: i32) -> (i32, i32) {
    %c0_i32 = arith.constant 0 : i32
    %c0_i32_0 = arith.constant 0 : i32
    %c0_i32_1 = arith.constant 0 : i32
    return %c0_i32, %c0_i32_0 : i32, i32
  }
  func.func @transform_6(%arg0: i32) -> (i32, i32) {
    %c0_i32 = arith.constant 0 : i32
    %c0_i32_0 = arith.constant 0 : i32
    %c0_i32_1 = arith.constant 0 : i32
    return %c0_i32, %c0_i32_0 : i32, i32
  }
  func.func @transform_7(%arg0: i32) -> (i32, i32) {
    %c0_i32 = arith.constant 0 : i32
    %c0_i32_0 = arith.constant 0 : i32
    return %arg0, %c0_i32 : i32, i32
  }
}

</mosaic_0001>

<bundles_post_ra>
// kernel: discriminator_forward.1
= control target key start
LH: loop header
LB: loop body
LE: loop exit
PB: predicated region body
PF: predicated region fallthrough
CT: control target
= control target key end

     0   :  { %s7293_s26 = smov 0   ;;  %s10362_s0 = inlined_call_operand.vmem [shape: bf16[320,784], index: 0, kind: input, shape index: {}]   ;;  %s10363_s1 = inlined_call_operand.vmem [shape: bf16[784,512], index: 1, kind: input, shape index: {}]   ;;  %s10364_s2 = inlined_call_operand.vmem [shape: f32[1,512], index: 2, kind: input, shape index: {}]   ;;  %s10365_s3 = inlined_call_operand.vmem [shape: bf16[512,256], index: 3, kind: input, shape index: {}]   ;;  %s10366_s4 = inlined_call_operand.vmem [shape: f32[1,256], index: 4, kind: input, shape index: {}]   ;;  %s10367_s5 = inlined_call_operand.vmem [shape: f32[1,256], index: 5, kind: input, shape index: {}]   ;;  %s10368_s6 = inlined_call_operand.<no memory space> [shape: f32[1,1], index: 6, kind: input, shape index: {}]   ;;  %s10369_s7 = inlined_call_operand.vmem [shape: f32[320,128], index: 7, kind: output, shape index: {}]  }
   0x1   :  { %12 = sst [smem:[#allocation2]] %s10368_s6 }
   0x2 LB: > { %s5432_s27 = sadd.s32 4294967295, %s7248_s26   ;;  %p5436_p0 = scmp.ge.s32.totalorder %s7248_s26, 1  ;;  %s7248_s26 = sphi %s7293_s26, %s18_s26  }
   0x3   : > { %p240_p1 = scmp.lt.s32.totalorder %s7248_s26, 3 }
   0x5   : > { %p241_p2 = pnand %p5436_p0, %p240_p1 }
   0x7   : > { %244 = sbr.rel (%p241_p2) target bundleno = 1771 (0x6eb), region = 48 }
   0xc   : > { %v5833_v0 = vld [vmem:[%s10363_s1 + $0xe0] sm:$0xf]  ;;  %v6921_v1 = vld [vmem:[%s10363_s1 + $0xec] sm:$0xf0]  ;;  %s273_s24 = smul.u32 20, %s5432_s27  ;;  %vm1903_vm0 = vcmask 130048  }
   0xd   : > { %v5961_v2 = vld [vmem:[%s10363_s1 + $0x1e0] sm:$0xf]  ;;  %v5834_v3 = vor.u32 %v6921_v1, %v5833_v0  ;;  %v6953_v4 = vld [vmem:[%s10363_s1 + $0x1ec] sm:$0xf0]  ;;  %s4954_s12 = sld [smem:[#allocation2]] }
   0xe   : > { %v6089_v5 = vld [vmem:[%s10363_s1 + $0x2e0] sm:$0xf]  ;;  %v6985_v6 = vld [vmem:[%s10363_s1 + $0x2ec] sm:$0xf0]  ;;  %v5962_v7 = vor.u32 %v6953_v4, %v5961_v2  ;;  %p274_p3 = scmp.lt.s32.totalorder %s273_s24, 39 }
   0xf   : > { %v6090_v8 = vor.u32 %v6985_v6, %v6089_v5  ;;  %v6217_v9 = vld [vmem:[%s10363_s1 + $0x3e0] sm:$0xf]  ;;  %v7017_v10 = vld [vmem:[%s10363_s1 + $0x3ec] sm:$0xf0]  ;;  %1934 = vmatpush.bf16.msra.mxu0 %v5834_v3 }
  0x10   : > { %v5817_v11 = vld [vmem:[%s10363_s1 + $0xc0] sm:$0xf]  ;;  %v6218_v12 = vor.u32 %v7017_v10, %v6217_v9  ;;  %v6917_v13 = vld [vmem:[%s10363_s1 + $0xcc] sm:$0xf0]  ;;  %1993 = vmatpush.bf16.msra.mxu1 %v5962_v7  ;;  %s10718_s24 = smov (!%p274_p3, %s273_s24), 39 }
  0x11   : > { %v5945_v14 = vld [vmem:[%s10363_s1 + $0x1c0] sm:$0xf]  ;;  %v6949_v15 = vld [vmem:[%s10363_s1 + $0x1cc] sm:$0xf0]  ;;  %2052 = vmatpush.bf16.msra.mxu2 %v6090_v8  ;;  %v5818_v16 = vor.u32 %v6917_v13, %v5817_v11  ;;  %s7151_s29 = smul.u32 28, %s10718_s24  ;;  %s5438_s13 = sshll.u32 %s10718_s24, 3 }
  0x12   : > { %v5946_v17 = vor.u32 %v6949_v15, %v5945_v14  ;;  %v6073_v18 = vld [vmem:[%s10363_s1 + $0x2c0] sm:$0xf]  ;;  %v6981_v19 = vld [vmem:[%s10363_s1 + $0x2cc] sm:$0xf0]  ;;  %2111 = vmatpush.bf16.msra.mxu3 %v6218_v12  ;;  %s10311_s15 = scalar_lea.vmem %s10369_s7, %s5438_s13 }
  0x13   : > { %v6201_v20 = vld [vmem:[%s10363_s1 + $0x3c0] sm:$0xf]  ;;  %v6074_v21 = vor.u32 %v6981_v19, %v6073_v18  ;;  %v7013_v22 = vld [vmem:[%s10363_s1 + $0x3cc] sm:$0xf0]  ;;  %1935 = vmatpush.bf16.msra.mxu0 %v5818_v16  ;;  %s7522_s17 = scalar_lea.vmem %s10362_s0, %s7151_s29 }
  0x14   : > { %v5801_v23 = vld [vmem:[%s10363_s1 + $0xa0] sm:$0xf]  ;;  %v6913_v24 = vld [vmem:[%s10363_s1 + $0xac] sm:$0xf0]  ;;  %v6202_v25 = vor.u32 %v7013_v22, %v6201_v20  ;;  %1994 = vmatpush.bf16.msra.mxu1 %v5946_v17 }
  0x15   : > { %v5929_v26 = vld [vmem:[%s10363_s1 + $0x1a0] sm:$0xf]  ;;  %v6945_v27 = vld [vmem:[%s10363_s1 + $0x1ac] sm:$0xf0]  ;;  %v5802_v29 = vor.u32 %v6913_v24, %v5801_v23  ;;  %2053 = vmatpush.bf16.msra.mxu2 %v6074_v21 }
  0x16   : > { %v6057_v28 = vld [vmem:[%s10363_s1 + $0x2a0] sm:$0xf]  ;;  %v6977_v30 = vld [vmem:[%s10363_s1 + $0x2ac] sm:$0xf0]  ;;  %v5930_v33 = vor.u32 %v6945_v27, %v5929_v26  ;;  %2112 = vmatpush.bf16.msra.mxu3 %v6202_v25 }
  0x17   : > { %v6185_v31 = vld [vmem:[%s10363_s1 + $0x3a0] sm:$0xf]  ;;  %v7009_v32 = vld [vmem:[%s10363_s1 + $0x3ac] sm:$0xf0]  ;;  %v6058_v34 = vor.u32 %v6977_v30, %v6057_v28  ;;  %1936 = vmatpush.bf16.msra.mxu0 %v5802_v29 }
  0x18   : > { %v5785_v35 = vld [vmem:[%s10363_s1 + $0x80] sm:$0xf]  ;;  %v6909_v36 = vld [vmem:[%s10363_s1 + $0x8c] sm:$0xf0]  ;;  %v6186_v38 = vor.u32 %v7009_v32, %v6185_v31  ;;  %1995 = vmatpush.bf16.msra.mxu1 %v5930_v33  ;;  %v6919_v31 = vld [vmem:[%s10363_s1 + $0xe4] sm:$0xf] }
  0x19   : > { %v5913_v37 = vld [vmem:[%s10363_s1 + $0x180] sm:$0xf]  ;;  %v6941_v39 = vld [vmem:[%s10363_s1 + $0x18c] sm:$0xf0]  ;;  %v5786_v44 = vor.u32 %v6909_v36, %v5785_v35  ;;  %2054 = vmatpush.bf16.msra.mxu2 %v6058_v34  ;;  %v5835_v32 = vld [vmem:[%s10363_s1 + $0xf0] sm:$0xf0] }
  0x1a   : > { %v6041_v40 = vld [vmem:[%s10363_s1 + $0x280] sm:$0xf]  ;;  %v6973_v41 = vld [vmem:[%s10363_s1 + $0x28c] sm:$0xf0]  ;;  %v5914_v45 = vor.u32 %v6941_v39, %v5913_v37  ;;  %2113 = vmatpush.bf16.msra.mxu3 %v6186_v38 }
  0x1b   : > { %v6169_v42 = vld [vmem:[%s10363_s1 + $0x380] sm:$0xf]  ;;  %v7005_v43 = vld [vmem:[%s10363_s1 + $0x38c] sm:$0xf0]  ;;  %v6042_v46 = vor.u32 %v6973_v41, %v6041_v40  ;;  %1937 = vmatpush.bf16.msra.mxu0 %v5786_v44  ;;  %v6915_v41 = vld [vmem:[%s10363_s1 + $0xc4] sm:$0xf] }
  0x1c   : > { %v5769_v47 = vld [vmem:[%s10363_s1 + $0x60] sm:$0xf]  ;;  %v6905_v48 = vld [vmem:[%s10363_s1 + $0x6c] sm:$0xf0]  ;;  %v6170_v50 = vor.u32 %v7005_v43, %v6169_v42  ;;  %1996 = vmatpush.bf16.msra.mxu1 %v5914_v45  ;;  %v5819_v42 = vld [vmem:[%s10363_s1 + $0xd0] sm:$0xf0] }
  0x1d   : > { %v5897_v49 = vld [vmem:[%s10363_s1 + $0x160] sm:$0xf]  ;;  %v6937_v51 = vld [vmem:[%s10363_s1 + $0x16c] sm:$0xf0]  ;;  %v5770_v56 = vor.u32 %v6905_v48, %v5769_v47  ;;  %2055 = vmatpush.bf16.msra.mxu2 %v6042_v46  ;;  %v6824_v44 = vld [vmem:[%s7522_s17 + $0x18] sm:$0xf0]  ;;  %v5838_v46 = vor.u32 %v6919_v31, %v5835_v32 }
  0x1e   : > { %v6025_v52 = vld [vmem:[%s10363_s1 + $0x260] sm:$0xf]  ;;  %v6969_v53 = vld [vmem:[%s10363_s1 + $0x26c] sm:$0xf0]  ;;  %v5898_v57 = vor.u32 %v6937_v51, %v5897_v49  ;;  %2114 = vmatpush.bf16.msra.mxu3 %v6170_v50  ;;  %v6821_v45 = vld [vmem:[%s7522_s17 + $0x4] sm:$0xf] }
  0x1f   : > { %v6153_v54 = vld [vmem:[%s10363_s1 + $0x360] sm:$0xf]  ;;  %v7001_v55 = vld [vmem:[%s10363_s1 + $0x36c] sm:$0xf0]  ;;  %v6026_v58 = vor.u32 %v6969_v53, %v6025_v52  ;;  %1938 = vmatpush.bf16.msra.mxu0 %v5770_v56  ;;  %v5449_v49 = vld [vmem:[%s7522_s17 + $0x8] sm:$0xf] }
  0x20   : > { %v5753_v59 = vld [vmem:[%s10363_s1 + $0x40] sm:$0xf]  ;;  %v6901_v60 = vld [vmem:[%s10363_s1 + $0x4c] sm:$0xf0]  ;;  %v6154_v62 = vor.u32 %v7001_v55, %v6153_v54  ;;  %1997 = vmatpush.bf16.msra.mxu1 %v5898_v57  ;;  %v6825_v50 = vld [vmem:[%s7522_s17 + $0x20] sm:$0xf0] }
  0x21   : > { %v5881_v61 = vld [vmem:[%s10363_s1 + $0x140] sm:$0xf]  ;;  %v6933_v63 = vld [vmem:[%s10363_s1 + $0x14c] sm:$0xf0]  ;;  %v5754_v4 = vor.u32 %v6901_v60, %v5753_v59  ;;  %2056 = vmatpush.bf16.msra.mxu2 %v6026_v58  ;;  %v7543_v52 = vor.u32 %v6825_v50, %v5449_v49  ;;  %v6822_v53 = vld [vmem:[%s7522_s17 + $0xc] sm:$0xf]  ;;  %v5822_v60 = vor.u32 %v6915_v41, %v5819_v42 }
  0x22   : > { %v6009_v0 = vld [vmem:[%s10363_s1 + $0x240] sm:$0xf]  ;;  %v6965_v1 = vld [vmem:[%s10363_s1 + $0x24c] sm:$0xf0]  ;;  %v5882_v6 = vor.u32 %v6933_v63, %v5881_v61  ;;  %2115 = vmatpush.bf16.msra.mxu3 %v6154_v62  ;;  %v5451_v54 = vld [vmem:[%s7522_s17 + $0x24] sm:$0xf0] }
  0x23   : > { %v6137_v2 = vld [vmem:[%s10363_s1 + $0x340] sm:$0xf]  ;;  %v6997_v3 = vld [vmem:[%s10363_s1 + $0x34c] sm:$0xf0]  ;;  %v6010_v7 = vor.u32 %v6965_v1, %v6009_v0  ;;  %1939 = vmatpush.bf16.msra.mxu0 %v5754_v4  ;;  %v7547_v56 = vor.u32 %v6822_v53, %v5451_v54  ;;  %v5803_v4 = vld [vmem:[%s10363_s1 + $0xb0] sm:$0xf0] }
  0x24   : > { %v5737_v5 = vld [vmem:[%s10363_s1 + $0x20] sm:$0xf]  ;;  %v6897_v8 = vld [vmem:[%s10363_s1 + $0x2c] sm:$0xf0]  ;;  %v6138_v11 = vor.u32 %v6997_v3, %v6137_v2  ;;  %1998 = vmatpush.bf16.msra.mxu1 %v5882_v6  ;;  %v6911_v3 = vld [vmem:[%s10363_s1 + $0xa4] sm:$0xf] }
  0x25   : > { %v5865_v9 = vld [vmem:[%s10363_s1 + $0x120] sm:$0xf]  ;;  %v6929_v10 = vld [vmem:[%s10363_s1 + $0x12c] sm:$0xf0]  ;;  %v5738_v16 = vor.u32 %v6897_v8, %v5737_v5  ;;  %2057 = vmatpush.bf16.msra.mxu2 %v6010_v7  ;;  %v5806_v8 = vor.u32 %v6911_v3, %v5803_v4  ;;  %v5505_v32 = vld [vmem:[%s7522_s17 + $0x78] sm:$0xf] }
  0x26   : > { %v5993_v12 = vld [vmem:[%s10363_s1 + $0x220] sm:$0xf]  ;;  %v6961_v13 = vld [vmem:[%s10363_s1 + $0x22c] sm:$0xf0]  ;;  %v5866_v19 = vor.u32 %v6929_v10, %v5865_v9  ;;  %2116 = vmatpush.bf16.msra.mxu3 %v6138_v11  ;;  %v5469_v10 = vld [vmem:[%s7522_s17 + $0x38] sm:$0xf] }
  0x27   : > { %v6121_v14 = vld [vmem:[%s10363_s1 + $0x320] sm:$0xf]  ;;  %v6993_v15 = vld [vmem:[%s10363_s1 + $0x32c] sm:$0xf0]  ;;  %v5994_v20 = vor.u32 %v6961_v13, %v5993_v12  ;;  %1940 = vmatpush.bf16.msra.mxu0 %v5738_v16  ;;  %v6831_v11 = vld [vmem:[%s7522_s17 + $0x50] sm:$0xf0] }
  0x28   : > { %v5721_v17 = vld [vmem:[%s10363_s1] sm:$0xf]  ;;  %v6893_v18 = vld [vmem:[%s10363_s1 + $0xc] sm:$0xf0]  ;;  %v6122_v24 = vor.u32 %v6993_v15, %v6121_v14  ;;  %1999 = vmatpush.bf16.msra.mxu1 %v5866_v19  ;;  %v6828_v12 = vld [vmem:[%s7522_s17 + $0x3c] sm:$0xf] }
  0x29   : > { %v5849_v21 = vld [vmem:[%s10363_s1 + $0x100] sm:$0xf]  ;;  %v6925_v22 = vld [vmem:[%s10363_s1 + $0x10c] sm:$0xf0]  ;;  %v5722_v30 = vor.u32 %v6893_v18, %v5721_v17  ;;  %2058 = vmatpush.bf16.msra.mxu2 %v5994_v20  ;;  %v5471_v13 = vld [vmem:[%s7522_s17 + $0x54] sm:$0xf0]  ;;  %v7591_v18 = vor.u32 %v6831_v11, %v5469_v10 }
  0x2a   : > { %v5977_v23 = vld [vmem:[%s10363_s1 + $0x200] sm:$0xf]  ;;  %v6957_v25 = vld [vmem:[%s10363_s1 + $0x20c] sm:$0xf0]  ;;  %v5850_v33 = vor.u32 %v6925_v22, %v5849_v21  ;;  %2117 = vmatpush.bf16.msra.mxu3 %v6122_v24  ;;  %v6832_v15 = vld [vmem:[%s7522_s17 + $0x58] sm:$0xf0]  ;;  %v7593_v19 = vor.u32 %v6828_v12, %v5471_v13 }
  0x2b   : > { %v6105_v26 = vld [vmem:[%s10363_s1 + $0x300] sm:$0xf]  ;;  %v6989_v27 = vld [vmem:[%s10363_s1 + $0x30c] sm:$0xf0]  ;;  %v5978_v34 = vor.u32 %v6957_v25, %v5977_v23  ;;  %1941 = vmatpush.bf16.msra.mxu0 %v5722_v30  ;;  %v6829_v16 = vld [vmem:[%s7522_s17 + $0x44] sm:$0xf] }
  0x2c   : > { %v6489_v28 = vld [vmem:[%s10363_s1 + $0x600] sm:$0xf]  ;;  %v7085_v29 = vld [vmem:[%s10363_s1 + $0x60c] sm:$0xf0]  ;;  %v6106_v38 = vor.u32 %v6989_v27, %v6105_v26  ;;  %2000 = vmatpush.bf16.msra.mxu1 %v5850_v33  ;;  %10511 = vst [vmem:[#allocation5_spill] sm:$0xff] %v7591_v18 }
  0x2d   : > { %v6345_v35 = vld [vmem:[%s10363_s1 + $0x4e0] sm:$0xf]  ;;  %v7049_v36 = vld [vmem:[%s10363_s1 + $0x4ec] sm:$0xf0]  ;;  %v6490_v39 = vor.u32 %v7085_v29, %v6489_v28  ;;  %2059 = vmatpush.bf16.msra.mxu2 %v5978_v34  ;;  %10512 = vst [vmem:[#allocation6_spill] sm:$0xff] %v7593_v19 }
  0x2e   : > { %v6473_v37 = vld [vmem:[%s10363_s1 + $0x5e0] sm:$0xf]  ;;  %v7081_v40 = vld [vmem:[%s10363_s1 + $0x5ec] sm:$0xf0]  ;;  %v6346_v55 = vor.u32 %v7049_v36, %v6345_v35  ;;  %2118 = vmatpush.bf16.msra.mxu3 %v6106_v38  ;;  %v6907_v24 = vld [vmem:[%s10363_s1 + $0x84] sm:$0xf] }
  0x2f   : > { %v5441_v43 = vld [vmem:[%s7522_s17] sm:$0xf]  ;;  %v6474_v57 = vor.u32 %v7081_v40, %v6473_v37  ;;  %v7045_v59 = vld [vmem:[%s10363_s1 + $0x4cc] sm:$0xf0]  ;;  %v5787_v26 = vld [vmem:[%s10363_s1 + $0x90] sm:$0xf0] }
  0x30   : > { %v7536_v47 = vor.u32 %v6824_v44, %v5441_v43  ;;  %v5443_v48 = vld [vmem:[%s7522_s17 + $0x1c] sm:$0xf0]  ;;  %v7077_v62 = vld [vmem:[%s10363_s1 + $0x5cc] sm:$0xf0]  ;;  %2060 = vmatmul.bf16.vlgmr.msra.gmra.mxu2 %v7543_v52  ;;  %2170 = vmatpush.bf16.msrb.mxu0 %v6346_v55  ;;  %v5790_v27 = vor.u32 %v6907_v24, %v5787_v26  ;;  %v6838_v29 = vld [vmem:[%s7522_s17 + $0x88] sm:$0xf0] }
  0x31   : > { %v7541_v51 = vor.u32 %v6821_v45, %v5443_v48  ;;  %2295 = vmatpush.bf16.msrb.mxu2 %v6490_v39  ;;  %v6329_v58 = vld [vmem:[%s10363_s1 + $0x4c0] sm:$0xf]  ;;  %2119 = vmatmul.bf16.vlgmr.msra.gmra.mxu3 %v7547_v56  ;;  %v7041_v2 = vld [vmem:[%s10363_s1 + $0x4ac] sm:$0xf0]  ;;  %v6835_v30 = vld [vmem:[%s7522_s17 + $0x74] sm:$0xf] }
  0x32   : > { %10509 = vst [vmem:[#allocation3_spill] sm:$0xff] %v7536_v47  ;;  %1942 = vmatmul.bf16.vlgmr.msra.gmra.mxu0 %v7536_v47  ;;  %2347 = vmatpush.bf16.msrb.mxu3 %v5838_v46  ;;  %v6457_v61 = vld [vmem:[%s10363_s1 + $0x5c0] sm:$0xf]  ;;  %v6330_v63 = vor.u32 %v7045_v59, %v6329_v58  ;;  %v7073_v6 = vld [vmem:[%s10363_s1 + $0x5ac] sm:$0xf0] }
  0x33   : > { %10510 = vst [vmem:[#allocation4_spill] sm:$0xff] %v7541_v51  ;;  %2001 = vmatmul.bf16.vlgmr.msra.gmra.mxu1 %v7541_v51  ;;  %v6458_v0 = vor.u32 %v7077_v62, %v6457_v61  ;;  %v6313_v1 = vld [vmem:[%s10363_s1 + $0x4a0] sm:$0xf]  ;;  %v7037_v23 = vld [vmem:[%s10363_s1 + $0x48c] sm:$0xf0] }
  0x34   : > { %2229 = vmatpush.bf16.msrb.mxu1 %v6474_v57  ;;  %v6441_v5 = vld [vmem:[%s10363_s1 + $0x5a0] sm:$0xf]  ;;  %2171 = vmatpush.bf16.msrb.mxu0 %v6330_v63  ;;  %v6314_v7 = vor.u32 %v7041_v2, %v6313_v1  ;;  %v5497_v28 = vld [vmem:[%s7522_s17 + $0x70] sm:$0xf]  ;;  %v6839_v33 = vld [vmem:[%s7522_s17 + $0x90] sm:$0xf0] }
  0x35   : > { %v6442_v9 = vor.u32 %v7073_v6, %v6441_v5  ;;  %v5477_v14 = vld [vmem:[%s7522_s17 + $0x40] sm:$0xf]  ;;  %v5499_v31 = vld [vmem:[%s7522_s17 + $0x8c] sm:$0xf0]  ;;  %v6836_v34 = vld [vmem:[%s7522_s17 + $0x7c] sm:$0xf]  ;;  %v7623_v36 = vor.u32 %v6838_v29, %v5497_v28  ;;  %v7627_v38 = vor.u32 %v6839_v33, %v5505_v32 }
  0x36   : > { %2348 = vmatpush.bf16.msrb.mxu3 %v5822_v60  ;;  %v5479_v17 = vld [vmem:[%s7522_s17 + $0x5c] sm:$0xf0]  ;;  %v7595_v20 = vor.u32 %v6832_v15, %v5477_v14  ;;  %v5507_v35 = vld [vmem:[%s7522_s17 + $0x94] sm:$0xf0]  ;;  %v7625_v37 = vor.u32 %v6835_v30, %v5499_v31  ;;  %v7069_v41 = vld [vmem:[%s10363_s1 + $0x58c] sm:$0xf0] }
  0x37   : > { %v7597_v21 = vor.u32 %v6829_v16, %v5479_v17  ;;  %v6297_v22 = vld [vmem:[%s10363_s1 + $0x480] sm:$0xf]  ;;  %10514 = vst [vmem:[#allocation8_spill] sm:$0xff] %v7623_v36  ;;  %v7629_v39 = vor.u32 %v6836_v34, %v5507_v35  ;;  %v5525_v43 = vld [vmem:[%s7522_s17 + $0xa8] sm:$0xf] }
  0x38   : > { %2230 = vmatpush.bf16.msrb.mxu1 %v6458_v0  ;;  %2172 = vmatpush.bf16.msrb.mxu0 %v6314_v7  ;;  %v6298_v25 = vor.u32 %v7037_v23, %v6297_v22  ;;  %10515 = vst [vmem:[#allocation9_spill] sm:$0xff] %v7625_v37  ;;  %v6425_v40 = vld [vmem:[%s10363_s1 + $0x580] sm:$0xf]  ;;  %v6845_v44 = vld [vmem:[%s7522_s17 + $0xc0] sm:$0xf0] }
  0x39   : > { %10513 = vst [vmem:[#allocation7_spill] sm:$0xff] %v7597_v21  ;;  %v6426_v42 = vor.u32 %v7069_v41, %v6425_v40  ;;  %v6842_v45 = vld [vmem:[%s7522_s17 + $0xac] sm:$0xf]  ;;  %v5527_v46 = vld [vmem:[%s7522_s17 + $0xc4] sm:$0xf0]  ;;  %v7649_v54 = vor.u32 %v6845_v44, %v5525_v43 }
  0x3a   : > { %2349 = vmatpush.bf16.msrb.mxu3 %v5806_v8  ;;  %10516 = vst [vmem:[#allocation10_spill] sm:$0xff] %v7629_v39  ;;  %v5533_v48 = vld [vmem:[%s7522_s17 + $0xb0] sm:$0xf]  ;;  %v6846_v49 = vld [vmem:[%s7522_s17 + $0xc8] sm:$0xf0]  ;;  %v7651_v55 = vor.u32 %v6842_v45, %v5527_v46 }
  0x3b   : > { %v6843_v50 = vld [vmem:[%s7522_s17 + $0xb4] sm:$0xf]  ;;  %v5535_v53 = vld [vmem:[%s7522_s17 + $0xcc] sm:$0xf0]  ;;  %10517 = vst [vmem:[#allocation11_spill] sm:$0xff] %v7649_v54  ;;  %v7653_v57 = vor.u32 %v6846_v49, %v5533_v48 }
  0x3c   : > { %2231 = vmatpush.bf16.msrb.mxu1 %v6442_v9  ;;  %2173 = vmatpush.bf16.msrb.mxu0 %v6298_v25  ;;  %10518 = vst [vmem:[#allocation12_spill] sm:$0xff] %v7651_v55  ;;  %v7655_v58 = vor.u32 %v6843_v50, %v5535_v53  ;;  %v6281_v59 = vld [vmem:[%s10363_s1 + $0x460] sm:$0xf]  ;;  %v7033_v60 = vld [vmem:[%s10363_s1 + $0x46c] sm:$0xf0] }
  0x3d   : > { %v6903_v61 = vld [vmem:[%s10363_s1 + $0x64] sm:$0xf]  ;;  %v6282_v62 = vor.u32 %v7033_v60, %v6281_v59  ;;  %v5771_v63 = vld [vmem:[%s10363_s1 + $0x70] sm:$0xf0]  ;;  %v6409_v0 = vld [vmem:[%s10363_s1 + $0x560] sm:$0xf] }
  0x3e   : > { %2350 = vmatpush.bf16.msrb.mxu3 %v5790_v27  ;;  %v7065_v1 = vld [vmem:[%s10363_s1 + $0x56c] sm:$0xf0]  ;;  %v5774_v2 = vor.u32 %v6903_v61, %v5771_v63  ;;  %v5553_v4 = vld [vmem:[%s7522_s17 + $0xe0] sm:$0xf]  ;;  %v6852_v5 = vld [vmem:[%s7522_s17 + $0xf8] sm:$0xf0] }
  0x3f   : > { %v6410_v3 = vor.u32 %v7065_v1, %v6409_v0  ;;  %v6849_v6 = vld [vmem:[%s7522_s17 + $0xe4] sm:$0xf]  ;;  %v5555_v7 = vld [vmem:[%s7522_s17 + $0xfc] sm:$0xf0]  ;;  %v5561_v8 = vld [vmem:[%s7522_s17 + $0xe8] sm:$0xf]  ;;  %v7687_v12 = vor.u32 %v6852_v5, %v5553_v4 }
  0x40   : > { %2065 = vmatmul.bf16.gmra.mxu2 %v7595_v20  ;;  %2232 = vmatpush.bf16.msrb.mxu1 %v6426_v42  ;;  %v6853_v9 = vld [vmem:[%s7522_s17 + $0x100] sm:$0xf0]  ;;  %v6850_v10 = vld [vmem:[%s7522_s17 + $0xec] sm:$0xf]  ;;  %v5563_v11 = vld [vmem:[%s7522_s17 + $0x104] sm:$0xf0]  ;;  %v7689_v13 = vor.u32 %v6849_v6, %v5555_v7 }
  0x41   : > { %2124 = vmatmul.bf16.gmra.mxu3 %v7597_v21  ;;  %2174 = vmatpush.bf16.msrb.mxu0 %v6282_v62  ;;  %10519 = vst [vmem:[#allocation13_spill] sm:$0xff] %v7687_v12  ;;  %v7691_v14 = vor.u32 %v6853_v9, %v5561_v8  ;;  %v7693_v15 = vor.u32 %v6850_v10, %v5563_v11  ;;  %v6265_v16 = vld [vmem:[%s10363_s1 + $0x440] sm:$0xf]  ;;  %v7029_v17 = vld [vmem:[%s10363_s1 + $0x44c] sm:$0xf0] }
  0x42   : > { %1947 = vmatmul.bf16.gmra.mxu0 %v7591_v18  ;;  %2351 = vmatpush.bf16.msrb.mxu3 %v5774_v2  ;;  %10520 = vst [vmem:[#allocation14_spill] sm:$0xff] %v7689_v13  ;;  %v6899_v22 = vld [vmem:[%s10363_s1 + $0x44] sm:$0xf]  ;;  %v6266_v23 = vor.u32 %v7029_v17, %v6265_v16  ;;  %v5755_v24 = vld [vmem:[%s10363_s1 + $0x50] sm:$0xf0] }
  0x43   : > { %2006 = vmatmul.bf16.gmra.mxu1 %v7593_v19  ;;  %10521 = vst [vmem:[#allocation15_spill] sm:$0xff] %v7693_v15  ;;  %v6393_v25 = vld [vmem:[%s10363_s1 + $0x540] sm:$0xf]  ;;  %v7061_v26 = vld [vmem:[%s10363_s1 + $0x54c] sm:$0xf0]  ;;  %v5758_v27 = vor.u32 %v6899_v22, %v5755_v24 }
  0x44   : > { %2233 = vmatpush.bf16.msrb.mxu1 %v6410_v3  ;;  %v6394_v28 = vor.u32 %v7061_v26, %v6393_v25  ;;  %v5581_v29 = vld [vmem:[%s7522_s17 + $0x118] sm:$0xf]  ;;  %v6859_v30 = vld [vmem:[%s7522_s17 + $0x130] sm:$0xf0]  ;;  %v6856_v31 = vld [vmem:[%s7522_s17 + $0x11c] sm:$0xf] }
  0x45   : > { %2175 = vmatpush.bf16.msrb.mxu0 %v6266_v23  ;;  %v5583_v32 = vld [vmem:[%s7522_s17 + $0x134] sm:$0xf0]  ;;  %v5589_v33 = vld [vmem:[%s7522_s17 + $0x120] sm:$0xf]  ;;  %v6860_v34 = vld [vmem:[%s7522_s17 + $0x138] sm:$0xf0]  ;;  %v7725_v41 = vor.u32 %v6859_v30, %v5581_v29 }
  0x46   : > { %2352 = vmatpush.bf16.msrb.mxu3 %v5758_v27  ;;  %v6857_v35 = vld [vmem:[%s7522_s17 + $0x124] sm:$0xf]  ;;  %v5591_v40 = vld [vmem:[%s7522_s17 + $0x13c] sm:$0xf0]  ;;  %v7727_v42 = vor.u32 %v6856_v31, %v5583_v32  ;;  %v7729_v43 = vor.u32 %v6860_v34, %v5589_v33  ;;  %v7025_v46 = vld [vmem:[%s10363_s1 + $0x42c] sm:$0xf0] }
  0x47   : > { %10522 = vst [vmem:[#allocation16_spill] sm:$0xff] %v7725_v41  ;;  %v7731_v44 = vor.u32 %v6857_v35, %v5591_v40  ;;  %v6249_v45 = vld [vmem:[%s10363_s1 + $0x420] sm:$0xf]  ;;  %v6895_v48 = vld [vmem:[%s10363_s1 + $0x24] sm:$0xf] }
  0x48   : > { %2234 = vmatpush.bf16.msrb.mxu1 %v6394_v28  ;;  %10523 = vst [vmem:[#allocation17_spill] sm:$0xff] %v7727_v42  ;;  %v6250_v49 = vor.u32 %v7025_v46, %v6249_v45  ;;  %v5739_v50 = vld [vmem:[%s10363_s1 + $0x30] sm:$0xf0]  ;;  %v6377_v53 = vld [vmem:[%s10363_s1 + $0x520] sm:$0xf] }
  0x49   : > { %10524 = vst [vmem:[#allocation18_spill] sm:$0xff] %v7729_v43  ;;  %v7057_v59 = vld [vmem:[%s10363_s1 + $0x52c] sm:$0xf0]  ;;  %v5742_v60 = vor.u32 %v6895_v48, %v5739_v50  ;;  %v6866_v63 = vld [vmem:[%s7522_s17 + $0x168] sm:$0xf0] }
  0x4a   : > { %10525 = vst [vmem:[#allocation19_spill] sm:$0xff] %v7731_v44  ;;  %v6378_v61 = vor.u32 %v7057_v59, %v6377_v53  ;;  %2176 = vmatpush.bf16.msrb.mxu0 %v6250_v49  ;;  %v5609_v62 = vld [vmem:[%s7522_s17 + $0x150] sm:$0xf]  ;;  %v6863_v0 = vld [vmem:[%s7522_s17 + $0x154] sm:$0xf] }
  0x4b   : > { %2353 = vmatpush.bf16.msrb.mxu3 %v5742_v60  ;;  %v5611_v1 = vld [vmem:[%s7522_s17 + $0x16c] sm:$0xf0]  ;;  %v5617_v2 = vld [vmem:[%s7522_s17 + $0x158] sm:$0xf]  ;;  %v6867_v3 = vld [vmem:[%s7522_s17 + $0x170] sm:$0xf0]  ;;  %v7763_v6 = vor.u32 %v6866_v63, %v5609_v62 }
  0x4c   : > { %2235 = vmatpush.bf16.msrb.mxu1 %v6378_v61  ;;  %v6864_v4 = vld [vmem:[%s7522_s17 + $0x15c] sm:$0xf]  ;;  %v5619_v5 = vld [vmem:[%s7522_s17 + $0x174] sm:$0xf0]  ;;  %v7765_v7 = vor.u32 %v6863_v0, %v5611_v1  ;;  %v7767_v8 = vor.u32 %v6867_v3, %v5617_v2  ;;  %v5637_v10 = vld [vmem:[%s7522_s17 + $0x188] sm:$0xf] }
  0x4d   : > { %10526 = vst [vmem:[#allocation20_spill] sm:$0xff] %v7763_v6  ;;  %v7769_v9 = vor.u32 %v6864_v4, %v5619_v5  ;;  %v6873_v11 = vld [vmem:[%s7522_s17 + $0x1a0] sm:$0xf0]  ;;  %v6870_v16 = vld [vmem:[%s7522_s17 + $0x18c] sm:$0xf] }
  0x4e   : > { %10527 = vst [vmem:[#allocation21_spill] sm:$0xff] %v7765_v7  ;;  %v5639_v17 = vld [vmem:[%s7522_s17 + $0x1a4] sm:$0xf0]  ;;  %v5645_v22 = vld [vmem:[%s7522_s17 + $0x190] sm:$0xf]  ;;  %v7783_v26 = vor.u32 %v6873_v11, %v5637_v10 }
  0x4f   : > { %10528 = vst [vmem:[#allocation22_spill] sm:$0xff] %v7767_v8  ;;  %v6874_v23 = vld [vmem:[%s7522_s17 + $0x1a8] sm:$0xf0]  ;;  %v6871_v24 = vld [vmem:[%s7522_s17 + $0x194] sm:$0xf]  ;;  %v7785_v27 = vor.u32 %v6870_v16, %v5639_v17 }
  0x50   : > { %2070 = vmatmul.bf16.gmra.mxu2 %v7627_v38  ;;  %10529 = vst [vmem:[#allocation23_spill] sm:$0xff] %v7769_v9  ;;  %v5647_v25 = vld [vmem:[%s7522_s17 + $0x1ac] sm:$0xf0]  ;;  %v7787_v28 = vor.u32 %v6874_v23, %v5645_v22  ;;  %v6233_v30 = vld [vmem:[%s10363_s1 + $0x400] sm:$0xf] }
  0x51   : > { %2129 = vmatmul.bf16.gmra.mxu3 %v7629_v39  ;;  %10530 = vst [vmem:[#allocation24_spill] sm:$0xff] %v7783_v26  ;;  %v7789_v29 = vor.u32 %v6871_v24, %v5647_v25  ;;  %v7021_v31 = vld [vmem:[%s10363_s1 + $0x40c] sm:$0xf0]  ;;  %v6891_v32 = vld [vmem:[%s10363_s1 + $0x4] sm:$0xf] }
  0x52   : > { %1952 = vmatmul.bf16.gmra.mxu0 %v7623_v36  ;;  %10531 = vst [vmem:[#allocation25_spill] sm:$0xff] %v7785_v27  ;;  %v6234_v33 = vor.u32 %v7021_v31, %v6233_v30  ;;  %v5723_v34 = vld [vmem:[%s10363_s1 + $0x10] sm:$0xf0]  ;;  %v6361_v40 = vld [vmem:[%s10363_s1 + $0x500] sm:$0xf] }
  0x53   : > { %2011 = vmatmul.bf16.gmra.mxu1 %v7625_v37  ;;  %10532 = vst [vmem:[#allocation26_spill] sm:$0xff] %v7787_v28  ;;  %v5726_v35 = vor.u32 %v6891_v32, %v5723_v34  ;;  %v7053_v45 = vld [vmem:[%s10363_s1 + $0x50c] sm:$0xf0]  ;;  %v563_v48 = vld [vmem:[%s10364_s2] sm:$0xf] }
  0x54   : > { %10533 = vst [vmem:[#allocation27_spill] sm:$0xff] %v7789_v29  ;;  %2177 = vmatpush.bf16.msrb.mxu0 %v6234_v33  ;;  %v6362_v46 = vor.u32 %v7053_v45, %v6361_v40  ;;  %v7816_v49 = vperm.slane %v563_v48, 0  ;;  %v5665_v50 = vld [vmem:[%s7522_s17 + $0x1c0] sm:$0xf]  ;;  %v6880_v53 = vld [vmem:[%s7522_s17 + $0x1d8] sm:$0xf0] }
  0x55   : > { %2354 = vmatpush.bf16.msrb.mxu3 %v5726_v35  ;;  %v6877_v59 = vld [vmem:[%s7522_s17 + $0x1c4] sm:$0xf]  ;;  %v5667_v60 = vld [vmem:[%s7522_s17 + $0x1dc] sm:$0xf0]  ;;  %v5673_v61 = vld [vmem:[%s7522_s17 + $0x1c8] sm:$0xf]  ;;  %v7826_v1 = vor.u32 %v6880_v53, %v5665_v50 }
  0x56   : > { %2236 = vmatpush.bf16.msrb.mxu1 %v6362_v46  ;;  %v6881_v62 = vld [vmem:[%s7522_s17 + $0x1e0] sm:$0xf0]  ;;  %v6878_v63 = vld [vmem:[%s7522_s17 + $0x1cc] sm:$0xf]  ;;  %v5675_v0 = vld [vmem:[%s7522_s17 + $0x1e4] sm:$0xf0]  ;;  %v7828_v3 = vor.u32 %v6877_v59, %v5667_v60 }
  0x57   : > { %10534 = vst [vmem:[#allocation28_spill] sm:$0xff] %v7826_v1  ;;  %v7830_v4 = vor.u32 %v6881_v62, %v5673_v61  ;;  %v7833_v11 = vor.u32 %v6878_v63, %v5675_v0  ;;  %v7015_v17 = vld [vmem:[%s10363_s1 + $0x3e4] sm:$0xf]  ;;  %v6219_v22 = vld [vmem:[%s10363_s1 + $0x3f0] sm:$0xf0] }
  0x58   : > { %10535 = vst [vmem:[#allocation29_spill] sm:$0xff] %v7828_v3  ;;  %v6951_v23 = vld [vmem:[%s10363_s1 + $0x1e4] sm:$0xf]  ;;  %v6222_v24 = vor.u32 %v7015_v17, %v6219_v22  ;;  %v5963_v25 = vld [vmem:[%s10363_s1 + $0x1f0] sm:$0xf0] }
  0x59   : > { %10536 = vst [vmem:[#allocation30_spill] sm:$0xff] %v7830_v4  ;;  %v7047_v30 = vld [vmem:[%s10363_s1 + $0x4e4] sm:$0xf]  ;;  %v6347_v31 = vld [vmem:[%s10363_s1 + $0x4f0] sm:$0xf0]  ;;  %v5966_v33 = vor.u32 %v6951_v23, %v5963_v25 }
  0x5a   : > { %10537 = vst [vmem:[#allocation31_spill] sm:$0xff] %v7833_v11  ;;  %v6350_v34 = vor.u32 %v7047_v30, %v6347_v31  ;;  %2524 = vmatpush.bf16.msra.mxu2 %v6222_v24  ;;  %v6983_v53 = vld [vmem:[%s10363_s1 + $0x2e4] sm:$0xf]  ;;  %v6091_v59 = vld [vmem:[%s10363_s1 + $0x2f0] sm:$0xf0] }
  0x5b   : > { %2406 = vmatpush.bf16.msra.mxu0 %v5966_v33  ;;  %v6094_v61 = vor.u32 %v6983_v53, %v6091_v59  ;;  %v5693_v62 = vld [vmem:[%s7522_s17 + $0x1f8] sm:$0xf]  ;;  %v6887_v63 = vld [vmem:[%s7522_s17 + $0x210] sm:$0xf0]  ;;  %v6884_v0 = vld [vmem:[%s7522_s17 + $0x1fc] sm:$0xf] }
  0x5c   : > { %2583 = vmatpush.bf16.msra.mxu3 %v6350_v34  ;;  %v5703_v17 = vld [vmem:[%s7522_s17 + $0x21c] sm:$0xf0]  ;;  %v7874_v23 = vor.u32 %v6887_v63, %v5693_v62  ;;  %v5457_v63 = vld [vmem:[%s7522_s17 + $0x10] sm:$0xf] }
  0x5d   : > { %2465 = vmatpush.bf16.msra.mxu1 %v6094_v61 }
  0x5e   : > { %10538 = vst [vmem:[#allocation32_spill] sm:$0xff] %v7874_v23 }
  0x60   : > { %2075 = vmatmul.bf16.gmra.mxu2 %v7653_v57 }
  0x61   : > { %2134 = vmatmul.bf16.gmra.mxu3 %v7655_v58 }
  0x62   : > { %1957 = vmatmul.bf16.gmra.mxu0 %v7649_v54 }
  0x63   : > { %2016 = vmatmul.bf16.gmra.mxu1 %v7651_v55 }
  0x70   : > { %2080 = vmatmul.bf16.gmra.mxu2 %v7691_v14 }
  0x71   : > { %2139 = vmatmul.bf16.gmra.mxu3 %v7693_v15 }
  0x72   : > { %1962 = vmatmul.bf16.gmra.mxu0 %v7687_v12 }
  0x73   : > { %2021 = vmatmul.bf16.gmra.mxu1 %v7689_v13 }
  0x80   : > { %2085 = vmatmul.bf16.gmra.mxu2 %v7729_v43 }
  0x81   : > { %2144 = vmatmul.bf16.gmra.mxu3 %v7731_v44 }
  0x82   : > { %1967 = vmatmul.bf16.gmra.mxu0 %v7725_v41 }
  0x83   : > { %2026 = vmatmul.bf16.gmra.mxu1 %v7727_v42 }
  0x90   : > { %2090 = vmatmul.bf16.gmra.mxu2 %v7767_v8 }
  0x91   : > { %2149 = vmatmul.bf16.gmra.mxu3 %v7769_v9 }
  0x92   : > { %1972 = vmatmul.bf16.gmra.mxu0 %v7763_v6 }
  0x93   : > { %2031 = vmatmul.bf16.gmra.mxu1 %v7765_v7 }
  0xa0   : > { %2095 = vmatmul.bf16.gmra.mxu2 %v7787_v28 }
  0xa1   : > { %2154 = vmatmul.bf16.gmra.mxu3 %v7789_v29 }
  0xa2   : > { %1977 = vmatmul.bf16.gmra.mxu0 %v7783_v26 }
  0xa3   : > { %2036 = vmatmul.bf16.gmra.mxu1 %v7785_v27 }
  0xaf   : > { %v1943_v2 = vpop.f32.mrf.mxu0 }
  0xb0   : > { %v1944_v5 = vadd.f32 %v1943_v2, %v7816_v49  ;;  %v2002_v10 = vpop.f32.mrf.mxu1  ;;  %2100 = vmatmul.bf16.gmra.mxu2 %v7830_v4  ;;  %v5695_v2 = vld [vmem:[%s7522_s17 + $0x214] sm:$0xf0] }
  0xb1   : > { %2159 = vmatmul.bf16.gmra.mxu3 %v7833_v11  ;;  %v7876_v31 = vor.u32 %v6884_v0, %v5695_v2  ;;  %v6826_v0 = vld [vmem:[%s7522_s17 + $0x28] sm:$0xf0]  ;;  %v7011_v2 = vld [vmem:[%s10363_s1 + $0x3c4] sm:$0xf] }
  0xb2   : > { %v2003_v16 = vadd.f32 %v2002_v10, %v1944_v5  ;;  %1982 = vmatmul.bf16.gmra.mxu0 %v7826_v1  ;;  %v5701_v5 = vld [vmem:[%s7522_s17 + $0x200] sm:$0xf]  ;;  %v6888_v10 = vld [vmem:[%s7522_s17 + $0x218] sm:$0xf0] }
  0xb3   : > { %2041 = vmatmul.bf16.gmra.mxu1 %v7828_v3  ;;  %v2061_v32 = vpop.f32.mrf.mxu2  ;;  %10539 = vst [vmem:[#allocation33_spill] sm:$0xff] %v7876_v31 }
  0xb4   : > { %v2062_v35 = vadd.f32 %v2061_v32, %v2003_v16  ;;  %v2120_v40 = vpop.f32.mrf.mxu3  ;;  %v6885_v16 = vld [vmem:[%s7522_s17 + $0x204] sm:$0xf]  ;;  %v7878_v32 = vor.u32 %v6888_v10, %v5701_v5  ;;  %v6203_v5 = vld [vmem:[%s10363_s1 + $0x3d0] sm:$0xf0] }
  0xb6   : > { %v7858_v50 = vadd.f32 %v2120_v40, %v2062_v35  ;;  %10540 = vst [vmem:[#allocation34_spill] sm:$0xff] %v7878_v32  ;;  %v7881_v35 = vor.u32 %v6885_v16, %v5703_v17  ;;  %v6823_v16 = vld [vmem:[%s7522_s17 + $0x14] sm:$0xf]  ;;  %v6206_v17 = vor.u32 %v7011_v2, %v6203_v5  ;;  %v7922_v2 = vor.u32 %v6826_v0, %v5457_v63 }
  0xb7   : > { %v1945_v45 = vpop.f32.mrf.mxu0 }
  0xb8   : > { %v1946_v46 = vadd.f32 %v1945_v45, %v7816_v49  ;;  %v2004_v48 = vpop.f32.mrf.mxu1  ;;  %10541 = vst [vmem:[#allocation35_spill] sm:$0xff] %v7881_v35  ;;  %2525 = vmatpush.bf16.msra.mxu2 %v6206_v17 }
  0xba   : > { %v2005_v60 = vadd.f32 %v2004_v48, %v1946_v46 }
  0xbb   : > { %v2063_v22 = vpop.f32.mrf.mxu2 }
  0xbc   : > { %v2064_v24 = vadd.f32 %v2063_v22, %v2005_v60  ;;  %v2122_v25 = vpop.f32.mrf.mxu3  ;;  %v6947_v22 = vld [vmem:[%s10363_s1 + $0x1c4] sm:$0xf] }
  0xbe   : > { %v7883_v40 = vadd.f32 %v2122_v25, %v2064_v24  ;;  %v5947_v24 = vld [vmem:[%s10363_s1 + $0x1d0] sm:$0xf0]  ;;  %v7043_v25 = vld [vmem:[%s10363_s1 + $0x4c4] sm:$0xf] }
  0xbf   : > { %v1948_v30 = vpop.f32.mrf.mxu0 }
  0xc0   : > { %v1949_v33 = vadd.f32 %v1948_v30, %v7816_v49  ;;  %v2007_v34 = vpop.f32.mrf.mxu1  ;;  %2105 = vmatmul.bf16.gmra.mxu2 %v7878_v32  ;;  %v5950_v30 = vor.u32 %v6947_v22, %v5947_v24 }
  0xc1   : > { %2164 = vmatmul.bf16.gmra.mxu3 %v7881_v35 }
  0xc2   : > { %v2008_v45 = vadd.f32 %v2007_v34, %v1949_v33  ;;  %1987 = vmatmul.bf16.gmra.mxu0 %v7874_v23  ;;  %v6331_v33 = vld [vmem:[%s10363_s1 + $0x4d0] sm:$0xf0]  ;;  %v6979_v34 = vld [vmem:[%s10363_s1 + $0x2c4] sm:$0xf] }
  0xc3   : > { %2046 = vmatmul.bf16.gmra.mxu1 %v7876_v31  ;;  %v2066_v46 = vpop.f32.mrf.mxu2  ;;  %2407 = vmatpush.bf16.msra.mxu0 %v5950_v30 }
  0xc4   : > { %v2067_v48 = vadd.f32 %v2066_v46, %v2008_v45  ;;  %v2125_v53 = vpop.f32.mrf.mxu3  ;;  %v6075_v45 = vld [vmem:[%s10363_s1 + $0x2d0] sm:$0xf0]  ;;  %v5459_v46 = vld [vmem:[%s7522_s17 + $0x2c] sm:$0xf0] }
  0xc5   : > { %v7924_v35 = vor.u32 %v6823_v16, %v5459_v46  ;;  %v6830_v46 = vld [vmem:[%s7522_s17 + $0x4c] sm:$0xf] }
  0xc6   : > { %v7890_v62 = vadd.f32 %v2125_v53, %v2067_v48  ;;  %v5465_v48 = vld [vmem:[%s7522_s17 + $0x18] sm:$0xf]  ;;  %v6827_v53 = vld [vmem:[%s7522_s17 + $0x30] sm:$0xf0] }
  0xc7   : > { %v1950_v59 = vpop.f32.mrf.mxu0  ;;  %10542 = vst [vmem:[#allocation36_spill] sm:$0xff] %v7924_v35  ;;  %v7926_v32 = vor.u32 %v6827_v53, %v5465_v48  ;;  %v7007_v48 = vld [vmem:[%s10363_s1 + $0x3a4] sm:$0xf]  ;;  %v6187_v53 = vld [vmem:[%s10363_s1 + $0x3b0] sm:$0xf0] }
  0xc8   : > { %v1951_v60 = vadd.f32 %v1950_v59, %v7816_v49  ;;  %v2009_v61 = vpop.f32.mrf.mxu1  ;;  %v6334_v59 = vor.u32 %v7043_v25, %v6331_v33 }
  0xc9   : > { %10543 = vst [vmem:[#allocation37_spill] sm:$0xff] %v7926_v32 }
  0xca   : > { %v2010_v10 = vadd.f32 %v2009_v61, %v1951_v60  ;;  %v6078_v60 = vor.u32 %v6979_v34, %v6075_v45  ;;  %2584 = vmatpush.bf16.msra.mxu3 %v6334_v59  ;;  %v6833_v34 = vld [vmem:[%s7522_s17 + $0x60] sm:$0xf0] }
  0xcb   : > { %v2068_v61 = vpop.f32.mrf.mxu2  ;;  %v6943_v59 = vld [vmem:[%s10363_s1 + $0x1a4] sm:$0xf] }
  0xcc   : > { %2466 = vmatpush.bf16.msra.mxu1 %v6078_v60  ;;  %v2069_v5 = vadd.f32 %v2068_v61, %v2010_v10  ;;  %v2127_v22 = vpop.f32.mrf.mxu3  ;;  %v6190_v60 = vor.u32 %v7007_v48, %v6187_v53  ;;  %v5931_v61 = vld [vmem:[%s10363_s1 + $0x1b0] sm:$0xf0] }
  0xce   : > { %v7929_v17 = vadd.f32 %v2127_v22, %v2069_v5  ;;  %v7039_v5 = vld [vmem:[%s10363_s1 + $0x4a4] sm:$0xf]  ;;  %v6315_v22 = vld [vmem:[%s10363_s1 + $0x4b0] sm:$0xf0]  ;;  %2526 = vmatpush.bf16.msra.mxu2 %v6190_v60 }
  0xcf   : > { %v1953_v24 = vpop.f32.mrf.mxu0 }
  0xd0   : > { %v1954_v31 = vadd.f32 %v1953_v24, %v7816_v49  ;;  %v2012_v11 = vpop.f32.mrf.mxu1  ;;  %6503 = vmatmul.msk.bf16.vlgmr.msrb.gmra.mxu2 %vm1903_vm0, %v7926_v32  ;;  %v5487_v24 = vld [vmem:[%s7522_s17 + $0x64] sm:$0xf0] }
  0xd1   : > { %2355 = vmatmul.bf16.vlgmr.msrb.gmra.mxu3 %v7536_v47  ;;  %v7965_v47 = vor.u32 %v6830_v46, %v5487_v24 }
  0xd2   : > { %v2013_v63 = vadd.f32 %v2012_v11, %v1954_v31  ;;  %2178 = vmatmul.bf16.vlgmr.msrb.gmra.mxu0 %v7922_v2  ;;  %v5485_v31 = vld [vmem:[%s7522_s17 + $0x48] sm:$0xf] }
  0xd3   : > { %2237 = vmatmul.bf16.vlgmr.msrb.gmra.mxu1 %v7924_v35  ;;  %v2071_v0 = vpop.f32.mrf.mxu2  ;;  %10544 = vst [vmem:[#allocation38_spill] sm:$0xff] %v7965_v47 }
  0xd4   : > { %v2072_v10 = vadd.f32 %v2071_v0, %v2013_v63  ;;  %v2130_v16 = vpop.f32.mrf.mxu3  ;;  %v5493_v63 = vld [vmem:[%s7522_s17 + $0x50] sm:$0xf]  ;;  %v6834_v0 = vld [vmem:[%s7522_s17 + $0x68] sm:$0xf0] }
  0xd5   : > { %v7967_v32 = vor.u32 %v6834_v0, %v5493_v63  ;;  %v5513_v63 = vld [vmem:[%s7522_s17 + $0x80] sm:$0xf]  ;;  %v6840_v0 = vld [vmem:[%s7522_s17 + $0x98] sm:$0xf0] }
  0xd6   : > { %v7937_v11 = vadd.f32 %v2130_v16, %v2072_v10  ;;  %v5934_v10 = vor.u32 %v6943_v59, %v5931_v61  ;;  %v6318_v16 = vor.u32 %v7039_v5, %v6315_v22  ;;  %v6975_v59 = vld [vmem:[%s10363_s1 + $0x2a4] sm:$0xf] }
  0xd7   : > { %v1955_v25 = vpop.f32.mrf.mxu0  ;;  %10545 = vst [vmem:[#allocation39_spill] sm:$0xff] %v7967_v32 }
  0xd8   : > { %v1956_v30 = vadd.f32 %v1955_v25, %v7816_v49  ;;  %v2014_v33 = vpop.f32.mrf.mxu1  ;;  %2408 = vmatpush.bf16.msra.mxu0 %v5934_v10  ;;  %2585 = vmatpush.bf16.msra.mxu3 %v6318_v16  ;;  %v6837_v10 = vld [vmem:[%s7522_s17 + $0x84] sm:$0xf]  ;;  %v5515_v16 = vld [vmem:[%s7522_s17 + $0x9c] sm:$0xf0] }
  0xda   : > { %v2015_v45 = vadd.f32 %v2014_v33, %v1956_v30  ;;  %v7963_v30 = vor.u32 %v6833_v34, %v5485_v31  ;;  %v6059_v31 = vld [vmem:[%s10363_s1 + $0x2b0] sm:$0xf0] }
  0xdb   : > { %v2073_v25 = vpop.f32.mrf.mxu2 }
  0xdc   : > { %v2074_v33 = vadd.f32 %v2073_v25, %v2015_v45  ;;  %v2132_v48 = vpop.f32.mrf.mxu3  ;;  %v6062_v45 = vor.u32 %v6975_v59, %v6059_v31  ;;  %v5521_v25 = vld [vmem:[%s7522_s17 + $0x88] sm:$0xf] }
  0xde   : > { %v7970_v3 = vadd.f32 %v2132_v48, %v2074_v33  ;;  %2467 = vmatpush.bf16.msra.mxu1 %v6062_v45  ;;  %v6841_v33 = vld [vmem:[%s7522_s17 + $0xa0] sm:$0xf0]  ;;  %v7994_v45 = vor.u32 %v6837_v10, %v5515_v16  ;;  %v5915_v10 = vld [vmem:[%s10363_s1 + $0x190] sm:$0xf0] }
  0xdf   : > { %v1958_v53 = vpop.f32.mrf.mxu0  ;;  %v7035_v16 = vld [vmem:[%s10363_s1 + $0x484] sm:$0xf] }
  0xe0   : > { %v1959_v35 = vadd.f32 %v1958_v53, %v7816_v49  ;;  %v2017_v4 = vpop.f32.mrf.mxu1  ;;  %6504 = vmatmul.msk.bf16.gmra.mxu2 %vm1903_vm0, %v7967_v32  ;;  %v7992_v53 = vor.u32 %v6840_v0, %v5513_v63  ;;  %10546 = vst [vmem:[#allocation40_spill] sm:$0xff] %v7994_v45  ;;  %v6939_v0 = vld [vmem:[%s10363_s1 + $0x184] sm:$0xf] }
  0xe1   : > { %2360 = vmatmul.bf16.gmra.mxu3 %v7591_v18  ;;  %v6848_v18 = vld [vmem:[%s7522_s17 + $0xd8] sm:$0xf0] }
  0xe2   : > { %v2018_v34 = vadd.f32 %v2017_v4, %v1959_v35  ;;  %2183 = vmatmul.bf16.gmra.mxu0 %v7963_v30 }
  0xe3   : > { %2242 = vmatmul.bf16.gmra.mxu1 %v7965_v47  ;;  %v2076_v46 = vpop.f32.mrf.mxu2 }
  0xe4   : > { %v2077_v60 = vadd.f32 %v2076_v46, %v2018_v34  ;;  %v2135_v61 = vpop.f32.mrf.mxu3  ;;  %v7996_v46 = vor.u32 %v6841_v33, %v5521_v25  ;;  %v5918_v25 = vor.u32 %v6939_v0, %v5915_v10  ;;  %v6299_v33 = vld [vmem:[%s10363_s1 + $0x490] sm:$0xf0] }
  0xe6   : > { %v7984_v22 = vadd.f32 %v2135_v61, %v2077_v60  ;;  %10547 = vst [vmem:[#allocation41_spill] sm:$0xff] %v7996_v46  ;;  %2409 = vmatpush.bf16.msra.mxu0 %v5918_v25  ;;  %v5541_v25 = vld [vmem:[%s7522_s17 + $0xb8] sm:$0xf] }
  0xe7   : > { %v1960_v4 = vpop.f32.mrf.mxu0 }
  0xe8   : > { %v1961_v35 = vadd.f32 %v1960_v4, %v7816_v49  ;;  %v2019_v5 = vpop.f32.mrf.mxu1 }
  0xea   : > { %v2020_v24 = vadd.f32 %v2019_v5, %v1961_v35  ;;  %v7003_v35 = vld [vmem:[%s10363_s1 + $0x384] sm:$0xf]  ;;  %v6171_v5 = vld [vmem:[%s10363_s1 + $0x390] sm:$0xf0] }
  0xeb   : > { %v2078_v48 = vpop.f32.mrf.mxu2  ;;  %v6174_v63 = vor.u32 %v7003_v35, %v6171_v5 }
  0xec   : > { %v2079_v59 = vadd.f32 %v2078_v48, %v2020_v24  ;;  %v2137_v31 = vpop.f32.mrf.mxu3  ;;  %v6302_v48 = vor.u32 %v7035_v16, %v6299_v33  ;;  %v6847_v33 = vld [vmem:[%s7522_s17 + $0xd0] sm:$0xf0] }
  0xed   : > { %2527 = vmatpush.bf16.msra.mxu2 %v6174_v63  ;;  %v8039_v47 = vor.u32 %v6847_v33, %v5541_v25 }
  0xee   : > { %v7999_v4 = vadd.f32 %v2137_v31, %v2079_v59  ;;  %v6971_v59 = vld [vmem:[%s10363_s1 + $0x284] sm:$0xf]  ;;  %v6043_v31 = vld [vmem:[%s10363_s1 + $0x290] sm:$0xf0]  ;;  %2586 = vmatpush.bf16.msra.mxu3 %v6302_v48 }
  0xef   : > { %v1963_v34 = vpop.f32.mrf.mxu0  ;;  %10548 = vst [vmem:[#allocation42_spill] sm:$0xff] %v8039_v47 }
  0xf0   : > { %v1964_v60 = vadd.f32 %v1963_v34, %v7816_v49  ;;  %v2022_v61 = vpop.f32.mrf.mxu1  ;;  %6505 = vmatmul.msk.bf16.gmra.mxu2 %vm1903_vm0, %v7996_v46  ;;  %v5543_v46 = vld [vmem:[%s7522_s17 + $0xd4] sm:$0xf0] }
  0xf1   : > { %2365 = vmatmul.bf16.gmra.mxu3 %v7623_v36  ;;  %v6844_v36 = vld [vmem:[%s7522_s17 + $0xbc] sm:$0xf] }
  0xf2   : > { %v2023_v24 = vadd.f32 %v2022_v61, %v1964_v60  ;;  %2188 = vmatmul.bf16.gmra.mxu0 %v7992_v53  ;;  %v6046_v60 = vor.u32 %v6971_v59, %v6043_v31  ;;  %v8041_v31 = vor.u32 %v6844_v36, %v5543_v46  ;;  %v6155_v36 = vld [vmem:[%s10363_s1 + $0x370] sm:$0xf0] }
  0xf3   : > { %2247 = vmatmul.bf16.gmra.mxu1 %v7994_v45  ;;  %v2081_v34 = vpop.f32.mrf.mxu2  ;;  %v5549_v45 = vld [vmem:[%s7522_s17 + $0xc0] sm:$0xf]  ;;  %v5899_v46 = vld [vmem:[%s10363_s1 + $0x170] sm:$0xf0] }
  0xf4   : > { %v2082_v61 = vadd.f32 %v2081_v34, %v2023_v24  ;;  %v2140_v35 = vpop.f32.mrf.mxu3  ;;  %2468 = vmatpush.bf16.msra.mxu1 %v6046_v60  ;;  %10549 = vst [vmem:[#allocation43_spill] sm:$0xff] %v8041_v31  ;;  %v8043_v34 = vor.u32 %v6848_v18, %v5549_v45  ;;  %v6999_v18 = vld [vmem:[%s10363_s1 + $0x364] sm:$0xf] }
  0xf5   : > { %v6158_v45 = vor.u32 %v6999_v18, %v6155_v36  ;;  %v6967_v36 = vld [vmem:[%s10363_s1 + $0x264] sm:$0xf] }
  0xf6   : > { %v8031_v10 = vadd.f32 %v2140_v35, %v2082_v61  ;;  %10550 = vst [vmem:[#allocation44_spill] sm:$0xff] %v8043_v34 }
  0xf7   : > { %v1965_v5 = vpop.f32.mrf.mxu0  ;;  %2528 = vmatpush.bf16.msra.mxu2 %v6158_v45  ;;  %v6851_v45 = vld [vmem:[%s7522_s17 + $0xf4] sm:$0xf] }
  0xf8   : > { %v1966_v63 = vadd.f32 %v1965_v5, %v7816_v49  ;;  %v2024_v0 = vpop.f32.mrf.mxu1 }
  0xfa   : > { %v2025_v16 = vadd.f32 %v2024_v0, %v1966_v63  ;;  %v7031_v63 = vld [vmem:[%s10363_s1 + $0x464] sm:$0xf]  ;;  %v6283_v0 = vld [vmem:[%s10363_s1 + $0x470] sm:$0xf0] }
  0xfb   : > { %v2083_v32 = vpop.f32.mrf.mxu2  ;;  %v6286_v33 = vor.u32 %v7031_v63, %v6283_v0  ;;  %v5569_v63 = vld [vmem:[%s7522_s17 + $0xf0] sm:$0xf]  ;;  %v6854_v0 = vld [vmem:[%s7522_s17 + $0x108] sm:$0xf0] }
  0xfc   : > { %v2084_v48 = vadd.f32 %v2083_v32, %v2025_v16  ;;  %v2142_v24 = vpop.f32.mrf.mxu3  ;;  %v6935_v32 = vld [vmem:[%s10363_s1 + $0x164] sm:$0xf] }
  0xfd   : > { %v5902_v25 = vor.u32 %v6935_v32, %v5899_v46  ;;  %2587 = vmatpush.bf16.msra.mxu3 %v6286_v33  ;;  %v8086_v33 = vor.u32 %v6854_v0, %v5569_v63 }
  0xfe   : > { %v8046_v35 = vadd.f32 %v2142_v24, %v2084_v48 }
  0xff   : > { %v1968_v59 = vpop.f32.mrf.mxu0  ;;  %2410 = vmatpush.bf16.msra.mxu0 %v5902_v25  ;;  %10551 = vst [vmem:[#allocation45_spill] sm:$0xff] %v8086_v33 }
 0x100   : > { %v1969_v60 = vadd.f32 %v1968_v59, %v7816_v49  ;;  %v2027_v61 = vpop.f32.mrf.mxu1  ;;  %6506 = vmatmul.msk.bf16.gmra.mxu2 %vm1903_vm0, %v8043_v34 }
 0x101   : > { %2370 = vmatmul.bf16.gmra.mxu3 %v7649_v54  ;;  %v6855_v54 = vld [vmem:[%s7522_s17 + $0x110] sm:$0xf0] }
 0x102   : > { %v2028_v5 = vadd.f32 %v2027_v61, %v1969_v60  ;;  %2193 = vmatmul.bf16.gmra.mxu0 %v8039_v47 }
 0x103   : > { %2252 = vmatmul.bf16.gmra.mxu1 %v8041_v31  ;;  %v2086_v16 = vpop.f32.mrf.mxu2 }
 0x104   : > { %v2087_v48 = vadd.f32 %v2086_v16, %v2028_v5  ;;  %v2145_v24 = vpop.f32.mrf.mxu3  ;;  %v6027_v5 = vld [vmem:[%s10363_s1 + $0x270] sm:$0xf0]  ;;  %v5571_v16 = vld [vmem:[%s7522_s17 + $0x10c] sm:$0xf0] }
 0x105   : > { %v6030_v46 = vor.u32 %v6967_v36, %v6027_v5  ;;  %v8088_v31 = vor.u32 %v6851_v45, %v5571_v16  ;;  %v5597_v16 = vld [vmem:[%s7522_s17 + $0x128] sm:$0xf] }
 0x106   : > { %v8072_v18 = vadd.f32 %v2145_v24, %v2087_v48 }
 0x107   : > { %v1970_v59 = vpop.f32.mrf.mxu0  ;;  %2469 = vmatpush.bf16.msra.mxu1 %v6030_v46  ;;  %10552 = vst [vmem:[#allocation46_spill] sm:$0xff] %v8088_v31 }
 0x108   : > { %v1971_v60 = vadd.f32 %v1970_v59, %v7816_v49  ;;  %v2029_v61 = vpop.f32.mrf.mxu1  ;;  %v5577_v59 = vld [vmem:[%s7522_s17 + $0xf8] sm:$0xf] }
 0x109   : > { %v8090_v29 = vor.u32 %v6855_v54, %v5577_v59  ;;  %v6861_v59 = vld [vmem:[%s7522_s17 + $0x140] sm:$0xf0] }
 0x10a   : > { %v2030_v32 = vadd.f32 %v2029_v61, %v1971_v60 }
 0x10b   : > { %v2088_v25 = vpop.f32.mrf.mxu2  ;;  %10553 = vst [vmem:[#allocation47_spill] sm:$0xff] %v8090_v29 }
 0x10c   : > { %v2089_v48 = vadd.f32 %v2088_v25, %v2030_v32  ;;  %v2147_v24 = vpop.f32.mrf.mxu3  ;;  %v6995_v25 = vld [vmem:[%s10363_s1 + $0x344] sm:$0xf] }
 0x10e   : > { %v8093_v36 = vadd.f32 %v2147_v24, %v2089_v48  ;;  %v6139_v48 = vld [vmem:[%s10363_s1 + $0x350] sm:$0xf0] }
 0x10f   : > { %v1973_v34 = vpop.f32.mrf.mxu0 }
 0x110   : > { %v1974_v60 = vadd.f32 %v1973_v34, %v7816_v49  ;;  %v2032_v61 = vpop.f32.mrf.mxu1  ;;  %6507 = vmatmul.msk.bf16.gmra.mxu2 %vm1903_vm0, %v8090_v29 }
 0x111   : > { %2375 = vmatmul.bf16.gmra.mxu3 %v7687_v12  ;;  %v6862_v12 = vld [vmem:[%s7522_s17 + $0x148] sm:$0xf0] }
 0x112   : > { %v2033_v5 = vadd.f32 %v2032_v61, %v1974_v60  ;;  %2198 = vmatmul.bf16.gmra.mxu0 %v8086_v33  ;;  %v6858_v60 = vld [vmem:[%s7522_s17 + $0x12c] sm:$0xf]  ;;  %v6142_v61 = vor.u32 %v6995_v25, %v6139_v48  ;;  %v5599_v25 = vld [vmem:[%s7522_s17 + $0x144] sm:$0xf0]  ;;  %v5605_v48 = vld [vmem:[%s7522_s17 + $0x130] sm:$0xf] }
 0x113   : > { %2257 = vmatmul.bf16.gmra.mxu1 %v8088_v31  ;;  %v2091_v54 = vpop.f32.mrf.mxu2  ;;  %v8135_v8 = vor.u32 %v6858_v60, %v5599_v25  ;;  %v8137_v7 = vor.u32 %v6862_v12, %v5605_v48  ;;  %v6865_v60 = vld [vmem:[%s7522_s17 + $0x164] sm:$0xf]  ;;  %v5867_v48 = vld [vmem:[%s10363_s1 + $0x130] sm:$0xf0] }
 0x114   : > { %v2092_v32 = vadd.f32 %v2091_v54, %v2033_v5  ;;  %v2150_v46 = vpop.f32.mrf.mxu3  ;;  %v6931_v5 = vld [vmem:[%s10363_s1 + $0x144] sm:$0xf]  ;;  %v5883_v54 = vld [vmem:[%s10363_s1 + $0x150] sm:$0xf0]  ;;  %2529 = vmatpush.bf16.msra.mxu2 %v6142_v61 }
 0x115   : > { %10555 = vst [vmem:[#allocation49_spill] sm:$0xff] %v8135_v8 }
 0x116   : > { %v8101_v45 = vadd.f32 %v2150_v46, %v2092_v32  ;;  %v7027_v32 = vld [vmem:[%s10363_s1 + $0x444] sm:$0xf]  ;;  %v5886_v46 = vor.u32 %v6931_v5, %v5883_v54  ;;  %v8133_v54 = vor.u32 %v6861_v59, %v5597_v16  ;;  %10556 = vst [vmem:[#allocation50_spill] sm:$0xff] %v8137_v7  ;;  %v5625_v16 = vld [vmem:[%s7522_s17 + $0x160] sm:$0xf] }
 0x117   : > { %v1975_v63 = vpop.f32.mrf.mxu0  ;;  %v6868_v59 = vld [vmem:[%s7522_s17 + $0x178] sm:$0xf0] }
 0x118   : > { %v1976_v34 = vadd.f32 %v1975_v63, %v7816_v49  ;;  %v2034_v0 = vpop.f32.mrf.mxu1  ;;  %v6267_v63 = vld [vmem:[%s10363_s1 + $0x450] sm:$0xf0]  ;;  %2411 = vmatpush.bf16.msra.mxu0 %v5886_v46  ;;  %10554 = vst [vmem:[#allocation48_spill] sm:$0xff] %v8133_v54 }
 0x119   : > { %v6270_v29 = vor.u32 %v7027_v32, %v6267_v63  ;;  %v6991_v63 = vld [vmem:[%s10363_s1 + $0x324] sm:$0xf] }
 0x11a   : > { %v2035_v24 = vadd.f32 %v2034_v0, %v1976_v34  ;;  %v6963_v34 = vld [vmem:[%s10363_s1 + $0x244] sm:$0xf]  ;;  %v6011_v0 = vld [vmem:[%s10363_s1 + $0x250] sm:$0xf0] }
 0x11b   : > { %v6014_v31 = vor.u32 %v6963_v34, %v6011_v0  ;;  %v2093_v5 = vpop.f32.mrf.mxu2  ;;  %2588 = vmatpush.bf16.msra.mxu3 %v6270_v29  ;;  %v6123_v34 = vld [vmem:[%s10363_s1 + $0x330] sm:$0xf0]  ;;  %v6927_v0 = vld [vmem:[%s10363_s1 + $0x124] sm:$0xf] }
 0x11c   : > { %v2094_v28 = vadd.f32 %v2093_v5, %v2035_v24  ;;  %v2152_v27 = vpop.f32.mrf.mxu3  ;;  %v6126_v25 = vor.u32 %v6991_v63, %v6123_v34  ;;  %v7023_v5 = vld [vmem:[%s10363_s1 + $0x424] sm:$0xf] }
 0x11d   : > { %2470 = vmatpush.bf16.msra.mxu1 %v6014_v31 }
 0x11e   : > { %v8140_v32 = vadd.f32 %v2152_v27, %v2094_v28  ;;  %2530 = vmatpush.bf16.msra.mxu2 %v6126_v25 }
 0x11f   : > { %v1978_v9 = vpop.f32.mrf.mxu0 }
 0x120   : > { %v1979_v44 = vadd.f32 %v1978_v9, %v7816_v49  ;;  %v2037_v61 = vpop.f32.mrf.mxu1  ;;  %6508 = vmatmul.msk.bf16.gmra.mxu2 %vm1903_vm0, %v8137_v7 }
 0x121   : > { %2380 = vmatmul.bf16.gmra.mxu3 %v7725_v41 }
 0x122   : > { %v2038_v46 = vadd.f32 %v2037_v61, %v1979_v44  ;;  %2203 = vmatmul.bf16.gmra.mxu0 %v8133_v54  ;;  %v6251_v61 = vld [vmem:[%s10363_s1 + $0x430] sm:$0xf0] }
 0x123   : > { %2262 = vmatmul.bf16.gmra.mxu1 %v8135_v8  ;;  %v2096_v12 = vpop.f32.mrf.mxu2 }
 0x124   : > { %v2097_v29 = vadd.f32 %v2096_v12, %v2038_v46  ;;  %v2155_v31 = vpop.f32.mrf.mxu3  ;;  %v5627_v46 = vld [vmem:[%s7522_s17 + $0x17c] sm:$0xf0]  ;;  %v5633_v12 = vld [vmem:[%s7522_s17 + $0x168] sm:$0xf] }
 0x125   : > { %v8176_v7 = vor.u32 %v6865_v60, %v5627_v46  ;;  %v5653_v46 = vld [vmem:[%s7522_s17 + $0x198] sm:$0xf] }
 0x126   : > { %v8148_v44 = vadd.f32 %v2155_v31, %v2097_v29  ;;  %v6869_v29 = vld [vmem:[%s7522_s17 + $0x180] sm:$0xf0]  ;;  %v5870_v31 = vor.u32 %v6927_v0, %v5867_v48 }
 0x127   : > { %v1980_v9 = vpop.f32.mrf.mxu0  ;;  %10558 = vst [vmem:[#allocation52_spill] sm:$0xff] %v8176_v7  ;;  %v8178_v8 = vor.u32 %v6869_v29, %v5633_v12  ;;  %v6959_v0 = vld [vmem:[%s10363_s1 + $0x224] sm:$0xf]  ;;  %v6875_v12 = vld [vmem:[%s7522_s17 + $0x1b0] sm:$0xf0] }
 0x128   : > { %v1981_v27 = vadd.f32 %v1980_v9, %v7816_v49  ;;  %v2039_v28 = vpop.f32.mrf.mxu1  ;;  %v6254_v9 = vor.u32 %v7023_v5, %v6251_v61  ;;  %2412 = vmatpush.bf16.msra.mxu0 %v5870_v31  ;;  %v6872_v29 = vld [vmem:[%s7522_s17 + $0x19c] sm:$0xf]  ;;  %v5655_v31 = vld [vmem:[%s7522_s17 + $0x1b4] sm:$0xf0] }
 0x129   : > { %10559 = vst [vmem:[#allocation53_spill] sm:$0xff] %v8178_v8 }
 0x12a   : > { %v2040_v24 = vadd.f32 %v2039_v28, %v1981_v27  ;;  %v8174_v28 = vor.u32 %v6868_v59, %v5625_v16  ;;  %2589 = vmatpush.bf16.msra.mxu3 %v6254_v9  ;;  %v5995_v16 = vld [vmem:[%s10363_s1 + $0x230] sm:$0xf0]  ;;  %v5661_v9 = vld [vmem:[%s7522_s17 + $0x1a0] sm:$0xf] }
 0x12b   : > { %v2098_v27 = vpop.f32.mrf.mxu2 }
 0x12c   : > { %10557 = vst [vmem:[#allocation51_spill] sm:$0xff] %v8174_v28  ;;  %v2099_v63 = vadd.f32 %v2098_v27, %v2040_v24  ;;  %v2157_v34 = vpop.f32.mrf.mxu3  ;;  %v5998_v24 = vor.u32 %v6959_v0, %v5995_v16  ;;  %v6876_v27 = vld [vmem:[%s7522_s17 + $0x1b8] sm:$0xf0] }
 0x12e   : > { %v8181_v42 = vadd.f32 %v2157_v34, %v2099_v63  ;;  %2471 = vmatpush.bf16.msra.mxu1 %v5998_v24  ;;  %v8203_v34 = vor.u32 %v6875_v12, %v5653_v46  ;;  %v8205_v24 = vor.u32 %v6872_v29, %v5655_v31  ;;  %v6923_v46 = vld [vmem:[%s10363_s1 + $0x104] sm:$0xf]  ;;  %v5851_v29 = vld [vmem:[%s10363_s1 + $0x110] sm:$0xf0] }
 0x12f   : > { %v1983_v41 = vpop.f32.mrf.mxu0  ;;  %v7019_v31 = vld [vmem:[%s10363_s1 + $0x404] sm:$0xf] }
 0x130   : > { %v1984_v54 = vadd.f32 %v1983_v41, %v7816_v49  ;;  %v2042_v43 = vpop.f32.mrf.mxu1  ;;  %6509 = vmatmul.msk.bf16.gmra.mxu2 %vm1903_vm0, %v8178_v8  ;;  %10560 = vst [vmem:[#allocation54_spill] sm:$0xff] %v8203_v34 }
 0x131   : > { %2385 = vmatmul.bf16.gmra.mxu3 %v7763_v6  ;;  %10561 = vst [vmem:[#allocation55_spill] sm:$0xff] %v8205_v24  ;;  %v5683_v6 = vld [vmem:[%s7522_s17 + $0x1ec] sm:$0xf0] }
 0x132   : > { %v2043_v59 = vadd.f32 %v2042_v43, %v1984_v54  ;;  %2208 = vmatmul.bf16.gmra.mxu0 %v8174_v28 }
 0x133   : > { %2267 = vmatmul.bf16.gmra.mxu1 %v8176_v7  ;;  %v2101_v41 = vpop.f32.mrf.mxu2 }
 0x134   : > { %v2102_v60 = vadd.f32 %v2101_v41, %v2043_v59  ;;  %v2160_v25 = vpop.f32.mrf.mxu3  ;;  %v8207_v41 = vor.u32 %v6876_v27, %v5661_v9  ;;  %v6235_v9 = vld [vmem:[%s10363_s1 + $0x410] sm:$0xf0] }
 0x136   : > { %v8195_v5 = vadd.f32 %v2160_v25, %v2102_v60  ;;  %10562 = vst [vmem:[#allocation56_spill] sm:$0xff] %v8207_v41 }
 0x137   : > { %v1985_v43 = vpop.f32.mrf.mxu0 }
 0x138   : > { %v1986_v54 = vadd.f32 %v1985_v43, %v7816_v49  ;;  %v2044_v48 = vpop.f32.mrf.mxu1 }
 0x13a   : > { %v2045_v61 = vadd.f32 %v2044_v48, %v1986_v54  ;;  %v6987_v48 = vld [vmem:[%s10363_s1 + $0x304] sm:$0xf] }
 0x13b   : > { %v2103_v63 = vpop.f32.mrf.mxu2 }
 0x13c   : > { %v2104_v0 = vadd.f32 %v2103_v63, %v2045_v61  ;;  %v2162_v16 = vpop.f32.mrf.mxu3  ;;  %v6107_v61 = vld [vmem:[%s10363_s1 + $0x310] sm:$0xf0]  ;;  %v5854_v63 = vor.u32 %v6923_v46, %v5851_v29 }
 0x13d   : > { %v6110_v12 = vor.u32 %v6987_v48, %v6107_v61 }
 0x13e   : > { %v8210_v43 = vadd.f32 %v2162_v16, %v2104_v0  ;;  %v6238_v0 = vor.u32 %v7019_v31, %v6235_v9  ;;  %v6955_v16 = vld [vmem:[%s10363_s1 + $0x204] sm:$0xf]  ;;  %2413 = vmatpush.bf16.msra.mxu0 %v5854_v63 }
 0x13f   : > { %v1988_v59 = vpop.f32.mrf.mxu0  ;;  %2531 = vmatpush.bf16.msra.mxu2 %v6110_v12 }
 0x140   : > { %v1989_v60 = vadd.f32 %v1988_v59, %v7816_v49  ;;  %v2047_v25 = vpop.f32.mrf.mxu1  ;;  %6510 = vmatmul.msk.bf16.gmra.mxu2 %vm1903_vm0, %v8207_v41  ;;  %v5979_v59 = vld [vmem:[%s10363_s1 + $0x210] sm:$0xf0]  ;;  %2590 = vmatpush.bf16.msra.mxu3 %v6238_v0  ;;  %v6882_v41 = vld [vmem:[%s7522_s17 + $0x1e8] sm:$0xf0] }
 0x141   : > { %2390 = vmatmul.bf16.gmra.mxu3 %v7783_v26  ;;  %v5982_v61 = vor.u32 %v6955_v16, %v5979_v59  ;;  %v5681_v26 = vld [vmem:[%s7522_s17 + $0x1d0] sm:$0xf] }
 0x142   : > { %v2048_v54 = vadd.f32 %v2047_v25, %v1989_v60  ;;  %2213 = vmatmul.bf16.gmra.mxu0 %v8203_v34  ;;  %v8250_v7 = vor.u32 %v6882_v41, %v5681_v26  ;;  %v7079_v26 = vld [vmem:[%s10363_s1 + $0x5e4] sm:$0xf]  ;;  %v5969_v41 = vld [vmem:[%s10363_s1 + $0x1e8] sm:$0xf] }
 0x143   : > { %2272 = vmatmul.bf16.gmra.mxu1 %v8205_v24  ;;  %v2106_v27 = vpop.f32.mrf.mxu2  ;;  %v6879_v24 = vld [vmem:[%s7522_s17 + $0x1d4] sm:$0xf] }
 0x144   : > { %v2107_v60 = vadd.f32 %v2106_v27, %v2048_v54  ;;  %v2165_v25 = vpop.f32.mrf.mxu3  ;;  %2472 = vmatpush.bf16.msra.mxu1 %v5982_v61  ;;  %v5689_v54 = vld [vmem:[%s7522_s17 + $0x1d8] sm:$0xf]  ;;  %v6883_v27 = vld [vmem:[%s7522_s17 + $0x1f0] sm:$0xf0]  ;;  %10563 = vst [vmem:[#allocation57_spill] sm:$0xff] %v8250_v7 }
 0x145   : > { %v8254_v63 = vor.u32 %v6883_v27, %v5689_v54  ;;  %v6954_v61 = vld [vmem:[%s10363_s1 + $0x1f4] sm:$0xf0] }
 0x146   : > { %v8242_v31 = vadd.f32 %v2165_v25, %v2107_v60 }
 0x147   : > { %v1990_v48 = vpop.f32.mrf.mxu0  ;;  %10565 = vst [vmem:[#allocation59_spill] sm:$0xff] %v8254_v63 }
 0x148   : > { %v1991_v46 = vadd.f32 %v1990_v48, %v7816_v49  ;;  %v2049_v29 = vpop.f32.mrf.mxu1  ;;  %v8252_v49 = vor.u32 %v6879_v24, %v5683_v6  ;;  %v5841_v6 = vld [vmem:[%s10363_s1 + $0xe8] sm:$0xf]  ;;  %v6475_v24 = vld [vmem:[%s10363_s1 + $0x5f0] sm:$0xf0] }
 0x14a   : > { %v2050_v9 = vadd.f32 %v2049_v29, %v1991_v46  ;;  %10564 = vst [vmem:[#allocation58_spill] sm:$0xff] %v8252_v49  ;;  %v6478_v29 = vor.u32 %v7079_v26, %v6475_v24  ;;  %v6886_v26 = vld [vmem:[%s7522_s17 + $0x20c] sm:$0xf] }
 0x14b   : > { %v2108_v8 = vpop.f32.mrf.mxu2 }
 0x14c   : > { %v2109_v12 = vadd.f32 %v2108_v8, %v2050_v9  ;;  %v2167_v16 = vpop.f32.mrf.mxu3  ;;  %v6922_v8 = vld [vmem:[%s10363_s1 + $0xf4] sm:$0xf0]  ;;  %v5970_v9 = vor.u32 %v6954_v61, %v5969_v41  ;;  %2642 = vmatpush.bf16.msrb.mxu0 %v6478_v29  ;;  %v5711_v41 = vld [vmem:[%s7522_s17 + $0x224] sm:$0xf0]  ;;  %v6890_v61 = vld [vmem:[%s7522_s17 + $0x228] sm:$0xf0] }
 0x14e   : > { %v8257_v25 = vadd.f32 %v2167_v16, %v2109_v12  ;;  %2819 = vmatpush.bf16.msrb.mxu3 %v5970_v9 }
 0x14f   : > { %v2179_v59 = vpop.f32.mrf.mxu0 }
 0x150   : > { %v2180_v0 = vadd.f32 %v2179_v59, %v7858_v50  ;;  %v2238_v60 = vpop.f32.mrf.mxu1  ;;  %6511 = vmatmul.msk.bf16.gmra.mxu2 %vm1903_vm0, %v8254_v63  ;;  %v5842_v50 = vor.u32 %v6922_v8, %v5841_v6  ;;  %v5709_v6 = vld [vmem:[%s7522_s17 + $0x208] sm:$0xf]  ;;  %v6889_v8 = vld [vmem:[%s7522_s17 + $0x220] sm:$0xf0] }
 0x151   : > { %2395 = vmatmul.bf16.gmra.mxu3 %v7826_v1 }
 0x152   : > { %v2239_v48 = vadd.f32 %v2238_v60, %v2180_v0  ;;  %2218 = vmatmul.bf16.gmra.mxu0 %v8250_v7  ;;  %2760 = vmatpush.bf16.msrb.mxu2 %v5842_v50  ;;  %v7083_v0 = vld [vmem:[%s10363_s1 + $0x604] sm:$0xf]  ;;  %v5717_v50 = vld [vmem:[%s7522_s17 + $0x210] sm:$0xf] }
 0x153   : > { %2277 = vmatmul.bf16.gmra.mxu1 %v8252_v49  ;;  %v2297_v46 = vpop.f32.mrf.mxu2  ;;  %v8303_v1 = vor.u32 %v6890_v61, %v5717_v50 }
 0x154   : > { %v2298_v54 = vadd.f32 %v2297_v46, %v2239_v48  ;;  %v8282_v27 = vpop.f32.mrf.mxu3  ;;  %v6491_v48 = vld [vmem:[%s10363_s1 + $0x610] sm:$0xf0]  ;;  %v8297_v46 = vor.u32 %v6889_v8, %v5709_v6 }
 0x155   : > { %v6494_v24 = vor.u32 %v7083_v0, %v6491_v48 }
 0x156   : > { %10566 = vst [vmem:[#allocation60_spill] sm:$0xff] %v8297_v46  ;;  %v3666_v29 = vmul.f32 0.2, %v2298_v54  ;;  %vm3586_vm1 = vcmp.gt.f32.partialorder %v2298_v54, 0.0 }
 0x157   : > { %v2181_v12 = vpop.f32.mrf.mxu0  ;;  %2708 = vmatpush.bf16.msrb.mxu1 %v6494_v24 }
 0x158   : > { %v2182_v16 = vadd.f32 %v2181_v12, %v7883_v40  ;;  %v2240_v59 = vpop.f32.mrf.mxu1  ;;  %v3746_v6 = vsel %vm3586_vm1, %v2298_v54, %v3666_v29  ;;  %v5825_v54 = vld [vmem:[%s10363_s1 + $0xc8] sm:$0xf]  ;;  %v7075_v29 = vld [vmem:[%s10363_s1 + $0x5c4] sm:$0xf] }
 0x15a   : > { %v2241_v60 = vadd.f32 %v2240_v59, %v2182_v16  ;;  %v8301_v59 = vor.u32 %v6886_v26, %v5711_v41 }
 0x15b   : > { %v2299_v40 = vpop.f32.mrf.mxu2 }
 0x15c   : > { %v2300_v9 = vadd.f32 %v2299_v40, %v2241_v60  ;;  %v8299_v12 = vpop.f32.mrf.mxu3  ;;  %10567 = vst [vmem:[#allocation61_spill] sm:$0xff] %v8301_v59  ;;  %v6918_v40 = vld [vmem:[%s10363_s1 + $0xd4] sm:$0xf0] }
 0x15e   : > { %vm3590_vm2 = vcmp.gt.f32.partialorder %v2300_v9, 0.0  ;;  %v3670_v48 = vmul.f32 0.2, %v2300_v9 }
 0x15f   : > { %v2184_v16 = vpop.f32.mrf.mxu0 }
 0x160   : > { %v2185_v63 = vadd.f32 %v2184_v16, %v7890_v62  ;;  %v2243_v0 = vpop.f32.mrf.mxu1  ;;  %v3750_v8 = vsel %vm3590_vm2, %v2300_v9, %v3670_v48  ;;  %6512 = vmatmul.msk.bf16.gmra.mxu2 %vm1903_vm0, %v8303_v1  ;;  %v5826_v9 = vor.u32 %v6918_v40, %v5825_v54  ;;  %v5953_v16 = vld [vmem:[%s10363_s1 + $0x1c8] sm:$0xf] }
 0x161   : > { %v8310_v60 = vpack.c.bf16 %v3750_v8, %v3746_v6  ;;  %2400 = vmatmul.bf16.gmra.mxu3 %v7874_v23 }
 0x162   : > { %v2244_v49 = vadd.f32 %v2243_v0, %v2185_v63  ;;  %2223 = vmatmul.bf16.gmra.mxu0 %v8297_v46  ;;  %v6950_v0 = vld [vmem:[%s10363_s1 + $0x1d4] sm:$0xf0]  ;;  %2761 = vmatpush.bf16.msrb.mxu2 %v5826_v9 }
 0x163   : > { %2282 = vmatmul.bf16.gmra.mxu1 %v8301_v59  ;;  %10568 = vst [vmem:[#allocation62_spill] sm:$0xff] %v8310_v60  ;;  %v2302_v26 = vpop.f32.mrf.mxu2  ;;  %v5954_v48 = vor.u32 %v6950_v0, %v5953_v16 }
 0x164   : > { %v2303_v24 = vadd.f32 %v2302_v26, %v2244_v49  ;;  %v8313_v62 = vpop.f32.mrf.mxu3  ;;  %v6459_v49 = vld [vmem:[%s10363_s1 + $0x5d0] sm:$0xf0] }
 0x165   : > { %2820 = vmatpush.bf16.msrb.mxu3 %v5954_v48 }
 0x166   : > { %v3674_v8 = vmul.f32 0.2, %v2303_v24  ;;  %vm3594_vm3 = vcmp.gt.f32.partialorder %v2303_v24, 0.0 }
 0x167   : > { %v2186_v41 = vpop.f32.mrf.mxu0 }
 0x168   : > { %v2187_v63 = vadd.f32 %v2186_v41, %v7929_v17  ;;  %v2245_v50 = vpop.f32.mrf.mxu1  ;;  %v6462_v17 = vor.u32 %v7075_v29, %v6459_v49  ;;  %v3754_v49 = vsel %vm3594_vm3, %v2303_v24, %v3674_v8  ;;  %v6914_v24 = vld [vmem:[%s10363_s1 + $0xb4] sm:$0xf0]  ;;  %v7071_v8 = vld [vmem:[%s10363_s1 + $0x5a4] sm:$0xf] }
 0x16a   : > { %v2246_v61 = vadd.f32 %v2245_v50, %v2187_v63  ;;  %2643 = vmatpush.bf16.msrb.mxu0 %v6462_v17 }
 0x16b   : > { %v2304_v6 = vpop.f32.mrf.mxu2 }
 0x16c   : > { %v2305_v26 = vadd.f32 %v2304_v6, %v2246_v61  ;;  %v8334_v41 = vpop.f32.mrf.mxu3 }
 0x16e   : > { %vm3598_vm4 = vcmp.gt.f32.partialorder %v2305_v26, 0.0  ;;  %v3678_v40 = vmul.f32 0.2, %v2305_v26 }
 0x16f   : > { %v2189_v63 = vpop.f32.mrf.mxu0 }
 0x170   : > { %v2190_v50 = vadd.f32 %v2189_v63, %v7937_v11  ;;  %v2248_v54 = vpop.f32.mrf.mxu1  ;;  %2532 = vmatmul.bf16.vlgmr.msra.gmra.mxu2 %v7547_v56  ;;  %v3758_v9 = vsel %vm3598_vm4, %v2305_v26, %v3678_v40  ;;  %v6946_v40 = vld [vmem:[%s10363_s1 + $0x1b4] sm:$0xf0] }
 0x171   : > { %2591 = vmatmul.bf16.vlgmr.msra.gmra.mxu3 %v7922_v2  ;;  %v8341_v61 = vpack.c.bf16 %v3758_v9, %v3754_v49 }
 0x172   : > { %v2249_v29 = vadd.f32 %v2248_v54, %v2190_v50  ;;  %2414 = vmatmul.bf16.vlgmr.msra.gmra.mxu0 %v7541_v51  ;;  %v5809_v50 = vld [vmem:[%s10363_s1 + $0xa8] sm:$0xf]  ;;  %v6443_v54 = vld [vmem:[%s10363_s1 + $0x5b0] sm:$0xf0] }
 0x173   : > { %2473 = vmatmul.bf16.vlgmr.msra.gmra.mxu1 %v7543_v52  ;;  %10569 = vst [vmem:[#allocation63_spill] sm:$0xff] %v8341_v61  ;;  %v2307_v17 = vpop.f32.mrf.mxu2  ;;  %v5810_v26 = vor.u32 %v6914_v24, %v5809_v50 }
 0x174   : > { %v2308_v16 = vadd.f32 %v2307_v17, %v2249_v29  ;;  %v8343_v0 = vpop.f32.mrf.mxu3  ;;  %v6446_v29 = vor.u32 %v7071_v8, %v6443_v54 }
 0x175   : > { %2762 = vmatpush.bf16.msrb.mxu2 %v5810_v26 }
 0x176   : > { %2644 = vmatpush.bf16.msrb.mxu0 %v6446_v29  ;;  %v3682_v17 = vmul.f32 0.2, %v2308_v16  ;;  %vm3602_vm5 = vcmp.gt.f32.partialorder %v2308_v16, 0.0 }
 0x177   : > { %v2191_v11 = vpop.f32.mrf.mxu0 }
 0x178   : > { %v2192_v48 = vadd.f32 %v2191_v11, %v7970_v3  ;;  %v2250_v6 = vpop.f32.mrf.mxu1  ;;  %v5937_v3 = vld [vmem:[%s10363_s1 + $0x1a8] sm:$0xf]  ;;  %v3762_v8 = vsel %vm3602_vm5, %v2308_v16, %v3682_v17 }
 0x179   : > { %v5938_v49 = vor.u32 %v6946_v40, %v5937_v3 }
 0x17a   : > { %v2251_v63 = vadd.f32 %v2250_v6, %v2192_v48 }
 0x17b   : > { %v2309_v9 = vpop.f32.mrf.mxu2  ;;  %2821 = vmatpush.bf16.msrb.mxu3 %v5938_v49 }
 0x17c   : > { %v2310_v11 = vadd.f32 %v2309_v9, %v2251_v63  ;;  %v8364_v48 = vpop.f32.mrf.mxu3 }
 0x17e   : > { %vm3606_vm6 = vcmp.gt.f32.partialorder %v2310_v11, 0.0  ;;  %v3686_v61 = vmul.f32 0.2, %v2310_v11 }
 0x17f   : > { %v2194_v6 = vpop.f32.mrf.mxu0 }
 0x180   : > { %v2195_v50 = vadd.f32 %v2194_v6, %v7984_v22  ;;  %v2253_v24 = vpop.f32.mrf.mxu1  ;;  %2537 = vmatmul.bf16.gmra.mxu2 %v7597_v21  ;;  %v3766_v26 = vsel %vm3606_vm6, %v2310_v11, %v3686_v61 }
 0x181   : > { %2596 = vmatmul.bf16.gmra.mxu3 %v7963_v30  ;;  %v8371_v63 = vpack.c.bf16 %v3766_v26, %v3762_v8  ;;  %v7067_v26 = vld [vmem:[%s10363_s1 + $0x584] sm:$0xf] }
 0x182   : > { %v2254_v60 = vadd.f32 %v2253_v24, %v2195_v50  ;;  %2419 = vmatmul.bf16.gmra.mxu0 %v7593_v19 }
 0x183   : > { %2478 = vmatmul.bf16.gmra.mxu1 %v7595_v20  ;;  %10570 = vst [vmem:[#allocation64_spill] sm:$0xff] %v8371_v63  ;;  %v2312_v54 = vpop.f32.mrf.mxu2 }
 0x184   : > { %v2313_v3 = vadd.f32 %v2312_v54, %v2254_v60  ;;  %v8373_v40 = vpop.f32.mrf.mxu3  ;;  %v5793_v60 = vld [vmem:[%s10363_s1 + $0x88] sm:$0xf] }
 0x186   : > { %v3690_v6 = vmul.f32 0.2, %v2313_v3  ;;  %vm3610_vm7 = vcmp.gt.f32.partialorder %v2313_v3, 0.0 }
 0x187   : > { %v2196_v22 = vpop.f32.mrf.mxu0 }
 0x188   : > { %v2197_v29 = vadd.f32 %v2196_v22, %v7999_v4  ;;  %v2255_v49 = vpop.f32.mrf.mxu1  ;;  %v6910_v4 = vld [vmem:[%s10363_s1 + $0x94] sm:$0xf0]  ;;  %v3770_v54 = vsel %vm3610_vm7, %v2313_v3, %v3690_v6 }
 0x189   : > { %v5794_v22 = vor.u32 %v6910_v4, %v5793_v60 }
 0x18a   : > { %v2256_v9 = vadd.f32 %v2255_v49, %v2197_v29  ;;  %v5921_v49 = vld [vmem:[%s10363_s1 + $0x188] sm:$0xf] }
 0x18b   : > { %v2314_v50 = vpop.f32.mrf.mxu2  ;;  %2763 = vmatpush.bf16.msrb.mxu2 %v5794_v22 }
 0x18c   : > { %v2315_v24 = vadd.f32 %v2314_v50, %v2256_v9  ;;  %v8376_v21 = vpop.f32.mrf.mxu3  ;;  %v6942_v9 = vld [vmem:[%s10363_s1 + $0x194] sm:$0xf0] }
 0x18e   : > { %vm3614_vm8 = vcmp.gt.f32.partialorder %v2315_v24, 0.0  ;;  %v3694_v11 = vmul.f32 0.2, %v2315_v24 }
 0x18f   : > { %v2199_v61 = vpop.f32.mrf.mxu0 }
 0x190   : > { %v2200_v16 = vadd.f32 %v2199_v61, %v8031_v10  ;;  %v2258_v17 = vpop.f32.mrf.mxu1  ;;  %v6427_v10 = vld [vmem:[%s10363_s1 + $0x590] sm:$0xf0]  ;;  %2542 = vmatmul.bf16.gmra.mxu2 %v7629_v39  ;;  %v3774_v50 = vsel %vm3614_vm8, %v2315_v24, %v3694_v11  ;;  %v5922_v61 = vor.u32 %v6942_v9, %v5921_v49 }
 0x191   : > { %v6430_v29 = vor.u32 %v7067_v26, %v6427_v10  ;;  %2601 = vmatmul.bf16.gmra.mxu3 %v7992_v53 }
 0x192   : > { %v2259_v8 = vadd.f32 %v2258_v17, %v2200_v16  ;;  %2424 = vmatmul.bf16.gmra.mxu0 %v7625_v37  ;;  %v8401_v16 = vpack.c.bf16 %v3774_v50, %v3770_v54  ;;  %2822 = vmatpush.bf16.msrb.mxu3 %v5922_v61  ;;  %v7063_v50 = vld [vmem:[%s10363_s1 + $0x564] sm:$0xf] }
 0x193   : > { %2483 = vmatmul.bf16.gmra.mxu1 %v7627_v38  ;;  %2645 = vmatpush.bf16.msrb.mxu0 %v6430_v29  ;;  %v2317_v3 = vpop.f32.mrf.mxu2 }
 0x194   : > { %10571 = vst [vmem:[#allocation65_spill] sm:$0xff] %v8401_v16  ;;  %v2318_v6 = vadd.f32 %v2317_v3, %v2259_v8  ;;  %v8403_v17 = vpop.f32.mrf.mxu3 }
 0x196   : > { %v3698_v39 = vmul.f32 0.2, %v2318_v6  ;;  %vm3618_vm9 = vcmp.gt.f32.partialorder %v2318_v6, 0.0 }
 0x197   : > { %v2201_v60 = vpop.f32.mrf.mxu0 }
 0x198   : > { %v2202_v4 = vadd.f32 %v2201_v60, %v8046_v35  ;;  %v2260_v26 = vpop.f32.mrf.mxu1  ;;  %v3778_v35 = vsel %vm3618_vm9, %v2318_v6, %v3698_v39  ;;  %v6411_v39 = vld [vmem:[%s10363_s1 + $0x570] sm:$0xf0]  ;;  %v5905_v6 = vld [vmem:[%s10363_s1 + $0x168] sm:$0xf]  ;;  %v6938_v60 = vld [vmem:[%s10363_s1 + $0x174] sm:$0xf0] }
 0x19a   : > { %v2261_v10 = vadd.f32 %v2260_v26, %v2202_v4  ;;  %v6414_v26 = vor.u32 %v7063_v50, %v6411_v39 }
 0x19b   : > { %v2319_v63 = vpop.f32.mrf.mxu2 }
 0x19c   : > { %v2320_v24 = vadd.f32 %v2319_v63, %v2261_v10  ;;  %v8406_v11 = vpop.f32.mrf.mxu3  ;;  %v5777_v63 = vld [vmem:[%s10363_s1 + $0x68] sm:$0xf]  ;;  %v5906_v10 = vor.u32 %v6938_v60, %v5905_v6  ;;  %2646 = vmatpush.bf16.msrb.mxu0 %v6414_v26 }
 0x19e   : > { %vm3622_vm10 = vcmp.gt.f32.partialorder %v2320_v24, 0.0  ;;  %v3702_v29 = vmul.f32 0.2, %v2320_v24  ;;  %2823 = vmatpush.bf16.msrb.mxu3 %v5906_v10 }
 0x19f   : > { %v2204_v49 = vpop.f32.mrf.mxu0 }
 0x1a0   : > { %v2205_v54 = vadd.f32 %v2204_v49, %v8072_v18  ;;  %v2263_v22 = vpop.f32.mrf.mxu1  ;;  %2547 = vmatmul.bf16.gmra.mxu2 %v7655_v58  ;;  %v3782_v9 = vsel %vm3622_vm10, %v2320_v24, %v3702_v29  ;;  %v6906_v18 = vld [vmem:[%s10363_s1 + $0x74] sm:$0xf0] }
 0x1a1   : > { %2606 = vmatmul.bf16.gmra.mxu3 %v8039_v47  ;;  %v8422_v61 = vpack.c.bf16 %v3782_v9, %v3778_v35  ;;  %v5778_v3 = vor.u32 %v6906_v18, %v5777_v63 }
 0x1a2   : > { %v2264_v8 = vadd.f32 %v2263_v22, %v2205_v54  ;;  %2429 = vmatmul.bf16.gmra.mxu0 %v7651_v55 }
 0x1a3   : > { %2488 = vmatmul.bf16.gmra.mxu1 %v7653_v57  ;;  %10572 = vst [vmem:[#allocation66_spill] sm:$0xff] %v8422_v61  ;;  %v2322_v4 = vpop.f32.mrf.mxu2  ;;  %2764 = vmatpush.bf16.msrb.mxu2 %v5778_v3 }
 0x1a4   : > { %v2323_v24 = vadd.f32 %v2322_v4, %v2264_v8  ;;  %v8433_v49 = vpop.f32.mrf.mxu3 }
 0x1a6   : > { %v3706_v63 = vmul.f32 0.2, %v2323_v24  ;;  %vm3626_vm11 = vcmp.gt.f32.partialorder %v2323_v24, 0.0 }
 0x1a7   : > { %v2206_v54 = vpop.f32.mrf.mxu0 }
 0x1a8   : > { %v2207_v22 = vadd.f32 %v2206_v54, %v8093_v36  ;;  %v2265_v29 = vpop.f32.mrf.mxu1  ;;  %v3786_v36 = vsel %vm3626_vm11, %v2323_v24, %v3706_v63  ;;  %v6902_v24 = vld [vmem:[%s10363_s1 + $0x54] sm:$0xf0] }
 0x1aa   : > { %v2266_v35 = vadd.f32 %v2265_v29, %v2207_v22  ;;  %v5761_v22 = vld [vmem:[%s10363_s1 + $0x48] sm:$0xf] }
 0x1ab   : > { %v2324_v9 = vpop.f32.mrf.mxu2  ;;  %v5762_v63 = vor.u32 %v6902_v24, %v5761_v22  ;;  %v10574_v24 = vld [vmem:[#allocation17_spill] sm:$0xff] }
 0x1ac   : > { %v2325_v18 = vadd.f32 %v2324_v9, %v2266_v35  ;;  %v8436_v61 = vpop.f32.mrf.mxu3  ;;  %v7059_v35 = vld [vmem:[%s10363_s1 + $0x544] sm:$0xf]  ;;  %v6395_v9 = vld [vmem:[%s10363_s1 + $0x550] sm:$0xf0] }
 0x1ad   : > { %2765 = vmatpush.bf16.msrb.mxu2 %v5762_v63 }
 0x1ae   : > { %vm3630_vm12 = vcmp.gt.f32.partialorder %v2325_v18, 0.0  ;;  %v3710_v39 = vmul.f32 0.2, %v2325_v18 }
 0x1af   : > { %v2209_v16 = vpop.f32.mrf.mxu0 }
 0x1b0   : > { %v2210_v50 = vadd.f32 %v2209_v16, %v8101_v45  ;;  %v2268_v8 = vpop.f32.mrf.mxu1  ;;  %2552 = vmatmul.bf16.gmra.mxu2 %v7693_v15  ;;  %v3790_v3 = vsel %vm3630_vm12, %v2325_v18, %v3710_v39  ;;  %v5889_v18 = vld [vmem:[%s10363_s1 + $0x148] sm:$0xf] }
 0x1b1   : > { %2611 = vmatmul.bf16.gmra.mxu3 %v8086_v33  ;;  %v8443_v60 = vpack.c.bf16 %v3790_v3, %v3786_v36  ;;  %v10594_v15 = vld [vmem:[#allocation36_spill] sm:$0xff] }
 0x1b2   : > { %v2269_v6 = vadd.f32 %v2268_v8, %v2210_v50  ;;  %2434 = vmatmul.bf16.gmra.mxu0 %v7689_v13  ;;  %v6934_v50 = vld [vmem:[%s10363_s1 + $0x154] sm:$0xf0] }
 0x1b3   : > { %2493 = vmatmul.bf16.gmra.mxu1 %v7691_v14  ;;  %10573 = vst [vmem:[#allocation67_spill] sm:$0xff] %v8443_v60  ;;  %v2327_v4 = vpop.f32.mrf.mxu2  ;;  %v5890_v8 = vor.u32 %v6934_v50, %v5889_v18  ;;  %v10577_v18 = vld [vmem:[#allocation48_spill] sm:$0xff] }
 0x1b4   : > { %v2328_v26 = vadd.f32 %v2327_v4, %v2269_v6  ;;  %v8445_v10 = vpop.f32.mrf.mxu3  ;;  %v5745_v60 = vld [vmem:[%s10363_s1 + $0x28] sm:$0xf] }
 0x1b5   : > { %2824 = vmatpush.bf16.msrb.mxu3 %v5890_v8 }
 0x1b6   : > { %v3714_v6 = vmul.f32 0.2, %v2328_v26  ;;  %vm3634_vm13 = vcmp.gt.f32.partialorder %v2328_v26, 0.0 }
 0x1b7   : > { %v2211_v45 = vpop.f32.mrf.mxu0 }
 0x1b8   : > { %v2212_v16 = vadd.f32 %v2211_v45, %v8140_v32  ;;  %v2270_v54 = vpop.f32.mrf.mxu1  ;;  %v6398_v32 = vor.u32 %v7059_v35, %v6395_v9  ;;  %v10575_v35 = vld [vmem:[#allocation18_spill] sm:$0xff]  ;;  %v10576_v9 = vld [vmem:[#allocation19_spill] sm:$0xff]  ;;  %v3794_v63 = vsel %vm3634_vm13, %v2328_v26, %v3714_v6 }
 0x1b9   : > { %v6898_v26 = vld [vmem:[%s10363_s1 + $0x34] sm:$0xf0]  ;;  %v7055_v6 = vld [vmem:[%s10363_s1 + $0x524] sm:$0xf] }
 0x1ba   : > { %v2271_v29 = vadd.f32 %v2270_v54, %v2212_v16  ;;  %2647 = vmatpush.bf16.msrb.mxu0 %v6398_v32 }
 0x1bb   : > { %v2329_v39 = vpop.f32.mrf.mxu2 }
 0x1bc   : > { %v2330_v36 = vadd.f32 %v2329_v39, %v2271_v29  ;;  %v8466_v3 = vpop.f32.mrf.mxu3 }
 0x1be   : > { %vm3638_vm14 = vcmp.gt.f32.partialorder %v2330_v36, 0.0  ;;  %v3718_v54 = vmul.f32 0.2, %v2330_v36 }
 0x1bf   : > { %v2214_v4 = vpop.f32.mrf.mxu0 }
 0x1c0   : > { %v2215_v45 = vadd.f32 %v2214_v4, %v8148_v44  ;;  %v2273_v16 = vpop.f32.mrf.mxu1  ;;  %2557 = vmatmul.bf16.gmra.mxu2 %v10576_v9  ;;  %v3798_v32 = vsel %vm3638_vm14, %v2330_v36, %v3718_v54  ;;  %v5746_v36 = vor.u32 %v6898_v26, %v5745_v60  ;;  %v6379_v54 = vld [vmem:[%s10363_s1 + $0x530] sm:$0xf0] }
 0x1c1   : > { %2616 = vmatmul.bf16.gmra.mxu3 %v10577_v18  ;;  %v8473_v29 = vpack.c.bf16 %v3798_v32, %v3794_v63  ;;  %v6382_v63 = vor.u32 %v7055_v6, %v6379_v54  ;;  %v10580_v6 = vld [vmem:[#allocation22_spill] sm:$0xff] }
 0x1c2   : > { %v2274_v22 = vadd.f32 %v2273_v16, %v2215_v45  ;;  %2439 = vmatmul.bf16.gmra.mxu0 %v10574_v24  ;;  %2766 = vmatpush.bf16.msrb.mxu2 %v5746_v36  ;;  %v10581_v36 = vld [vmem:[#allocation23_spill] sm:$0xff] }
 0x1c3   : > { %2498 = vmatmul.bf16.gmra.mxu1 %v10575_v35  ;;  %10578 = vst [vmem:[#allocation68_spill] sm:$0xff] %v8473_v29  ;;  %v2332_v50 = vpop.f32.mrf.mxu2  ;;  %2648 = vmatpush.bf16.msrb.mxu0 %v6382_v63  ;;  %v10579_v35 = vld [vmem:[#allocation21_spill] sm:$0xff] }
 0x1c4   : > { %v2333_v8 = vadd.f32 %v2332_v50, %v2274_v22  ;;  %v8475_v39 = vpop.f32.mrf.mxu3  ;;  %v6930_v22 = vld [vmem:[%s10363_s1 + $0x134] sm:$0xf0] }
 0x1c6   : > { %vm3642_vm15 = vcmp.gt.f32.partialorder %v2333_v8, 0.0 }
 0x1c7   : > { %v2216_v44 = vpop.f32.mrf.mxu0 }
 0x1c8   : > { %v2217_v4 = vadd.f32 %v2216_v44, %v8181_v42  ;;  %v2275_v45 = vpop.f32.mrf.mxu1  ;;  %v5873_v42 = vld [vmem:[%s10363_s1 + $0x128] sm:$0xf]  ;;  %v3722_v44 = vmul.f32 0.2, %v2333_v8 }
 0x1c9   : > { %v5874_v32 = vor.u32 %v6930_v22, %v5873_v42 }
 0x1ca   : > { %v2276_v16 = vadd.f32 %v2275_v45, %v2217_v4  ;;  %v3802_v54 = vsel %vm3642_vm15, %v2333_v8, %v3722_v44 }
 0x1cb   : > { %v2334_v50 = vpop.f32.mrf.mxu2  ;;  %2825 = vmatpush.bf16.msrb.mxu3 %v5874_v32 }
 0x1cc   : > { %v2335_v60 = vadd.f32 %v2334_v50, %v2276_v16  ;;  %v8496_v4 = vpop.f32.mrf.mxu3 }
 0x1ce   : > { %vm3646_vm1 = vcmp.gt.f32.partialorder %v2335_v60, 0.0  ;;  %v3726_v18 = vmul.f32 0.2, %v2335_v60 }
 0x1cf   : > { %v2219_v45 = vpop.f32.mrf.mxu0 }
 0x1d0   : > { %v2220_v26 = vadd.f32 %v2219_v45, %v8195_v5  ;;  %v2278_v29 = vpop.f32.mrf.mxu1  ;;  %2562 = vmatmul.bf16.gmra.mxu2 %v10581_v36  ;;  %v3806_v42 = vsel %vm3646_vm1, %v2335_v60, %v3726_v18 }
 0x1d1   : > { %2621 = vmatmul.bf16.gmra.mxu3 %v8174_v28  ;;  %v8503_v16 = vpack.c.bf16 %v3806_v42, %v3802_v54  ;;  %v6894_v42 = vld [vmem:[%s10363_s1 + $0x14] sm:$0xf0] }
 0x1d2   : > { %v2279_v9 = vadd.f32 %v2278_v29, %v2220_v26  ;;  %2444 = vmatmul.bf16.gmra.mxu0 %v10579_v35 }
 0x1d3   : > { %2503 = vmatmul.bf16.gmra.mxu1 %v10580_v6  ;;  %10582 = vst [vmem:[#allocation69_spill] sm:$0xff] %v8503_v16  ;;  %v2337_v22 = vpop.f32.mrf.mxu2 }
 0x1d4   : > { %v2338_v63 = vadd.f32 %v2337_v22, %v2279_v9  ;;  %v8505_v32 = vpop.f32.mrf.mxu3  ;;  %v5729_v9 = vld [vmem:[%s10363_s1 + $0x8] sm:$0xf] }
 0x1d6   : > { %v3730_v26 = vmul.f32 0.2, %v2338_v63  ;;  %vm3650_vm2 = vcmp.gt.f32.partialorder %v2338_v63, 0.0 }
 0x1d7   : > { %v2221_v5 = vpop.f32.mrf.mxu0 }
 0x1d8   : > { %v2222_v50 = vadd.f32 %v2221_v5, %v8210_v43  ;;  %v2280_v29 = vpop.f32.mrf.mxu1  ;;  %v10583_v43 = vld [vmem:[#allocation25_spill] sm:$0xff]  ;;  %v3810_v22 = vsel %vm3650_vm2, %v2338_v63, %v3730_v26  ;;  %v10584_v5 = vld [vmem:[#allocation26_spill] sm:$0xff] }
 0x1da   : > { %v2281_v45 = vadd.f32 %v2280_v29, %v2222_v50  ;;  %v10585_v50 = vld [vmem:[#allocation27_spill] sm:$0xff]  ;;  %v5730_v29 = vor.u32 %v6894_v42, %v5729_v9 }
 0x1db   : > { %v2339_v33 = vpop.f32.mrf.mxu2 }
 0x1dc   : > { %v2340_v6 = vadd.f32 %v2339_v33, %v2281_v45  ;;  %v8508_v36 = vpop.f32.mrf.mxu3  ;;  %v7051_v33 = vld [vmem:[%s10363_s1 + $0x504] sm:$0xf]  ;;  %2767 = vmatpush.bf16.msrb.mxu2 %v5730_v29 }
 0x1de   : > { %vm3654_vm3 = vcmp.gt.f32.partialorder %v2340_v6, 0.0  ;;  %v3734_v60 = vmul.f32 0.2, %v2340_v6 }
 0x1df   : > { %v2224_v18 = vpop.f32.mrf.mxu0 }
 0x1e0   : > { %v2225_v8 = vadd.f32 %v2224_v18, %v8242_v31  ;;  %v2283_v44 = vpop.f32.mrf.mxu1  ;;  %v6363_v31 = vld [vmem:[%s10363_s1 + $0x510] sm:$0xf0]  ;;  %2567 = vmatmul.bf16.gmra.mxu2 %v10585_v50  ;;  %v5857_v18 = vld [vmem:[%s10363_s1 + $0x108] sm:$0xf] }
 0x1e1   : > { %v6366_v45 = vor.u32 %v7051_v33, %v6363_v31  ;;  %2626 = vmatmul.bf16.gmra.mxu3 %v8203_v34  ;;  %v10588_v34 = vld [vmem:[#allocation30_spill] sm:$0xff]  ;;  %v6225_v50 = vld [vmem:[%s10363_s1 + $0x3e8] sm:$0xf] }
 0x1e2   : > { %v2284_v54 = vadd.f32 %v2283_v44, %v2225_v8  ;;  %2449 = vmatmul.bf16.gmra.mxu0 %v10583_v43  ;;  %v6926_v8 = vld [vmem:[%s10363_s1 + $0x114] sm:$0xf0]  ;;  %v3814_v44 = vsel %vm3654_vm3, %v2340_v6, %v3734_v60  ;;  %v8541_v6 = vld [vmem:[%s10364_s2] sm:$0xf] }
 0x1e3   : > { %2508 = vmatmul.bf16.gmra.mxu1 %v10584_v5  ;;  %v5858_v16 = vor.u32 %v6926_v8, %v5857_v18  ;;  %v8533_v28 = vpack.c.bf16 %v3814_v44, %v3810_v22  ;;  %2649 = vmatpush.bf16.msrb.mxu0 %v6366_v45  ;;  %v2342_v63 = vpop.f32.mrf.mxu2  ;;  %v8544_v60 = vperm.slane %v8541_v6, 1  ;;  %v10593_v5 = vld [vmem:[#allocation35_spill] sm:$0xff] }
 0x1e4   : > { %v2343_v26 = vadd.f32 %v2342_v63, %v2284_v54  ;;  %v8535_v9 = vpop.f32.mrf.mxu3 }
 0x1e5   : > { %10586 = vst [vmem:[#allocation70_spill] sm:$0xff] %v8533_v28  ;;  %2826 = vmatpush.bf16.msrb.mxu3 %v5858_v16  ;;  %v2357_v29 = vadd.f32 %v8282_v27, %v8544_v60  ;;  %v10587_v28 = vld [vmem:[#allocation29_spill] sm:$0xff] }
 0x1e6   : > { %v3738_v54 = vmul.f32 0.2, %v2343_v26  ;;  %vm3658_vm4 = vcmp.gt.f32.partialorder %v2343_v26, 0.0 }
 0x1e7   : > { %v2226_v42 = vpop.f32.mrf.mxu0 }
 0x1e8   : > { %v2227_v33 = vadd.f32 %v2226_v42, %v8257_v25  ;;  %v2285_v31 = vpop.f32.mrf.mxu1 }
 0x1ea   : > { %v2286_v22 = vadd.f32 %v2285_v31, %v2227_v33  ;;  %v10589_v33 = vld [vmem:[#allocation31_spill] sm:$0xff]  ;;  %v3818_v31 = vsel %vm3658_vm4, %v2343_v26, %v3738_v54  ;;  %v6986_v26 = vld [vmem:[%s10363_s1 + $0x2f4] sm:$0xf0]  ;;  %v6481_v54 = vld [vmem:[%s10363_s1 + $0x5e8] sm:$0xf] }
 0x1eb   : > { %v2344_v16 = vpop.f32.mrf.mxu2 }
 0x1ec   : > { %v2345_v45 = vadd.f32 %v2344_v16, %v2286_v22  ;;  %v8548_v18 = vpop.f32.mrf.mxu3  ;;  %v6353_v22 = vld [vmem:[%s10363_s1 + $0x4e8] sm:$0xf] }
 0x1ed   : > { %v6097_v16 = vld [vmem:[%s10363_s1 + $0x2e8] sm:$0xf] }
 0x1ee   : > { %vm3662_vm5 = vcmp.gt.f32.partialorder %v2345_v45, 0.0  ;;  %v3742_v63 = vmul.f32 0.2, %v2345_v45 }
 0x1ef   : > { %v2415_v8 = vpop.f32.mrf.mxu0 }
 0x1f0   : > { %v2416_v25 = vadd.f32 %v2415_v8, %v2357_v29  ;;  %v2474_v44 = vpop.f32.mrf.mxu1  ;;  %2572 = vmatmul.bf16.gmra.mxu2 %v10589_v33  ;;  %v3822_v27 = vsel %vm3662_vm5, %v2345_v45, %v3742_v63  ;;  %v7050_v29 = vld [vmem:[%s10363_s1 + $0x4f4] sm:$0xf0] }
 0x1f1   : > { %2631 = vmatmul.bf16.gmra.mxu3 %v8250_v7  ;;  %v8563_v8 = vpack.c.bf16 %v3822_v27, %v3818_v31  ;;  %v7082_v45 = vld [vmem:[%s10363_s1 + $0x5f4] sm:$0xf0]  ;;  %v6098_v7 = vor.u32 %v6986_v26, %v6097_v16 }
 0x1f2   : > { %v2475_v42 = vadd.f32 %v2474_v44, %v2416_v25  ;;  %2454 = vmatmul.bf16.gmra.mxu0 %v10587_v28  ;;  %v6354_v25 = vor.u32 %v7050_v29, %v6353_v22  ;;  %v2359_v44 = vadd.f32 %v8299_v12, %v8544_v60  ;;  %v6482_v31 = vor.u32 %v7082_v45, %v6481_v54  ;;  %v7018_v12 = vld [vmem:[%s10363_s1 + $0x3f4] sm:$0xf0] }
 0x1f3   : > { %2513 = vmatmul.bf16.gmra.mxu1 %v10588_v34  ;;  %10590 = vst [vmem:[#allocation29_spill] sm:$0xff] %v8563_v8  ;;  %v2533_v63 = vpop.f32.mrf.mxu2  ;;  %2878 = vmatpush.bf16.msra.mxu0 %v6098_v7  ;;  %v6226_v26 = vor.u32 %v7018_v12, %v6225_v50 }
 0x1f4   : > { %v2534_v27 = vadd.f32 %v2533_v63, %v2475_v42  ;;  %v2592_v22 = vpop.f32.mrf.mxu3  ;;  %2996 = vmatpush.bf16.msra.mxu2 %v6354_v25  ;;  %3055 = vmatpush.bf16.msra.mxu3 %v6482_v31  ;;  %v2362_v42 = vadd.f32 %v8313_v62, %v8544_v60  ;;  %v2364_v62 = vadd.f32 %v8334_v41, %v8544_v60  ;;  %v6081_v41 = vld [vmem:[%s10363_s1 + $0x2c8] sm:$0xf] }
 0x1f5   : > { %2937 = vmatpush.bf16.msra.mxu1 %v6226_v26 }
 0x1f6   : > { %v8576_v34 = vadd.f32 %v2592_v22, %v2534_v27  ;;  %v10591_v22 = vld [vmem:[#allocation33_spill] sm:$0xff] }
 0x1f7   : > { %v2417_v29 = vpop.f32.mrf.mxu0 }
 0x1f8   : > { %v2418_v8 = vadd.f32 %v2417_v29, %v2359_v44  ;;  %v2476_v33 = vpop.f32.mrf.mxu1  ;;  %v10592_v29 = vld [vmem:[#allocation34_spill] sm:$0xff] }
 0x1fa   : > { %v2477_v16 = vadd.f32 %v2476_v33, %v2418_v8 }
 0x1fb   : > { %v2535_v25 = vpop.f32.mrf.mxu2 }
 0x1fc   : > { %v2536_v54 = vadd.f32 %v2535_v25, %v2477_v16  ;;  %v2594_v7 = vpop.f32.mrf.mxu3  ;;  %v6337_v25 = vld [vmem:[%s10363_s1 + $0x4c8] sm:$0xf] }
 0x1fe   : > { %v8586_v31 = vadd.f32 %v2594_v7, %v2536_v54  ;;  %v7046_v54 = vld [vmem:[%s10363_s1 + $0x4d4] sm:$0xf0] }
 0x1ff   : > { %v2420_v45 = vpop.f32.mrf.mxu0 }
 0x200   : > { %v2421_v44 = vadd.f32 %v2420_v45, %v2362_v42  ;;  %v2479_v63 = vpop.f32.mrf.mxu1  ;;  %2577 = vmatmul.bf16.gmra.mxu2 %v10593_v5  ;;  %v6338_v45 = vor.u32 %v7046_v54, %v6337_v25 }
 0x201   : > { %2636 = vmatmul.bf16.gmra.mxu3 %v8297_v46 }
 0x202   : > { %v2480_v27 = vadd.f32 %v2479_v63, %v2421_v44  ;;  %2459 = vmatmul.bf16.gmra.mxu0 %v10591_v22  ;;  %v6982_v44 = vld [vmem:[%s10363_s1 + $0x2d4] sm:$0xf0]  ;;  %v6465_v63 = vld [vmem:[%s10363_s1 + $0x5c8] sm:$0xf]  ;;  %2997 = vmatpush.bf16.msra.mxu2 %v6338_v45  ;;  %v10595_v45 = vld [vmem:[#allocation37_spill] sm:$0xff] }
 0x203   : > { %2518 = vmatmul.bf16.gmra.mxu1 %v10592_v29  ;;  %v2538_v50 = vpop.f32.mrf.mxu2 }
 0x204   : > { %v2539_v33 = vadd.f32 %v2538_v50, %v2480_v27  ;;  %v2597_v8 = vpop.f32.mrf.mxu3  ;;  %v6082_v27 = vor.u32 %v6982_v44, %v6081_v41  ;;  %v6209_v50 = vld [vmem:[%s10363_s1 + $0x3c8] sm:$0xf] }
 0x206   : > { %v8594_v42 = vadd.f32 %v2597_v8, %v2539_v33  ;;  %v7014_v33 = vld [vmem:[%s10363_s1 + $0x3d4] sm:$0xf0]  ;;  %2879 = vmatpush.bf16.msra.mxu0 %v6082_v27 }
 0x207   : > { %v2422_v12 = vpop.f32.mrf.mxu0 }
 0x208   : > { %v2423_v16 = vadd.f32 %v2422_v12, %v2364_v62  ;;  %v2481_v26 = vpop.f32.mrf.mxu1  ;;  %v7078_v62 = vld [vmem:[%s10363_s1 + $0x5d4] sm:$0xf0]  ;;  %v6210_v12 = vor.u32 %v7014_v33, %v6209_v50 }
 0x209   : > { %v6466_v8 = vor.u32 %v7078_v62, %v6465_v63  ;;  %v10596_v63 = vld [vmem:[#allocation3_spill] sm:$0xff] }
 0x20a   : > { %v2482_v7 = vadd.f32 %v2481_v26, %v2423_v16  ;;  %v2367_v16 = vadd.f32 %v8343_v0, %v8544_v60  ;;  %2938 = vmatpush.bf16.msra.mxu1 %v6210_v12  ;;  %v2369_v0 = vadd.f32 %v8364_v48, %v8544_v60  ;;  %v6065_v48 = vld [vmem:[%s10363_s1 + $0x2a8] sm:$0xf] }
 0x20b   : > { %v2540_v26 = vpop.f32.mrf.mxu2  ;;  %3056 = vmatpush.bf16.msra.mxu3 %v6466_v8 }
 0x20c   : > { %v2541_v25 = vadd.f32 %v2540_v26, %v2482_v7  ;;  %v2599_v54 = vpop.f32.mrf.mxu3  ;;  %v7042_v26 = vld [vmem:[%s10363_s1 + $0x4b4] sm:$0xf0] }
 0x20e   : > { %v8622_v5 = vadd.f32 %v2599_v54, %v2541_v25  ;;  %v6978_v25 = vld [vmem:[%s10363_s1 + $0x2b4] sm:$0xf0]  ;;  %v6449_v54 = vld [vmem:[%s10363_s1 + $0x5a8] sm:$0xf] }
 0x20f   : > { %v2425_v41 = vpop.f32.mrf.mxu0 }
 0x210   : > { %v2426_v44 = vadd.f32 %v2425_v41, %v2367_v16  ;;  %v2484_v46 = vpop.f32.mrf.mxu1  ;;  %2768 = vmatmul.bf16.vlgmr.msrb.gmra.mxu2 %v10596_v63  ;;  %v6321_v16 = vld [vmem:[%s10363_s1 + $0x4a8] sm:$0xf]  ;;  %v7074_v41 = vld [vmem:[%s10363_s1 + $0x5b4] sm:$0xf0] }
 0x211   : > { %2827 = vmatmul.bf16.vlgmr.msrb.gmra.mxu3 %v7541_v51  ;;  %v6193_v51 = vld [vmem:[%s10363_s1 + $0x3a8] sm:$0xf] }
 0x212   : > { %v2485_v29 = vadd.f32 %v2484_v46, %v2426_v44  ;;  %2650 = vmatmul.bf16.vlgmr.msrb.gmra.mxu0 %v10594_v15  ;;  %v6066_v44 = vor.u32 %v6978_v25, %v6065_v48  ;;  %v7010_v48 = vld [vmem:[%s10363_s1 + $0x3b4] sm:$0xf0] }
 0x213   : > { %6513 = vmatmul.msk.bf16.vlgmr.msrb.gmra.mxu1 %vm1903_vm0, %v10595_v45  ;;  %v2543_v7 = vpop.f32.mrf.mxu2  ;;  %v6194_v25 = vor.u32 %v7010_v48, %v6193_v51 }
 0x214   : > { %v2544_v27 = vadd.f32 %v2543_v7, %v2485_v29  ;;  %v2602_v62 = vpop.f32.mrf.mxu3  ;;  %v6322_v29 = vor.u32 %v7042_v26, %v6321_v16  ;;  %v2372_v7 = vadd.f32 %v8373_v40, %v8544_v60  ;;  %2880 = vmatpush.bf16.msra.mxu0 %v6066_v44  ;;  %v10597_v40 = vld [vmem:[#allocation38_spill] sm:$0xff] }
 0x215   : > { %2939 = vmatpush.bf16.msra.mxu1 %v6194_v25 }
 0x216   : > { %v8631_v12 = vadd.f32 %v2602_v62, %v2544_v27  ;;  %2998 = vmatpush.bf16.msra.mxu2 %v6322_v29 }
 0x217   : > { %v2427_v50 = vpop.f32.mrf.mxu0 }
 0x218   : > { %v2428_v33 = vadd.f32 %v2427_v50, %v2369_v0  ;;  %v2486_v8 = vpop.f32.mrf.mxu1  ;;  %v6450_v0 = vor.u32 %v7074_v41, %v6449_v54  ;;  %v10598_v54 = vld [vmem:[#allocation39_spill] sm:$0xff]  ;;  %v2374_v41 = vadd.f32 %v8376_v21, %v8544_v60  ;;  %v6305_v21 = vld [vmem:[%s10363_s1 + $0x488] sm:$0xf] }
 0x21a   : > { %v2487_v46 = vadd.f32 %v2486_v8, %v2428_v33  ;;  %3057 = vmatpush.bf16.msra.mxu3 %v6450_v0 }
 0x21b   : > { %v2545_v27 = vpop.f32.mrf.mxu2 }
 0x21c   : > { %v2546_v62 = vadd.f32 %v2545_v27, %v2487_v46  ;;  %v2604_v50 = vpop.f32.mrf.mxu3  ;;  %v10599_v46 = vld [vmem:[#allocation5_spill] sm:$0xff] }
 0x21e   : > { %v8653_v26 = vadd.f32 %v2604_v50, %v2546_v62 }
 0x21f   : > { %v2430_v33 = vpop.f32.mrf.mxu0 }
 0x220   : > { %v2431_v8 = vadd.f32 %v2430_v33, %v2372_v7  ;;  %v2489_v16 = vpop.f32.mrf.mxu1  ;;  %2773 = vmatmul.bf16.gmra.mxu2 %v10599_v46 }
 0x221   : > { %2832 = vmatmul.bf16.gmra.mxu3 %v7593_v19 }
 0x222   : > { %v2490_v29 = vadd.f32 %v2489_v16, %v2431_v8  ;;  %2655 = vmatmul.bf16.gmra.mxu0 %v10597_v40  ;;  %v2377_v8 = vadd.f32 %v8403_v17, %v8544_v60 }
 0x223   : > { %6514 = vmatmul.msk.bf16.gmra.mxu1 %vm1903_vm0, %v10598_v54  ;;  %v2548_v44 = vpop.f32.mrf.mxu2 }
 0x224   : > { %v2549_v0 = vadd.f32 %v2548_v44, %v2490_v29  ;;  %v2607_v7 = vpop.f32.mrf.mxu3  ;;  %v7038_v29 = vld [vmem:[%s10363_s1 + $0x494] sm:$0xf0]  ;;  %v10600_v44 = vld [vmem:[#allocation40_spill] sm:$0xff] }
 0x225   : > { %v6306_v17 = vor.u32 %v7038_v29, %v6305_v21 }
 0x226   : > { %v8668_v33 = vadd.f32 %v2607_v7, %v2549_v0  ;;  %v6049_v0 = vld [vmem:[%s10363_s1 + $0x288] sm:$0xf]  ;;  %v10601_v7 = vld [vmem:[#allocation41_spill] sm:$0xff] }
 0x227   : > { %v2432_v27 = vpop.f32.mrf.mxu0  ;;  %2999 = vmatpush.bf16.msra.mxu2 %v6306_v17 }
 0x228   : > { %v2433_v62 = vadd.f32 %v2432_v27, %v2374_v41  ;;  %v2491_v50 = vpop.f32.mrf.mxu1  ;;  %v10602_v27 = vld [vmem:[#allocation8_spill] sm:$0xff] }
 0x22a   : > { %v2492_v51 = vadd.f32 %v2491_v50, %v2433_v62  ;;  %v7070_v62 = vld [vmem:[%s10363_s1 + $0x594] sm:$0xf0] }
 0x22b   : > { %v2550_v16 = vpop.f32.mrf.mxu2 }
 0x22c   : > { %v2551_v48 = vadd.f32 %v2550_v16, %v2492_v51  ;;  %v2609_v46 = vpop.f32.mrf.mxu3  ;;  %v6177_v51 = vld [vmem:[%s10363_s1 + $0x388] sm:$0xf] }
 0x22e   : > { %v8672_v63 = vadd.f32 %v2609_v46, %v2551_v48  ;;  %v6433_v46 = vld [vmem:[%s10363_s1 + $0x588] sm:$0xf]  ;;  %v2379_v48 = vadd.f32 %v8406_v11, %v8544_v60 }
 0x22f   : > { %v2435_v19 = vpop.f32.mrf.mxu0  ;;  %v6434_v50 = vor.u32 %v7070_v62, %v6433_v46 }
 0x230   : > { %v2436_v25 = vadd.f32 %v2435_v19, %v2377_v8  ;;  %v2494_v54 = vpop.f32.mrf.mxu1  ;;  %v6974_v19 = vld [vmem:[%s10363_s1 + $0x294] sm:$0xf0]  ;;  %2778 = vmatmul.bf16.gmra.mxu2 %v10602_v27 }
 0x231   : > { %2837 = vmatmul.bf16.gmra.mxu3 %v7625_v37  ;;  %v7006_v8 = vld [vmem:[%s10363_s1 + $0x394] sm:$0xf0]  ;;  %v2382_v37 = vadd.f32 %v8433_v49, %v8544_v60  ;;  %v6289_v49 = vld [vmem:[%s10363_s1 + $0x468] sm:$0xf] }
 0x232   : > { %v2495_v41 = vadd.f32 %v2494_v54, %v2436_v25  ;;  %2660 = vmatmul.bf16.gmra.mxu0 %v10600_v44  ;;  %v6050_v54 = vor.u32 %v6974_v19, %v6049_v0  ;;  %v6178_v16 = vor.u32 %v7006_v8, %v6177_v51  ;;  %3058 = vmatpush.bf16.msra.mxu3 %v6434_v50  ;;  %v10603_v50 = vld [vmem:[#allocation43_spill] sm:$0xff] }
 0x233   : > { %6515 = vmatmul.msk.bf16.gmra.mxu1 %vm1903_vm0, %v10601_v7  ;;  %v2553_v25 = vpop.f32.mrf.mxu2 }
 0x234   : > { %2881 = vmatpush.bf16.msra.mxu0 %v6050_v54  ;;  %v2554_v21 = vadd.f32 %v2553_v25, %v2495_v41  ;;  %v2612_v29 = vpop.f32.mrf.mxu3  ;;  %2940 = vmatpush.bf16.msra.mxu1 %v6178_v16  ;;  %v10604_v16 = vld [vmem:[#allocation44_spill] sm:$0xff]  ;;  %v6970_v25 = vld [vmem:[%s10363_s1 + $0x274] sm:$0xf0] }
 0x236   : > { %v8705_v46 = vadd.f32 %v2612_v29, %v2554_v21  ;;  %v6417_v21 = vld [vmem:[%s10363_s1 + $0x568] sm:$0xf]  ;;  %v7066_v29 = vld [vmem:[%s10363_s1 + $0x574] sm:$0xf0] }
 0x237   : > { %v2437_v0 = vpop.f32.mrf.mxu0 }
 0x238   : > { %v2438_v17 = vadd.f32 %v2437_v0, %v2379_v48  ;;  %v2496_v19 = vpop.f32.mrf.mxu1  ;;  %v10605_v48 = vld [vmem:[#allocation11_spill] sm:$0xff]  ;;  %v2384_v0 = vadd.f32 %v8436_v61, %v8544_v60  ;;  %v7002_v61 = vld [vmem:[%s10363_s1 + $0x374] sm:$0xf0] }
 0x23a   : > { %v2497_v62 = vadd.f32 %v2496_v19, %v2438_v17 }
 0x23b   : > { %v2555_v27 = vpop.f32.mrf.mxu2 }
 0x23c   : > { %v2556_v54 = vadd.f32 %v2555_v27, %v2497_v62  ;;  %v2614_v51 = vpop.f32.mrf.mxu3  ;;  %v6418_v62 = vor.u32 %v7066_v29, %v6417_v21 }
 0x23e   : > { %v8709_v45 = vadd.f32 %v2614_v51, %v2556_v54  ;;  %3059 = vmatpush.bf16.msra.mxu3 %v6418_v62 }
 0x23f   : > { %v2440_v8 = vpop.f32.mrf.mxu0 }
 0x240   : > { %v2441_v7 = vadd.f32 %v2440_v8, %v2382_v37  ;;  %v2499_v11 = vpop.f32.mrf.mxu1  ;;  %2783 = vmatmul.bf16.gmra.mxu2 %v10605_v48  ;;  %v7034_v37 = vld [vmem:[%s10363_s1 + $0x474] sm:$0xf0] }
 0x241   : > { %2842 = vmatmul.bf16.gmra.mxu3 %v7651_v55  ;;  %v6290_v27 = vor.u32 %v7034_v37, %v6289_v49  ;;  %v6161_v55 = vld [vmem:[%s10363_s1 + $0x368] sm:$0xf] }
 0x242   : > { %v2500_v41 = vadd.f32 %v2499_v11, %v2441_v7  ;;  %2665 = vmatmul.bf16.gmra.mxu0 %v10603_v50  ;;  %v6033_v7 = vld [vmem:[%s10363_s1 + $0x268] sm:$0xf] }
 0x243   : > { %6516 = vmatmul.msk.bf16.gmra.mxu1 %vm1903_vm0, %v10604_v16  ;;  %v2558_v17 = vpop.f32.mrf.mxu2  ;;  %v6034_v19 = vor.u32 %v6970_v25, %v6033_v7  ;;  %3000 = vmatpush.bf16.msra.mxu2 %v6290_v27  ;;  %v6162_v25 = vor.u32 %v7002_v61, %v6161_v55  ;;  %v2389_v55 = vadd.f32 %v8466_v3, %v8544_v60  ;;  %v6017_v3 = vld [vmem:[%s10363_s1 + $0x248] sm:$0xf]  ;;  %v10609_v16 = vld [vmem:[#allocation49_spill] sm:$0xff] }
 0x244   : > { %v2559_v54 = vadd.f32 %v2558_v17, %v2500_v41  ;;  %v2617_v51 = vpop.f32.mrf.mxu3  ;;  %v2387_v41 = vadd.f32 %v8445_v10, %v8544_v60 }
 0x245   : > { %2882 = vmatpush.bf16.msra.mxu0 %v6034_v19  ;;  %2941 = vmatpush.bf16.msra.mxu1 %v6162_v25 }
 0x246   : > { %v8736_v37 = vadd.f32 %v2617_v51, %v2559_v54  ;;  %v10606_v51 = vld [vmem:[#allocation46_spill] sm:$0xff] }
 0x247   : > { %v2442_v8 = vpop.f32.mrf.mxu0 }
 0x248   : > { %v2443_v11 = vadd.f32 %v2442_v8, %v2384_v0  ;;  %v2501_v49 = vpop.f32.mrf.mxu1  ;;  %v10607_v8 = vld [vmem:[#allocation47_spill] sm:$0xff] }
 0x24a   : > { %v2502_v7 = vadd.f32 %v2501_v49, %v2443_v11  ;;  %v10608_v11 = vld [vmem:[#allocation13_spill] sm:$0xff] }
 0x24b   : > { %v2560_v27 = vpop.f32.mrf.mxu2 }
 0x24c   : > { %v2561_v21 = vadd.f32 %v2560_v27, %v2502_v7  ;;  %v2619_v29 = vpop.f32.mrf.mxu3 }
 0x24e   : > { %v8746_v62 = vadd.f32 %v2619_v29, %v2561_v21  ;;  %v6273_v21 = vld [vmem:[%s10363_s1 + $0x448] sm:$0xf]  ;;  %v7030_v29 = vld [vmem:[%s10363_s1 + $0x454] sm:$0xf0] }
 0x24f   : > { %v2445_v0 = vpop.f32.mrf.mxu0 }
 0x250   : > { %v2446_v17 = vadd.f32 %v2445_v0, %v2387_v41  ;;  %v2504_v19 = vpop.f32.mrf.mxu1  ;;  %2788 = vmatmul.bf16.gmra.mxu2 %v10608_v11 }
 0x251   : > { %2847 = vmatmul.bf16.gmra.mxu3 %v7689_v13 }
 0x252   : > { %v2505_v54 = vadd.f32 %v2504_v19, %v2446_v17  ;;  %2670 = vmatmul.bf16.gmra.mxu0 %v10606_v51  ;;  %v6274_v17 = vor.u32 %v7030_v29, %v6273_v21  ;;  %v6966_v19 = vld [vmem:[%s10363_s1 + $0x254] sm:$0xf0] }
 0x253   : > { %6517 = vmatmul.msk.bf16.gmra.mxu1 %vm1903_vm0, %v10607_v8  ;;  %v2563_v10 = vpop.f32.mrf.mxu2 }
 0x254   : > { %v2564_v49 = vadd.f32 %v2563_v10, %v2505_v54  ;;  %v2622_v61 = vpop.f32.mrf.mxu3  ;;  %v6401_v54 = vld [vmem:[%s10363_s1 + $0x548] sm:$0xf]  ;;  %v7062_v10 = vld [vmem:[%s10363_s1 + $0x554] sm:$0xf0]  ;;  %3001 = vmatpush.bf16.msra.mxu2 %v6274_v17 }
 0x255   : > { %v10610_v17 = vld [vmem:[#allocation50_spill] sm:$0xff] }
 0x256   : > { %v8755_v27 = vadd.f32 %v2622_v61, %v2564_v49  ;;  %v6145_v49 = vld [vmem:[%s10363_s1 + $0x348] sm:$0xf]  ;;  %v6998_v61 = vld [vmem:[%s10363_s1 + $0x354] sm:$0xf0] }
 0x257   : > { %v2447_v7 = vpop.f32.mrf.mxu0 }
 0x258   : > { %v2448_v25 = vadd.f32 %v2447_v7, %v2389_v55  ;;  %v2506_v41 = vpop.f32.mrf.mxu1  ;;  %v6018_v55 = vor.u32 %v6966_v19, %v6017_v3  ;;  %v6402_v7 = vor.u32 %v7062_v10, %v6401_v54  ;;  %v10611_v54 = vld [vmem:[#allocation16_spill] sm:$0xff] }
 0x25a   : > { %v2507_v0 = vadd.f32 %v2506_v41, %v2448_v25  ;;  %v6146_v25 = vor.u32 %v6998_v61, %v6145_v49  ;;  %2883 = vmatpush.bf16.msra.mxu0 %v6018_v55  ;;  %v2392_v41 = vadd.f32 %v8475_v39, %v8544_v60  ;;  %3060 = vmatpush.bf16.msra.mxu3 %v6402_v7 }
 0x25b   : > { %v2565_v21 = vpop.f32.mrf.mxu2  ;;  %v2394_v39 = vadd.f32 %v8496_v4, %v8544_v60  ;;  %v6001_v4 = vld [vmem:[%s10363_s1 + $0x228] sm:$0xf] }
 0x25c   : > { %2942 = vmatpush.bf16.msra.mxu1 %v6146_v25  ;;  %v2566_v29 = vadd.f32 %v2565_v21, %v2507_v0  ;;  %v2624_v3 = vpop.f32.mrf.mxu3  ;;  %v6962_v21 = vld [vmem:[%s10363_s1 + $0x234] sm:$0xf0] }
 0x25e   : > { %v8783_v8 = vadd.f32 %v2624_v3, %v2566_v29  ;;  %v6385_v29 = vld [vmem:[%s10363_s1 + $0x528] sm:$0xf]  ;;  %v7058_v3 = vld [vmem:[%s10363_s1 + $0x534] sm:$0xf0] }
 0x25f   : > { %v2450_v19 = vpop.f32.mrf.mxu0 }
 0x260   : > { %v2451_v13 = vadd.f32 %v2450_v19, %v2392_v41  ;;  %v2509_v11 = vpop.f32.mrf.mxu1  ;;  %2793 = vmatmul.bf16.gmra.mxu2 %v10611_v54  ;;  %v7026_v41 = vld [vmem:[%s10363_s1 + $0x434] sm:$0xf0]  ;;  %v6002_v19 = vor.u32 %v6962_v21, %v6001_v4 }
 0x261   : > { %2852 = vmatmul.bf16.gmra.mxu3 %v10574_v24  ;;  %v6129_v24 = vld [vmem:[%s10363_s1 + $0x328] sm:$0xf]  ;;  %v6994_v4 = vld [vmem:[%s10363_s1 + $0x334] sm:$0xf0] }
 0x262   : > { %v2510_v48 = vadd.f32 %v2509_v11, %v2451_v13  ;;  %2675 = vmatmul.bf16.gmra.mxu0 %v10609_v16  ;;  %v6257_v11 = vld [vmem:[%s10363_s1 + $0x428] sm:$0xf]  ;;  %v6130_v21 = vor.u32 %v6994_v4, %v6129_v24 }
 0x263   : > { %6518 = vmatmul.msk.bf16.gmra.mxu1 %vm1903_vm0, %v10610_v17  ;;  %v2568_v0 = vpop.f32.mrf.mxu2  ;;  %2884 = vmatpush.bf16.msra.mxu0 %v6002_v19 }
 0x264   : > { %v2569_v55 = vadd.f32 %v2568_v0, %v2510_v48  ;;  %v2627_v10 = vpop.f32.mrf.mxu3  ;;  %v6258_v48 = vor.u32 %v7026_v41, %v6257_v11  ;;  %v2397_v0 = vadd.f32 %v8505_v32, %v8544_v60  ;;  %v10612_v32 = vld [vmem:[#allocation52_spill] sm:$0xff]  ;;  %2943 = vmatpush.bf16.msra.mxu1 %v6130_v21 }
 0x266   : > { %v8792_v25 = vadd.f32 %v2627_v10, %v2569_v55  ;;  %3002 = vmatpush.bf16.msra.mxu2 %v6258_v48 }
 0x267   : > { %v2452_v49 = vpop.f32.mrf.mxu0 }
 0x268   : > { %v2453_v61 = vadd.f32 %v2452_v49, %v2394_v39  ;;  %v2511_v7 = vpop.f32.mrf.mxu1  ;;  %v6386_v39 = vor.u32 %v7058_v3, %v6385_v29  ;;  %v10613_v29 = vld [vmem:[#allocation53_spill] sm:$0xff]  ;;  %v2399_v3 = vadd.f32 %v8508_v36, %v8544_v60  ;;  %v6241_v36 = vld [vmem:[%s10363_s1 + $0x408] sm:$0xf] }
 0x26a   : > { %v2512_v13 = vadd.f32 %v2511_v7, %v2453_v61  ;;  %3061 = vmatpush.bf16.msra.mxu3 %v6386_v39 }
 0x26b   : > { %v2570_v55 = vpop.f32.mrf.mxu2 }
 0x26c   : > { %v2571_v10 = vadd.f32 %v2570_v55, %v2512_v13  ;;  %v2629_v49 = vpop.f32.mrf.mxu3  ;;  %v10614_v13 = vld [vmem:[#allocation20_spill] sm:$0xff] }
 0x26e   : > { %v8814_v41 = vadd.f32 %v2629_v49, %v2571_v10 }
 0x26f   : > { %v2455_v61 = vpop.f32.mrf.mxu0 }
 0x270   : > { %v2456_v7 = vadd.f32 %v2455_v61, %v2397_v0  ;;  %v2514_v11 = vpop.f32.mrf.mxu1  ;;  %2798 = vmatmul.bf16.gmra.mxu2 %v10614_v13 }
 0x271   : > { %2857 = vmatmul.bf16.gmra.mxu3 %v10579_v35 }
 0x272   : > { %v2515_v48 = vadd.f32 %v2514_v11, %v2456_v7  ;;  %2680 = vmatmul.bf16.gmra.mxu0 %v10612_v32  ;;  %v2402_v7 = vadd.f32 %v8535_v9, %v8544_v60 }
 0x273   : > { %6519 = vmatmul.msk.bf16.gmra.mxu1 %vm1903_vm0, %v10613_v29  ;;  %v2573_v19 = vpop.f32.mrf.mxu2 }
 0x274   : > { %v2574_v39 = vadd.f32 %v2573_v19, %v2515_v48  ;;  %v2632_v0 = vpop.f32.mrf.mxu3  ;;  %v7022_v48 = vld [vmem:[%s10363_s1 + $0x414] sm:$0xf0]  ;;  %v10616_v19 = vld [vmem:[#allocation55_spill] sm:$0xff] }
 0x275   : > { %v6242_v9 = vor.u32 %v7022_v48, %v6241_v36 }
 0x276   : > { %v8829_v61 = vadd.f32 %v2632_v0, %v2574_v39  ;;  %v10617_v39 = vld [vmem:[#allocation56_spill] sm:$0xff] }
 0x277   : > { %v2457_v55 = vpop.f32.mrf.mxu0  ;;  %v10618_v0 = vld [vmem:[#allocation24_spill] sm:$0xff]  ;;  %3003 = vmatpush.bf16.msra.mxu2 %v6242_v9 }
 0x278   : > { %v2458_v10 = vadd.f32 %v2457_v55, %v2399_v3  ;;  %v2516_v49 = vpop.f32.mrf.mxu1 }
 0x27a   : > { %v2517_v24 = vadd.f32 %v2516_v49, %v2458_v10  ;;  %v7054_v10 = vld [vmem:[%s10363_s1 + $0x514] sm:$0xf0]  ;;  %v6113_v49 = vld [vmem:[%s10363_s1 + $0x308] sm:$0xf] }
 0x27b   : > { %v2575_v11 = vpop.f32.mrf.mxu2 }
 0x27c   : > { %v2576_v4 = vadd.f32 %v2575_v11, %v2517_v24  ;;  %v2634_v13 = vpop.f32.mrf.mxu3  ;;  %v6990_v24 = vld [vmem:[%s10363_s1 + $0x314] sm:$0xf0] }
 0x27e   : > { %v8833_v54 = vadd.f32 %v2634_v13, %v2576_v4  ;;  %v6958_v13 = vld [vmem:[%s10363_s1 + $0x214] sm:$0xf0] }
 0x27f   : > { %v2460_v35 = vpop.f32.mrf.mxu0 }
 0x280   : > { %v2461_v21 = vadd.f32 %v2460_v35, %v2402_v7  ;;  %v2519_v29 = vpop.f32.mrf.mxu1  ;;  %10615 = vst [vmem:[#allocation36_spill] sm:$0xff] %v8833_v54  ;;  %2803 = vmatmul.bf16.gmra.mxu2 %v10618_v0  ;;  %v5985_v35 = vld [vmem:[%s10363_s1 + $0x208] sm:$0xf]  ;;  %v2404_v7 = vadd.f32 %v8548_v18, %v8544_v60 }
 0x281   : > { %2862 = vmatmul.bf16.gmra.mxu3 %v10583_v43  ;;  %v5986_v55 = vor.u32 %v6958_v13, %v5985_v35 }
 0x282   : > { %v2520_v3 = vadd.f32 %v2519_v29, %v2461_v21  ;;  %2685 = vmatmul.bf16.gmra.mxu0 %v10616_v19  ;;  %v6369_v29 = vld [vmem:[%s10363_s1 + $0x508] sm:$0xf]  ;;  %v6114_v21 = vor.u32 %v6990_v24, %v6113_v49  ;;  %v8876_v24 = vperm.slane %v8541_v6, 2 }
 0x283   : > { %6520 = vmatmul.msk.bf16.gmra.mxu1 %vm1903_vm0, %v10617_v39  ;;  %v2578_v11 = vpop.f32.mrf.mxu2  ;;  %v6370_v4 = vor.u32 %v7054_v10, %v6369_v29  ;;  %2885 = vmatpush.bf16.msra.mxu0 %v5986_v55  ;;  %v10619_v10 = vld [vmem:[#allocation58_spill] sm:$0xff]  ;;  %v10620_v55 = vld [vmem:[#allocation59_spill] sm:$0xff]  ;;  %v10621_v49 = vld [vmem:[#allocation28_spill] sm:$0xff] }
 0x284   : > { %v2579_v36 = vadd.f32 %v2578_v11, %v2520_v3  ;;  %v2637_v48 = vpop.f32.mrf.mxu3  ;;  %2944 = vmatpush.bf16.msra.mxu1 %v6114_v21  ;;  %v6099_v11 = vld [vmem:[%s10363_s1 + $0x2f8] sm:$0xf0] }
 0x285   : > { %3062 = vmatpush.bf16.msra.mxu3 %v6370_v4 }
 0x286   : > { %v8866_v43 = vadd.f32 %v2637_v48, %v2579_v36 }
 0x287   : > { %v2462_v9 = vpop.f32.mrf.mxu0 }
 0x288   : > { %v2463_v35 = vadd.f32 %v2462_v9, %v2404_v7  ;;  %v2521_v13 = vpop.f32.mrf.mxu1  ;;  %v6984_v7 = vld [vmem:[%s10363_s1 + $0x2ec] sm:$0xf] }
 0x289   : > { %v6102_v48 = vor.u32 %v6984_v7, %v6099_v11 }
 0x28a   : > { %v2522_v0 = vadd.f32 %v2521_v13, %v2463_v35 }
 0x28b   : > { %v2580_v39 = vpop.f32.mrf.mxu2  ;;  %3291 = vmatpush.bf16.msrb.mxu3 %v6102_v48 }
 0x28c   : > { %v2581_v17 = vadd.f32 %v2580_v39, %v2522_v0  ;;  %v2639_v19 = vpop.f32.mrf.mxu3 }
 0x28e   : > { %v8869_v29 = vadd.f32 %v2639_v19, %v2581_v17  ;;  %v5971_v17 = vld [vmem:[%s10363_s1 + $0x1f8] sm:$0xf0]  ;;  %v7086_v19 = vld [vmem:[%s10363_s1 + $0x614] sm:$0xf0] }
 0x28f   : > { %v2651_v54 = vpop.f32.mrf.mxu0 }
 0x290   : > { %v2652_v60 = vadd.f32 %v2651_v54, %v8576_v34  ;;  %v2710_v18 = vpop.f32.mrf.mxu1  ;;  %2808 = vmatmul.bf16.gmra.mxu2 %v10621_v49  ;;  %v6952_v34 = vld [vmem:[%s10363_s1 + $0x1ec] sm:$0xf]  ;;  %v6497_v54 = vld [vmem:[%s10363_s1 + $0x608] sm:$0xf] }
 0x291   : > { %2867 = vmatmul.bf16.gmra.mxu3 %v10587_v28  ;;  %v5974_v39 = vor.u32 %v6952_v34, %v5971_v17  ;;  %v6498_v0 = vor.u32 %v7086_v19, %v6497_v54 }
 0x292   : > { %v2711_v3 = vadd.f32 %v2710_v18, %v2652_v60  ;;  %2690 = vmatmul.bf16.gmra.mxu0 %v10619_v10  ;;  %v6920_v60 = vld [vmem:[%s10363_s1 + $0xec] sm:$0xf]  ;;  %v5843_v18 = vld [vmem:[%s10363_s1 + $0xf8] sm:$0xf0] }
 0x293   : > { %6521 = vmatmul.msk.bf16.gmra.mxu1 %vm1903_vm0, %v10620_v55  ;;  %v2769_v6 = vpop.f32.mrf.mxu2  ;;  %3232 = vmatpush.bf16.msrb.mxu2 %v5974_v39  ;;  %v5846_v54 = vor.u32 %v6920_v60, %v5843_v18 }
 0x294   : > { %v2770_v4 = vadd.f32 %v2769_v6, %v8876_v24  ;;  %v2828_v21 = vpop.f32.mrf.mxu3  ;;  %3121 = vmatpush.bf16.msrb.mxu0 %v6498_v0  ;;  %v3667_v34 = vmul.f32 0.2, %v2711_v3  ;;  %vm3587_vm6 = vcmp.gt.f32.partialorder %v2711_v3, 0.0 }
 0x295   : > { %3173 = vmatpush.bf16.msrb.mxu1 %v5846_v54  ;;  %v6948_v54 = vld [vmem:[%s10363_s1 + $0x1cc] sm:$0xf] }
 0x296   : > { %v8899_v13 = vadd.f32 %v2828_v21, %v2770_v4  ;;  %v3747_v19 = vsel %vm3587_vm6, %v2711_v3, %v3667_v34 }
 0x297   : > { %v2653_v36 = vpop.f32.mrf.mxu0 }
 0x298   : > { %v2654_v9 = vadd.f32 %v2653_v36, %v8586_v31  ;;  %v2712_v35 = vpop.f32.mrf.mxu1 }
 0x29a   : > { %v2713_v17 = vadd.f32 %v2712_v35, %v2654_v9 }
 0x29b   : > { %v2771_v39 = vpop.f32.mrf.mxu2 }
 0x29c   : > { %vm3591_vm7 = vcmp.gt.f32.partialorder %v2713_v17, 0.0  ;;  %v3671_v31 = vmul.f32 0.2, %v2713_v17  ;;  %v2772_v7 = vadd.f32 %v2771_v39, %v8876_v24  ;;  %v2830_v11 = vpop.f32.mrf.mxu3 }
 0x29e   : > { %v3751_v6 = vsel %vm3591_vm7, %v2713_v17, %v3671_v31  ;;  %v8911_v48 = vadd.f32 %v2830_v11, %v2772_v7  ;;  %v5955_v31 = vld [vmem:[%s10363_s1 + $0x1d8] sm:$0xf0] }
 0x29f   : > { %v8907_v0 = vpack.c.bf16 %v3751_v6, %v3747_v19  ;;  %v2656_v4 = vpop.f32.mrf.mxu0  ;;  %v5958_v39 = vor.u32 %v6948_v54, %v5955_v31  ;;  %v6083_v11 = vld [vmem:[%s10363_s1 + $0x2d8] sm:$0xf0] }
 0x2a0   : > { %v2657_v21 = vadd.f32 %v2656_v4, %v8594_v42  ;;  %v2715_v36 = vpop.f32.mrf.mxu1  ;;  %2813 = vmatmul.bf16.gmra.mxu2 %v7874_v23  ;;  %v6916_v4 = vld [vmem:[%s10363_s1 + $0xcc] sm:$0xf] }
 0x2a1   : > { %10622 = vst [vmem:[#allocation38_spill] sm:$0xff] %v8907_v0  ;;  %2872 = vmatmul.bf16.gmra.mxu3 %v10591_v22  ;;  %3233 = vmatpush.bf16.msrb.mxu2 %v5958_v39 }
 0x2a2   : > { %v2716_v9 = vadd.f32 %v2715_v36, %v2657_v21  ;;  %2695 = vmatmul.bf16.gmra.mxu0 %v8301_v59  ;;  %v5827_v21 = vld [vmem:[%s10363_s1 + $0xd8] sm:$0xf0] }
 0x2a3   : > { %6522 = vmatmul.msk.bf16.gmra.mxu1 %vm1903_vm0, %v8303_v1  ;;  %v2774_v3 = vpop.f32.mrf.mxu2 }
 0x2a4   : > { %v2775_v35 = vadd.f32 %v2774_v3, %v8876_v24  ;;  %v2833_v60 = vpop.f32.mrf.mxu3  ;;  %v3675_v19 = vmul.f32 0.2, %v2716_v9  ;;  %vm3595_vm8 = vcmp.gt.f32.partialorder %v2716_v9, 0.0 }
 0x2a6   : > { %v8920_v17 = vadd.f32 %v2833_v60, %v2775_v35  ;;  %v5830_v35 = vor.u32 %v6916_v4, %v5827_v21  ;;  %v3755_v60 = vsel %vm3595_vm8, %v2716_v9, %v3675_v19 }
 0x2a7   : > { %v2658_v18 = vpop.f32.mrf.mxu0 }
 0x2a8   : > { %v2659_v42 = vadd.f32 %v2658_v18, %v8622_v5  ;;  %v2717_v34 = vpop.f32.mrf.mxu1  ;;  %v6980_v5 = vld [vmem:[%s10363_s1 + $0x2cc] sm:$0xf]  ;;  %3174 = vmatpush.bf16.msrb.mxu1 %v5830_v35  ;;  %v6067_v35 = vld [vmem:[%s10363_s1 + $0x2b8] sm:$0xf0] }
 0x2a9   : > { %v6086_v3 = vor.u32 %v6980_v5, %v6083_v11 }
 0x2aa   : > { %v2718_v6 = vadd.f32 %v2717_v34, %v2659_v42 }
 0x2ab   : > { %v2776_v36 = vpop.f32.mrf.mxu2  ;;  %3292 = vmatpush.bf16.msrb.mxu3 %v6086_v3  ;;  %v5939_v3 = vld [vmem:[%s10363_s1 + $0x1b8] sm:$0xf0] }
 0x2ac   : > { %vm3599_vm9 = vcmp.gt.f32.partialorder %v2718_v6, 0.0  ;;  %v3679_v7 = vmul.f32 0.2, %v2718_v6  ;;  %v2777_v42 = vadd.f32 %v2776_v36, %v8876_v24  ;;  %v2835_v34 = vpop.f32.mrf.mxu3  ;;  %v6944_v36 = vld [vmem:[%s10363_s1 + $0x1ac] sm:$0xf] }
 0x2ae   : > { %v3759_v18 = vsel %vm3599_vm9, %v2718_v6, %v3679_v7  ;;  %v8944_v22 = vadd.f32 %v2835_v34, %v2777_v42 }
 0x2af   : > { %v2661_v54 = vpop.f32.mrf.mxu0  ;;  %v8941_v31 = vpack.c.bf16 %v3759_v18, %v3755_v60  ;;  %v5942_v18 = vor.u32 %v6944_v36, %v5939_v3  ;;  %v6912_v36 = vld [vmem:[%s10363_s1 + $0xac] sm:$0xf] }
 0x2b0   : > { %v2662_v39 = vadd.f32 %v2661_v54, %v8631_v12  ;;  %v2720_v0 = vpop.f32.mrf.mxu1  ;;  %3004 = vmatmul.bf16.vlgmr.msra.gmra.mxu2 %v7922_v2 }
 0x2b1   : > { %10623 = vst [vmem:[#allocation40_spill] sm:$0xff] %v8941_v31  ;;  %3063 = vmatmul.bf16.vlgmr.msra.gmra.mxu3 %v10594_v15  ;;  %3234 = vmatpush.bf16.msrb.mxu2 %v5942_v18 }
 0x2b2   : > { %v2721_v23 = vadd.f32 %v2720_v0, %v2662_v39  ;;  %2886 = vmatmul.bf16.vlgmr.msra.gmra.mxu0 %v7543_v52 }
 0x2b3   : > { %2945 = vmatmul.bf16.vlgmr.msra.gmra.mxu1 %v7547_v56  ;;  %v2779_v9 = vpop.f32.mrf.mxu2 }
 0x2b4   : > { %v2780_v19 = vadd.f32 %v2779_v9, %v8876_v24  ;;  %v2838_v6 = vpop.f32.mrf.mxu3  ;;  %v3683_v4 = vmul.f32 0.2, %v2721_v23  ;;  %vm3603_vm10 = vcmp.gt.f32.partialorder %v2721_v23, 0.0 }
 0x2b6   : > { %v8952_v11 = vadd.f32 %v2838_v6, %v2780_v19  ;;  %v3763_v34 = vsel %vm3603_vm10, %v2721_v23, %v3683_v4  ;;  %v5811_v23 = vld [vmem:[%s10363_s1 + $0xb8] sm:$0xf0] }
 0x2b7   : > { %v2663_v7 = vpop.f32.mrf.mxu0 }
 0x2b8   : > { %v2664_v12 = vadd.f32 %v2663_v7, %v8653_v26  ;;  %v2722_v5 = vpop.f32.mrf.mxu1  ;;  %v6976_v26 = vld [vmem:[%s10363_s1 + $0x2ac] sm:$0xf] }
 0x2b9   : > { %v6070_v42 = vor.u32 %v6976_v26, %v6067_v35 }
 0x2ba   : > { %v2723_v0 = vadd.f32 %v2722_v5, %v2664_v12 }
 0x2bb   : > { %v2781_v60 = vpop.f32.mrf.mxu2  ;;  %3293 = vmatpush.bf16.msrb.mxu3 %v6070_v42 }
 0x2bc   : > { %vm3607_vm11 = vcmp.gt.f32.partialorder %v2723_v0, 0.0  ;;  %v3687_v21 = vmul.f32 0.2, %v2723_v0  ;;  %v2782_v39 = vadd.f32 %v2781_v60, %v8876_v24  ;;  %v2840_v9 = vpop.f32.mrf.mxu3 }
 0x2be   : > { %v3767_v54 = vsel %vm3607_vm11, %v2723_v0, %v3687_v21  ;;  %v8970_v5 = vadd.f32 %v2840_v9, %v2782_v39  ;;  %v5814_v0 = vor.u32 %v6912_v36, %v5811_v23  ;;  %v10625_v21 = vld [vmem:[#allocation7_spill] sm:$0xff] }
 0x2bf   : > { %v2666_v19 = vpop.f32.mrf.mxu0  ;;  %v8967_v6 = vpack.c.bf16 %v3767_v54, %v3763_v34 }
 0x2c0   : > { %v2667_v7 = vadd.f32 %v2666_v19, %v8668_v33  ;;  %v2725_v12 = vpop.f32.mrf.mxu1  ;;  %3009 = vmatmul.bf16.gmra.mxu2 %v7963_v30  ;;  %3175 = vmatpush.bf16.msrb.mxu1 %v5814_v0 }
 0x2c1   : > { %10624 = vst [vmem:[#allocation59_spill] sm:$0xff] %v8967_v6  ;;  %3068 = vmatmul.bf16.gmra.mxu3 %v10597_v40 }
 0x2c2   : > { %v2726_v4 = vadd.f32 %v2725_v12, %v2667_v7  ;;  %2891 = vmatmul.bf16.gmra.mxu0 %v7595_v20 }
 0x2c3   : > { %2950 = vmatmul.bf16.gmra.mxu1 %v10625_v21  ;;  %v2784_v33 = vpop.f32.mrf.mxu2 }
 0x2c4   : > { %v2785_v3 = vadd.f32 %v2784_v33, %v8876_v24  ;;  %v2843_v26 = vpop.f32.mrf.mxu3  ;;  %v3691_v34 = vmul.f32 0.2, %v2726_v4  ;;  %vm3611_vm12 = vcmp.gt.f32.partialorder %v2726_v4, 0.0 }
 0x2c6   : > { %v8984_v42 = vadd.f32 %v2843_v26, %v2785_v3  ;;  %v3771_v19 = vsel %vm3611_vm12, %v2726_v4, %v3691_v34  ;;  %v6940_v3 = vld [vmem:[%s10363_s1 + $0x18c] sm:$0xf]  ;;  %v5923_v4 = vld [vmem:[%s10363_s1 + $0x198] sm:$0xf0] }
 0x2c7   : > { %v2668_v35 = vpop.f32.mrf.mxu0  ;;  %v6051_v34 = vld [vmem:[%s10363_s1 + $0x298] sm:$0xf0] }
 0x2c8   : > { %v2669_v60 = vadd.f32 %v2668_v35, %v8672_v63  ;;  %v2727_v18 = vpop.f32.mrf.mxu1 }
 0x2ca   : > { %v2728_v54 = vadd.f32 %v2727_v18, %v2669_v60  ;;  %v5926_v60 = vor.u32 %v6940_v3, %v5923_v4  ;;  %v10627_v18 = vld [vmem:[#allocation10_spill] sm:$0xff] }
 0x2cb   : > { %v2786_v9 = vpop.f32.mrf.mxu2 }
 0x2cc   : > { %vm3615_vm13 = vcmp.gt.f32.partialorder %v2728_v54, 0.0  ;;  %v3695_v39 = vmul.f32 0.2, %v2728_v54  ;;  %v2787_v12 = vadd.f32 %v2786_v9, %v8876_v24  ;;  %v2845_v36 = vpop.f32.mrf.mxu3  ;;  %3235 = vmatpush.bf16.msrb.mxu2 %v5926_v60 }
 0x2ce   : > { %v3775_v7 = vsel %vm3615_vm13, %v2728_v54, %v3695_v39  ;;  %v8990_v35 = vadd.f32 %v2845_v36, %v2787_v12  ;;  %v6908_v54 = vld [vmem:[%s10363_s1 + $0x8c] sm:$0xf]  ;;  %v5795_v39 = vld [vmem:[%s10363_s1 + $0x98] sm:$0xf0] }
 0x2cf   : > { %v2671_v23 = vpop.f32.mrf.mxu0  ;;  %v8987_v0 = vpack.c.bf16 %v3775_v7, %v3771_v19  ;;  %v5798_v7 = vor.u32 %v6908_v54, %v5795_v39 }
 0x2d0   : > { %v2672_v33 = vadd.f32 %v2671_v23, %v8705_v46  ;;  %v2730_v63 = vpop.f32.mrf.mxu1  ;;  %3014 = vmatmul.bf16.gmra.mxu2 %v7992_v53  ;;  %v6972_v46 = vld [vmem:[%s10363_s1 + $0x28c] sm:$0xf] }
 0x2d1   : > { %10626 = vst [vmem:[#allocation28_spill] sm:$0xff] %v8987_v0  ;;  %3073 = vmatmul.bf16.gmra.mxu3 %v10600_v44  ;;  %v6054_v19 = vor.u32 %v6972_v46, %v6051_v34  ;;  %3176 = vmatpush.bf16.msrb.mxu1 %v5798_v7 }
 0x2d2   : > { %v2731_v26 = vadd.f32 %v2730_v63, %v2672_v33  ;;  %2896 = vmatmul.bf16.gmra.mxu0 %v7627_v38 }
 0x2d3   : > { %2955 = vmatmul.bf16.gmra.mxu1 %v10627_v18  ;;  %v2789_v9 = vpop.f32.mrf.mxu2  ;;  %3294 = vmatpush.bf16.msrb.mxu3 %v6054_v19 }
 0x2d4   : > { %v2790_v12 = vadd.f32 %v2789_v9, %v8876_v24  ;;  %v2848_v36 = vpop.f32.mrf.mxu3  ;;  %v3699_v4 = vmul.f32 0.2, %v2731_v26  ;;  %vm3619_vm14 = vcmp.gt.f32.partialorder %v2731_v26, 0.0 }
 0x2d6   : > { %v9016_v3 = vadd.f32 %v2848_v36, %v2790_v12  ;;  %v3779_v31 = vsel %vm3619_vm14, %v2731_v26, %v3699_v4 }
 0x2d7   : > { %v2673_v23 = vpop.f32.mrf.mxu0 }
 0x2d8   : > { %v2674_v33 = vadd.f32 %v2673_v23, %v8709_v45  ;;  %v2732_v63 = vpop.f32.mrf.mxu1 }
 0x2da   : > { %v2733_v60 = vadd.f32 %v2732_v63, %v2674_v33 }
 0x2db   : > { %v2791_v6 = vpop.f32.mrf.mxu2 }
 0x2dc   : > { %vm3623_vm15 = vcmp.gt.f32.partialorder %v2733_v60, 0.0  ;;  %v3703_v0 = vmul.f32 0.2, %v2733_v60  ;;  %v2792_v34 = vadd.f32 %v2791_v6, %v8876_v24  ;;  %v2850_v54 = vpop.f32.mrf.mxu3  ;;  %v6936_v6 = vld [vmem:[%s10363_s1 + $0x16c] sm:$0xf] }
 0x2de   : > { %v3783_v46 = vsel %vm3623_vm15, %v2733_v60, %v3703_v0  ;;  %v9022_v7 = vadd.f32 %v2850_v54, %v2792_v34  ;;  %v6035_v0 = vld [vmem:[%s10363_s1 + $0x278] sm:$0xf0]  ;;  %v6904_v54 = vld [vmem:[%s10363_s1 + $0x6c] sm:$0xf] }
 0x2df   : > { %v2676_v39 = vpop.f32.mrf.mxu0  ;;  %v9019_v9 = vpack.c.bf16 %v3783_v46, %v3779_v31  ;;  %v6968_v31 = vld [vmem:[%s10363_s1 + $0x26c] sm:$0xf] }
 0x2e0   : > { %v2677_v45 = vadd.f32 %v2676_v39, %v8736_v37  ;;  %v2735_v19 = vpop.f32.mrf.mxu1  ;;  %3019 = vmatmul.bf16.gmra.mxu2 %v8039_v47  ;;  %v5907_v37 = vld [vmem:[%s10363_s1 + $0x178] sm:$0xf0]  ;;  %v6038_v23 = vor.u32 %v6968_v31, %v6035_v0 }
 0x2e1   : > { %10628 = vst [vmem:[#allocation7_spill] sm:$0xff] %v9019_v9  ;;  %3078 = vmatmul.bf16.gmra.mxu3 %v10603_v50  ;;  %v5910_v36 = vor.u32 %v6936_v6, %v5907_v37  ;;  %v5779_v39 = vld [vmem:[%s10363_s1 + $0x78] sm:$0xf0] }
 0x2e2   : > { %v2736_v12 = vadd.f32 %v2735_v19, %v2677_v45  ;;  %2901 = vmatmul.bf16.gmra.mxu0 %v7653_v57  ;;  %3295 = vmatpush.bf16.msrb.mxu3 %v6038_v23  ;;  %v5782_v6 = vor.u32 %v6904_v54, %v5779_v39  ;;  %v10631_v54 = vld [vmem:[#allocation45_spill] sm:$0xff]  ;;  %v10633_v47 = vld [vmem:[#allocation18_spill] sm:$0xff] }
 0x2e3   : > { %2960 = vmatmul.bf16.gmra.mxu1 %v7655_v58  ;;  %v2794_v26 = vpop.f32.mrf.mxu2  ;;  %3236 = vmatpush.bf16.msrb.mxu2 %v5910_v36 }
 0x2e4   : > { %v2795_v33 = vadd.f32 %v2794_v26, %v8876_v24  ;;  %v2853_v63 = vpop.f32.mrf.mxu3  ;;  %v3707_v45 = vmul.f32 0.2, %v2736_v12  ;;  %vm3627_vm1 = vcmp.gt.f32.partialorder %v2736_v12, 0.0  ;;  %3177 = vmatpush.bf16.msrb.mxu1 %v5782_v6 }
 0x2e6   : > { %v9042_v34 = vadd.f32 %v2853_v63, %v2795_v33  ;;  %v3787_v31 = vsel %vm3627_vm1, %v2736_v12, %v3707_v45 }
 0x2e7   : > { %v2678_v4 = vpop.f32.mrf.mxu0 }
 0x2e8   : > { %v2679_v60 = vadd.f32 %v2678_v4, %v8746_v62  ;;  %v2737_v46 = vpop.f32.mrf.mxu1 }
 0x2ea   : > { %v2738_v19 = vadd.f32 %v2737_v46, %v2679_v60  ;;  %v10630_v46 = vld [vmem:[#allocation15_spill] sm:$0xff] }
 0x2eb   : > { %v2796_v62 = vpop.f32.mrf.mxu2 }
 0x2ec   : > { %vm3631_vm2 = vcmp.gt.f32.partialorder %v2738_v19, 0.0  ;;  %v3711_v37 = vmul.f32 0.2, %v2738_v19  ;;  %v2797_v26 = vadd.f32 %v2796_v62, %v8876_v24  ;;  %v2855_v36 = vpop.f32.mrf.mxu3  ;;  %v6932_v62 = vld [vmem:[%s10363_s1 + $0x14c] sm:$0xf] }
 0x2ee   : > { %v3791_v0 = vsel %vm3631_vm2, %v2738_v19, %v3711_v37  ;;  %v9054_v9 = vadd.f32 %v2855_v36, %v2797_v26 }
 0x2ef   : > { %v2681_v23 = vpop.f32.mrf.mxu0  ;;  %v9051_v33 = vpack.c.bf16 %v3791_v0, %v3787_v31  ;;  %v5891_v31 = vld [vmem:[%s10363_s1 + $0x158] sm:$0xf0] }
 0x2f0   : > { %v2682_v63 = vadd.f32 %v2681_v23, %v8755_v27  ;;  %v2740_v4 = vpop.f32.mrf.mxu1  ;;  %3024 = vmatmul.bf16.gmra.mxu2 %v10631_v54  ;;  %v5894_v36 = vor.u32 %v6932_v62, %v5891_v31 }
 0x2f1   : > { %10629 = vst [vmem:[#allocation10_spill] sm:$0xff] %v9051_v33  ;;  %3083 = vmatmul.bf16.gmra.mxu3 %v10606_v51 }
 0x2f2   : > { %v2741_v60 = vadd.f32 %v2740_v4, %v2682_v63  ;;  %2906 = vmatmul.bf16.gmra.mxu0 %v7691_v14  ;;  %3237 = vmatpush.bf16.msrb.mxu2 %v5894_v36  ;;  %v6019_v63 = vld [vmem:[%s10363_s1 + $0x258] sm:$0xf0]  ;;  %v6900_v4 = vld [vmem:[%s10363_s1 + $0x4c] sm:$0xf] }
 0x2f3   : > { %2965 = vmatmul.bf16.gmra.mxu1 %v10630_v46  ;;  %v2799_v12 = vpop.f32.mrf.mxu2 }
 0x2f4   : > { %v2800_v39 = vadd.f32 %v2799_v12, %v8876_v24  ;;  %v2858_v45 = vpop.f32.mrf.mxu3  ;;  %v3715_v0 = vmul.f32 0.2, %v2741_v60  ;;  %vm3635_vm3 = vcmp.gt.f32.partialorder %v2741_v60, 0.0  ;;  %v5763_v12 = vld [vmem:[%s10363_s1 + $0x58] sm:$0xf0] }
 0x2f6   : > { %v9062_v37 = vadd.f32 %v2858_v45, %v2800_v39 }
 0x2f7   : > { %v2683_v19 = vpop.f32.mrf.mxu0 }
 0x2f8   : > { %v2684_v6 = vadd.f32 %v2683_v19, %v8783_v8  ;;  %v2742_v27 = vpop.f32.mrf.mxu1  ;;  %v6964_v8 = vld [vmem:[%s10363_s1 + $0x24c] sm:$0xf]  ;;  %v5766_v19 = vor.u32 %v6900_v4, %v5763_v12 }
 0x2f9   : > { %v6022_v45 = vor.u32 %v6964_v8, %v6019_v63  ;;  %v10634_v8 = vld [vmem:[#allocation19_spill] sm:$0xff] }
 0x2fa   : > { %v2743_v26 = vadd.f32 %v2742_v27, %v2684_v6  ;;  %v3795_v6 = vsel %vm3635_vm3, %v2741_v60, %v3715_v0  ;;  %3178 = vmatpush.bf16.msrb.mxu1 %v5766_v19  ;;  %v10635_v60 = vld [vmem:[#allocation48_spill] sm:$0xff]  ;;  %v5875_v19 = vld [vmem:[%s10363_s1 + $0x138] sm:$0xf0] }
 0x2fb   : > { %v2801_v39 = vpop.f32.mrf.mxu2  ;;  %3296 = vmatpush.bf16.msrb.mxu3 %v6022_v45  ;;  %v6928_v45 = vld [vmem:[%s10363_s1 + $0x12c] sm:$0xf] }
 0x2fc   : > { %vm3639_vm4 = vcmp.gt.f32.partialorder %v2743_v26, 0.0  ;;  %v3719_v23 = vmul.f32 0.2, %v2743_v26  ;;  %v2802_v62 = vadd.f32 %v2801_v39, %v8876_v24  ;;  %v2860_v31 = vpop.f32.mrf.mxu3 }
 0x2fe   : > { %v3799_v27 = vsel %vm3639_vm4, %v2743_v26, %v3719_v23  ;;  %v9086_v46 = vadd.f32 %v2860_v31, %v2802_v62  ;;  %v5878_v62 = vor.u32 %v6928_v45, %v5875_v19  ;;  %v6896_v45 = vld [vmem:[%s10363_s1 + $0x2c] sm:$0xf]  ;;  %v10638_v19 = vld [vmem:[#allocation23_spill] sm:$0xff] }
 0x2ff   : > { %v2686_v36 = vpop.f32.mrf.mxu0  ;;  %v9083_v33 = vpack.c.bf16 %v3799_v27, %v3795_v6  ;;  %v6003_v6 = vld [vmem:[%s10363_s1 + $0x238] sm:$0xf0] }
 0x300   : > { %v2687_v51 = vadd.f32 %v2686_v36, %v8792_v25  ;;  %v2745_v54 = vpop.f32.mrf.mxu1  ;;  %3029 = vmatmul.bf16.gmra.mxu2 %v10635_v60 }
 0x301   : > { %10632 = vst [vmem:[#allocation71_spill] sm:$0xff] %v9083_v33  ;;  %3088 = vmatmul.bf16.gmra.mxu3 %v10609_v16  ;;  %3238 = vmatpush.bf16.msrb.mxu2 %v5878_v62 }
 0x302   : > { %v2746_v50 = vadd.f32 %v2745_v54, %v2687_v51  ;;  %2911 = vmatmul.bf16.gmra.mxu0 %v10633_v47 }
 0x303   : > { %2970 = vmatmul.bf16.gmra.mxu1 %v10634_v8  ;;  %v2804_v0 = vpop.f32.mrf.mxu2 }
 0x304   : > { %v2805_v26 = vadd.f32 %v2804_v0, %v8876_v24  ;;  %v2863_v23 = vpop.f32.mrf.mxu3  ;;  %v3723_v39 = vmul.f32 0.2, %v2746_v50  ;;  %vm3643_vm5 = vcmp.gt.f32.partialorder %v2746_v50, 0.0 }
 0x306   : > { %v9094_v12 = vadd.f32 %v2863_v23, %v2805_v26  ;;  %v3803_v36 = vsel %vm3643_vm5, %v2746_v50, %v3723_v39  ;;  %v5747_v50 = vld [vmem:[%s10363_s1 + $0x38] sm:$0xf0] }
 0x307   : > { %v2688_v63 = vpop.f32.mrf.mxu0 }
 0x308   : > { %v2689_v25 = vadd.f32 %v2688_v63, %v8814_v41  ;;  %v2747_v4 = vpop.f32.mrf.mxu1  ;;  %v6960_v41 = vld [vmem:[%s10363_s1 + $0x22c] sm:$0xf] }
 0x309   : > { %v6006_v31 = vor.u32 %v6960_v41, %v6003_v6 }
 0x30a   : > { %v2748_v51 = vadd.f32 %v2747_v4, %v2689_v25 }
 0x30b   : > { %v2806_v27 = vpop.f32.mrf.mxu2  ;;  %3297 = vmatpush.bf16.msrb.mxu3 %v6006_v31  ;;  %v10640_v31 = vld [vmem:[#allocation36_spill] sm:$0xff] }
 0x30c   : > { %vm3647_vm6 = vcmp.gt.f32.partialorder %v2748_v51, 0.0  ;;  %v3727_v54 = vmul.f32 0.2, %v2748_v51  ;;  %v2807_v26 = vadd.f32 %v2806_v27, %v8876_v24  ;;  %v2865_v23 = vpop.f32.mrf.mxu3 }
 0x30e   : > { %v3807_v0 = vsel %vm3647_vm6, %v2748_v51, %v3727_v54  ;;  %v9112_v16 = vadd.f32 %v2865_v23, %v2807_v26  ;;  %v10637_v51 = vld [vmem:[#allocation22_spill] sm:$0xff]  ;;  %v5750_v54 = vor.u32 %v6896_v45, %v5747_v50 }
 0x30f   : > { %v2691_v63 = vpop.f32.mrf.mxu0  ;;  %v9109_v25 = vpack.c.bf16 %v3807_v0, %v3803_v36 }
 0x310   : > { %v2692_v4 = vadd.f32 %v2691_v63, %v8829_v61  ;;  %v2750_v33 = vpop.f32.mrf.mxu1  ;;  %v10639_v61 = vld [vmem:[#allocation51_spill] sm:$0xff]  ;;  %3179 = vmatpush.bf16.msrb.mxu1 %v5750_v54 }
 0x311   : > { %10636 = vst [vmem:[#allocation18_spill] sm:$0xff] %v9109_v25  ;;  %3034 = vmatmul.bf16.gmra.mxu2 %v10639_v61  ;;  %3093 = vmatmul.bf16.gmra.mxu3 %v10612_v32 }
 0x312   : > { %v2751_v39 = vadd.f32 %v2750_v33, %v2692_v4  ;;  %2916 = vmatmul.bf16.gmra.mxu0 %v10637_v51 }
 0x313   : > { %2975 = vmatmul.bf16.gmra.mxu1 %v10638_v19  ;;  %v2809_v41 = vpop.f32.mrf.mxu2 }
 0x314   : > { %v2810_v6 = vadd.f32 %v2809_v41, %v8876_v24  ;;  %v2868_v27 = vpop.f32.mrf.mxu3  ;;  %v3731_v33 = vmul.f32 0.2, %v2751_v39  ;;  %vm3651_vm7 = vcmp.gt.f32.partialorder %v2751_v39, 0.0 }
 0x316   : > { %v9126_v26 = vadd.f32 %v2868_v27, %v2810_v6  ;;  %v3811_v45 = vsel %vm3651_vm7, %v2751_v39, %v3731_v33  ;;  %v6924_v6 = vld [vmem:[%s10363_s1 + $0x10c] sm:$0xf]  ;;  %v5859_v39 = vld [vmem:[%s10363_s1 + $0x118] sm:$0xf0] }
 0x317   : > { %v2693_v62 = vpop.f32.mrf.mxu0  ;;  %v6956_v33 = vld [vmem:[%s10363_s1 + $0x20c] sm:$0xf] }
 0x318   : > { %v2694_v36 = vadd.f32 %v2693_v62, %v10640_v31  ;;  %v2752_v0 = vpop.f32.mrf.mxu1 }
 0x31a   : > { %v2753_v23 = vadd.f32 %v2752_v0, %v2694_v36  ;;  %v10642_v36 = vld [vmem:[#allocation26_spill] sm:$0xff]  ;;  %v5862_v0 = vor.u32 %v6924_v6, %v5859_v39 }
 0x31b   : > { %v2811_v4 = vpop.f32.mrf.mxu2 }
 0x31c   : > { %vm3655_vm8 = vcmp.gt.f32.partialorder %v2753_v23, 0.0  ;;  %v3735_v63 = vmul.f32 0.2, %v2753_v23  ;;  %v2812_v54 = vadd.f32 %v2811_v4, %v8876_v24  ;;  %v2870_v25 = vpop.f32.mrf.mxu3  ;;  %3239 = vmatpush.bf16.msrb.mxu2 %v5862_v0  ;;  %v5731_v4 = vld [vmem:[%s10363_s1 + $0x18] sm:$0xf0] }
 0x31e   : > { %v3815_v50 = vsel %vm3655_vm8, %v2753_v23, %v3735_v63  ;;  %v9132_v31 = vadd.f32 %v2870_v25, %v2812_v54  ;;  %v10644_v25 = vld [vmem:[#allocation54_spill] sm:$0xff]  ;;  %v10645_v63 = vld [vmem:[#allocation55_spill] sm:$0xff] }
 0x31f   : > { %v2696_v32 = vpop.f32.mrf.mxu0  ;;  %v9129_v41 = vpack.c.bf16 %v3815_v50, %v3811_v45 }
 0x320   : > { %v2697_v61 = vadd.f32 %v2696_v32, %v8866_v43  ;;  %v2755_v62 = vpop.f32.mrf.mxu1  ;;  %v5987_v43 = vld [vmem:[%s10363_s1 + $0x218] sm:$0xf0]  ;;  %v10643_v32 = vld [vmem:[#allocation27_spill] sm:$0xff] }
 0x321   : > { %10641 = vst [vmem:[#allocation19_spill] sm:$0xff] %v9129_v41  ;;  %3039 = vmatmul.bf16.gmra.mxu2 %v10644_v25  ;;  %v5990_v23 = vor.u32 %v6956_v33, %v5987_v43  ;;  %3098 = vmatmul.bf16.gmra.mxu3 %v10645_v63 }
 0x322   : > { %v2756_v27 = vadd.f32 %v2755_v62, %v2697_v61  ;;  %2921 = vmatmul.bf16.gmra.mxu0 %v10642_v36  ;;  %v6892_v61 = vld [vmem:[%s10363_s1 + $0xc] sm:$0xf] }
 0x323   : > { %2980 = vmatmul.bf16.gmra.mxu1 %v10643_v32  ;;  %3298 = vmatpush.bf16.msrb.mxu3 %v5990_v23  ;;  %v2814_v45 = vpop.f32.mrf.mxu2  ;;  %v5734_v50 = vor.u32 %v6892_v61, %v5731_v4 }
 0x324   : > { %v2815_v54 = vadd.f32 %v2814_v45, %v8876_v24  ;;  %v2873_v62 = vpop.f32.mrf.mxu3  ;;  %v3739_v43 = vmul.f32 0.2, %v2756_v27  ;;  %vm3659_vm9 = vcmp.gt.f32.partialorder %v2756_v27, 0.0 }
 0x325   : > { %3180 = vmatpush.bf16.msrb.mxu1 %v5734_v50 }
 0x326   : > { %v9158_v0 = vadd.f32 %v2873_v62, %v2815_v54  ;;  %v3819_v25 = vsel %vm3659_vm9, %v2756_v27, %v3739_v43  ;;  %v10647_v62 = vld [vmem:[#allocation30_spill] sm:$0xff] }
 0x327   : > { %v2698_v6 = vpop.f32.mrf.mxu0 }
 0x328   : > { %v2699_v39 = vadd.f32 %v2698_v6, %v8869_v29  ;;  %v2757_v33 = vpop.f32.mrf.mxu1 }
 0x32a   : > { %v2758_v41 = vadd.f32 %v2757_v33, %v2699_v39  ;;  %v10648_v39 = vld [vmem:[#allocation31_spill] sm:$0xff]  ;;  %v10649_v33 = vld [vmem:[#allocation57_spill] sm:$0xff] }
 0x32b   : > { %v2816_v63 = vpop.f32.mrf.mxu2 }
 0x32c   : > { %vm3663_vm10 = vcmp.gt.f32.partialorder %v2758_v41, 0.0  ;;  %v3743_v23 = vmul.f32 0.2, %v2758_v41  ;;  %v2817_v61 = vadd.f32 %v2816_v63, %v8876_v24  ;;  %v2875_v4 = vpop.f32.mrf.mxu3  ;;  %v7080_v24 = vld [vmem:[%s10363_s1 + $0x5ec] sm:$0xf] }
 0x32d   : > { %v6499_v63 = vld [vmem:[%s10363_s1 + $0x618] sm:$0xf0] }
 0x32e   : > { %v3823_v32 = vsel %vm3663_vm10, %v2758_v41, %v3743_v23  ;;  %v9164_v50 = vadd.f32 %v2875_v4, %v2817_v61  ;;  %v7016_v41 = vld [vmem:[%s10363_s1 + $0x3ec] sm:$0xf] }
 0x32f   : > { %v2887_v45 = vpop.f32.mrf.mxu0  ;;  %v9161_v19 = vpack.c.bf16 %v3823_v32, %v3819_v25  ;;  %v6227_v32 = vld [vmem:[%s10363_s1 + $0x3f8] sm:$0xf0]  ;;  %v7084_v25 = vld [vmem:[%s10363_s1 + $0x60c] sm:$0xf] }
 0x330   : > { %v2888_v29 = vadd.f32 %v2887_v45, %v8899_v13  ;;  %v2946_v6 = vpop.f32.mrf.mxu1  ;;  %v6483_v13 = vld [vmem:[%s10363_s1 + $0x5f8] sm:$0xf0]  ;;  %v6230_v23 = vor.u32 %v7016_v41, %v6227_v32  ;;  %v6502_v61 = vor.u32 %v7084_v25, %v6499_v63 }
 0x331   : > { %10646 = vst [vmem:[#allocation48_spill] sm:$0xff] %v9161_v19  ;;  %3044 = vmatmul.bf16.gmra.mxu2 %v10649_v33  ;;  %3103 = vmatmul.bf16.gmra.mxu3 %v10619_v10  ;;  %v6486_v27 = vor.u32 %v7080_v24, %v6483_v13  ;;  %v7048_v19 = vld [vmem:[%s10363_s1 + $0x4ec] sm:$0xf]  ;;  %v6355_v41 = vld [vmem:[%s10363_s1 + $0x4f8] sm:$0xf0] }
 0x332   : > { %v2947_v54 = vadd.f32 %v2946_v6, %v2888_v29  ;;  %2926 = vmatmul.bf16.gmra.mxu0 %v10647_v62  ;;  %3534 = vmatpush.bf16.msra.mxu3 %v6502_v61  ;;  %v10652_v10 = vld [vmem:[#allocation60_spill] sm:$0xff] }
 0x333   : > { %2985 = vmatmul.bf16.gmra.mxu1 %v10648_v39  ;;  %v3005_v43 = vpop.f32.mrf.mxu2  ;;  %3468 = vmatpush.bf16.msra.mxu2 %v6486_v27 }
 0x334   : > { %v3006_v4 = vadd.f32 %v3005_v43, %v2947_v54  ;;  %v3064_v45 = vpop.f32.mrf.mxu3  ;;  %3350 = vmatpush.bf16.msra.mxu0 %v6230_v23  ;;  %v6358_v54 = vor.u32 %v7048_v19, %v6355_v41 }
 0x336   : > { %v9189_v13 = vadd.f32 %v3064_v45, %v3006_v4  ;;  %3409 = vmatpush.bf16.msra.mxu1 %v6358_v54  ;;  %v10650_v45 = vld [vmem:[#allocation34_spill] sm:$0xff] }
 0x337   : > { %v2889_v29 = vpop.f32.mrf.mxu0 }
 0x338   : > { %v2890_v6 = vadd.f32 %v2889_v29, %v8911_v48  ;;  %v2948_v24 = vpop.f32.mrf.mxu1  ;;  %v10651_v29 = vld [vmem:[#allocation35_spill] sm:$0xff] }
 0x33a   : > { %v2949_v32 = vadd.f32 %v2948_v24, %v2890_v6 }
 0x33b   : > { %v3007_v25 = vpop.f32.mrf.mxu2 }
 0x33c   : > { %v3008_v27 = vadd.f32 %v3007_v25, %v2949_v32  ;;  %v3066_v63 = vpop.f32.mrf.mxu3  ;;  %v7076_v25 = vld [vmem:[%s10363_s1 + $0x5cc] sm:$0xf] }
 0x33e   : > { %v9198_v61 = vadd.f32 %v3066_v63, %v3008_v27  ;;  %v6467_v27 = vld [vmem:[%s10363_s1 + $0x5d8] sm:$0xf0] }
 0x33f   : > { %v2892_v48 = vpop.f32.mrf.mxu0 }
 0x340   : > { %v2893_v43 = vadd.f32 %v2892_v48, %v8920_v17  ;;  %v2951_v23 = vpop.f32.mrf.mxu1  ;;  %v6470_v48 = vor.u32 %v7076_v25, %v6467_v27 }
 0x341   : > { %3049 = vmatmul.bf16.gmra.mxu2 %v10652_v10  ;;  %3108 = vmatmul.bf16.gmra.mxu3 %v8301_v59 }
 0x342   : > { %v2952_v4 = vadd.f32 %v2951_v23, %v2893_v43  ;;  %2931 = vmatmul.bf16.gmra.mxu0 %v10650_v45  ;;  %v7012_v43 = vld [vmem:[%s10363_s1 + $0x3cc] sm:$0xf]  ;;  %3469 = vmatpush.bf16.msra.mxu2 %v6470_v48 }
 0x343   : > { %2990 = vmatmul.bf16.gmra.mxu1 %v10651_v29  ;;  %v3010_v19 = vpop.f32.mrf.mxu2  ;;  %v7044_v23 = vld [vmem:[%s10363_s1 + $0x4cc] sm:$0xf]  ;;  %v10653_v29 = vld [vmem:[#allocation37_spill] sm:$0xff] }
 0x344   : > { %v3011_v6 = vadd.f32 %v3010_v19, %v2952_v4  ;;  %v3069_v24 = vpop.f32.mrf.mxu3  ;;  %v6339_v19 = vld [vmem:[%s10363_s1 + $0x4d8] sm:$0xf0] }
 0x346   : > { %v9205_v17 = vadd.f32 %v3069_v24, %v3011_v6  ;;  %v6342_v6 = vor.u32 %v7044_v23, %v6339_v19 }
 0x347   : > { %v2894_v41 = vpop.f32.mrf.mxu0 }
 0x348   : > { %v2895_v32 = vadd.f32 %v2894_v41, %v8944_v22  ;;  %v2953_v54 = vpop.f32.mrf.mxu1  ;;  %v6211_v22 = vld [vmem:[%s10363_s1 + $0x3d8] sm:$0xf0]  ;;  %3410 = vmatpush.bf16.msra.mxu1 %v6342_v6 }
 0x349   : > { %v6214_v4 = vor.u32 %v7012_v43, %v6211_v22  ;;  %v10654_v43 = vld [vmem:[#allocation3_spill] sm:$0xff]  ;;  %v10655_v22 = vld [vmem:[#allocation4_spill] sm:$0xff] }
 0x34a   : > { %v2954_v63 = vadd.f32 %v2953_v54, %v2895_v32 }
 0x34b   : > { %3351 = vmatpush.bf16.msra.mxu0 %v6214_v4  ;;  %v3012_v24 = vpop.f32.mrf.mxu2 }
 0x34c   : > { %v3013_v41 = vadd.f32 %v3012_v24, %v2954_v63  ;;  %v3071_v32 = vpop.f32.mrf.mxu3 }
 0x34e   : > { %v9226_v59 = vadd.f32 %v3071_v32, %v3013_v41  ;;  %v7072_v41 = vld [vmem:[%s10363_s1 + $0x5ac] sm:$0xf]  ;;  %v6451_v32 = vld [vmem:[%s10363_s1 + $0x5b8] sm:$0xf0] }
 0x34f   : > { %v2897_v54 = vpop.f32.mrf.mxu0 }
 0x350   : > { %v2898_v25 = vadd.f32 %v2897_v54, %v8952_v11  ;;  %v2956_v27 = vpop.f32.mrf.mxu1 }
 0x351   : > { %3240 = vmatmul.bf16.vlgmr.msrb.gmra.mxu2 %v10655_v22  ;;  %3299 = vmatmul.bf16.vlgmr.msrb.gmra.mxu3 %v7543_v52  ;;  %v7008_v52 = vld [vmem:[%s10363_s1 + $0x3ac] sm:$0xf] }
 0x352   : > { %v2957_v10 = vadd.f32 %v2956_v27, %v2898_v25  ;;  %6523 = vmatmul.msk.bf16.vlgmr.msrb.gmra.mxu0 %vm1903_vm0, %v10653_v29 }
 0x353   : > { %3181 = vmatmul.bf16.vlgmr.msrb.gmra.mxu1 %v10654_v43  ;;  %v3015_v48 = vpop.f32.mrf.mxu2 }
 0x354   : > { %v3016_v23 = vadd.f32 %v3015_v48, %v2957_v10  ;;  %v3074_v63 = vpop.f32.mrf.mxu3  ;;  %v6454_v10 = vor.u32 %v7072_v41, %v6451_v32  ;;  %v10656_v41 = vld [vmem:[#allocation39_spill] sm:$0xff]  ;;  %v10657_v32 = vld [vmem:[#allocation5_spill] sm:$0xff] }
 0x356   : > { %v9234_v6 = vadd.f32 %v3074_v63, %v3016_v23  ;;  %3470 = vmatpush.bf16.msra.mxu2 %v6454_v10 }
 0x357   : > { %v2899_v4 = vpop.f32.mrf.mxu0 }
 0x358   : > { %v2900_v19 = vadd.f32 %v2899_v4, %v8970_v5  ;;  %v2958_v11 = vpop.f32.mrf.mxu1  ;;  %v6195_v5 = vld [vmem:[%s10363_s1 + $0x3b8] sm:$0xf0]  ;;  %v7040_v4 = vld [vmem:[%s10363_s1 + $0x4ac] sm:$0xf] }
 0x359   : > { %v6198_v54 = vor.u32 %v7008_v52, %v6195_v5  ;;  %v10658_v52 = vld [vmem:[#allocation6_spill] sm:$0xff] }
 0x35a   : > { %v2959_v24 = vadd.f32 %v2958_v11, %v2900_v19  ;;  %v6323_v19 = vld [vmem:[%s10363_s1 + $0x4b8] sm:$0xf0] }
 0x35b   : > { %v3017_v25 = vpop.f32.mrf.mxu2  ;;  %3352 = vmatpush.bf16.msra.mxu0 %v6198_v54 }
 0x35c   : > { %v3018_v27 = vadd.f32 %v3017_v25, %v2959_v24  ;;  %v3076_v43 = vpop.f32.mrf.mxu3  ;;  %v6326_v24 = vor.u32 %v7040_v4, %v6323_v19 }
 0x35e   : > { %v9249_v63 = vadd.f32 %v3076_v43, %v3018_v27  ;;  %3411 = vmatpush.bf16.msra.mxu1 %v6326_v24  ;;  %v10659_v24 = vld [vmem:[#allocation41_spill] sm:$0xff] }
 0x35f   : > { %v2902_v22 = vpop.f32.mrf.mxu0 }
 0x360   : > { %v2903_v48 = vadd.f32 %v2902_v22, %v8984_v42  ;;  %v2961_v23 = vpop.f32.mrf.mxu1 }
 0x361   : > { %3245 = vmatmul.bf16.gmra.mxu2 %v10658_v52  ;;  %3304 = vmatmul.bf16.gmra.mxu3 %v7595_v20  ;;  %v7068_v20 = vld [vmem:[%s10363_s1 + $0x58c] sm:$0xf] }
 0x362   : > { %v2962_v11 = vadd.f32 %v2961_v23, %v2903_v48  ;;  %6524 = vmatmul.msk.bf16.gmra.mxu0 %vm1903_vm0, %v10656_v41 }
 0x363   : > { %3186 = vmatmul.bf16.gmra.mxu1 %v10657_v32  ;;  %v3020_v42 = vpop.f32.mrf.mxu2 }
 0x364   : > { %v3021_v10 = vadd.f32 %v3020_v42, %v2962_v11  ;;  %v3079_v5 = vpop.f32.mrf.mxu3 }
 0x366   : > { %v9263_v43 = vadd.f32 %v3079_v5, %v3021_v10  ;;  %v6179_v10 = vld [vmem:[%s10363_s1 + $0x398] sm:$0xf0]  ;;  %v10660_v5 = vld [vmem:[#allocation8_spill] sm:$0xff] }
 0x367   : > { %v2904_v54 = vpop.f32.mrf.mxu0 }
 0x368   : > { %v2905_v25 = vadd.f32 %v2904_v54, %v8990_v35  ;;  %v2963_v27 = vpop.f32.mrf.mxu1  ;;  %v6435_v35 = vld [vmem:[%s10363_s1 + $0x598] sm:$0xf0]  ;;  %v10661_v54 = vld [vmem:[#allocation9_spill] sm:$0xff] }
 0x369   : > { %v6438_v42 = vor.u32 %v7068_v20, %v6435_v35 }
 0x36a   : > { %v2964_v22 = vadd.f32 %v2963_v27, %v2905_v25  ;;  %v7036_v27 = vld [vmem:[%s10363_s1 + $0x48c] sm:$0xf] }
 0x36b   : > { %v3022_v48 = vpop.f32.mrf.mxu2  ;;  %3471 = vmatpush.bf16.msra.mxu2 %v6438_v42 }
 0x36c   : > { %v3023_v23 = vadd.f32 %v3022_v48, %v2964_v22  ;;  %v3081_v4 = vpop.f32.mrf.mxu3  ;;  %v6307_v22 = vld [vmem:[%s10363_s1 + $0x498] sm:$0xf0] }
 0x36d   : > { %v6310_v48 = vor.u32 %v7036_v27, %v6307_v22  ;;  %v10663_v22 = vld [vmem:[#allocation11_spill] sm:$0xff] }
 0x36e   : > { %v9266_v33 = vadd.f32 %v3081_v4, %v3023_v23 }
 0x36f   : > { %v2907_v19 = vpop.f32.mrf.mxu0  ;;  %3412 = vmatpush.bf16.msra.mxu1 %v6310_v48  ;;  %v7064_v48 = vld [vmem:[%s10363_s1 + $0x56c] sm:$0xf] }
 0x370   : > { %v2908_v32 = vadd.f32 %v2907_v19, %v9016_v3  ;;  %v2966_v52 = vpop.f32.mrf.mxu1  ;;  %v7004_v3 = vld [vmem:[%s10363_s1 + $0x38c] sm:$0xf] }
 0x371   : > { %3250 = vmatmul.bf16.gmra.mxu2 %v10661_v54  ;;  %v6182_v25 = vor.u32 %v7004_v3, %v6179_v10  ;;  %3309 = vmatmul.bf16.gmra.mxu3 %v7627_v38 }
 0x372   : > { %v2967_v11 = vadd.f32 %v2966_v52, %v2908_v32  ;;  %6525 = vmatmul.msk.bf16.gmra.mxu0 %vm1903_vm0, %v10659_v24 }
 0x373   : > { %3191 = vmatmul.bf16.gmra.mxu1 %v10660_v5  ;;  %3353 = vmatpush.bf16.msra.mxu0 %v6182_v25  ;;  %v3025_v23 = vpop.f32.mrf.mxu2 }
 0x374   : > { %v3026_v4 = vadd.f32 %v3025_v23, %v2967_v11  ;;  %v3084_v19 = vpop.f32.mrf.mxu3  ;;  %v10662_v11 = vld [vmem:[#allocation44_spill] sm:$0xff] }
 0x376   : > { %v9292_v38 = vadd.f32 %v3084_v19, %v3026_v4  ;;  %v6163_v4 = vld [vmem:[%s10363_s1 + $0x378] sm:$0xf0] }
 0x377   : > { %v2909_v32 = vpop.f32.mrf.mxu0 }
 0x378   : > { %v2910_v52 = vadd.f32 %v2909_v32, %v9022_v7  ;;  %v2968_v20 = vpop.f32.mrf.mxu1  ;;  %v10664_v7 = vld [vmem:[#allocation12_spill] sm:$0xff] }
 0x37a   : > { %v2969_v35 = vadd.f32 %v2968_v20, %v2910_v52 }
 0x37b   : > { %v3027_v42 = vpop.f32.mrf.mxu2 }
 0x37c   : > { %v3028_v3 = vadd.f32 %v3027_v42, %v2969_v35  ;;  %v3086_v10 = vpop.f32.mrf.mxu3 }
 0x37e   : > { %v9295_v25 = vadd.f32 %v3086_v10, %v3028_v3  ;;  %v7032_v10 = vld [vmem:[%s10363_s1 + $0x46c] sm:$0xf] }
 0x37f   : > { %v2912_v5 = vpop.f32.mrf.mxu0 }
 0x380   : > { %v2913_v54 = vadd.f32 %v2912_v5, %v9042_v34  ;;  %v2971_v39 = vpop.f32.mrf.mxu1  ;;  %v6419_v34 = vld [vmem:[%s10363_s1 + $0x578] sm:$0xf0] }
 0x381   : > { %3255 = vmatmul.bf16.gmra.mxu2 %v10664_v7  ;;  %3314 = vmatmul.bf16.gmra.mxu3 %v7653_v57  ;;  %v6422_v23 = vor.u32 %v7064_v48, %v6419_v34  ;;  %v6291_v5 = vld [vmem:[%s10363_s1 + $0x478] sm:$0xf0] }
 0x382   : > { %v2972_v27 = vadd.f32 %v2971_v39, %v2913_v54  ;;  %6526 = vmatmul.msk.bf16.gmra.mxu0 %vm1903_vm0, %v10662_v11  ;;  %v7000_v39 = vld [vmem:[%s10363_s1 + $0x36c] sm:$0xf] }
 0x383   : > { %3196 = vmatmul.bf16.gmra.mxu1 %v10663_v22  ;;  %v3030_v19 = vpop.f32.mrf.mxu2  ;;  %v6166_v32 = vor.u32 %v7000_v39, %v6163_v4  ;;  %3472 = vmatpush.bf16.msra.mxu2 %v6422_v23  ;;  %v6294_v22 = vor.u32 %v7032_v10, %v6291_v5 }
 0x384   : > { %v3031_v57 = vadd.f32 %v3030_v19, %v2972_v27  ;;  %v3089_v52 = vpop.f32.mrf.mxu3  ;;  %v10665_v19 = vld [vmem:[#allocation47_spill] sm:$0xff] }
 0x385   : > { %3354 = vmatpush.bf16.msra.mxu0 %v6166_v32  ;;  %3413 = vmatpush.bf16.msra.mxu1 %v6294_v22  ;;  %v10666_v32 = vld [vmem:[#allocation13_spill] sm:$0xff]  ;;  %v6403_v22 = vld [vmem:[%s10363_s1 + $0x558] sm:$0xf0] }
 0x386   : > { %v9315_v3 = vadd.f32 %v3089_v52, %v3031_v57  ;;  %v10667_v57 = vld [vmem:[#allocation14_spill] sm:$0xff] }
 0x387   : > { %v2914_v20 = vpop.f32.mrf.mxu0 }
 0x388   : > { %v2915_v35 = vadd.f32 %v2914_v20, %v9054_v9  ;;  %v2973_v42 = vpop.f32.mrf.mxu1 }
 0x38a   : > { %v2974_v54 = vadd.f32 %v2973_v42, %v2915_v35 }
 0x38b   : > { %v3032_v27 = vpop.f32.mrf.mxu2 }
 0x38c   : > { %v3033_v7 = vadd.f32 %v3032_v27, %v2974_v54  ;;  %v3091_v48 = vpop.f32.mrf.mxu3  ;;  %v7060_v54 = vld [vmem:[%s10363_s1 + $0x54c] sm:$0xf] }
 0x38e   : > { %v9324_v23 = vadd.f32 %v3091_v48, %v3033_v7  ;;  %v6406_v7 = vor.u32 %v7060_v54, %v6403_v22  ;;  %v7028_v48 = vld [vmem:[%s10363_s1 + $0x44c] sm:$0xf]  ;;  %v10670_v22 = vld [vmem:[#allocation17_spill] sm:$0xff] }
 0x38f   : > { %v2917_v34 = vpop.f32.mrf.mxu0  ;;  %v10669_v54 = vld [vmem:[#allocation16_spill] sm:$0xff] }
 0x390   : > { %v2918_v9 = vadd.f32 %v2917_v34, %v9062_v37  ;;  %v2976_v39 = vpop.f32.mrf.mxu1  ;;  %3473 = vmatpush.bf16.msra.mxu2 %v6406_v7 }
 0x391   : > { %3260 = vmatmul.bf16.gmra.mxu2 %v10667_v57  ;;  %3319 = vmatmul.bf16.gmra.mxu3 %v7691_v14  ;;  %v6996_v14 = vld [vmem:[%s10363_s1 + $0x34c] sm:$0xf] }
 0x392   : > { %v2977_v4 = vadd.f32 %v2976_v39, %v2918_v9  ;;  %6527 = vmatmul.msk.bf16.gmra.mxu0 %vm1903_vm0, %v10665_v19  ;;  %v6275_v9 = vld [vmem:[%s10363_s1 + $0x458] sm:$0xf0] }
 0x393   : > { %3201 = vmatmul.bf16.gmra.mxu1 %v10666_v32  ;;  %v6278_v39 = vor.u32 %v7028_v48, %v6275_v9 }
 0x394   : > { %v3035_v52 = vpop.f32.mrf.mxu2  ;;  %v3094_v35 = vpop.f32.mrf.mxu3 }
 0x395   : > { %v3036_v20 = vadd.f32 %v3035_v52, %v2977_v4  ;;  %3414 = vmatpush.bf16.msra.mxu1 %v6278_v39  ;;  %v7056_v39 = vld [vmem:[%s10363_s1 + $0x52c] sm:$0xf] }
 0x397   : > { %v2919_v42 = vpop.f32.mrf.mxu0  ;;  %v9332_v5 = vadd.f32 %v3094_v35, %v3036_v20 }
 0x398   : > { %v2920_v10 = vadd.f32 %v2919_v42, %v9086_v46  ;;  %v2978_v37 = vpop.f32.mrf.mxu1  ;;  %v6147_v46 = vld [vmem:[%s10363_s1 + $0x358] sm:$0xf0] }
 0x399   : > { %v6150_v34 = vor.u32 %v6996_v14, %v6147_v46 }
 0x39a   : > { %v2979_v27 = vadd.f32 %v2978_v37, %v2920_v10  ;;  %v10668_v37 = vld [vmem:[#allocation50_spill] sm:$0xff] }
 0x39b   : > { %3355 = vmatpush.bf16.msra.mxu0 %v6150_v34 }
 0x39c   : > { %v3037_v4 = vpop.f32.mrf.mxu2  ;;  %v3096_v57 = vpop.f32.mrf.mxu3 }
 0x39d   : > { %v3038_v32 = vadd.f32 %v3037_v4, %v2979_v27  ;;  %v6387_v4 = vld [vmem:[%s10363_s1 + $0x538] sm:$0xf0] }
 0x39f   : > { %v2922_v52 = vpop.f32.mrf.mxu0  ;;  %v9353_v42 = vadd.f32 %v3096_v57, %v3038_v32  ;;  %v6390_v32 = vor.u32 %v7056_v39, %v6387_v4  ;;  %v10673_v39 = vld [vmem:[#allocation21_spill] sm:$0xff] }
 0x3a0   : > { %v2923_v20 = vadd.f32 %v2922_v52, %v9094_v12  ;;  %v2981_v35 = vpop.f32.mrf.mxu1 }
 0x3a1   : > { %3265 = vmatmul.bf16.gmra.mxu2 %v10670_v22  ;;  %3324 = vmatmul.bf16.gmra.mxu3 %v10633_v47  ;;  %v6992_v47 = vld [vmem:[%s10363_s1 + $0x32c] sm:$0xf] }
 0x3a2   : > { %v2982_v10 = vadd.f32 %v2981_v35, %v2923_v20  ;;  %6528 = vmatmul.msk.bf16.gmra.mxu0 %vm1903_vm0, %v10668_v37  ;;  %3474 = vmatpush.bf16.msra.mxu2 %v6390_v32 }
 0x3a3   : > { %3206 = vmatmul.bf16.gmra.mxu1 %v10669_v54 }
 0x3a4   : > { %v3040_v7 = vpop.f32.mrf.mxu2  ;;  %v3099_v27 = vpop.f32.mrf.mxu3 }
 0x3a5   : > { %v3041_v14 = vadd.f32 %v3040_v7, %v2982_v10 }
 0x3a7   : > { %v2924_v46 = vpop.f32.mrf.mxu0  ;;  %v9361_v34 = vadd.f32 %v3099_v27, %v3041_v14  ;;  %v7024_v14 = vld [vmem:[%s10363_s1 + $0x42c] sm:$0xf]  ;;  %v6259_v27 = vld [vmem:[%s10363_s1 + $0x438] sm:$0xf0] }
 0x3a8   : > { %v2925_v48 = vadd.f32 %v2924_v46, %v9112_v16  ;;  %v2983_v12 = vpop.f32.mrf.mxu1  ;;  %v6131_v16 = vld [vmem:[%s10363_s1 + $0x338] sm:$0xf0] }
 0x3a9   : > { %v6134_v57 = vor.u32 %v6992_v47, %v6131_v16 }
 0x3aa   : > { %v2984_v9 = vadd.f32 %v2983_v12, %v2925_v48  ;;  %v10671_v48 = vld [vmem:[#allocation53_spill] sm:$0xff]  ;;  %v6262_v12 = vor.u32 %v7024_v14, %v6259_v27 }
 0x3ab   : > { %3356 = vmatpush.bf16.msra.mxu0 %v6134_v57 }
 0x3ac   : > { %v3042_v52 = vpop.f32.mrf.mxu2  ;;  %v3101_v35 = vpop.f32.mrf.mxu3  ;;  %3415 = vmatpush.bf16.msra.mxu1 %v6262_v12  ;;  %v10674_v12 = vld [vmem:[#allocation56_spill] sm:$0xff] }
 0x3ad   : > { %v3043_v20 = vadd.f32 %v3042_v52, %v2984_v9  ;;  %v10672_v9 = vld [vmem:[#allocation20_spill] sm:$0xff] }
 0x3af   : > { %v2927_v10 = vpop.f32.mrf.mxu0  ;;  %v9376_v7 = vadd.f32 %v3101_v35, %v3043_v20 }
 0x3b0   : > { %v2928_v54 = vadd.f32 %v2927_v10, %v9126_v26  ;;  %v2986_v22 = vpop.f32.mrf.mxu1 }
 0x3b1   : > { %3270 = vmatmul.bf16.gmra.mxu2 %v10673_v39  ;;  %3329 = vmatmul.bf16.gmra.mxu3 %v10637_v51  ;;  %v7052_v51 = vld [vmem:[%s10363_s1 + $0x50c] sm:$0xf] }
 0x3b2   : > { %v2987_v46 = vadd.f32 %v2986_v22, %v2928_v54  ;;  %6529 = vmatmul.msk.bf16.gmra.mxu0 %vm1903_vm0, %v10671_v48 }
 0x3b3   : > { %3211 = vmatmul.bf16.gmra.mxu1 %v10672_v9 }
 0x3b4   : > { %v3045_v26 = vpop.f32.mrf.mxu2  ;;  %v3104_v47 = vpop.f32.mrf.mxu3 }
 0x3b5   : > { %v3046_v4 = vadd.f32 %v3045_v26, %v2987_v46  ;;  %v6115_v26 = vld [vmem:[%s10363_s1 + $0x318] sm:$0xf0] }
 0x3b7   : > { %v2929_v32 = vpop.f32.mrf.mxu0  ;;  %v9390_v52 = vadd.f32 %v3104_v47, %v3046_v4  ;;  %v10675_v4 = vld [vmem:[#allocation24_spill] sm:$0xff]  ;;  %v10676_v47 = vld [vmem:[#allocation25_spill] sm:$0xff] }
 0x3b8   : > { %v2930_v16 = vadd.f32 %v2929_v32, %v9132_v31  ;;  %v2988_v57 = vpop.f32.mrf.mxu1  ;;  %v6371_v31 = vld [vmem:[%s10363_s1 + $0x518] sm:$0xf0] }
 0x3b9   : > { %v6374_v39 = vor.u32 %v7052_v51, %v6371_v31 }
 0x3ba   : > { %v2989_v20 = vadd.f32 %v2988_v57, %v2930_v16  ;;  %v7020_v16 = vld [vmem:[%s10363_s1 + $0x40c] sm:$0xf]  ;;  %v6243_v57 = vld [vmem:[%s10363_s1 + $0x418] sm:$0xf0] }
 0x3bb   : > { %3475 = vmatpush.bf16.msra.mxu2 %v6374_v39 }
 0x3bc   : > { %v3047_v35 = vpop.f32.mrf.mxu2  ;;  %v3106_v54 = vpop.f32.mrf.mxu3 }
 0x3bd   : > { %v3048_v10 = vadd.f32 %v3047_v35, %v2989_v20  ;;  %v6246_v20 = vor.u32 %v7020_v16, %v6243_v57  ;;  %v6729_v57 = vld [vmem:[%s10365_s3 + $0x170] sm:$0xf] }
 0x3bf   : > { %v2932_v22 = vpop.f32.mrf.mxu0  ;;  %v9393_v9 = vadd.f32 %v3106_v54, %v3048_v10  ;;  %3416 = vmatpush.bf16.msra.mxu1 %v6246_v20  ;;  %v6601_v20 = vld [vmem:[%s10365_s3 + $0x70] sm:$0xf] }
 0x3c0   : > { %v2933_v14 = vadd.f32 %v2932_v22, %v9158_v0  ;;  %v2991_v27 = vpop.f32.mrf.mxu1  ;;  %v6988_v0 = vld [vmem:[%s10363_s1 + $0x30c] sm:$0xf] }
 0x3c1   : > { %3275 = vmatmul.bf16.gmra.mxu2 %v10676_v47  ;;  %v6118_v32 = vor.u32 %v6988_v0, %v6115_v26  ;;  %3334 = vmatmul.bf16.gmra.mxu3 %v10642_v36 }
 0x3c2   : > { %v2992_v46 = vadd.f32 %v2991_v27, %v2933_v14  ;;  %6530 = vmatmul.msk.bf16.gmra.mxu0 %vm1903_vm0, %v10674_v12 }
 0x3c3   : > { %3216 = vmatmul.bf16.gmra.mxu1 %v10675_v4  ;;  %3357 = vmatpush.bf16.msra.mxu0 %v6118_v32  ;;  %v7241_v4 = vld [vmem:[%s10364_s2] sm:$0xf] }
 0x3c4   : > { %v3050_v35 = vpop.f32.mrf.mxu2  ;;  %v3109_v54 = vpop.f32.mrf.mxu3  ;;  %v9424_v47 = vperm.slane %v7241_v4, 3  ;;  %v6665_v4 = vld [vmem:[%s10365_s3 + $0xf0] sm:$0xf] }
 0x3c5   : > { %v3051_v10 = vadd.f32 %v3050_v35, %v2992_v46 }
 0x3c7   : > { %v2934_v22 = vpop.f32.mrf.mxu0  ;;  %v9419_v36 = vadd.f32 %v3109_v54, %v3051_v10 }
 0x3c8   : > { %v2935_v14 = vadd.f32 %v2934_v22, %v9164_v50  ;;  %v2993_v27 = vpop.f32.mrf.mxu1 }
 0x3ca   : > { %v2994_v51 = vadd.f32 %v2993_v27, %v2935_v14 }
 0x3cc   : > { %v3052_v31 = vpop.f32.mrf.mxu2  ;;  %v3111_v0 = vpop.f32.mrf.mxu3 }
 0x3cd   : > { %v3053_v39 = vadd.f32 %v3052_v31, %v2994_v51 }
 0x3cf   : > { %v3123_v26 = vpop.f32.mrf.mxu0  ;;  %v9427_v16 = vadd.f32 %v3111_v0, %v3053_v39 }
 0x3d0   : > { %v3124_v46 = vadd.f32 %v3123_v26, %v9189_v13  ;;  %v3182_v32 = vpop.f32.mrf.mxu1  ;;  %v7134_v13 = vld [vmem:[%s10365_s3 + $0x174] sm:$0xf0] }
 0x3d1   : > { %v3183_v50 = vadd.f32 %v3182_v32, %v9424_v47  ;;  %3280 = vmatmul.bf16.gmra.mxu2 %v10587_v28  ;;  %3339 = vmatmul.bf16.gmra.mxu3 %v10647_v62  ;;  %v6730_v35 = vor.u32 %v7134_v13, %v6729_v57  ;;  %v6793_v28 = vld [vmem:[%s10365_s3 + $0x1f0] sm:$0xf]  ;;  %v7150_v62 = vld [vmem:[%s10365_s3 + $0x1f4] sm:$0xf0] }
 0x3d2   : > { %6531 = vmatmul.msk.bf16.gmra.mxu0 %vm1903_vm0, %v10620_v55  ;;  %v6794_v22 = vor.u32 %v7150_v62, %v6793_v28  ;;  %v3668_v31 = vmul.f32 0.2, %v3124_v46  ;;  %vm3588_vm11 = vcmp.gt.f32.partialorder %v3124_v46, 0.0  ;;  %v7118_v32 = vld [vmem:[%s10365_s3 + $0xf4] sm:$0xf0] }
 0x3d3   : > { %3221 = vmatmul.bf16.gmra.mxu1 %v10621_v49  ;;  %v7102_v49 = vld [vmem:[%s10365_s3 + $0x74] sm:$0xf0]  ;;  %4374 = vmatpush.bf16.msrb.mxu2 %v6730_v35  ;;  %v6666_v57 = vor.u32 %v7118_v32, %v6665_v4 }
 0x3d4   : > { %v3241_v10 = vpop.f32.mrf.mxu2  ;;  %v6602_v54 = vor.u32 %v7102_v49, %v6601_v20  ;;  %v3300_v27 = vpop.f32.mrf.mxu3  ;;  %4433 = vmatpush.bf16.msrb.mxu3 %v6794_v22  ;;  %v3748_v13 = vsel %vm3588_vm11, %v3124_v46, %v3668_v31 }
 0x3d5   : > { %v3242_v14 = vadd.f32 %v3241_v10, %v3183_v50  ;;  %4315 = vmatpush.bf16.msrb.mxu1 %v6666_v57 }
 0x3d6   : > { %4256 = vmatpush.bf16.msrb.mxu0 %v6602_v54 }
 0x3d7   : > { %v3125_v51 = vpop.f32.mrf.mxu0  ;;  %v9454_v26 = vadd.f32 %v3300_v27, %v3242_v14  ;;  %v10677_v27 = vld [vmem:[#allocation32_spill] sm:$0xff] }
 0x3d8   : > { %v3126_v39 = vadd.f32 %v3125_v51, %v9198_v61  ;;  %v3184_v0 = vpop.f32.mrf.mxu1  ;;  %v10678_v51 = vld [vmem:[#allocation33_spill] sm:$0xff] }
 0x3d9   : > { %v3185_v35 = vadd.f32 %v3184_v0, %v9424_v47 }
 0x3da   : > { %vm3592_vm12 = vcmp.gt.f32.partialorder %v3126_v39, 0.0  ;;  %v3672_v50 = vmul.f32 0.2, %v3126_v39 }
 0x3dc   : > { %v3752_v20 = vsel %vm3592_vm12, %v3126_v39, %v3672_v50  ;;  %v3243_v49 = vpop.f32.mrf.mxu2  ;;  %v3302_v62 = vpop.f32.mrf.mxu3 }
 0x3dd   : > { %v9462_v61 = vpack.c.bf16 %v3752_v20, %v3748_v13  ;;  %v3244_v28 = vadd.f32 %v3243_v49, %v3185_v35  ;;  %v6721_v13 = vld [vmem:[%s10365_s3 + $0x160] sm:$0xf]  ;;  %v7132_v20 = vld [vmem:[%s10365_s3 + $0x164] sm:$0xf0] }
 0x3de   : > { %v6722_v35 = vor.u32 %v7132_v20, %v6721_v13  ;;  %v6593_v49 = vld [vmem:[%s10365_s3 + $0x60] sm:$0xf] }
 0x3df   : > { %v3128_v10 = vpop.f32.mrf.mxu0  ;;  %v9466_v14 = vadd.f32 %v3302_v62, %v3244_v28  ;;  %v6785_v28 = vld [vmem:[%s10365_s3 + $0x1e0] sm:$0xf]  ;;  %v7148_v62 = vld [vmem:[%s10365_s3 + $0x1e4] sm:$0xf0] }
 0x3e0   : > { %v3129_v54 = vadd.f32 %v3128_v10, %v9205_v17  ;;  %v3187_v22 = vpop.f32.mrf.mxu1  ;;  %4375 = vmatpush.bf16.msrb.mxu2 %v6722_v35 }
 0x3e1   : > { %v3188_v46 = vadd.f32 %v3187_v22, %v9424_v47  ;;  %3285 = vmatmul.bf16.gmra.mxu2 %v10678_v51  ;;  %3344 = vmatmul.bf16.gmra.mxu3 %v10650_v45  ;;  %v6786_v22 = vor.u32 %v7148_v62, %v6785_v28 }
 0x3e2   : > { %6532 = vmatmul.msk.bf16.gmra.mxu0 %vm1903_vm0, %v8303_v1  ;;  %v3676_v32 = vmul.f32 0.2, %v3129_v54  ;;  %vm3596_vm13 = vcmp.gt.f32.partialorder %v3129_v54, 0.0 }
 0x3e3   : > { %3226 = vmatmul.bf16.gmra.mxu1 %v10677_v27  ;;  %v7116_v27 = vld [vmem:[%s10365_s3 + $0xe4] sm:$0xf0]  ;;  %4434 = vmatpush.bf16.msrb.mxu3 %v6786_v22 }
 0x3e4   : > { %v3246_v31 = vpop.f32.mrf.mxu2  ;;  %v3305_v0 = vpop.f32.mrf.mxu3  ;;  %v3756_v51 = vsel %vm3596_vm13, %v3129_v54, %v3676_v32 }
 0x3e5   : > { %v3247_v39 = vadd.f32 %v3246_v31, %v3188_v46  ;;  %v6657_v46 = vld [vmem:[%s10365_s3 + $0xe0] sm:$0xf] }
 0x3e7   : > { %v3130_v4 = vpop.f32.mrf.mxu0  ;;  %v9475_v57 = vadd.f32 %v3305_v0, %v3247_v39  ;;  %v6658_v0 = vor.u32 %v7116_v27, %v6657_v46 }
 0x3e8   : > { %v3131_v17 = vadd.f32 %v3130_v4, %v9226_v59  ;;  %v3189_v50 = vpop.f32.mrf.mxu1  ;;  %v7100_v59 = vld [vmem:[%s10365_s3 + $0x64] sm:$0xf0] }
 0x3e9   : > { %v6594_v10 = vor.u32 %v7100_v59, %v6593_v49  ;;  %v3190_v39 = vadd.f32 %v3189_v50, %v9424_v47  ;;  %4316 = vmatpush.bf16.msrb.mxu1 %v6658_v0 }
 0x3ea   : > { %vm3600_vm14 = vcmp.gt.f32.partialorder %v3131_v17, 0.0  ;;  %v3680_v45 = vmul.f32 0.2, %v3131_v17 }
 0x3eb   : > { %4257 = vmatpush.bf16.msrb.mxu0 %v6594_v10 }
 0x3ec   : > { %v3760_v31 = vsel %vm3600_vm14, %v3131_v17, %v3680_v45  ;;  %v3248_v13 = vpop.f32.mrf.mxu2  ;;  %v3307_v35 = vpop.f32.mrf.mxu3 }
 0x3ed   : > { %v9503_v4 = vpack.c.bf16 %v3760_v31, %v3756_v51  ;;  %v3249_v20 = vadd.f32 %v3248_v13, %v3190_v39  ;;  %v6777_v31 = vld [vmem:[%s10365_s3 + $0x1d0] sm:$0xf]  ;;  %v7146_v39 = vld [vmem:[%s10365_s3 + $0x1d4] sm:$0xf0] }
 0x3ef   : > { %v3133_v49 = vpop.f32.mrf.mxu0  ;;  %v9506_v62 = vadd.f32 %v3307_v35, %v3249_v20  ;;  %v6778_v35 = vor.u32 %v7146_v39, %v6777_v31 }
 0x3f0   : > { %v3134_v59 = vadd.f32 %v3133_v49, %v9234_v6  ;;  %v3192_v28 = vpop.f32.mrf.mxu1 }
 0x3f1   : > { %v3193_v54 = vadd.f32 %v3192_v28, %v9424_v47  ;;  %3476 = vmatmul.bf16.vlgmr.msra.gmra.mxu2 %v10594_v15  ;;  %6533 = vmatmul.msk.bf16.vlgmr.msra.gmra.mxu3 %vm1903_vm0, %v10653_v29  ;;  %v6713_v15 = vld [vmem:[%s10365_s3 + $0x150] sm:$0xf] }
 0x3f2   : > { %3358 = vmatmul.bf16.vlgmr.msra.gmra.mxu0 %v7547_v56  ;;  %v3684_v10 = vmul.f32 0.2, %v3134_v59  ;;  %vm3604_vm15 = vcmp.gt.f32.partialorder %v3134_v59, 0.0  ;;  %v6585_v29 = vld [vmem:[%s10365_s3 + $0x50] sm:$0xf]  ;;  %4435 = vmatpush.bf16.msrb.mxu3 %v6778_v35 }
 0x3f3   : > { %3417 = vmatmul.bf16.vlgmr.msra.gmra.mxu1 %v7922_v2  ;;  %v7130_v2 = vld [vmem:[%s10365_s3 + $0x154] sm:$0xf0] }
 0x3f4   : > { %v3251_v32 = vpop.f32.mrf.mxu2  ;;  %v3310_v50 = vpop.f32.mrf.mxu3  ;;  %v6714_v27 = vor.u32 %v7130_v2, %v6713_v15  ;;  %v3764_v0 = vsel %vm3604_vm15, %v3134_v59, %v3684_v10  ;;  %v6649_v59 = vld [vmem:[%s10365_s3 + $0xd0] sm:$0xf]  ;;  %v7114_v10 = vld [vmem:[%s10365_s3 + $0xd4] sm:$0xf0] }
 0x3f5   : > { %v3252_v17 = vadd.f32 %v3251_v32, %v3193_v54 }
 0x3f6   : > { %4376 = vmatpush.bf16.msrb.mxu2 %v6714_v27 }
 0x3f7   : > { %v3135_v45 = vpop.f32.mrf.mxu0  ;;  %v9515_v46 = vadd.f32 %v3310_v50, %v3252_v17 }
 0x3f8   : > { %v3136_v6 = vadd.f32 %v3135_v45, %v9249_v63  ;;  %v3194_v22 = vpop.f32.mrf.mxu1  ;;  %v7098_v63 = vld [vmem:[%s10365_s3 + $0x54] sm:$0xf0] }
 0x3f9   : > { %v6586_v51 = vor.u32 %v7098_v63, %v6585_v29  ;;  %v3195_v20 = vadd.f32 %v3194_v22, %v9424_v47 }
 0x3fa   : > { %vm3608_vm1 = vcmp.gt.f32.partialorder %v3136_v6, 0.0  ;;  %v3688_v56 = vmul.f32 0.2, %v3136_v6 }
 0x3fb   : > { %4258 = vmatpush.bf16.msrb.mxu0 %v6586_v51 }
 0x3fc   : > { %v3768_v13 = vsel %vm3608_vm1, %v3136_v6, %v3688_v56  ;;  %v3253_v28 = vpop.f32.mrf.mxu2  ;;  %v3312_v32 = vpop.f32.mrf.mxu3  ;;  %v6650_v6 = vor.u32 %v7114_v10, %v6649_v59  ;;  %v7096_v59 = vld [vmem:[%s10365_s3 + $0x44] sm:$0xf0]  ;;  %v6769_v10 = vld [vmem:[%s10365_s3 + $0x1c0] sm:$0xf] }
 0x3fd   : > { %v9536_v49 = vpack.c.bf16 %v3768_v13, %v3764_v0  ;;  %v3254_v54 = vadd.f32 %v3253_v28, %v3195_v20 }
 0x3fe   : > { %4317 = vmatpush.bf16.msrb.mxu1 %v6650_v6 }
 0x3ff   : > { %v3138_v17 = vpop.f32.mrf.mxu0  ;;  %v9539_v15 = vadd.f32 %v3312_v32, %v3254_v54  ;;  %v6705_v32 = vld [vmem:[%s10365_s3 + $0x140] sm:$0xf] }
 0x400   : > { %v3139_v50 = vadd.f32 %v3138_v17, %v9263_v43  ;;  %v3197_v45 = vpop.f32.mrf.mxu1  ;;  %v7128_v17 = vld [vmem:[%s10365_s3 + $0x144] sm:$0xf0] }
 0x401   : > { %v3198_v22 = vadd.f32 %v3197_v45, %v9424_v47  ;;  %3481 = vmatmul.bf16.gmra.mxu2 %v10597_v40  ;;  %6534 = vmatmul.msk.bf16.gmra.mxu3 %vm1903_vm0, %v10656_v41  ;;  %v6577_v45 = vld [vmem:[%s10365_s3 + $0x40] sm:$0xf] }
 0x402   : > { %3363 = vmatmul.bf16.gmra.mxu0 %v10625_v21  ;;  %v3692_v63 = vmul.f32 0.2, %v3139_v50  ;;  %vm3612_vm2 = vcmp.gt.f32.partialorder %v3139_v50, 0.0  ;;  %v6578_v6 = vor.u32 %v7096_v59, %v6577_v45  ;;  %v6697_v59 = vld [vmem:[%s10365_s3 + $0x130] sm:$0xf] }
 0x403   : > { %3422 = vmatmul.bf16.gmra.mxu1 %v7963_v30 }
 0x404   : > { %v3256_v43 = vpop.f32.mrf.mxu2  ;;  %v3315_v2 = vpop.f32.mrf.mxu3  ;;  %v3772_v30 = vsel %vm3612_vm2, %v3139_v50, %v3692_v63  ;;  %v6706_v50 = vor.u32 %v7128_v17, %v6705_v32  ;;  %4259 = vmatpush.bf16.msrb.mxu0 %v6578_v6  ;;  %v7142_v6 = vld [vmem:[%s10365_s3 + $0x1b4] sm:$0xf0] }
 0x405   : > { %v3257_v56 = vadd.f32 %v3256_v43, %v3198_v22  ;;  %v7112_v22 = vld [vmem:[%s10365_s3 + $0xc4] sm:$0xf0] }
 0x406   : > { %4377 = vmatpush.bf16.msrb.mxu2 %v6706_v50 }
 0x407   : > { %v3140_v29 = vpop.f32.mrf.mxu0  ;;  %v9554_v21 = vadd.f32 %v3315_v2, %v3257_v56 }
 0x408   : > { %v3141_v27 = vadd.f32 %v3140_v29, %v9266_v33  ;;  %v3199_v51 = vpop.f32.mrf.mxu1 }
 0x409   : > { %v3200_v40 = vadd.f32 %v3199_v51, %v9424_v47 }
 0x40a   : > { %vm3616_vm3 = vcmp.gt.f32.partialorder %v3141_v27, 0.0  ;;  %v3696_v31 = vmul.f32 0.2, %v3141_v27 }
 0x40c   : > { %v3776_v39 = vsel %vm3616_vm3, %v3141_v27, %v3696_v31  ;;  %v3258_v41 = vpop.f32.mrf.mxu2  ;;  %v3317_v20 = vpop.f32.mrf.mxu3 }
 0x40d   : > { %v9557_v0 = vpack.c.bf16 %v3776_v39, %v3772_v30  ;;  %v3259_v13 = vadd.f32 %v3258_v41, %v3200_v40 }
 0x40f   : > { %v3143_v35 = vpop.f32.mrf.mxu0  ;;  %v9560_v33 = vadd.f32 %v3317_v20, %v3259_v13 }
 0x410   : > { %v3144_v28 = vadd.f32 %v3143_v35, %v9292_v38  ;;  %v3202_v54 = vpop.f32.mrf.mxu1 }
 0x411   : > { %v3203_v38 = vadd.f32 %v3202_v54, %v9424_v47  ;;  %3486 = vmatmul.bf16.gmra.mxu2 %v10600_v44  ;;  %6535 = vmatmul.msk.bf16.gmra.mxu3 %vm1903_vm0, %v10659_v24  ;;  %v6641_v44 = vld [vmem:[%s10365_s3 + $0xc0] sm:$0xf] }
 0x412   : > { %3368 = vmatmul.bf16.gmra.mxu0 %v10627_v18  ;;  %v7144_v18 = vld [vmem:[%s10365_s3 + $0x1c4] sm:$0xf0]  ;;  %v6642_v43 = vor.u32 %v7112_v22, %v6641_v44  ;;  %v3700_v24 = vmul.f32 0.2, %v3144_v28  ;;  %vm3620_vm4 = vcmp.gt.f32.partialorder %v3144_v28, 0.0 }
 0x413   : > { %3427 = vmatmul.bf16.gmra.mxu1 %v7992_v53  ;;  %v6770_v53 = vor.u32 %v7144_v18, %v6769_v10  ;;  %v7094_v18 = vld [vmem:[%s10365_s3 + $0x34] sm:$0xf0] }
 0x414   : > { %v3261_v56 = vpop.f32.mrf.mxu2  ;;  %v3320_v29 = vpop.f32.mrf.mxu3  ;;  %4318 = vmatpush.bf16.msrb.mxu1 %v6642_v43  ;;  %v3780_v39 = vsel %vm3620_vm4, %v3144_v28, %v3700_v24  ;;  %v10680_v28 = vld [vmem:[#allocation43_spill] sm:$0xff] }
 0x415   : > { %4436 = vmatpush.bf16.msrb.mxu3 %v6770_v53  ;;  %v3262_v2 = vadd.f32 %v3261_v56, %v3203_v38  ;;  %v10679_v38 = vld [vmem:[#allocation42_spill] sm:$0xff] }
 0x417   : > { %v3145_v63 = vpop.f32.mrf.mxu0  ;;  %v9593_v31 = vadd.f32 %v3320_v29, %v3262_v2 }
 0x418   : > { %v3146_v27 = vadd.f32 %v3145_v63, %v9295_v25  ;;  %v3204_v51 = vpop.f32.mrf.mxu1 }
 0x419   : > { %v3205_v41 = vadd.f32 %v3204_v51, %v9424_v47  ;;  %v6633_v51 = vld [vmem:[%s10365_s3 + $0xb0] sm:$0xf] }
 0x41a   : > { %vm3624_vm5 = vcmp.gt.f32.partialorder %v3146_v27, 0.0  ;;  %v3704_v30 = vmul.f32 0.2, %v3146_v27 }
 0x41c   : > { %v3784_v40 = vsel %vm3624_vm5, %v3146_v27, %v3704_v30  ;;  %v3263_v20 = vpop.f32.mrf.mxu2  ;;  %v3322_v54 = vpop.f32.mrf.mxu3  ;;  %v7110_v30 = vld [vmem:[%s10365_s3 + $0xb4] sm:$0xf0] }
 0x41d   : > { %v9596_v13 = vpack.c.bf16 %v3784_v40, %v3780_v39  ;;  %v3264_v35 = vadd.f32 %v3263_v20, %v3205_v41  ;;  %v6634_v40 = vor.u32 %v7110_v30, %v6633_v51  ;;  %v7140_v51 = vld [vmem:[%s10365_s3 + $0x1a4] sm:$0xf0] }
 0x41f   : > { %v3148_v32 = vpop.f32.mrf.mxu0  ;;  %v9599_v25 = vadd.f32 %v3322_v54, %v3264_v35  ;;  %4319 = vmatpush.bf16.msrb.mxu1 %v6634_v40  ;;  %v6625_v40 = vld [vmem:[%s10365_s3 + $0xa0] sm:$0xf] }
 0x420   : > { %v3149_v17 = vadd.f32 %v3148_v32, %v9315_v3  ;;  %v3207_v50 = vpop.f32.mrf.mxu1  ;;  %v7126_v3 = vld [vmem:[%s10365_s3 + $0x134] sm:$0xf0] }
 0x421   : > { %v3208_v45 = vadd.f32 %v3207_v50, %v9424_v47  ;;  %3491 = vmatmul.bf16.gmra.mxu2 %v10680_v28  ;;  %6536 = vmatmul.msk.bf16.gmra.mxu3 %vm1903_vm0, %v10662_v11  ;;  %v6698_v10 = vor.u32 %v7126_v3, %v6697_v59  ;;  %v6761_v11 = vld [vmem:[%s10365_s3 + $0x1b0] sm:$0xf]  ;;  %v10681_v3 = vld [vmem:[#allocation15_spill] sm:$0xff] }
 0x422   : > { %3373 = vmatmul.bf16.gmra.mxu0 %v7655_v58  ;;  %v6569_v58 = vld [vmem:[%s10365_s3 + $0x30] sm:$0xf]  ;;  %v6762_v22 = vor.u32 %v7142_v6, %v6761_v11  ;;  %v3708_v29 = vmul.f32 0.2, %v3149_v17  ;;  %vm3628_vm6 = vcmp.gt.f32.partialorder %v3149_v17, 0.0 }
 0x423   : > { %3432 = vmatmul.bf16.gmra.mxu1 %v10679_v38  ;;  %v6570_v44 = vor.u32 %v7094_v18, %v6569_v58  ;;  %4378 = vmatpush.bf16.msrb.mxu2 %v6698_v10  ;;  %v10682_v10 = vld [vmem:[#allocation45_spill] sm:$0xff] }
 0x424   : > { %v3266_v53 = vpop.f32.mrf.mxu2  ;;  %v3325_v56 = vpop.f32.mrf.mxu3  ;;  %4437 = vmatpush.bf16.msrb.mxu3 %v6762_v22  ;;  %v3788_v41 = vsel %vm3628_vm6, %v3149_v17, %v3708_v29  ;;  %v10683_v17 = vld [vmem:[#allocation46_spill] sm:$0xff] }
 0x425   : > { %v3267_v43 = vadd.f32 %v3266_v53, %v3208_v45  ;;  %4260 = vmatpush.bf16.msrb.mxu0 %v6570_v44 }
 0x427   : > { %v3150_v2 = vpop.f32.mrf.mxu0  ;;  %v9626_v27 = vadd.f32 %v3325_v56, %v3267_v43  ;;  %v6689_v56 = vld [vmem:[%s10365_s3 + $0x120] sm:$0xf] }
 0x428   : > { %v3151_v63 = vadd.f32 %v3150_v2, %v9324_v23  ;;  %v3209_v24 = vpop.f32.mrf.mxu1  ;;  %v7124_v2 = vld [vmem:[%s10365_s3 + $0x124] sm:$0xf0] }
 0x429   : > { %v3210_v20 = vadd.f32 %v3209_v24, %v9424_v47  ;;  %v6690_v29 = vor.u32 %v7124_v2, %v6689_v56  ;;  %v6753_v24 = vld [vmem:[%s10365_s3 + $0x1a0] sm:$0xf] }
 0x42a   : > { %vm3632_vm7 = vcmp.gt.f32.partialorder %v3151_v63, 0.0  ;;  %v3712_v39 = vmul.f32 0.2, %v3151_v63 }
 0x42b   : > { %4379 = vmatpush.bf16.msrb.mxu2 %v6690_v29 }
 0x42c   : > { %v3792_v23 = vsel %vm3632_vm7, %v3151_v63, %v3712_v39  ;;  %v3268_v54 = vpop.f32.mrf.mxu2  ;;  %v3327_v50 = vpop.f32.mrf.mxu3  ;;  %v6561_v63 = vld [vmem:[%s10365_s3 + $0x20] sm:$0xf]  ;;  %v6754_v39 = vor.u32 %v7140_v51, %v6753_v24  ;;  %v7138_v24 = vld [vmem:[%s10365_s3 + $0x194] sm:$0xf0] }
 0x42d   : > { %v9635_v35 = vpack.c.bf16 %v3792_v23, %v3788_v41  ;;  %v3269_v32 = vadd.f32 %v3268_v54, %v3210_v20  ;;  %v7108_v41 = vld [vmem:[%s10365_s3 + $0xa4] sm:$0xf0] }
 0x42e   : > { %4438 = vmatpush.bf16.msrb.mxu3 %v6754_v39 }
 0x42f   : > { %v3153_v45 = vpop.f32.mrf.mxu0  ;;  %v9638_v59 = vadd.f32 %v3327_v50, %v3269_v32  ;;  %v6626_v32 = vor.u32 %v7108_v41, %v6625_v40 }
 0x430   : > { %v3154_v38 = vadd.f32 %v3153_v45, %v9332_v5  ;;  %v3212_v28 = vpop.f32.mrf.mxu1 }
 0x431   : > { %v3213_v58 = vadd.f32 %v3212_v28, %v9424_v47  ;;  %3496 = vmatmul.bf16.gmra.mxu2 %v10683_v17  ;;  %6537 = vmatmul.msk.bf16.gmra.mxu3 %vm1903_vm0, %v10665_v19 }
 0x432   : > { %3378 = vmatmul.bf16.gmra.mxu0 %v10681_v3  ;;  %v3716_v44 = vmul.f32 0.2, %v3154_v38  ;;  %vm3636_vm8 = vcmp.gt.f32.partialorder %v3154_v38, 0.0  ;;  %4320 = vmatpush.bf16.msrb.mxu1 %v6626_v32 }
 0x433   : > { %3437 = vmatmul.bf16.gmra.mxu1 %v10682_v10 }
 0x434   : > { %v3271_v18 = vpop.f32.mrf.mxu2  ;;  %v3330_v6 = vpop.f32.mrf.mxu3  ;;  %v3796_v23 = vsel %vm3636_vm8, %v3154_v38, %v3716_v44 }
 0x435   : > { %v3272_v11 = vadd.f32 %v3271_v18, %v3213_v58 }
 0x437   : > { %v3155_v53 = vpop.f32.mrf.mxu0  ;;  %v9647_v43 = vadd.f32 %v3330_v6, %v3272_v11  ;;  %v10684_v11 = vld [vmem:[#allocation49_spill] sm:$0xff] }
 0x438   : > { %v3156_v5 = vadd.f32 %v3155_v53, %v9353_v42  ;;  %v3214_v22 = vpop.f32.mrf.mxu1  ;;  %v7092_v42 = vld [vmem:[%s10365_s3 + $0x24] sm:$0xf0] }
 0x439   : > { %v6562_v30 = vor.u32 %v7092_v42, %v6561_v63  ;;  %v3215_v54 = vadd.f32 %v3214_v22, %v9424_v47  ;;  %v6745_v42 = vld [vmem:[%s10365_s3 + $0x190] sm:$0xf] }
 0x43a   : > { %vm3640_vm9 = vcmp.gt.f32.partialorder %v3156_v5, 0.0  ;;  %v3720_v19 = vmul.f32 0.2, %v3156_v5  ;;  %v6746_v40 = vor.u32 %v7138_v24, %v6745_v42 }
 0x43b   : > { %4261 = vmatpush.bf16.msrb.mxu0 %v6562_v30 }
 0x43c   : > { %v3800_v20 = vsel %vm3640_vm9, %v3156_v5, %v3720_v19  ;;  %v3273_v45 = vpop.f32.mrf.mxu2  ;;  %v3332_v3 = vpop.f32.mrf.mxu3  ;;  %v6553_v19 = vld [vmem:[%s10365_s3 + $0x10] sm:$0xf]  ;;  %4439 = vmatpush.bf16.msrb.mxu3 %v6746_v40  ;;  %v10688_v40 = vld [vmem:[#allocation27_spill] sm:$0xff] }
 0x43d   : > { %v9675_v50 = vpack.c.bf16 %v3800_v20, %v3796_v23  ;;  %v3274_v28 = vadd.f32 %v3273_v45, %v3215_v54 }
 0x43f   : > { %v3158_v58 = vpop.f32.mrf.mxu0  ;;  %v9678_v18 = vadd.f32 %v3332_v3, %v3274_v28 }
 0x440   : > { %v3159_v10 = vadd.f32 %v3158_v58, %v9361_v34  ;;  %v3217_v17 = vpop.f32.mrf.mxu1  ;;  %v6617_v58 = vld [vmem:[%s10365_s3 + $0x90] sm:$0xf] }
 0x441   : > { %v3218_v38 = vadd.f32 %v3217_v17, %v9424_v47  ;;  %3501 = vmatmul.bf16.gmra.mxu2 %v10684_v11  ;;  %6538 = vmatmul.msk.bf16.gmra.mxu3 %vm1903_vm0, %v10668_v37  ;;  %v7122_v37 = vld [vmem:[%s10365_s3 + $0x114] sm:$0xf0]  ;;  %v10685_v17 = vld [vmem:[#allocation23_spill] sm:$0xff] }
 0x442   : > { %3383 = vmatmul.bf16.gmra.mxu0 %v10634_v8  ;;  %v3724_v22 = vmul.f32 0.2, %v3159_v10  ;;  %vm3644_vm10 = vcmp.gt.f32.partialorder %v3159_v10, 0.0 }
 0x443   : > { %3442 = vmatmul.bf16.gmra.mxu1 %v10635_v60  ;;  %v6681_v60 = vld [vmem:[%s10365_s3 + $0x110] sm:$0xf] }
 0x444   : > { %v3276_v6 = vpop.f32.mrf.mxu2  ;;  %v3335_v44 = vpop.f32.mrf.mxu3  ;;  %v6682_v29 = vor.u32 %v7122_v37, %v6681_v60  ;;  %v3804_v51 = vsel %vm3644_vm10, %v3159_v10, %v3724_v22  ;;  %v7106_v10 = vld [vmem:[%s10365_s3 + $0x94] sm:$0xf0] }
 0x445   : > { %v3277_v53 = vadd.f32 %v3276_v6, %v3218_v38  ;;  %v6618_v38 = vor.u32 %v7106_v10, %v6617_v58  ;;  %v10686_v6 = vld [vmem:[#allocation51_spill] sm:$0xff] }
 0x446   : > { %4380 = vmatpush.bf16.msrb.mxu2 %v6682_v29 }
 0x447   : > { %v3160_v5 = vpop.f32.mrf.mxu0  ;;  %v9687_v2 = vadd.f32 %v3335_v44, %v3277_v53  ;;  %v10687_v53 = vld [vmem:[#allocation52_spill] sm:$0xff]  ;;  %4321 = vmatpush.bf16.msrb.mxu1 %v6618_v38 }
 0x448   : > { %v3161_v34 = vadd.f32 %v3160_v5, %v9376_v7  ;;  %v3219_v56 = vpop.f32.mrf.mxu1  ;;  %v7090_v7 = vld [vmem:[%s10365_s3 + $0x14] sm:$0xf0] }
 0x449   : > { %v6554_v63 = vor.u32 %v7090_v7, %v6553_v19  ;;  %v3220_v39 = vadd.f32 %v3219_v56, %v9424_v47 }
 0x44a   : > { %vm3648_vm11 = vcmp.gt.f32.partialorder %v3161_v34, 0.0  ;;  %v3728_v8 = vmul.f32 0.2, %v3161_v34 }
 0x44b   : > { %4262 = vmatpush.bf16.msrb.mxu0 %v6554_v63 }
 0x44c   : > { %v3808_v30 = vsel %vm3648_vm11, %v3161_v34, %v3728_v8  ;;  %v3278_v23 = vpop.f32.mrf.mxu2  ;;  %v3337_v54 = vpop.f32.mrf.mxu3 }
 0x44d   : > { %v9708_v41 = vpack.c.bf16 %v3808_v30, %v3804_v51  ;;  %v3279_v20 = vadd.f32 %v3278_v23, %v3220_v39 }
 0x44f   : > { %v3163_v32 = vpop.f32.mrf.mxu0  ;;  %v9711_v3 = vadd.f32 %v3337_v54, %v3279_v20  ;;  %v10689_v20 = vld [vmem:[#allocation54_spill] sm:$0xff]  ;;  %v10690_v54 = vld [vmem:[#allocation55_spill] sm:$0xff] }
 0x450   : > { %v3164_v45 = vadd.f32 %v3163_v32, %v9390_v52  ;;  %v3222_v28 = vpop.f32.mrf.mxu1 }
 0x451   : > { %v3223_v11 = vadd.f32 %v3222_v28, %v9424_v47  ;;  %3506 = vmatmul.bf16.gmra.mxu2 %v10687_v53  ;;  %6539 = vmatmul.msk.bf16.gmra.mxu3 %vm1903_vm0, %v10671_v48  ;;  %v6545_v28 = vld [vmem:[%s10365_s3] sm:$0xf] }
 0x452   : > { %3388 = vmatmul.bf16.gmra.mxu0 %v10685_v17  ;;  %v3732_v34 = vmul.f32 0.2, %v3164_v45  ;;  %vm3652_vm12 = vcmp.gt.f32.partialorder %v3164_v45, 0.0 }
 0x453   : > { %3447 = vmatmul.bf16.gmra.mxu1 %v10686_v6  ;;  %v7136_v6 = vld [vmem:[%s10365_s3 + $0x184] sm:$0xf0] }
 0x454   : > { %v3281_v52 = vpop.f32.mrf.mxu2  ;;  %v3340_v5 = vpop.f32.mrf.mxu3  ;;  %v3812_v19 = vsel %vm3652_vm12, %v3164_v45, %v3732_v34  ;;  %v6673_v45 = vld [vmem:[%s10365_s3 + $0x100] sm:$0xf] }
 0x455   : > { %v3282_v44 = vadd.f32 %v3281_v52, %v3223_v11  ;;  %v6737_v11 = vld [vmem:[%s10365_s3 + $0x180] sm:$0xf] }
 0x456   : > { %v6609_v34 = vld [vmem:[%s10365_s3 + $0x80] sm:$0xf] }
 0x457   : > { %v3165_v22 = vpop.f32.mrf.mxu0  ;;  %v9726_v60 = vadd.f32 %v3340_v5, %v3282_v44 }
 0x458   : > { %v3166_v56 = vadd.f32 %v3165_v22, %v9393_v9  ;;  %v3224_v8 = vpop.f32.mrf.mxu1  ;;  %v6738_v22 = vor.u32 %v7136_v6, %v6737_v11 }
 0x459   : > { %v3225_v29 = vadd.f32 %v3224_v8, %v9424_v47 }
 0x45a   : > { %vm3656_vm13 = vcmp.gt.f32.partialorder %v3166_v56, 0.0  ;;  %v3736_v37 = vmul.f32 0.2, %v3166_v56  ;;  %4440 = vmatpush.bf16.msrb.mxu3 %v6738_v22  ;;  %v6667_v22 = vld [vmem:[%s10365_s3 + $0xf8] sm:$0xf0] }
 0x45c   : > { %v3816_v7 = vsel %vm3656_vm13, %v3166_v56, %v3736_v37  ;;  %v3283_v48 = vpop.f32.mrf.mxu2  ;;  %v3342_v24 = vpop.f32.mrf.mxu3  ;;  %v7104_v56 = vld [vmem:[%s10365_s3 + $0x84] sm:$0xf0] }
 0x45d   : > { %v9729_v63 = vpack.c.bf16 %v3816_v7, %v3812_v19  ;;  %v3284_v42 = vadd.f32 %v3283_v48, %v3225_v29  ;;  %v6610_v37 = vor.u32 %v7104_v56, %v6609_v34 }
 0x45f   : > { %v3168_v51 = vpop.f32.mrf.mxu0  ;;  %v9732_v9 = vadd.f32 %v3342_v24, %v3284_v42  ;;  %4322 = vmatpush.bf16.msrb.mxu1 %v6610_v37 }
 0x460   : > { %v3169_v30 = vadd.f32 %v3168_v51, %v9419_v36  ;;  %v3227_v39 = vpop.f32.mrf.mxu1  ;;  %v7120_v36 = vld [vmem:[%s10365_s3 + $0x104] sm:$0xf0] }
 0x461   : > { %v3228_v23 = vadd.f32 %v3227_v39, %v9424_v47  ;;  %3511 = vmatmul.bf16.gmra.mxu2 %v10690_v54  ;;  %6540 = vmatmul.msk.bf16.gmra.mxu3 %vm1903_vm0, %v10674_v12  ;;  %v6674_v38 = vor.u32 %v7120_v36, %v6673_v45  ;;  %v7088_v12 = vld [vmem:[%s10365_s3 + $0x4] sm:$0xf0]  ;;  %v10693_v45 = vld [vmem:[#allocation58_spill] sm:$0xff]  ;;  %v7101_v36 = vld [vmem:[%s10365_s3 + $0x74] sm:$0xf] }
 0x462   : > { %3393 = vmatmul.bf16.gmra.mxu0 %v10688_v40  ;;  %v3740_v53 = vmul.f32 0.2, %v3169_v30  ;;  %v6546_v5 = vor.u32 %v7088_v12, %v6545_v28  ;;  %vm3660_vm14 = vcmp.gt.f32.partialorder %v3169_v30, 0.0  ;;  %v6603_v28 = vld [vmem:[%s10365_s3 + $0x78] sm:$0xf0] }
 0x463   : > { %3452 = vmatmul.bf16.gmra.mxu1 %v10689_v20  ;;  %4381 = vmatpush.bf16.msrb.mxu2 %v6674_v38  ;;  %v10691_v20 = vld [vmem:[#allocation31_spill] sm:$0xff] }
 0x464   : > { %v3286_v32 = vpop.f32.mrf.mxu2  ;;  %v3345_v10 = vpop.f32.mrf.mxu3  ;;  %4263 = vmatpush.bf16.msrb.mxu0 %v6546_v5  ;;  %v7117_v5 = vld [vmem:[%s10365_s3 + $0xf4] sm:$0xf] }
 0x465   : > { %v3287_v58 = vadd.f32 %v3286_v32, %v3228_v23  ;;  %v10692_v32 = vld [vmem:[#allocation57_spill] sm:$0xff]  ;;  %v6670_v37 = vor.u32 %v7117_v5, %v6667_v22 }
 0x467   : > { %v3170_v17 = vpop.f32.mrf.mxu0  ;;  %v9765_v8 = vadd.f32 %v3345_v10, %v3287_v58  ;;  %v6795_v58 = vld [vmem:[%s10365_s3 + $0x1f8] sm:$0xf0]  ;;  %4551 = vmatpush.bf16.msra.mxu1 %v6670_v37 }
 0x468   : > { %v3171_v52 = vadd.f32 %v3170_v17, %v9427_v16  ;;  %v3229_v44 = vpop.f32.mrf.mxu1  ;;  %v3820_v16 = vsel %vm3660_vm14, %v3169_v30, %v3740_v53  ;;  %v6731_v30 = vld [vmem:[%s10365_s3 + $0x178] sm:$0xf0]  ;;  %v6606_v17 = vor.u32 %v7101_v36, %v6603_v28 }
 0x469   : > { %v3230_v29 = vadd.f32 %v3229_v44, %v9424_v47  ;;  %v7133_v47 = vld [vmem:[%s10365_s3 + $0x174] sm:$0xf] }
 0x46a   : > { %vm3664_vm15 = vcmp.gt.f32.partialorder %v3171_v52, 0.0  ;;  %v3744_v19 = vmul.f32 0.2, %v3171_v52  ;;  %4492 = vmatpush.bf16.msra.mxu0 %v6606_v17  ;;  %v7099_v17 = vld [vmem:[%s10365_s3 + $0x64] sm:$0xf] }
 0x46c   : > { %v3824_v7 = vsel %vm3664_vm15, %v3171_v52, %v3744_v19  ;;  %v3288_v42 = vpop.f32.mrf.mxu2  ;;  %v3347_v51 = vpop.f32.mrf.mxu3 }
 0x46d   : > { %v9768_v48 = vpack.c.bf16 %v3824_v7, %v3820_v16  ;;  %v3289_v24 = vadd.f32 %v3288_v42, %v3230_v29 }
 0x46f   : > { %v3359_v39 = vpop.f32.mrf.mxu0  ;;  %v9770_v23 = vadd.f32 %v3347_v51, %v3289_v24 }
 0x470   : > { %v3418_v40 = vpop.f32.mrf.mxu1  ;;  %v3360_v54 = vadd.f32 %v3359_v39, %v9454_v26  ;;  %v6734_v26 = vor.u32 %v7133_v47, %v6731_v30 }
 0x471   : > { %3516 = vmatmul.bf16.gmra.mxu2 %v10693_v45  ;;  %6541 = vmatmul.msk.bf16.gmra.mxu3 %vm1903_vm0, %v10620_v55  ;;  %v7149_v55 = vld [vmem:[%s10365_s3 + $0x1f4] sm:$0xf] }
 0x472   : > { %3398 = vmatmul.bf16.gmra.mxu0 %v10691_v20  ;;  %v6798_v38 = vor.u32 %v7149_v55, %v6795_v58  ;;  %v3419_v12 = vadd.f32 %v3418_v40, %v3360_v54  ;;  %4610 = vmatpush.bf16.msra.mxu2 %v6734_v26  ;;  %v10695_v20 = vld [vmem:[#allocation60_spill] sm:$0xff]  ;;  %v10696_v54 = vld [vmem:[#allocation61_spill] sm:$0xff] }
 0x473   : > { %3457 = vmatmul.bf16.gmra.mxu1 %v10692_v32 }
 0x474   : > { %v3477_v10 = vpop.f32.mrf.mxu2  ;;  %v3536_v11 = vpop.f32.mrf.mxu3  ;;  %4669 = vmatpush.bf16.msra.mxu3 %v6798_v38  ;;  %v6595_v38 = vld [vmem:[%s10365_s3 + $0x68] sm:$0xf0] }
 0x475   : > { %v3478_v52 = vadd.f32 %v3477_v10, %v3419_v12 }
 0x477   : > { %v3361_v6 = vpop.f32.mrf.mxu0  ;;  %v3537_v34 = vadd.f32 %v3536_v11, %v3478_v52  ;;  %v6787_v52 = vld [vmem:[%s10365_s3 + $0x1e8] sm:$0xf0] }
 0x478   : > { %v3420_v53 = vpop.f32.mrf.mxu1  ;;  %v3362_v44 = vadd.f32 %v3361_v6, %v9466_v14  ;;  %v10694_v14 = vld [vmem:[#allocation35_spill] sm:$0xff] }
 0x479   : > { %v3669_v24 = vmul.f32 0.2, %v3537_v34  ;;  %vm3589_vm1 = vcmp.gt.f32.partialorder %v3537_v34, 0.0 }
 0x47a   : > { %v3421_v56 = vadd.f32 %v3420_v53, %v3362_v44  ;;  %v7147_v53 = vld [vmem:[%s10365_s3 + $0x1e4] sm:$0xf] }
 0x47b   : > { %v3749_v32 = vsel %vm3589_vm1, %v3537_v34, %v3669_v24  ;;  %v7115_v44 = vld [vmem:[%s10365_s3 + $0xe4] sm:$0xf]  ;;  %v6790_v22 = vor.u32 %v7147_v53, %v6787_v52  ;;  %v6659_v34 = vld [vmem:[%s10365_s3 + $0xe8] sm:$0xf0]  ;;  %v10697_v24 = vld [vmem:[#allocation62_spill] sm:$0xff] }
 0x47c   : > { %v3479_v19 = vpop.f32.mrf.mxu2  ;;  %v3538_v7 = vpop.f32.mrf.mxu3 }
 0x47d   : > { %v3480_v16 = vadd.f32 %v3479_v19, %v3421_v56  ;;  %4670 = vmatpush.bf16.msra.mxu3 %v6790_v22 }
 0x47f   : > { %v3364_v29 = vpop.f32.mrf.mxu0  ;;  %v3539_v51 = vadd.f32 %v3538_v7, %v3480_v16  ;;  %v6662_v16 = vor.u32 %v7115_v44, %v6659_v34 }
 0x480   : > { %v3423_v42 = vpop.f32.mrf.mxu1  ;;  %v3365_v40 = vadd.f32 %v3364_v29, %v9475_v57  ;;  %v7131_v57 = vld [vmem:[%s10365_s3 + $0x164] sm:$0xf] }
 0x481   : > { %vm3593_vm2 = vcmp.gt.f32.partialorder %v3539_v51, 0.0  ;;  %v3673_v39 = vmul.f32 0.2, %v3539_v51  ;;  %3521 = vmatmul.bf16.gmra.mxu2 %v10696_v54  ;;  %6542 = vmatmul.msk.bf16.gmra.mxu3 %vm1903_vm0, %v8303_v1  ;;  %v6723_v1 = vld [vmem:[%s10365_s3 + $0x168] sm:$0xf0] }
 0x482   : > { %3403 = vmatmul.bf16.gmra.mxu0 %v10694_v14  ;;  %v3424_v36 = vadd.f32 %v3423_v42, %v3365_v40  ;;  %v6726_v6 = vor.u32 %v7131_v57, %v6723_v1  ;;  %4552 = vmatpush.bf16.msra.mxu1 %v6662_v16  ;;  %v6587_v57 = vld [vmem:[%s10365_s3 + $0x58] sm:$0xf0]  ;;  %v10700_v16 = vld [vmem:[#allocation40_spill] sm:$0xff] }
 0x483   : > { %3462 = vmatmul.bf16.gmra.mxu1 %v10695_v20  ;;  %v3753_v45 = vsel %vm3593_vm2, %v3539_v51, %v3673_v39  ;;  %v10698_v39 = vld [vmem:[#allocation38_spill] sm:$0xff] }
 0x484   : > { %v9809_v47 = vpack.c.bf16 %v3753_v45, %v3749_v32  ;;  %v3482_v30 = vpop.f32.mrf.mxu2  ;;  %v3541_v26 = vpop.f32.mrf.mxu3  ;;  %4611 = vmatpush.bf16.msra.mxu2 %v6726_v6 }
 0x485   : > { %v3483_v58 = vadd.f32 %v3482_v30, %v3424_v36 }
 0x487   : > { %v3366_v28 = vpop.f32.mrf.mxu0  ;;  %v3542_v12 = vadd.f32 %v3541_v26, %v3483_v58  ;;  %v6715_v58 = vld [vmem:[%s10365_s3 + $0x158] sm:$0xf0] }
 0x488   : > { %v3425_v55 = vpop.f32.mrf.mxu1  ;;  %v3367_v10 = vadd.f32 %v3366_v28, %v9506_v62  ;;  %v6598_v62 = vor.u32 %v7099_v17, %v6595_v38 }
 0x489   : > { %v3677_v29 = vmul.f32 0.2, %v3542_v12  ;;  %vm3597_vm0 = vcmp.gt.f32.partialorder %v3542_v12, 0.0 }
 0x48a   : > { %v3426_v11 = vadd.f32 %v3425_v55, %v3367_v10  ;;  %4493 = vmatpush.bf16.msra.mxu0 %v6598_v62  ;;  %v7097_v10 = vld [vmem:[%s10365_s3 + $0x54] sm:$0xf] }
 0x48b   : > { %v3757_v40 = vsel %vm3597_vm0, %v3542_v12, %v3677_v29  ;;  %v7145_v12 = vld [vmem:[%s10365_s3 + $0x1d4] sm:$0xf]  ;;  %v6651_v29 = vld [vmem:[%s10365_s3 + $0xd8] sm:$0xf0] }
 0x48c   : > { %v3484_v5 = vpop.f32.mrf.mxu2  ;;  %v3543_v37 = vpop.f32.mrf.mxu3 }
 0x48d   : > { %v3485_v56 = vadd.f32 %v3484_v5, %v3426_v11  ;;  %v6779_v11 = vld [vmem:[%s10365_s3 + $0x1d8] sm:$0xf0] }
 0x48e   : > { %v6782_v62 = vor.u32 %v7145_v12, %v6779_v11 }
 0x48f   : > { %v3369_v19 = vpop.f32.mrf.mxu0  ;;  %v3544_v42 = vadd.f32 %v3543_v37, %v3485_v56  ;;  %v10699_v56 = vld [vmem:[#allocation63_spill] sm:$0xff] }
 0x490   : > { %v3428_v7 = vpop.f32.mrf.mxu1  ;;  %v3370_v14 = vadd.f32 %v3369_v19, %v9515_v46  ;;  %v7129_v46 = vld [vmem:[%s10365_s3 + $0x154] sm:$0xf]  ;;  %4671 = vmatpush.bf16.msra.mxu3 %v6782_v62  ;;  %v6707_v62 = vld [vmem:[%s10365_s3 + $0x148] sm:$0xf0] }
 0x491   : > { %vm3601_vm3 = vcmp.gt.f32.partialorder %v3544_v42, 0.0  ;;  %v3681_v51 = vmul.f32 0.2, %v3544_v42  ;;  %4382 = vmatmul.bf16.vlgmr.msrb.gmra.mxu2 %v9462_v61  ;;  %4441 = vmatmul.bf16.vlgmr.msrb.gmra.mxu3 %v9809_v47  ;;  %v6718_v38 = vor.u32 %v7129_v46, %v6715_v58 }
 0x492   : > { %4264 = vmatmul.bf16.vlgmr.msrb.gmra.mxu0 %v10697_v24  ;;  %v3429_v45 = vadd.f32 %v3428_v7, %v3370_v14  ;;  %v7113_v7 = vld [vmem:[%s10365_s3 + $0xd4] sm:$0xf] }
 0x493   : > { %4323 = vmatmul.bf16.vlgmr.msrb.gmra.mxu1 %v10698_v39  ;;  %v3761_v20 = vsel %vm3601_vm3, %v3544_v42, %v3681_v51  ;;  %4612 = vmatpush.bf16.msra.mxu2 %v6718_v38  ;;  %v6654_v14 = vor.u32 %v7113_v7, %v6651_v29 }
 0x494   : > { %v3487_v54 = vpop.f32.mrf.mxu2  ;;  %v9841_v32 = vpack.c.bf16 %v3761_v20, %v3757_v40  ;;  %v3546_v30 = vpop.f32.mrf.mxu3 }
 0x495   : > { %v3488_v28 = vadd.f32 %v3487_v54, %v3429_v45  ;;  %4553 = vmatpush.bf16.msra.mxu1 %v6654_v14 }
 0x497   : > { %v3371_v36 = vpop.f32.mrf.mxu0  ;;  %v3547_v1 = vadd.f32 %v3546_v30, %v3488_v28 }
 0x498   : > { %v3430_v26 = vpop.f32.mrf.mxu1  ;;  %v3372_v55 = vadd.f32 %v3371_v36, %v9539_v15  ;;  %v6590_v15 = vor.u32 %v7097_v10, %v6587_v57 }
 0x499   : > { %v3685_v22 = vmul.f32 0.2, %v3547_v1  ;;  %vm3605_vm4 = vcmp.gt.f32.partialorder %v3547_v1, 0.0 }
 0x49a   : > { %v3431_v17 = vadd.f32 %v3430_v26, %v3372_v55  ;;  %4494 = vmatpush.bf16.msra.mxu0 %v6590_v15  ;;  %v10701_v15 = vld [vmem:[#allocation64_spill] sm:$0xff] }
 0x49b   : > { %v3765_v42 = vsel %vm3605_vm4, %v3547_v1, %v3685_v22 }
 0x49c   : > { %v3489_v6 = vpop.f32.mrf.mxu2  ;;  %v3548_v52 = vpop.f32.mrf.mxu3 }
 0x49d   : > { %v3490_v53 = vadd.f32 %v3489_v6, %v3431_v17  ;;  %v10702_v6 = vld [vmem:[#allocation59_spill] sm:$0xff] }
 0x49f   : > { %v3374_v44 = vpop.f32.mrf.mxu0  ;;  %v3549_v34 = vadd.f32 %v3548_v52, %v3490_v53  ;;  %v7095_v53 = vld [vmem:[%s10365_s3 + $0x44] sm:$0xf] }
 0x4a0   : > { %v3433_v5 = vpop.f32.mrf.mxu1  ;;  %v3375_v19 = vadd.f32 %v3374_v44, %v9554_v21 }
 0x4a1   : > { %vm3609_vm5 = vcmp.gt.f32.partialorder %v3549_v34, 0.0  ;;  %v3689_v37 = vmul.f32 0.2, %v3549_v34  ;;  %4387 = vmatmul.bf16.gmra.mxu2 %v9503_v4  ;;  %4446 = vmatmul.bf16.gmra.mxu3 %v9841_v32 }
 0x4a2   : > { %4269 = vmatmul.bf16.gmra.mxu0 %v10699_v56  ;;  %v3434_v21 = vadd.f32 %v3433_v5, %v3375_v19  ;;  %v7111_v19 = vld [vmem:[%s10365_s3 + $0xc4] sm:$0xf] }
 0x4a3   : > { %4328 = vmatmul.bf16.gmra.mxu1 %v10700_v16  ;;  %v3769_v51 = vsel %vm3609_vm5, %v3549_v34, %v3689_v37  ;;  %v7143_v34 = vld [vmem:[%s10365_s3 + $0x1c4] sm:$0xf]  ;;  %v6771_v37 = vld [vmem:[%s10365_s3 + $0x1c8] sm:$0xf0] }
 0x4a4   : > { %v3492_v40 = vpop.f32.mrf.mxu2  ;;  %v9873_v20 = vpack.c.bf16 %v3769_v51, %v3765_v42  ;;  %v3551_v54 = vpop.f32.mrf.mxu3  ;;  %v6774_v42 = vor.u32 %v7143_v34, %v6771_v37  ;;  %v6643_v51 = vld [vmem:[%s10365_s3 + $0xc8] sm:$0xf0] }
 0x4a5   : > { %v3493_v36 = vadd.f32 %v3492_v40, %v3434_v21 }
 0x4a6   : > { %4672 = vmatpush.bf16.msra.mxu3 %v6774_v42 }
 0x4a7   : > { %v3376_v45 = vpop.f32.mrf.mxu0  ;;  %v3552_v28 = vadd.f32 %v3551_v54, %v3493_v36  ;;  %v6646_v54 = vor.u32 %v7111_v19, %v6643_v51 }
 0x4a8   : > { %v3435_v30 = vpop.f32.mrf.mxu1  ;;  %v3377_v26 = vadd.f32 %v3376_v45, %v9560_v33  ;;  %v7127_v33 = vld [vmem:[%s10365_s3 + $0x144] sm:$0xf] }
 0x4a9   : > { %v3693_v17 = vmul.f32 0.2, %v3552_v28  ;;  %vm3613_vm6 = vcmp.gt.f32.partialorder %v3552_v28, 0.0  ;;  %v6710_v5 = vor.u32 %v7127_v33, %v6707_v62  ;;  %4554 = vmatpush.bf16.msra.mxu1 %v6646_v54  ;;  %v10704_v33 = vld [vmem:[#allocation28_spill] sm:$0xff]  ;;  %v6699_v62 = vld [vmem:[%s10365_s3 + $0x138] sm:$0xf0] }
 0x4aa   : > { %v3436_v55 = vadd.f32 %v3435_v30, %v3377_v26 }
 0x4ab   : > { %v3773_v52 = vsel %vm3613_vm6, %v3552_v28, %v3693_v17  ;;  %4613 = vmatpush.bf16.msra.mxu2 %v6710_v5  ;;  %v7141_v5 = vld [vmem:[%s10365_s3 + $0x1b4] sm:$0xf] }
 0x4ac   : > { %v3494_v46 = vpop.f32.mrf.mxu2  ;;  %v3553_v10 = vpop.f32.mrf.mxu3 }
 0x4ad   : > { %v3495_v58 = vadd.f32 %v3494_v46, %v3436_v55 }
 0x4af   : > { %v3379_v57 = vpop.f32.mrf.mxu0  ;;  %v3554_v38 = vadd.f32 %v3553_v10, %v3495_v58 }
 0x4b0   : > { %v3438_v1 = vpop.f32.mrf.mxu1  ;;  %v3380_v11 = vadd.f32 %v3379_v57, %v9593_v31  ;;  %v6579_v31 = vld [vmem:[%s10365_s3 + $0x48] sm:$0xf0] }
 0x4b1   : > { %vm3617_vm7 = vcmp.gt.f32.partialorder %v3554_v38, 0.0  ;;  %v3697_v12 = vmul.f32 0.2, %v3554_v38  ;;  %4392 = vmatmul.bf16.gmra.mxu2 %v9536_v49  ;;  %4451 = vmatmul.bf16.gmra.mxu3 %v9873_v20  ;;  %v6582_v22 = vor.u32 %v7095_v53, %v6579_v31  ;;  %v7093_v53 = vld [vmem:[%s10365_s3 + $0x34] sm:$0xf] }
 0x4b2   : > { %4274 = vmatmul.bf16.gmra.mxu0 %v10701_v15  ;;  %v3439_v14 = vadd.f32 %v3438_v1, %v3380_v11 }
 0x4b3   : > { %4333 = vmatmul.bf16.gmra.mxu1 %v10702_v6  ;;  %v3777_v44 = vsel %vm3617_vm7, %v3554_v38, %v3697_v12  ;;  %4495 = vmatpush.bf16.msra.mxu0 %v6582_v22  ;;  %v10703_v38 = vld [vmem:[#allocation65_spill] sm:$0xff]  ;;  %v6763_v22 = vld [vmem:[%s10365_s3 + $0x1b8] sm:$0xf0] }
 0x4b4   : > { %v3497_v7 = vpop.f32.mrf.mxu2  ;;  %v9902_v29 = vpack.c.bf16 %v3777_v44, %v3773_v52  ;;  %v3556_v40 = vpop.f32.mrf.mxu3  ;;  %v6571_v44 = vld [vmem:[%s10365_s3 + $0x38] sm:$0xf0] }
 0x4b5   : > { %v3498_v30 = vadd.f32 %v3497_v7, %v3439_v14  ;;  %v6574_v19 = vor.u32 %v7093_v53, %v6571_v44  ;;  %v6766_v7 = vor.u32 %v7141_v5, %v6763_v22 }
 0x4b7   : > { %v3381_v21 = vpop.f32.mrf.mxu0  ;;  %v3557_v26 = vadd.f32 %v3556_v40, %v3498_v30  ;;  %4496 = vmatpush.bf16.msra.mxu0 %v6574_v19  ;;  %4673 = vmatpush.bf16.msra.mxu3 %v6766_v7  ;;  %v6635_v30 = vld [vmem:[%s10365_s3 + $0xb8] sm:$0xf0]  ;;  %v6691_v7 = vld [vmem:[%s10365_s3 + $0x128] sm:$0xf0] }
 0x4b8   : > { %v3440_v45 = vpop.f32.mrf.mxu1  ;;  %v3382_v36 = vadd.f32 %v3381_v21, %v9599_v25  ;;  %v7125_v25 = vld [vmem:[%s10365_s3 + $0x134] sm:$0xf] }
 0x4b9   : > { %v3701_v17 = vmul.f32 0.2, %v3557_v26  ;;  %vm3621_vm8 = vcmp.gt.f32.partialorder %v3557_v26, 0.0  ;;  %v6702_v52 = vor.u32 %v7125_v25, %v6699_v62  ;;  %v10706_v25 = vld [vmem:[#allocation7_spill] sm:$0xff] }
 0x4ba   : > { %v3441_v28 = vadd.f32 %v3440_v45, %v3382_v36  ;;  %v7109_v45 = vld [vmem:[%s10365_s3 + $0xb4] sm:$0xf] }
 0x4bb   : > { %v3781_v31 = vsel %vm3621_vm8, %v3557_v26, %v3701_v17  ;;  %4614 = vmatpush.bf16.msra.mxu2 %v6702_v52 }
 0x4bc   : > { %v3499_v55 = vpop.f32.mrf.mxu2  ;;  %v3558_v58 = vpop.f32.mrf.mxu3 }
 0x4bd   : > { %v3500_v46 = vadd.f32 %v3499_v55, %v3441_v28  ;;  %v6638_v28 = vor.u32 %v7109_v45, %v6635_v30  ;;  %v6755_v45 = vld [vmem:[%s10365_s3 + $0x1a8] sm:$0xf0]  ;;  %v7107_v30 = vld [vmem:[%s10365_s3 + $0xa4] sm:$0xf] }
 0x4bf   : > { %v3384_v10 = vpop.f32.mrf.mxu0  ;;  %v3559_v1 = vadd.f32 %v3558_v58, %v3500_v46  ;;  %4555 = vmatpush.bf16.msra.mxu1 %v6638_v28  ;;  %v6627_v28 = vld [vmem:[%s10365_s3 + $0xa8] sm:$0xf0] }
 0x4c0   : > { %v3443_v57 = vpop.f32.mrf.mxu1  ;;  %v3385_v11 = vadd.f32 %v3384_v10, %v9626_v27 }
 0x4c1   : > { %vm3625_vm9 = vcmp.gt.f32.partialorder %v3559_v1, 0.0  ;;  %v3705_v12 = vmul.f32 0.2, %v3559_v1  ;;  %4397 = vmatmul.bf16.gmra.mxu2 %v9557_v0  ;;  %4456 = vmatmul.bf16.gmra.mxu3 %v9902_v29 }
 0x4c2   : > { %4279 = vmatmul.bf16.gmra.mxu0 %v10703_v38  ;;  %v3444_v42 = vadd.f32 %v3443_v57, %v3385_v11 }
 0x4c3   : > { %4338 = vmatmul.bf16.gmra.mxu1 %v10704_v33  ;;  %v3785_v27 = vsel %vm3625_vm9, %v3559_v1, %v3705_v12 }
 0x4c4   : > { %v3502_v34 = vpop.f32.mrf.mxu2  ;;  %v9931_v37 = vpack.c.bf16 %v3785_v27, %v3781_v31  ;;  %v3561_v51 = vpop.f32.mrf.mxu3 }
 0x4c5   : > { %v3503_v21 = vadd.f32 %v3502_v34, %v3444_v42  ;;  %v7091_v42 = vld [vmem:[%s10365_s3 + $0x24] sm:$0xf] }
 0x4c7   : > { %v3386_v14 = vpop.f32.mrf.mxu0  ;;  %v3562_v36 = vadd.f32 %v3561_v51, %v3503_v21  ;;  %v6563_v51 = vld [vmem:[%s10365_s3 + $0x28] sm:$0xf0] }
 0x4c8   : > { %v3445_v40 = vpop.f32.mrf.mxu1  ;;  %v3387_v54 = vadd.f32 %v3386_v14, %v9638_v59  ;;  %v10705_v59 = vld [vmem:[#allocation66_spill] sm:$0xff] }
 0x4c9   : > { %v3709_v17 = vmul.f32 0.2, %v3562_v36  ;;  %vm3629_vm10 = vcmp.gt.f32.partialorder %v3562_v36, 0.0 }
 0x4ca   : > { %v3446_v26 = vadd.f32 %v3445_v40, %v3387_v54  ;;  %v7139_v54 = vld [vmem:[%s10365_s3 + $0x1a4] sm:$0xf] }
 0x4cb   : > { %v3789_v62 = vsel %vm3629_vm10, %v3562_v36, %v3709_v17 }
 0x4cc   : > { %v3504_v55 = vpop.f32.mrf.mxu2  ;;  %v3563_v58 = vpop.f32.mrf.mxu3 }
 0x4cd   : > { %v3505_v46 = vadd.f32 %v3504_v55, %v3446_v26  ;;  %v6758_v26 = vor.u32 %v7139_v54, %v6755_v45  ;;  %v7137_v45 = vld [vmem:[%s10365_s3 + $0x194] sm:$0xf] }
 0x4cf   : > { %v3389_v10 = vpop.f32.mrf.mxu0  ;;  %v3564_v1 = vadd.f32 %v3563_v58, %v3505_v46  ;;  %4674 = vmatpush.bf16.msra.mxu3 %v6758_v26 }
 0x4d0   : > { %v3448_v57 = vpop.f32.mrf.mxu1  ;;  %v3390_v11 = vadd.f32 %v3389_v10, %v9647_v43  ;;  %v7123_v43 = vld [vmem:[%s10365_s3 + $0x124] sm:$0xf]  ;;  %v6630_v10 = vor.u32 %v7107_v30, %v6627_v28  ;;  %v6747_v30 = vld [vmem:[%s10365_s3 + $0x198] sm:$0xf0] }
 0x4d1   : > { %vm3633_vm11 = vcmp.gt.f32.partialorder %v3564_v1, 0.0  ;;  %v3713_v12 = vmul.f32 0.2, %v3564_v1  ;;  %4402 = vmatmul.bf16.gmra.mxu2 %v9596_v13  ;;  %4461 = vmatmul.bf16.gmra.mxu3 %v9931_v37  ;;  %v6694_v21 = vor.u32 %v7123_v43, %v6691_v7  ;;  %v6750_v26 = vor.u32 %v7137_v45, %v6747_v30 }
 0x4d2   : > { %4284 = vmatmul.bf16.gmra.mxu0 %v10705_v59  ;;  %v3449_v52 = vadd.f32 %v3448_v57, %v3390_v11  ;;  %4556 = vmatpush.bf16.msra.mxu1 %v6630_v10 }
 0x4d3   : > { %4343 = vmatmul.bf16.gmra.mxu1 %v10706_v25  ;;  %v3793_v53 = vsel %vm3633_vm11, %v3564_v1, %v3713_v12  ;;  %4615 = vmatpush.bf16.msra.mxu2 %v6694_v21  ;;  %v10707_v12 = vld [vmem:[#allocation67_spill] sm:$0xff] }
 0x4d4   : > { %v3507_v31 = vpop.f32.mrf.mxu2  ;;  %v9945_v27 = vpack.c.bf16 %v3793_v53, %v3789_v62  ;;  %v3566_v44 = vpop.f32.mrf.mxu3  ;;  %v10708_v53 = vld [vmem:[#allocation10_spill] sm:$0xff]  ;;  %4675 = vmatpush.bf16.msra.mxu3 %v6750_v26 }
 0x4d5   : > { %v3508_v34 = vadd.f32 %v3507_v31, %v3449_v52 }
 0x4d7   : > { %v3391_v5 = vpop.f32.mrf.mxu0  ;;  %v3567_v14 = vadd.f32 %v3566_v44, %v3508_v34 }
 0x4d8   : > { %v3450_v22 = vpop.f32.mrf.mxu1  ;;  %v3392_v19 = vadd.f32 %v3391_v5, %v9678_v18  ;;  %v6566_v18 = vor.u32 %v7091_v42, %v6563_v51  ;;  %v6683_v51 = vld [vmem:[%s10365_s3 + $0x118] sm:$0xf0] }
 0x4d9   : > { %v3717_v17 = vmul.f32 0.2, %v3567_v14  ;;  %vm3637_vm12 = vcmp.gt.f32.partialorder %v3567_v14, 0.0 }
 0x4da   : > { %v3451_v40 = vadd.f32 %v3450_v22, %v3392_v19  ;;  %4497 = vmatpush.bf16.msra.mxu0 %v6566_v18 }
 0x4db   : > { %v3797_v31 = vsel %vm3637_vm12, %v3567_v14, %v3717_v17  ;;  %v7089_v14 = vld [vmem:[%s10365_s3 + $0x14] sm:$0xf]  ;;  %v10709_v17 = vld [vmem:[#allocation68_spill] sm:$0xff] }
 0x4dc   : > { %v3509_v36 = vpop.f32.mrf.mxu2  ;;  %v3568_v46 = vpop.f32.mrf.mxu3 }
 0x4dd   : > { %v3510_v55 = vadd.f32 %v3509_v36, %v3451_v40  ;;  %v6555_v40 = vld [vmem:[%s10365_s3 + $0x18] sm:$0xf0] }
 0x4df   : > { %v3394_v58 = vpop.f32.mrf.mxu0  ;;  %v3569_v1 = vadd.f32 %v3568_v46, %v3510_v55 }
 0x4e0   : > { %v3453_v57 = vpop.f32.mrf.mxu1  ;;  %v3395_v62 = vadd.f32 %v3394_v58, %v9687_v2  ;;  %v7121_v2 = vld [vmem:[%s10365_s3 + $0x114] sm:$0xf] }
 0x4e1   : > { %vm3641_vm13 = vcmp.gt.f32.partialorder %v3569_v1, 0.0  ;;  %v3721_v11 = vmul.f32 0.2, %v3569_v1  ;;  %4407 = vmatmul.bf16.gmra.mxu2 %v9635_v35  ;;  %4466 = vmatmul.bf16.gmra.mxu3 %v9945_v27  ;;  %v6686_v54 = vor.u32 %v7121_v2, %v6683_v51 }
 0x4e2   : > { %4289 = vmatmul.bf16.gmra.mxu0 %v10707_v12  ;;  %v3454_v22 = vadd.f32 %v3453_v57, %v3395_v62  ;;  %v10710_v62 = vld [vmem:[#allocation71_spill] sm:$0xff] }
 0x4e3   : > { %4348 = vmatmul.bf16.gmra.mxu1 %v10708_v53  ;;  %v3801_v52 = vsel %vm3641_vm13, %v3569_v1, %v3721_v11  ;;  %4616 = vmatpush.bf16.msra.mxu2 %v6686_v54 }
 0x4e4   : > { %v3512_v44 = vpop.f32.mrf.mxu2  ;;  %v9977_v5 = vpack.c.bf16 %v3801_v52, %v3797_v31  ;;  %v3571_v34 = vpop.f32.mrf.mxu3  ;;  %v7105_v31 = vld [vmem:[%s10365_s3 + $0x94] sm:$0xf]  ;;  %v6619_v52 = vld [vmem:[%s10365_s3 + $0x98] sm:$0xf0] }
 0x4e5   : > { %v3513_v7 = vadd.f32 %v3512_v44, %v3454_v22 }
 0x4e7   : > { %v3396_v19 = vpop.f32.mrf.mxu0  ;;  %v3572_v21 = vadd.f32 %v3571_v34, %v3513_v7  ;;  %v6622_v34 = vor.u32 %v7105_v31, %v6619_v52 }
 0x4e8   : > { %v3455_v43 = vpop.f32.mrf.mxu1  ;;  %v3397_v42 = vadd.f32 %v3396_v19, %v9711_v3  ;;  %v6558_v3 = vor.u32 %v7089_v14, %v6555_v40 }
 0x4e9   : > { %v3725_v10 = vmul.f32 0.2, %v3572_v21  ;;  %vm3645_vm14 = vcmp.gt.f32.partialorder %v3572_v21, 0.0  ;;  %4557 = vmatpush.bf16.msra.mxu1 %v6622_v34  ;;  %v7103_v34 = vld [vmem:[%s10365_s3 + $0x84] sm:$0xf] }
 0x4ea   : > { %v3456_v18 = vadd.f32 %v3455_v43, %v3397_v42  ;;  %4498 = vmatpush.bf16.msra.mxu0 %v6558_v3 }
 0x4eb   : > { %v3805_v44 = vsel %vm3645_vm14, %v3572_v21, %v3725_v10  ;;  %v6675_v10 = vld [vmem:[%s10365_s3 + $0x108] sm:$0xf0] }
 0x4ec   : > { %v3514_v36 = vpop.f32.mrf.mxu2  ;;  %v3573_v55 = vpop.f32.mrf.mxu3 }
 0x4ed   : > { %v3515_v28 = vadd.f32 %v3514_v36, %v3456_v18 }
 0x4ef   : > { %v3399_v46 = vpop.f32.mrf.mxu0  ;;  %v3574_v57 = vadd.f32 %v3573_v55, %v3515_v28  ;;  %v10711_v28 = vld [vmem:[#allocation69_spill] sm:$0xff] }
 0x4f0   : > { %v3458_v58 = vpop.f32.mrf.mxu1  ;;  %v3400_v11 = vadd.f32 %v3399_v46, %v9726_v60 }
 0x4f1   : > { %vm3649_vm15 = vcmp.gt.f32.partialorder %v3574_v57, 0.0  ;;  %v3729_v1 = vmul.f32 0.2, %v3574_v57  ;;  %4412 = vmatmul.bf16.gmra.mxu2 %v9675_v50  ;;  %4471 = vmatmul.bf16.gmra.mxu3 %v9977_v5 }
 0x4f2   : > { %4294 = vmatmul.bf16.gmra.mxu0 %v10709_v17  ;;  %v3459_v60 = vadd.f32 %v3458_v58, %v3400_v11  ;;  %v10712_v58 = vld [vmem:[#allocation18_spill] sm:$0xff] }
 0x4f3   : > { %4353 = vmatmul.bf16.gmra.mxu1 %v10710_v62  ;;  %v3809_v22 = vsel %vm3649_vm15, %v3574_v57, %v3729_v1  ;;  %v7087_v57 = vld [vmem:[%s10365_s3 + $0x4] sm:$0xf] }
 0x4f4   : > { %v3517_v19 = vpop.f32.mrf.mxu2  ;;  %v10009_v43 = vpack.c.bf16 %v3809_v22, %v3805_v44  ;;  %v3576_v7 = vpop.f32.mrf.mxu3  ;;  %v7135_v44 = vld [vmem:[%s10365_s3 + $0x184] sm:$0xf]  ;;  %v6739_v22 = vld [vmem:[%s10365_s3 + $0x188] sm:$0xf0] }
 0x4f5   : > { %v3518_v51 = vadd.f32 %v3517_v19, %v3459_v60 }
 0x4f7   : > { %v3401_v42 = vpop.f32.mrf.mxu0  ;;  %v3577_v40 = vadd.f32 %v3576_v7, %v3518_v51  ;;  %v6742_v7 = vor.u32 %v7135_v44, %v6739_v22 }
 0x4f8   : > { %v3460_v2 = vpop.f32.mrf.mxu1  ;;  %v3402_v14 = vadd.f32 %v3401_v42, %v9732_v9  ;;  %v7119_v9 = vld [vmem:[%s10365_s3 + $0x104] sm:$0xf]  ;;  %v6611_v42 = vld [vmem:[%s10365_s3 + $0x88] sm:$0xf0] }
 0x4f9   : > { %v3733_v36 = vmul.f32 0.2, %v3577_v40  ;;  %vm3653_vm1 = vcmp.gt.f32.partialorder %v3577_v40, 0.0  ;;  %v6678_v31 = vor.u32 %v7119_v9, %v6675_v10  ;;  %4676 = vmatpush.bf16.msra.mxu3 %v6742_v7 }
 0x4fa   : > { %v3461_v18 = vadd.f32 %v3460_v2, %v3402_v14 }
 0x4fb   : > { %v3813_v1 = vsel %vm3653_vm1, %v3577_v40, %v3733_v36  ;;  %4617 = vmatpush.bf16.msra.mxu2 %v6678_v31  ;;  %v6614_v40 = vor.u32 %v7103_v34, %v6611_v42 }
 0x4fc   : > { %v3519_v54 = vpop.f32.mrf.mxu2  ;;  %v3578_v45 = vpop.f32.mrf.mxu3 }
 0x4fd   : > { %v3520_v3 = vadd.f32 %v3519_v54, %v3461_v18  ;;  %4558 = vmatpush.bf16.msra.mxu1 %v6614_v40 }
 0x4ff   : > { %v3404_v30 = vpop.f32.mrf.mxu0  ;;  %v3579_v26 = vadd.f32 %v3578_v45, %v3520_v3  ;;  %v10047_v45 = vld [vmem:[%s10366_s4] sm:$0x3] }
 0x500   : > { %v3463_v21 = vpop.f32.mrf.mxu1  ;;  %v3405_v46 = vadd.f32 %v3404_v30, %v9765_v8  ;;  %v6547_v8 = vld [vmem:[%s10365_s3 + $0x8] sm:$0xf0]  ;;  %v10050_v30 = vperm.slane %v10047_v45, 0 }
 0x501   : > { %vm3657_vm2 = vcmp.gt.f32.partialorder %v3579_v26, 0.0  ;;  %v3737_v55 = vmul.f32 0.2, %v3579_v26  ;;  %4417 = vmatmul.bf16.gmra.mxu2 %v9708_v41  ;;  %4476 = vmatmul.bf16.gmra.mxu3 %v10009_v43  ;;  %v6550_v52 = vor.u32 %v7087_v57, %v6547_v8 }
 0x502   : > { %4299 = vmatmul.bf16.gmra.mxu0 %v10711_v28  ;;  %v3464_v2 = vadd.f32 %v3463_v21, %v3405_v46 }
 0x503   : > { %4358 = vmatmul.bf16.gmra.mxu1 %v10712_v58  ;;  %v3817_v11 = vsel %vm3657_vm2, %v3579_v26, %v3737_v55  ;;  %4499 = vmatpush.bf16.msra.mxu0 %v6550_v52  ;;  %v10714_v52 = vld [vmem:[#allocation19_spill] sm:$0xff] }
 0x504   : > { %v3522_v19 = vpop.f32.mrf.mxu2  ;;  %v10038_v60 = vpack.c.bf16 %v3817_v11, %v3813_v1  ;;  %v3581_v51 = vpop.f32.mrf.mxu3  ;;  %v10713_v11 = vld [vmem:[#allocation70_spill] sm:$0xff] }
 0x505   : > { %v3523_v54 = vadd.f32 %v3522_v19, %v3464_v2 }
 0x507   : > { %v3406_v14 = vpop.f32.mrf.mxu0  ;;  %v3582_v21 = vadd.f32 %v3581_v51, %v3523_v54 }
 0x508   : > { %v3465_v18 = vpop.f32.mrf.mxu1  ;;  %v3407_v3 = vadd.f32 %v3406_v14, %v9770_v23 }
 0x509   : > { %v3741_v8 = vmul.f32 0.2, %v3582_v21  ;;  %vm3661_vm0 = vcmp.gt.f32.partialorder %v3582_v21, 0.0 }
 0x50a   : > { %v3466_v36 = vadd.f32 %v3465_v18, %v3407_v3 }
 0x50b   : > { %v3821_v44 = vsel %vm3661_vm0, %v3582_v21, %v3741_v8 }
 0x50c   : > { %v3524_v26 = vpop.f32.mrf.mxu2  ;;  %v3583_v46 = vpop.f32.mrf.mxu3 }
 0x50d   : > { %v3525_v55 = vadd.f32 %v3524_v26, %v3466_v36 }
 0x50f   : > { %v4265_v9 = vpop.f32.mrf.mxu0  ;;  %v3584_v23 = vadd.f32 %v3583_v46, %v3525_v55 }
 0x510   : > { %v4266_v10 = vadd.f32 %v4265_v9, %v10050_v30  ;;  %v4324_v57 = vpop.f32.mrf.mxu1 }
 0x511   : > { %vm3665_vm3 = vcmp.gt.f32.partialorder %v3584_v23, 0.0  ;;  %v3745_v31 = vmul.f32 0.2, %v3584_v23  ;;  %4422 = vmatmul.bf16.gmra.mxu2 %v9729_v63  ;;  %4481 = vmatmul.bf16.gmra.mxu3 %v10038_v60 }
 0x512   : > { %v4325_v1 = vadd.f32 %v4324_v57, %v4266_v10  ;;  %4304 = vmatmul.bf16.gmra.mxu0 %v10713_v11  ;;  %v10715_v10 = vld [vmem:[#allocation29_spill] sm:$0xff]  ;;  %v10716_v57 = vld [vmem:[#allocation48_spill] sm:$0xff] }
 0x513   : > { %4363 = vmatmul.bf16.gmra.mxu1 %v10714_v52  ;;  %v3825_v22 = vsel %vm3665_vm3, %v3584_v23, %v3745_v31 }
 0x514   : > { %v4383_v34 = vpop.f32.mrf.mxu2  ;;  %v10057_v19 = vpack.c.bf16 %v3825_v22, %v3821_v44  ;;  %v4442_v42 = vpop.f32.mrf.mxu3 }
 0x515   : > { %v4384_v7 = vadd.f32 %v4383_v34, %v4325_v1 }
 0x517   : > { %v4267_v2 = vpop.f32.mrf.mxu0  ;;  %v10060_v40 = vadd.f32 %v4442_v42, %v4384_v7 }
 0x518   : > { %v4268_v51 = vadd.f32 %v4267_v2, %v10050_v30  ;;  %v4326_v14 = vpop.f32.mrf.mxu1 }
 0x519   : > { %vm4728_vm4 = vcmp.gt.f32.partialorder %v10060_v40, 0.0 }
 0x51a   : > { %v4327_v18 = vadd.f32 %v4326_v14, %v4268_v51 }
 0x51c   : > { %v4385_v54 = vpop.f32.mrf.mxu2  ;;  %v4444_v36 = vpop.f32.mrf.mxu3 }
 0x51d   : > { %v4386_v3 = vadd.f32 %v4385_v54, %v4327_v18 }
 0x51f   : > { %v4270_v26 = vpop.f32.mrf.mxu0  ;;  %v10063_v46 = vadd.f32 %v4444_v36, %v4386_v3 }
 0x520   : > { %v4271_v55 = vadd.f32 %v4270_v26, %v10050_v30  ;;  %v4329_v21 = vpop.f32.mrf.mxu1 }
 0x521   : > { %4427 = vmatmul.bf16.gmra.mxu2 %v9768_v48  ;;  %4486 = vmatmul.bf16.gmra.mxu3 %v10057_v19  ;;  %vm4730_vm6 = vcmp.gt.f32.partialorder %v10063_v46, 0.0 }
 0x522   : > { %v4330_v9 = vadd.f32 %v4329_v21, %v4271_v55  ;;  %4309 = vmatmul.bf16.gmra.mxu0 %v10715_v10 }
 0x523   : > { %4368 = vmatmul.bf16.gmra.mxu1 %v10716_v57 }
 0x524   : > { %v4388_v8 = vpop.f32.mrf.mxu2  ;;  %v4447_v1 = vpop.f32.mrf.mxu3 }
 0x525   : > { %v4389_v23 = vadd.f32 %v4388_v8, %v4330_v9 }
 0x527   : > { %v4272_v31 = vpop.f32.mrf.mxu0  ;;  %v10070_v34 = vadd.f32 %v4447_v1, %v4389_v23 }
 0x528   : > { %v4273_v44 = vadd.f32 %v4272_v31, %v10050_v30  ;;  %v4331_v22 = vpop.f32.mrf.mxu1 }
 0x529   : > { %vm4732_vm8 = vcmp.gt.f32.partialorder %v10070_v34, 0.0 }
 0x52a   : > { %v4332_v7 = vadd.f32 %v4331_v22, %v4273_v44 }
 0x52c   : > { %v4390_v42 = vpop.f32.mrf.mxu2  ;;  %v4449_v51 = vpop.f32.mrf.mxu3 }
 0x52d   : > { %v4391_v2 = vadd.f32 %v4390_v42, %v4332_v7 }
 0x52f   : > { %v4275_v14 = vpop.f32.mrf.mxu0  ;;  %v10073_v3 = vadd.f32 %v4449_v51, %v4391_v2 }
 0x530   : > { %v4276_v18 = vadd.f32 %v4275_v14, %v10050_v30  ;;  %v4334_v54 = vpop.f32.mrf.mxu1 }
 0x531   : > { %4618 = vmatmul.bf16.vlgmr.msra.gmra.mxu2 %v9462_v61  ;;  %4677 = vmatmul.bf16.vlgmr.msra.gmra.mxu3 %v9809_v47  ;;  %vm4734_vm10 = vcmp.gt.f32.partialorder %v10073_v3, 0.0 }
 0x532   : > { %v4335_v36 = vadd.f32 %v4334_v54, %v4276_v18  ;;  %4500 = vmatmul.bf16.vlgmr.msra.gmra.mxu0 %v10697_v24 }
 0x533   : > { %4559 = vmatmul.bf16.vlgmr.msra.gmra.mxu1 %v10698_v39 }
 0x534   : > { %v4393_v26 = vpop.f32.mrf.mxu2  ;;  %v4452_v21 = vpop.f32.mrf.mxu3 }
 0x535   : > { %v4394_v55 = vadd.f32 %v4393_v26, %v4335_v36 }
 0x537   : > { %v4277_v9 = vpop.f32.mrf.mxu0  ;;  %v10080_v1 = vadd.f32 %v4452_v21, %v4394_v55 }
 0x538   : > { %v4278_v8 = vadd.f32 %v4277_v9, %v10050_v30  ;;  %v4336_v23 = vpop.f32.mrf.mxu1 }
 0x539   : > { %vm4736_vm12 = vcmp.gt.f32.partialorder %v10080_v1, 0.0 }
 0x53a   : > { %v4337_v31 = vadd.f32 %v4336_v23, %v4278_v8 }
 0x53c   : > { %v4395_v44 = vpop.f32.mrf.mxu2  ;;  %v4454_v7 = vpop.f32.mrf.mxu3 }
 0x53d   : > { %v4396_v22 = vadd.f32 %v4395_v44, %v4337_v31 }
 0x53f   : > { %v4280_v24 = vpop.f32.mrf.mxu0  ;;  %v10083_v61 = vadd.f32 %v4454_v7, %v4396_v22 }
 0x540   : > { %v4281_v39 = vadd.f32 %v4280_v24, %v10050_v30  ;;  %v4339_v42 = vpop.f32.mrf.mxu1 }
 0x541   : > { %4623 = vmatmul.bf16.gmra.mxu2 %v9503_v4  ;;  %4682 = vmatmul.bf16.gmra.mxu3 %v9841_v32  ;;  %vm4738_vm14 = vcmp.gt.f32.partialorder %v10083_v61, 0.0 }
 0x542   : > { %v4340_v47 = vadd.f32 %v4339_v42, %v4281_v39  ;;  %4505 = vmatmul.bf16.gmra.mxu0 %v10699_v56 }
 0x543   : > { %4564 = vmatmul.bf16.gmra.mxu1 %v10700_v16 }
 0x544   : > { %v4398_v2 = vpop.f32.mrf.mxu2  ;;  %v4457_v14 = vpop.f32.mrf.mxu3 }
 0x545   : > { %v4399_v51 = vadd.f32 %v4398_v2, %v4340_v47 }
 0x547   : > { %v4282_v18 = vpop.f32.mrf.mxu0  ;;  %v10090_v26 = vadd.f32 %v4457_v14, %v4399_v51 }
 0x548   : > { %v4283_v54 = vadd.f32 %v4282_v18, %v10050_v30  ;;  %v4341_v36 = vpop.f32.mrf.mxu1 }
 0x549   : > { %vm4740_vm1 = vcmp.gt.f32.partialorder %v10090_v26, 0.0 }
 0x54a   : > { %v4342_v55 = vadd.f32 %v4341_v36, %v4283_v54 }
 0x54c   : > { %v4400_v21 = vpop.f32.mrf.mxu2  ;;  %v4459_v8 = vpop.f32.mrf.mxu3 }
 0x54d   : > { %v4401_v9 = vadd.f32 %v4400_v21, %v4342_v55 }
 0x54f   : > { %v4285_v56 = vpop.f32.mrf.mxu0  ;;  %v10093_v4 = vadd.f32 %v4459_v8, %v4401_v9 }
 0x550   : > { %v4286_v16 = vadd.f32 %v4285_v56, %v10050_v30  ;;  %v4344_v23 = vpop.f32.mrf.mxu1 }
 0x551   : > { %4628 = vmatmul.bf16.gmra.mxu2 %v9536_v49  ;;  %4687 = vmatmul.bf16.gmra.mxu3 %v9873_v20  ;;  %vm4742_vm0 = vcmp.gt.f32.partialorder %v10093_v4, 0.0 }
 0x552   : > { %v4345_v32 = vadd.f32 %v4344_v23, %v4286_v16  ;;  %4510 = vmatmul.bf16.gmra.mxu0 %v10701_v15 }
 0x553   : > { %4569 = vmatmul.bf16.gmra.mxu1 %v10702_v6 }
 0x554   : > { %v4403_v31 = vpop.f32.mrf.mxu2  ;;  %v4462_v22 = vpop.f32.mrf.mxu3 }
 0x555   : > { %v4404_v44 = vadd.f32 %v4403_v31, %v4345_v32 }
 0x557   : > { %v4287_v7 = vpop.f32.mrf.mxu0  ;;  %v10100_v42 = vadd.f32 %v4462_v22, %v4404_v44 }
 0x558   : > { %v4288_v24 = vadd.f32 %v4287_v7, %v10050_v30  ;;  %v4346_v39 = vpop.f32.mrf.mxu1 }
 0x55a   : > { %v4347_v47 = vadd.f32 %v4346_v39, %v4288_v24 }
 0x55c   : > { %v4405_v2 = vpop.f32.mrf.mxu2  ;;  %v4464_v14 = vpop.f32.mrf.mxu3 }
 0x55d   : > { %v4406_v51 = vadd.f32 %v4405_v2, %v4347_v47 }
 0x55f   : > { %v4290_v15 = vpop.f32.mrf.mxu0  ;;  %v10103_v49 = vadd.f32 %v4464_v14, %v4406_v51 }
 0x560   : > { %v4291_v6 = vadd.f32 %v4290_v15, %v10050_v30  ;;  %v4349_v18 = vpop.f32.mrf.mxu1 }
 0x561   : > { %4633 = vmatmul.bf16.gmra.mxu2 %v9557_v0  ;;  %4692 = vmatmul.bf16.gmra.mxu3 %v9902_v29 }
 0x562   : > { %v4350_v20 = vadd.f32 %v4349_v18, %v4291_v6  ;;  %4515 = vmatmul.bf16.gmra.mxu0 %v10703_v38 }
 0x563   : > { %4574 = vmatmul.bf16.gmra.mxu1 %v10704_v33 }
 0x564   : > { %v4408_v54 = vpop.f32.mrf.mxu2  ;;  %v4467_v55 = vpop.f32.mrf.mxu3 }
 0x565   : > { %v4409_v36 = vadd.f32 %v4408_v54, %v4350_v20 }
 0x567   : > { %v4292_v21 = vpop.f32.mrf.mxu0  ;;  %v10110_v56 = vadd.f32 %v4467_v55, %v4409_v36 }
 0x568   : > { %v4293_v9 = vadd.f32 %v4292_v21, %v10050_v30  ;;  %v4351_v8 = vpop.f32.mrf.mxu1 }
 0x56a   : > { %v4352_v16 = vadd.f32 %v4351_v8, %v4293_v9 }
 0x56c   : > { %v4410_v23 = vpop.f32.mrf.mxu2  ;;  %v4469_v31 = vpop.f32.mrf.mxu3 }
 0x56d   : > { %v4411_v32 = vadd.f32 %v4410_v23, %v4352_v16 }
 0x56f   : > { %v4295_v38 = vpop.f32.mrf.mxu0  ;;  %v10113_v0 = vadd.f32 %v4469_v31, %v4411_v32 }
 0x570   : > { %v4296_v33 = vadd.f32 %v4295_v38, %v10050_v30  ;;  %v4354_v44 = vpop.f32.mrf.mxu1 }
 0x571   : > { %4638 = vmatmul.bf16.gmra.mxu2 %v9596_v13  ;;  %4697 = vmatmul.bf16.gmra.mxu3 %v9931_v37 }
 0x572   : > { %v4355_v29 = vadd.f32 %v4354_v44, %v4296_v33  ;;  %4520 = vmatmul.bf16.gmra.mxu0 %v10705_v59 }
 0x573   : > { %4579 = vmatmul.bf16.gmra.mxu1 %v10706_v25 }
 0x574   : > { %v4413_v22 = vpop.f32.mrf.mxu2  ;;  %v4472_v24 = vpop.f32.mrf.mxu3 }
 0x575   : > { %v4414_v7 = vadd.f32 %v4413_v22, %v4355_v29 }
 0x577   : > { %v4297_v39 = vpop.f32.mrf.mxu0  ;;  %v10120_v51 = vadd.f32 %v4472_v24, %v4414_v7 }
 0x578   : > { %v4298_v47 = vadd.f32 %v4297_v39, %v10050_v30  ;;  %v4356_v2 = vpop.f32.mrf.mxu1 }
 0x57a   : > { %v4357_v14 = vadd.f32 %v4356_v2, %v4298_v47 }
 0x57c   : > { %v4415_v15 = vpop.f32.mrf.mxu2  ;;  %v4474_v18 = vpop.f32.mrf.mxu3 }
 0x57d   : > { %v4416_v6 = vadd.f32 %v4415_v15, %v4357_v14 }
 0x57f   : > { %v4300_v59 = vpop.f32.mrf.mxu0  ;;  %v10123_v13 = vadd.f32 %v4474_v18, %v4416_v6 }
 0x580   : > { %v4301_v25 = vadd.f32 %v4300_v59, %v10050_v30  ;;  %v4359_v20 = vpop.f32.mrf.mxu1 }
 0x581   : > { %4643 = vmatmul.bf16.gmra.mxu2 %v9635_v35  ;;  %4702 = vmatmul.bf16.gmra.mxu3 %v9945_v27 }
 0x582   : > { %v4360_v37 = vadd.f32 %v4359_v20, %v4301_v25  ;;  %4525 = vmatmul.bf16.gmra.mxu0 %v10707_v12 }
 0x583   : > { %4584 = vmatmul.bf16.gmra.mxu1 %v10708_v53 }
 0x584   : > { %v4418_v54 = vpop.f32.mrf.mxu2  ;;  %v4477_v55 = vpop.f32.mrf.mxu3 }
 0x585   : > { %v4419_v36 = vadd.f32 %v4418_v54, %v4360_v37 }
 0x587   : > { %v4302_v21 = vpop.f32.mrf.mxu0  ;;  %v10130_v16 = vadd.f32 %v4477_v55, %v4419_v36 }
 0x588   : > { %v4303_v9 = vadd.f32 %v4302_v21, %v10050_v30  ;;  %v4361_v8 = vpop.f32.mrf.mxu1 }
 0x58a   : > { %v4362_v23 = vadd.f32 %v4361_v8, %v4303_v9  ;;  %v10153_v9 = vperm.slane %v10047_v45, 1 }
 0x58c   : > { %v4420_v32 = vpop.f32.mrf.mxu2  ;;  %v4479_v38 = vpop.f32.mrf.mxu3 }
 0x58d   : > { %v4421_v31 = vadd.f32 %v4420_v32, %v4362_v23 }
 0x58f   : > { %v4305_v12 = vpop.f32.mrf.mxu0  ;;  %v10133_v35 = vadd.f32 %v4479_v38, %v4421_v31  ;;  %v4768_v31 = vmul.f32 0.2, %v10060_v40 }
 0x590   : > { %v4306_v53 = vadd.f32 %v4305_v12, %v10050_v30  ;;  %v4364_v33 = vpop.f32.mrf.mxu1 }
 0x591   : > { %4648 = vmatmul.bf16.gmra.mxu2 %v9675_v50  ;;  %4707 = vmatmul.bf16.gmra.mxu3 %v9977_v5 }
 0x592   : > { %v4365_v27 = vadd.f32 %v4364_v33, %v4306_v53  ;;  %4530 = vmatmul.bf16.gmra.mxu0 %v10709_v17  ;;  %v4848_v33 = vld [vmem:[%s10367_s5] sm:$0x3] }
 0x593   : > { %4589 = vmatmul.bf16.gmra.mxu1 %v10710_v62 }
 0x594   : > { %v4423_v44 = vpop.f32.mrf.mxu2  ;;  %v4482_v22 = vpop.f32.mrf.mxu3 }
 0x595   : > { %v4424_v29 = vadd.f32 %v4423_v44, %v4365_v27 }
 0x597   : > { %v4307_v7 = vpop.f32.mrf.mxu0  ;;  %v10140_v47 = vadd.f32 %v4482_v22, %v4424_v29  ;;  %v4808_v29 = vsel %vm4728_vm4, %v10060_v40, %v4768_v31  ;;  %vm4744_vm4 = vcmp.gt.f32.partialorder %v10100_v42, 0.0 }
 0x598   : > { %v4308_v24 = vadd.f32 %v4307_v7, %v10050_v30  ;;  %v4366_v39 = vpop.f32.mrf.mxu1 }
 0x59a   : > { %v4367_v2 = vadd.f32 %v4366_v39, %v4308_v24 }
 0x59c   : > { %v4425_v14 = vpop.f32.mrf.mxu2  ;;  %v4484_v6 = vpop.f32.mrf.mxu3 }
 0x59d   : > { %v4426_v15 = vadd.f32 %v4425_v14, %v4367_v2  ;;  %v4770_v14 = vmul.f32 0.2, %v10063_v46 }
 0x59f   : > { %v4310_v17 = vpop.f32.mrf.mxu0  ;;  %v10143_v50 = vadd.f32 %v4484_v6, %v4426_v15 }
 0x5a0   : > { %v4311_v62 = vadd.f32 %v4310_v17, %v10050_v30  ;;  %v4369_v18 = vpop.f32.mrf.mxu1 }
 0x5a1   : > { %4653 = vmatmul.bf16.gmra.mxu2 %v9708_v41  ;;  %4712 = vmatmul.bf16.gmra.mxu3 %v10009_v43 }
 0x5a2   : > { %v4370_v5 = vadd.f32 %v4369_v18, %v4311_v62  ;;  %4535 = vmatmul.bf16.gmra.mxu0 %v10711_v28 }
 0x5a3   : > { %4594 = vmatmul.bf16.gmra.mxu1 %v10712_v58 }
 0x5a4   : > { %v4428_v59 = vpop.f32.mrf.mxu2  ;;  %v4487_v20 = vpop.f32.mrf.mxu3 }
 0x5a5   : > { %v4429_v25 = vadd.f32 %v4428_v59, %v4370_v5 }
 0x5a7   : > { %v4312_v37 = vpop.f32.mrf.mxu0  ;;  %v10150_v55 = vadd.f32 %v4487_v20, %v4429_v25  ;;  %v4810_v25 = vsel %vm4730_vm6, %v10063_v46, %v4770_v14  ;;  %vm4746_vm6 = vcmp.gt.f32.partialorder %v10103_v49, 0.0 }
 0x5a8   : > { %v4313_v54 = vadd.f32 %v4312_v37, %v10050_v30  ;;  %v4371_v36 = vpop.f32.mrf.mxu1 }
 0x5aa   : > { %v4372_v21 = vadd.f32 %v4371_v36, %v4313_v54 }
 0x5ac   : > { %v4430_v28 = vpop.f32.mrf.mxu2  ;;  %v4489_v58 = vpop.f32.mrf.mxu3 }
 0x5ad   : > { %v4431_v8 = vadd.f32 %v4430_v28, %v4372_v21  ;;  %v4772_v28 = vmul.f32 0.2, %v10070_v34 }
 0x5af   : > { %v4501_v23 = vpop.f32.mrf.mxu0  ;;  %v10155_v32 = vadd.f32 %v4489_v58, %v4431_v8 }
 0x5b0   : > { %v4560_v41 = vpop.f32.mrf.mxu1  ;;  %v4502_v43 = vadd.f32 %v4501_v23, %v10153_v9 }
 0x5b1   : > { %4658 = vmatmul.bf16.gmra.mxu2 %v9729_v63  ;;  %4717 = vmatmul.bf16.gmra.mxu3 %v10038_v60  ;;  %v10168_v63 = vperm.slane %v4848_v33, 0  ;;  %v10170_v60 = vperm.slane %v4848_v33, 1 }
 0x5b2   : > { %4540 = vmatmul.bf16.gmra.mxu0 %v10713_v11  ;;  %v4561_v30 = vadd.f32 %v4560_v41, %v4502_v43  ;;  %v4812_v41 = vsel %vm4732_vm8, %v10070_v34, %v4772_v28  ;;  %v4778_v28 = vmul.f32 0.2, %v10083_v61  ;;  %vm4748_vm8 = vcmp.gt.f32.partialorder %v10110_v56, 0.0 }
 0x5b3   : > { %4599 = vmatmul.bf16.gmra.mxu1 %v10714_v52  ;;  %v4854_v39 = vmul.f32 %v10168_v63, %v4808_v29  ;;  %v4856_v36 = vmul.f32 %v10168_v63, %v4810_v25  ;;  %v4858_v31 = vmul.f32 %v10168_v63, %v4812_v41 }
 0x5b4   : > { %v4619_v45 = vpop.f32.mrf.mxu2  ;;  %v4678_v12 = vpop.f32.mrf.mxu3 }
 0x5b5   : > { %v4620_v38 = vadd.f32 %v4619_v45, %v4561_v30 }
 0x5b7   : > { %v4503_v53 = vpop.f32.mrf.mxu0  ;;  %v4679_v27 = vadd.f32 %v4678_v12, %v4620_v38  ;;  %v4774_v12 = vmul.f32 0.2, %v10073_v3 }
 0x5b8   : > { %v4562_v11 = vpop.f32.mrf.mxu1  ;;  %v4504_v52 = vadd.f32 %v4503_v53, %v10153_v9 }
 0x5b9   : > { %vm4729_vm5 = vcmp.gt.f32.partialorder %v4679_v27, 0.0  ;;  %v4769_v44 = vmul.f32 0.2, %v4679_v27 }
 0x5ba   : > { %v4563_v22 = vadd.f32 %v4562_v11, %v4504_v52 }
 0x5bb   : > { %v4809_v7 = vsel %vm4729_vm5, %v4679_v27, %v4769_v44 }
 0x5bc   : > { %v4621_v24 = vpop.f32.mrf.mxu2  ;;  %v4855_v2 = vmul.f32 %v10170_v60, %v4809_v7  ;;  %v4680_v6 = vpop.f32.mrf.mxu3 }
 0x5bd   : > { %v4622_v15 = vadd.f32 %v4621_v24, %v4563_v22  ;;  %v4814_v22 = vsel %vm4734_vm10, %v10073_v3, %v4774_v12  ;;  %vm4750_vm10 = vcmp.gt.f32.partialorder %v10113_v0, 0.0 }
 0x5be   : > { %v4894_v18 = vadd.f32 %v4855_v2, %v4854_v39  ;;  %v4860_v2 = vmul.f32 %v10168_v63, %v4814_v22 }
 0x5bf   : > { %v4506_v17 = vpop.f32.mrf.mxu0  ;;  %v4681_v5 = vadd.f32 %v4680_v6, %v4622_v15  ;;  %v4776_v15 = vmul.f32 0.2, %v10080_v1 }
 0x5c0   : > { %v4565_v62 = vpop.f32.mrf.mxu1  ;;  %v4507_v59 = vadd.f32 %v4506_v17, %v10153_v9  ;;  %4895 = vadd.xlane.f32.xlu0 %v4894_v18 }
 0x5c1   : > { %vm4731_vm7 = vcmp.gt.f32.partialorder %v4681_v5, 0.0  ;;  %v4771_v40 = vmul.f32 0.2, %v4681_v5  ;;  %4663 = vmatmul.bf16.gmra.mxu2 %v9768_v48  ;;  %4722 = vmatmul.bf16.gmra.mxu3 %v10057_v19  ;;  %v4816_v25 = vsel %vm4736_vm12, %v10080_v1, %v4776_v15  ;;  %vm4752_vm12 = vcmp.gt.f32.partialorder %v10120_v51, 0.0 }
 0x5c2   : > { %4545 = vmatmul.bf16.gmra.mxu0 %v10715_v10  ;;  %v4566_v20 = vadd.f32 %v4565_v62, %v4507_v59 }
 0x5c3   : > { %4604 = vmatmul.bf16.gmra.mxu1 %v10716_v57  ;;  %v4811_v37 = vsel %vm4731_vm7, %v4681_v5, %v4771_v40 }
 0x5c4   : > { %v4624_v54 = vpop.f32.mrf.mxu2  ;;  %v4857_v21 = vmul.f32 %v10170_v60, %v4811_v37  ;;  %v4683_v8 = vpop.f32.mrf.mxu3 }
 0x5c5   : > { %v4625_v10 = vadd.f32 %v4624_v54, %v4566_v20 }
 0x5c6   : > { %v4897_v48 = vadd.f32 %v4857_v21, %v4856_v36  ;;  %v4862_v36 = vmul.f32 %v10168_v63, %v4816_v25 }
 0x5c7   : > { %v4508_v58 = vpop.f32.mrf.mxu0  ;;  %v4684_v23 = vadd.f32 %v4683_v8, %v4625_v10 }
 0x5c8   : > { %v4567_v57 = vpop.f32.mrf.mxu1  ;;  %v4509_v46 = vadd.f32 %v4508_v58, %v10153_v9  ;;  %4898 = vadd.xlane.f32.xlu0 %v4897_v48 }
 0x5c9   : > { %vm4733_vm9 = vcmp.gt.f32.partialorder %v4684_v23, 0.0  ;;  %v4773_v19 = vmul.f32 0.2, %v4684_v23 }
 0x5ca   : > { %v4568_v43 = vadd.f32 %v4567_v57, %v4509_v46 }
 0x5cb   : > { %v4813_v30 = vsel %vm4733_vm9, %v4684_v23, %v4773_v19  ;;  %v4818_v19 = vsel %vm4738_vm14, %v10083_v61, %v4778_v28  ;;  %vm4754_vm14 = vcmp.gt.f32.partialorder %v10123_v13, 0.0 }
 0x5cc   : > { %v4626_v45 = vpop.f32.mrf.mxu2  ;;  %v4859_v38 = vmul.f32 %v10170_v60, %v4813_v30  ;;  %v4685_v33 = vpop.f32.mrf.mxu3 }
 0x5cd   : > { %v4627_v53 = vadd.f32 %v4626_v45, %v4568_v43  ;;  %v4864_v45 = vmul.f32 %v10168_v63, %v4818_v19 }
 0x5ce   : > { %v4900_v52 = vadd.f32 %v4859_v38, %v4858_v31  ;;  %v4780_v38 = vmul.f32 0.2, %v10090_v26 }
 0x5cf   : > { %v4511_v11 = vpop.f32.mrf.mxu0  ;;  %v4686_v44 = vadd.f32 %v4685_v33, %v4627_v53 }
 0x5d0   : > { %v4570_v27 = vpop.f32.mrf.mxu1  ;;  %v4512_v29 = vadd.f32 %v4511_v11, %v10153_v9  ;;  %4901 = vadd.xlane.f32.xlu1 %v4900_v52 }
 0x5d1   : > { %vm4735_vm11 = vcmp.gt.f32.partialorder %v4686_v44, 0.0  ;;  %v4775_v34 = vmul.f32 0.2, %v4686_v44 }
 0x5d2   : > { %v4571_v7 = vadd.f32 %v4570_v27, %v4512_v29  ;;  %v4820_v29 = vsel %vm4740_vm1, %v10090_v26, %v4780_v38  ;;  %vm4756_vm1 = vcmp.gt.f32.partialorder %v10130_v16, 0.0 }
 0x5d3   : > { %v4815_v24 = vsel %vm4735_vm11, %v4686_v44, %v4775_v34 }
 0x5d4   : > { %v4629_v39 = vpop.f32.mrf.mxu2  ;;  %v4861_v14 = vmul.f32 %v10170_v60, %v4815_v24  ;;  %v4688_v17 = vpop.f32.mrf.mxu3  ;;  %v4866_v24 = vmul.f32 %v10168_v63, %v4820_v29 }
 0x5d5   : > { %v4630_v6 = vadd.f32 %v4629_v39, %v4571_v7 }
 0x5d6   : > { %v4903_v5 = vadd.f32 %v4861_v14, %v4860_v2  ;;  %v4782_v2 = vmul.f32 0.2, %v10093_v4 }
 0x5d7   : > { %v4513_v62 = vpop.f32.mrf.mxu0  ;;  %v4689_v59 = vadd.f32 %v4688_v17, %v4630_v6 }
 0x5d8   : > { %v4572_v18 = vpop.f32.mrf.mxu1  ;;  %v4514_v40 = vadd.f32 %v4513_v62, %v10153_v9  ;;  %4904 = vadd.xlane.f32.xlu1 %v4903_v5 }
 0x5d9   : > { %vm4737_vm13 = vcmp.gt.f32.partialorder %v4689_v59, 0.0  ;;  %v4777_v3 = vmul.f32 0.2, %v4689_v59 }
 0x5da   : > { %v4573_v20 = vadd.f32 %v4572_v18, %v4514_v40 }
 0x5db   : > { %v4817_v37 = vsel %vm4737_vm13, %v4689_v59, %v4777_v3  ;;  %v4822_v59 = vsel %vm4742_vm0, %v10093_v4, %v4782_v2  ;;  %vm4758_vm0 = vcmp.gt.f32.partialorder %v10133_v35, 0.0 }
 0x5dc   : > { %v4631_v54 = vpop.f32.mrf.mxu2  ;;  %v4863_v21 = vmul.f32 %v10170_v60, %v4817_v37  ;;  %v4690_v8 = vpop.f32.mrf.mxu3 }
 0x5dd   : > { %v4632_v10 = vadd.f32 %v4631_v54, %v4573_v20  ;;  %v4868_v20 = vmul.f32 %v10168_v63, %v4822_v59  ;;  %v4784_v54 = vmul.f32 0.2, %v10100_v42  ;;  %v4790_v59 = vmul.f32 0.2, %v10113_v0 }
 0x5de   : > { %v4906_v48 = vadd.f32 %v4863_v21, %v4862_v36 }
 0x5df   : > { %v4516_v58 = vpop.f32.mrf.mxu0  ;;  %v4691_v23 = vadd.f32 %v4690_v8, %v4632_v10 }
 0x5e0   : > { %v4575_v57 = vpop.f32.mrf.mxu1  ;;  %v4517_v46 = vadd.f32 %v4516_v58, %v10153_v9  ;;  %4907 = vadd.xlane.f32.xlu2 %v4906_v48  ;;  %v4824_v48 = vsel %vm4744_vm4, %v10100_v42, %v4784_v54  ;;  %vm4760_vm4 = vcmp.gt.f32.partialorder %v10140_v47, 0.0 }
 0x5e1   : > { %vm4739_vm15 = vcmp.gt.f32.partialorder %v4691_v23, 0.0  ;;  %v4779_v1 = vmul.f32 0.2, %v4691_v23  ;;  %v4870_v19 = vmul.f32 %v10168_v63, %v4824_v48 }
 0x5e2   : > { %v4576_v41 = vadd.f32 %v4575_v57, %v4517_v46 }
 0x5e3   : > { %v4819_v43 = vsel %vm4739_vm15, %v4691_v23, %v4779_v1 }
 0x5e4   : > { %v4634_v30 = vpop.f32.mrf.mxu2  ;;  %v4865_v31 = vmul.f32 %v10170_v60, %v4819_v43  ;;  %v4693_v53 = vpop.f32.mrf.mxu3  ;;  %v4786_v43 = vmul.f32 0.2, %v10103_v49 }
 0x5e5   : > { %v4635_v12 = vadd.f32 %v4634_v30, %v4576_v41 }
 0x5e6   : > { %v4909_v27 = vadd.f32 %v4865_v31, %v4864_v45 }
 0x5e7   : > { %v4518_v33 = vpop.f32.mrf.mxu0  ;;  %v4694_v52 = vadd.f32 %v4693_v53, %v4635_v12 }
 0x5e8   : > { %v4577_v11 = vpop.f32.mrf.mxu1  ;;  %v4519_v44 = vadd.f32 %v4518_v33, %v10153_v9  ;;  %4910 = vadd.xlane.f32.xlu2 %v4909_v27 }
 0x5e9   : > { %vm4741_vm2 = vcmp.gt.f32.partialorder %v4694_v52, 0.0  ;;  %v4781_v61 = vmul.f32 0.2, %v4694_v52 }
 0x5ea   : > { %v4578_v34 = vadd.f32 %v4577_v11, %v4519_v44  ;;  %v4826_v11 = vsel %vm4746_vm6, %v10103_v49, %v4786_v43  ;;  %vm4762_vm6 = vcmp.gt.f32.partialorder %v10143_v50, 0.0 }
 0x5eb   : > { %v4821_v22 = vsel %vm4741_vm2, %v4694_v52, %v4781_v61  ;;  %v4872_v61 = vmul.f32 %v10168_v63, %v4826_v11 }
 0x5ec   : > { %v4636_v7 = vpop.f32.mrf.mxu2  ;;  %v4867_v39 = vmul.f32 %v10170_v60, %v4821_v22  ;;  %v4695_v15 = vpop.f32.mrf.mxu3 }
 0x5ed   : > { %v4637_v14 = vadd.f32 %v4636_v7, %v4578_v34  ;;  %v4788_v34 = vmul.f32 0.2, %v10110_v56 }
 0x5ee   : > { %v4912_v62 = vadd.f32 %v4867_v39, %v4866_v24 }
 0x5ef   : > { %v4521_v6 = vpop.f32.mrf.mxu0  ;;  %v4696_v18 = vadd.f32 %v4695_v15, %v4637_v14 }
 0x5f0   : > { %v4580_v17 = vpop.f32.mrf.mxu1  ;;  %v4522_v5 = vadd.f32 %v4521_v6, %v10153_v9  ;;  %4913 = vadd.xlane.f32.xlu0 %v4912_v62  ;;  %v4828_v6 = vsel %vm4748_vm8, %v10110_v56, %v4788_v34  ;;  %vm4764_vm8 = vcmp.gt.f32.partialorder %v10150_v55, 0.0 }
 0x5f1   : > { %vm4743_vm3 = vcmp.gt.f32.partialorder %v4696_v18, 0.0  ;;  %v4783_v26 = vmul.f32 0.2, %v4696_v18 }
 0x5f2   : > { %v4581_v40 = vadd.f32 %v4580_v17, %v4522_v5  ;;  %v4874_v5 = vmul.f32 %v10168_v63, %v4828_v6 }
 0x5f3   : > { %v4823_v3 = vsel %vm4743_vm3, %v4696_v18, %v4783_v26 }
 0x5f4   : > { %v4639_v25 = vpop.f32.mrf.mxu2  ;;  %v4869_v37 = vmul.f32 %v10170_v60, %v4823_v3  ;;  %v4698_v21 = vpop.f32.mrf.mxu3 }
 0x5f5   : > { %v4640_v36 = vadd.f32 %v4639_v25, %v4581_v40 }
 0x5f6   : > { %v4915_v8 = vadd.f32 %v4869_v37, %v4868_v20 }
 0x5f7   : > { %v4523_v28 = vpop.f32.mrf.mxu0  ;;  %v4699_v58 = vadd.f32 %v4698_v21, %v4640_v36  ;;  %v4830_v21 = vsel %vm4750_vm10, %v10113_v0, %v4790_v59 }
 0x5f8   : > { %v4582_v10 = vpop.f32.mrf.mxu1  ;;  %v4524_v57 = vadd.f32 %v4523_v28, %v10153_v9  ;;  %4916 = vadd.xlane.f32.xlu1 %v4915_v8 }
 0x5f9   : > { %vm4745_vm5 = vcmp.gt.f32.partialorder %v4699_v58, 0.0  ;;  %v4785_v4 = vmul.f32 0.2, %v4699_v58 }
 0x5fa   : > { %v4583_v23 = vadd.f32 %v4582_v10, %v4524_v57 }
 0x5fb   : > { %v4825_v46 = vsel %vm4745_vm5, %v4699_v58, %v4785_v4  ;;  %v4876_v58 = vmul.f32 %v10168_v63, %v4830_v21  ;;  %v4792_v4 = vmul.f32 0.2, %v10120_v51 }
 0x5fc   : > { %v4641_v1 = vpop.f32.mrf.mxu2  ;;  %v4871_v41 = vmul.f32 %v10170_v60, %v4825_v46  ;;  %v4700_v45 = vpop.f32.mrf.mxu3 }
 0x5fd   : > { %v4642_v30 = vadd.f32 %v4641_v1, %v4583_v23 }
 0x5fe   : > { %v4918_v12 = vadd.f32 %v4871_v41, %v4870_v19 }
 0x5ff   : > { %v4526_v31 = vpop.f32.mrf.mxu0  ;;  %v4701_v53 = vadd.f32 %v4700_v45, %v4642_v30  ;;  %v4832_v30 = vsel %vm4752_vm12, %v10120_v51, %v4792_v4 }
 0x600   : > { %v4585_v38 = vpop.f32.mrf.mxu1  ;;  %v4527_v33 = vadd.f32 %v4526_v31, %v10153_v9  ;;  %4919 = vadd.xlane.f32.xlu2 %v4918_v12  ;;  %v4878_v12 = vmul.f32 %v10168_v63, %v4832_v30 }
 0x601   : > { %vm4747_vm7 = vcmp.gt.f32.partialorder %v4701_v53, 0.0  ;;  %v4787_v42 = vmul.f32 0.2, %v4701_v53 }
 0x602   : > { %v4586_v27 = vadd.f32 %v4585_v38, %v4527_v33  ;;  %v4794_v33 = vmul.f32 0.2, %v10123_v13 }
 0x603   : > { %v4827_v52 = vsel %vm4747_vm7, %v4701_v53, %v4787_v42 }
 0x604   : > { %v4644_v44 = vpop.f32.mrf.mxu2  ;;  %v4873_v29 = vmul.f32 %v10170_v60, %v4827_v52  ;;  %v4703_v7 = vpop.f32.mrf.mxu3  ;;  %v4834_v34 = vsel %vm4754_vm14, %v10123_v13, %v4794_v33 }
 0x605   : > { %v4645_v22 = vadd.f32 %v4644_v44, %v4586_v27 }
 0x606   : > { %v4921_v2 = vadd.f32 %v4873_v29, %v4872_v61 }
 0x607   : > { %v4528_v24 = vpop.f32.mrf.mxu0  ;;  %v4704_v14 = vadd.f32 %v4703_v7, %v4645_v22 }
 0x608   : > { %v4587_v39 = vpop.f32.mrf.mxu1  ;;  %v4529_v15 = vadd.f32 %v4528_v24, %v10153_v9  ;;  %4922 = vadd.xlane.f32.xlu0 %v4921_v2 }
 0x609   : > { %vm4749_vm9 = vcmp.gt.f32.partialorder %v4704_v14, 0.0  ;;  %v4789_v49 = vmul.f32 0.2, %v4704_v14 }
 0x60a   : > { %v4588_v17 = vadd.f32 %v4587_v39, %v4529_v15  ;;  %v4880_v39 = vmul.f32 %v10168_v63, %v4834_v34 }
 0x60b   : > { %v4829_v62 = vsel %vm4749_vm9, %v4704_v14, %v4789_v49  ;;  %v4796_v14 = vmul.f32 0.2, %v10130_v16 }
 0x60c   : > { %v4646_v18 = vpop.f32.mrf.mxu2  ;;  %v4875_v26 = vmul.f32 %v10170_v60, %v4829_v62  ;;  %v4705_v3 = vpop.f32.mrf.mxu3 }
 0x60d   : > { %v4647_v40 = vadd.f32 %v4646_v18, %v4588_v17 }
 0x60e   : > { %v4924_v37 = vadd.f32 %v4875_v26, %v4874_v5  ;;  %v4836_v26 = vsel %vm4756_vm1, %v10130_v16, %v4796_v14 }
 0x60f   : > { %v4531_v25 = vpop.f32.mrf.mxu0  ;;  %v4706_v54 = vadd.f32 %v4705_v3, %v4647_v40 }
 0x610   : > { %v4590_v20 = vpop.f32.mrf.mxu1  ;;  %v4532_v36 = vadd.f32 %v4531_v25, %v10153_v9  ;;  %4925 = vadd.xlane.f32.xlu1 %v4924_v37  ;;  %v4882_v25 = vmul.f32 %v10168_v63, %v4836_v26  ;;  %v4798_v37 = vmul.f32 0.2, %v10133_v35 }
 0x611   : > { %vm4751_vm11 = vcmp.gt.f32.partialorder %v4706_v54, 0.0  ;;  %v4791_v56 = vmul.f32 0.2, %v4706_v54 }
 0x612   : > { %v4591_v28 = vadd.f32 %v4590_v20, %v4532_v36 }
 0x613   : > { %v4831_v10 = vsel %vm4751_vm11, %v4706_v54, %v4791_v56  ;;  %vm4766_vm11 = vcmp.gt.f32.partialorder %v10155_v32, 0.0 }
 0x614   : > { %v4649_v8 = vpop.f32.mrf.mxu2  ;;  %v4877_v57 = vmul.f32 %v10170_v60, %v4831_v10  ;;  %v4708_v23 = vpop.f32.mrf.mxu3 }
 0x615   : > { %v4650_v48 = vadd.f32 %v4649_v8, %v4591_v28 }
 0x616   : > { %v4927_v19 = vadd.f32 %v4877_v57, %v4876_v58  ;;  %v10266_v58 = vstv %s4954_s12  ;;  %v4838_v57 = vsel %vm4758_vm0, %v10133_v35, %v4798_v37 }
 0x617   : > { %v4533_v46 = vpop.f32.mrf.mxu0  ;;  %v4709_v41 = vadd.f32 %v4708_v23, %v4650_v48 }
 0x618   : > { %v4592_v1 = vpop.f32.mrf.mxu1  ;;  %v4534_v43 = vadd.f32 %v4533_v46, %v10153_v9  ;;  %4928 = vadd.xlane.f32.xlu2 %v4927_v19  ;;  %v4884_v19 = vmul.f32 %v10168_v63, %v4838_v57 }
 0x619   : > { %vm4753_vm13 = vcmp.gt.f32.partialorder %v4709_v41, 0.0  ;;  %v4793_v0 = vmul.f32 0.2, %v4709_v41 }
 0x61a   : > { %v4593_v45 = vadd.f32 %v4592_v1, %v4534_v43  ;;  %v4800_v43 = vmul.f32 0.2, %v10140_v47 }
 0x61b   : > { %v4833_v31 = vsel %vm4753_vm13, %v4709_v41, %v4793_v0 }
 0x61c   : > { %v4651_v38 = vpop.f32.mrf.mxu2  ;;  %v4879_v53 = vmul.f32 %v10170_v60, %v4833_v31  ;;  %v4710_v11 = vpop.f32.mrf.mxu3 }
 0x61d   : > { %v4652_v42 = vadd.f32 %v4651_v38, %v4593_v45 }
 0x61e   : > { %v4930_v44 = vadd.f32 %v4879_v53, %v4878_v12 }
 0x61f   : > { %v4536_v27 = vpop.f32.mrf.mxu0  ;;  %v4711_v61 = vadd.f32 %v4710_v11, %v4652_v42  ;;  %v4840_v42 = vsel %vm4760_vm4, %v10140_v47, %v4800_v43 }
 0x620   : > { %v4595_v52 = vpop.f32.mrf.mxu1  ;;  %v4537_v29 = vadd.f32 %v4536_v27, %v10153_v9  ;;  %4931 = vadd.xlane.f32.xlu0 %v4930_v44 }
 0x621   : > { %vm4755_vm15 = vcmp.gt.f32.partialorder %v4711_v61, 0.0  ;;  %v4795_v51 = vmul.f32 0.2, %v4711_v61 }
 0x622   : > { %v4596_v22 = vadd.f32 %v4595_v52, %v4537_v29  ;;  %v4886_v29 = vmul.f32 %v10168_v63, %v4840_v42 }
 0x623   : > { %v4835_v7 = vsel %vm4755_vm15, %v4711_v61, %v4795_v51 }
 0x624   : > { %v4654_v24 = vpop.f32.mrf.mxu2  ;;  %v4881_v2 = vmul.f32 %v10170_v60, %v4835_v7  ;;  %v4713_v49 = vpop.f32.mrf.mxu3 }
 0x625   : > { %v4655_v15 = vadd.f32 %v4654_v24, %v4596_v22 }
 0x626   : > { %v4933_v62 = vadd.f32 %v4881_v2, %v4880_v39  ;;  %v4802_v39 = vmul.f32 0.2, %v10143_v50 }
 0x627   : > { %v4538_v6 = vpop.f32.mrf.mxu0  ;;  %v4714_v18 = vadd.f32 %v4713_v49, %v4655_v15 }
 0x628   : > { %v4597_v17 = vpop.f32.mrf.mxu1  ;;  %v4539_v5 = vadd.f32 %v4538_v6, %v10153_v9  ;;  %4934 = vadd.xlane.f32.xlu1 %v4933_v62  ;;  %v4842_v62 = vsel %vm4762_vm6, %v10143_v50, %v4802_v39 }
 0x629   : > { %vm4757_vm2 = vcmp.gt.f32.partialorder %v4714_v18, 0.0  ;;  %v4797_v13 = vmul.f32 0.2, %v4714_v18 }
 0x62a   : > { %v4598_v59 = vadd.f32 %v4597_v17, %v4539_v5 }
 0x62b   : > { %v4837_v40 = vsel %vm4757_vm2, %v4714_v18, %v4797_v13 }
 0x62c   : > { %v4656_v3 = vpop.f32.mrf.mxu2  ;;  %v4883_v20 = vmul.f32 %v10170_v60, %v4837_v40  ;;  %v4715_v36 = vpop.f32.mrf.mxu3 }
 0x62d   : > { %v4657_v54 = vadd.f32 %v4656_v3, %v4598_v59 }
 0x62e   : > { %v4936_v28 = vadd.f32 %v4883_v20, %v4882_v25  ;;  %v4888_v20 = vmul.f32 %v10168_v63, %v4842_v62 }
 0x62f   : > { %v4541_v56 = vpop.f32.mrf.mxu0  ;;  %v4716_v10 = vadd.f32 %v4715_v36, %v4657_v54  ;;  %v4804_v36 = vmul.f32 0.2, %v10150_v55 }
 0x630   : > { %v4600_v21 = vpop.f32.mrf.mxu1  ;;  %v4542_v16 = vadd.f32 %v4541_v56, %v10153_v9  ;;  %4937 = vadd.xlane.f32.xlu2 %v4936_v28 }
 0x631   : > { %vm4759_vm3 = vcmp.gt.f32.partialorder %v4716_v10, 0.0  ;;  %v4799_v8 = vmul.f32 0.2, %v4716_v10 }
 0x632   : > { %v4601_v4 = vadd.f32 %v4600_v21, %v4542_v16 }
 0x633   : > { %v4896_v48 = vpop.xlane.xlu0 %4895  ;;  %v4839_v23 = vsel %vm4759_vm3, %v4716_v10, %v4799_v8 }
 0x634   : > { %v4956_v46 = vadd.f32 %v10266_v58, %v4896_v48  ;;  %v4659_v1 = vpop.f32.mrf.mxu2  ;;  %v4885_v41 = vmul.f32 %v10170_v60, %v4839_v23  ;;  %v4718_v30 = vpop.f32.mrf.mxu3  ;;  %v4844_v23 = vsel %vm4764_vm8, %v10150_v55, %v4804_v36 }
 0x635   : > { %v4660_v0 = vadd.f32 %v4659_v1, %v4601_v4 }
 0x636   : > { %v6799_v31 = vmul.f32 -1.442695, %v4956_v46  ;;  %v4939_v35 = vadd.f32 %v4885_v41, %v4884_v19 }
 0x637   : > { %v4543_v45 = vpop.f32.mrf.mxu0  ;;  %v4719_v12 = vadd.f32 %v4718_v30, %v4660_v0 }
 0x638   : > { %v4602_v38 = vpop.f32.mrf.mxu1  ;;  %v4544_v53 = vadd.f32 %v4543_v45, %v10153_v9  ;;  %7160 = vpow2.f32 %v6799_v31  ;;  %4940 = vadd.xlane.f32.xlu0 %v4939_v35  ;;  %v4890_v31 = vmul.f32 %v10168_v63, %v4844_v23  ;;  %v4806_v35 = vmul.f32 0.2, %v10155_v32 }
 0x639   : > { %vm4761_vm5 = vcmp.gt.f32.partialorder %v4719_v12, 0.0  ;;  %v4801_v33 = vmul.f32 0.2, %v4719_v12 }
 0x63a   : > { %v4603_v11 = vadd.f32 %v4602_v38, %v4544_v53 }
 0x63b   : > { %v4899_v27 = vpop.xlane.xlu0 %4898  ;;  %v4841_v52 = vsel %vm4761_vm5, %v4719_v12, %v4801_v33 }
 0x63c   : > { %v4957_v44 = vadd.f32 %v10266_v58, %v4899_v27  ;;  %v4661_v61 = vpop.f32.mrf.mxu2  ;;  %v4887_v51 = vmul.f32 %v10170_v60, %v4841_v52  ;;  %v4720_v22 = vpop.f32.mrf.mxu3 }
 0x63d   : > { %v4662_v34 = vadd.f32 %v4661_v61, %v4603_v11 }
 0x63e   : > { %v7161_v24 = vpop.eup %7160  ;;  %v6800_v2 = vmul.f32 -1.442695, %v4957_v44  ;;  %v4942_v14 = vadd.f32 %v4887_v51, %v4886_v29 }
 0x63f   : > { %v4546_v7 = vpop.f32.mrf.mxu0  ;;  %v10281_v47 = vadd.f32 1.0, %v7161_v24  ;;  %v4721_v15 = vadd.f32 %v4720_v22, %v4662_v34 }
 0x640   : > { %v4547_v49 = vadd.f32 %v4546_v7, %v10153_v9  ;;  %7162 = vpow2.f32 %v6800_v2  ;;  %v4605_v6 = vpop.f32.mrf.mxu1  ;;  %4943 = vadd.xlane.f32.xlu1 %v4942_v14  ;;  %v4846_v7 = vsel %vm4766_vm11, %v10155_v32, %v4806_v35 }
 0x641   : > { %7164 = vrcp.f32 %v10281_v47  ;;  %vm4763_vm7 = vcmp.gt.f32.partialorder %v4721_v15, 0.0  ;;  %v4803_v17 = vmul.f32 0.2, %v4721_v15  ;;  %v5065_v46 = vand.u32 2147483647, %v10281_v47 }
 0x642   : > { %v4606_v18 = vadd.f32 %v4605_v6, %v4547_v49  ;;  %v5067_v1 = vand.u32 2147483648, %v10281_v47  ;;  %vm5061_vm12 = vweird.f32 %v10281_v47  ;;  %v4892_v49 = vmul.f32 %v10168_v63, %v4846_v7 }
 0x643   : > { %v4902_v5 = vpop.xlane.xlu1 %4901  ;;  %v4843_v59 = vsel %vm4763_vm7, %v4721_v15, %v4803_v17  ;;  %vm5066_vm14 = vcmp.eq.f32.partialorder %v5065_v46, 8.507059e+37 }
 0x644   : > { %v4958_v13 = vadd.f32 %v10266_v58, %v4902_v5  ;;  %v4664_v26 = vpop.f32.mrf.mxu2  ;;  %v4723_v3 = vpop.f32.mrf.mxu3  ;;  %v4889_v37 = vmul.f32 %v10170_v60, %v4843_v59  ;;  %v5068_v11 = vor.u32 1.1754944e-38, %v5067_v1 }
 0x645   : > { %v4665_v40 = vadd.f32 %v4664_v26, %v4606_v18 }
 0x646   : > { %v7163_v54 = vpop.eup %7162  ;;  %v6801_v56 = vmul.f32 -1.442695, %v4958_v13  ;;  %v4945_v16 = vadd.f32 %v4889_v37, %v4888_v20 }
 0x647   : > { %v4548_v25 = vpop.f32.mrf.mxu0  ;;  %v7165_v50 = vpop.eup %7164  ;;  %v10291_v21 = vadd.f32 1.0, %v7163_v54  ;;  %v4724_v28 = vadd.f32 %v4723_v3, %v4665_v40 }
 0x648   : > { %v4549_v10 = vadd.f32 %v4548_v25, %v10153_v9  ;;  %v5057_v8 = vmul.f32 %v7165_v50, %v10281_v47  ;;  %7166 = vpow2.f32 %v6801_v56  ;;  %4946 = vadd.xlane.f32.xlu2 %v4945_v16  ;;  %v4607_v48 = vpop.f32.mrf.mxu1  ;;  %vm5062_vm10 = vweird.f32 %v7165_v50 }
 0x649   : > { %7168 = vrcp.f32 %v10291_v21  ;;  %vm4765_vm9 = vcmp.gt.f32.partialorder %v4724_v28, 0.0  ;;  %v4805_v4 = vmul.f32 0.2, %v4724_v28  ;;  %vm5063_vm13 = vmor %vm5061_vm12, %vm5062_vm10  ;;  %v5080_v24 = vand.u32 2147483647, %v10291_v21 }
 0x64a   : > { %v5058_v57 = vsub.f32 1.0, %v5057_v8  ;;  %v4608_v9 = vadd.f32 %v4607_v48, %v4549_v10  ;;  %v5082_v39 = vand.u32 2147483648, %v10291_v21  ;;  %vm5076_vm2 = vweird.f32 %v10291_v21 }
 0x64b   : > { %v4905_v19 = vpop.xlane.xlu1 %4904  ;;  %v4845_v30 = vsel %vm4765_vm9, %v4724_v28, %v4805_v4  ;;  %vm5081_vm3 = vcmp.eq.f32.partialorder %v5080_v24, 8.507059e+37 }
 0x64c   : > { %v5059_v41 = vmul.f32 %v7165_v50, %v5058_v57  ;;  %v4959_v43 = vadd.f32 %v10266_v58, %v4905_v19  ;;  %v4666_v0 = vpop.f32.mrf.mxu2  ;;  %v4891_v55 = vmul.f32 %v10170_v60, %v4845_v30  ;;  %v4725_v33 = vpop.f32.mrf.mxu3  ;;  %v5083_v5 = vor.u32 1.1754944e-38, %v5082_v39 }
 0x64d   : > { %v4667_v45 = vadd.f32 %v4666_v0, %v4608_v9 }
 0x64e   : > { %v7167_v38 = vpop.eup %7166  ;;  %v5060_v12 = vadd.f32 %v7165_v50, %v5059_v41  ;;  %v6802_v53 = vmul.f32 -1.442695, %v4959_v43  ;;  %v4948_v44 = vadd.f32 %v4891_v55, %v4890_v31 }
 0x64f   : > { %v7169_v42 = vpop.eup %7168  ;;  %v5038_v27 = vadd.f32 1.0, %v7167_v38  ;;  %v4726_v52 = vadd.f32 %v4725_v33, %v4667_v45 }
 0x650   : > { %v5064_v61 = vsel %vm5063_vm13, %v7165_v50, %v5060_v12  ;;  %v5072_v29 = vmul.f32 %v7169_v42, %v10291_v21  ;;  %7170 = vpow2.f32 %v6802_v53  ;;  %4949 = vadd.xlane.f32.xlu0 %v4948_v44  ;;  %vm5077_vm1 = vweird.f32 %v7169_v42 }
 0x651   : > { %v5069_v51 = vsel %vm5066_vm14, %v5068_v11, %v5064_v61  ;;  %7172 = vrcp.f32 %v5038_v27  ;;  %vm4767_vm15 = vcmp.gt.f32.partialorder %v4726_v52, 0.0  ;;  %v4807_v22 = vmul.f32 0.2, %v4726_v52  ;;  %vm5078_vm0 = vmor %vm5076_vm2, %vm5077_vm1 }
 0x652   : > { %5356 = vst [vmem:[%s10311_s15] sm:$0xff] %v5069_v51  ;;  %v5073_v34 = vsub.f32 1.0, %v5072_v29  ;;  %v5095_v37 = vand.u32 2147483647, %v5038_v27  ;;  %vm5091_vm5 = vweird.f32 %v5038_v27 }
 0x653   : > { %v4908_v2 = vpop.xlane.xlu2 %4907  ;;  %v4847_v15 = vsel %vm4767_vm15, %v4726_v52, %v4807_v22 }
 0x654   : > { %v5074_v14 = vmul.f32 %v7169_v42, %v5073_v34  ;;  %v4960_v47 = vadd.f32 %v10266_v58, %v4908_v2  ;;  %v4893_v6 = vmul.f32 %v10170_v60, %v4847_v15  ;;  %v5097_v60 = vand.u32 2147483648, %v5038_v27 }
 0x655   : > { %vm5096_vm7 = vcmp.eq.f32.partialorder %v5095_v37, 8.507059e+37 }
 0x656   : > { %v7171_v17 = vpop.eup %7170  ;;  %v5075_v62 = vadd.f32 %v7169_v42, %v5074_v14  ;;  %v6803_v32 = vmul.f32 -1.442695, %v4960_v47  ;;  %v4951_v26 = vadd.f32 %v4893_v6, %v4892_v49  ;;  %v5098_v28 = vor.u32 1.1754944e-38, %v5097_v60 }
 0x657   : > { %v7173_v18 = vpop.eup %7172  ;;  %v5039_v13 = vadd.f32 1.0, %v7171_v17 }
 0x658   : > { %v5079_v59 = vsel %vm5078_vm0, %v7169_v42, %v5075_v62  ;;  %v5087_v40 = vmul.f32 %v7173_v18, %v5038_v27  ;;  %7174 = vpow2.f32 %v6803_v32  ;;  %4952 = vadd.xlane.f32.xlu1 %v4951_v26  ;;  %vm5092_vm4 = vweird.f32 %v7173_v18 }
 0x659   : > { %v5084_v3 = vsel %vm5081_vm3, %v5083_v5, %v5079_v59  ;;  %7176 = vrcp.f32 %v5039_v13  ;;  %vm5093_vm6 = vmor %vm5091_vm5, %vm5092_vm4  ;;  %v5112_v48 = vand.u32 2147483648, %v5039_v13  ;;  %v5110_v1 = vand.u32 2147483647, %v5039_v13 }
 0x65a   : > { %5357 = vst [vmem:[%s10311_s15 + $0x8] sm:$0xff] %v5084_v3  ;;  %v5088_v63 = vsub.f32 1.0, %v5087_v40  ;;  %vm5106_vm9 = vweird.f32 %v5039_v13 }
 0x65b   : > { %v4911_v25 = vpop.xlane.xlu2 %4910  ;;  %v5113_v30 = vor.u32 1.1754944e-38, %v5112_v48  ;;  %vm5111_vm11 = vcmp.eq.f32.partialorder %v5110_v1, 8.507059e+37 }
 0x65c   : > { %v5089_v20 = vmul.f32 %v7173_v18, %v5088_v63  ;;  %v4961_v54 = vadd.f32 %v10266_v58, %v4911_v25 }
 0x65e   : > { %v7175_v36 = vpop.eup %7174  ;;  %v5090_v56 = vadd.f32 %v7173_v18, %v5089_v20  ;;  %v6804_v50 = vmul.f32 -1.442695, %v4961_v54 }
 0x65f   : > { %v7177_v21 = vpop.eup %7176  ;;  %v5040_v10 = vadd.f32 1.0, %v7175_v36 }
 0x660   : > { %v5094_v16 = vsel %vm5093_vm6, %v7173_v18, %v5090_v56  ;;  %v5102_v8 = vmul.f32 %v7177_v21, %v5039_v13  ;;  %7178 = vpow2.f32 %v6804_v50  ;;  %vm5107_vm8 = vweird.f32 %v7177_v21 }
 0x661   : > { %v5099_v57 = vsel %vm5096_vm7, %v5098_v28, %v5094_v16  ;;  %7180 = vrcp.f32 %v5040_v10  ;;  %vm5108_vm10 = vmor %vm5106_vm9, %vm5107_vm8  ;;  %v5127_v12 = vand.u32 2147483648, %v5040_v10  ;;  %v5125_v42 = vand.u32 2147483647, %v5040_v10 }
 0x662   : > { %5358 = vst [vmem:[%s10311_s15 + $0x10] sm:$0xff] %v5099_v57  ;;  %v5103_v4 = vsub.f32 1.0, %v5102_v8  ;;  %vm5121_vm13 = vweird.f32 %v5040_v10 }
 0x663   : > { %v4914_v23 = vpop.xlane.xlu0 %4913  ;;  %v5128_v29 = vor.u32 1.1754944e-38, %v5127_v12  ;;  %vm5126_vm15 = vcmp.eq.f32.partialorder %v5125_v42, 8.507059e+37 }
 0x664   : > { %v5104_v46 = vmul.f32 %v7177_v21, %v5103_v4  ;;  %v4962_v9 = vadd.f32 %v10266_v58, %v4914_v23 }
 0x666   : > { %v7179_v19 = vpop.eup %7178  ;;  %v5105_v41 = vadd.f32 %v7177_v21, %v5104_v46  ;;  %v6805_v43 = vmul.f32 -1.442695, %v4962_v9 }
 0x667   : > { %v7181_v0 = vpop.eup %7180  ;;  %v5041_v45 = vadd.f32 1.0, %v7179_v19 }
 0x668   : > { %v5109_v31 = vsel %vm5108_vm10, %v7177_v21, %v5105_v41  ;;  %v5117_v55 = vmul.f32 %v7181_v0, %v5040_v10  ;;  %7182 = vpow2.f32 %v6805_v43  ;;  %vm5122_vm12 = vweird.f32 %v7181_v0 }
 0x669   : > { %v5114_v38 = vsel %vm5111_vm11, %v5113_v30, %v5109_v31  ;;  %7184 = vrcp.f32 %v5041_v45  ;;  %vm5123_vm14 = vmor %vm5121_vm13, %vm5122_vm12  ;;  %v5142_v39 = vand.u32 2147483648, %v5041_v45  ;;  %v5140_v47 = vand.u32 2147483647, %v5041_v45 }
 0x66a   : > { %5359 = vst [vmem:[%s10311_s15 + $0x18] sm:$0xff] %v5114_v38  ;;  %v5118_v35 = vsub.f32 1.0, %v5117_v55  ;;  %vm5136_vm2 = vweird.f32 %v5041_v45 }
 0x66b   : > { %v4917_v53 = vpop.xlane.xlu1 %4916  ;;  %v5143_v32 = vor.u32 1.1754944e-38, %v5142_v39  ;;  %vm5141_vm3 = vcmp.eq.f32.partialorder %v5140_v47, 8.507059e+37 }
 0x66c   : > { %v5119_v33 = vmul.f32 %v7181_v0, %v5118_v35  ;;  %v4963_v11 = vadd.f32 %v10266_v58, %v4917_v53 }
 0x66e   : > { %v7183_v27 = vpop.eup %7182  ;;  %v5120_v52 = vadd.f32 %v7181_v0, %v5119_v33  ;;  %v6806_v44 = vmul.f32 -1.442695, %v4963_v11 }
 0x66f   : > { %v7185_v61 = vpop.eup %7184  ;;  %v5042_v51 = vadd.f32 1.0, %v7183_v27 }
 0x670   : > { %v5124_v34 = vsel %vm5123_vm14, %v7181_v0, %v5120_v52  ;;  %v5132_v22 = vmul.f32 %v7185_v61, %v5041_v45  ;;  %7186 = vpow2.f32 %v6806_v44  ;;  %vm5137_vm1 = vweird.f32 %v7185_v61 }
 0x671   : > { %v5129_v7 = vsel %vm5126_vm15, %v5128_v29, %v5124_v34  ;;  %7188 = vrcp.f32 %v5042_v51  ;;  %vm5138_vm0 = vmor %vm5136_vm2, %vm5137_vm1  ;;  %v5157_v40 = vand.u32 2147483648, %v5042_v51  ;;  %v5155_v60 = vand.u32 2147483647, %v5042_v51 }
 0x672   : > { %5360 = vst [vmem:[%s10311_s15 + $0x20] sm:$0xff] %v5129_v7  ;;  %v5133_v24 = vsub.f32 1.0, %v5132_v22  ;;  %vm5151_vm5 = vweird.f32 %v5042_v51 }
 0x673   : > { %v4920_v2 = vpop.xlane.xlu2 %4919  ;;  %v5158_v56 = vor.u32 1.1754944e-38, %v5157_v40  ;;  %vm5156_vm7 = vcmp.eq.f32.partialorder %v5155_v60, 8.507059e+37 }
 0x674   : > { %v5134_v14 = vmul.f32 %v7185_v61, %v5133_v24  ;;  %v4964_v15 = vadd.f32 %v10266_v58, %v4920_v2 }
 0x676   : > { %v7187_v49 = vpop.eup %7186  ;;  %v5135_v6 = vadd.f32 %v7185_v61, %v5134_v14  ;;  %v6807_v17 = vmul.f32 -1.442695, %v4964_v15 }
 0x677   : > { %v7189_v62 = vpop.eup %7188  ;;  %v5043_v18 = vadd.f32 1.0, %v7187_v49 }
 0x678   : > { %v5139_v5 = vsel %vm5138_vm0, %v7185_v61, %v5135_v6  ;;  %v5147_v13 = vmul.f32 %v7189_v62, %v5042_v51  ;;  %7190 = vpow2.f32 %v6807_v17  ;;  %vm5152_vm4 = vweird.f32 %v7189_v62 }
 0x679   : > { %v5144_v26 = vsel %vm5141_vm3, %v5143_v32, %v5139_v5  ;;  %7192 = vrcp.f32 %v5043_v18  ;;  %vm5153_vm6 = vmor %vm5151_vm5, %vm5152_vm4  ;;  %v5172_v8 = vand.u32 2147483648, %v5043_v18  ;;  %v5170_v48 = vand.u32 2147483647, %v5043_v18 }
 0x67a   : > { %5361 = vst [vmem:[%s10311_s15 + $0x28] sm:$0xff] %v5144_v26  ;;  %v5148_v59 = vsub.f32 1.0, %v5147_v13  ;;  %vm5166_vm9 = vweird.f32 %v5043_v18 }
 0x67b   : > { %v4923_v3 = vpop.xlane.xlu0 %4922  ;;  %v5173_v41 = vor.u32 1.1754944e-38, %v5172_v8  ;;  %vm5171_vm11 = vcmp.eq.f32.partialorder %v5170_v48, 8.507059e+37 }
 0x67c   : > { %v5149_v63 = vmul.f32 %v7189_v62, %v5148_v59  ;;  %v4965_v25 = vadd.f32 %v10266_v58, %v4923_v3 }
 0x67e   : > { %v7191_v20 = vpop.eup %7190  ;;  %v5150_v37 = vadd.f32 %v7189_v62, %v5149_v63  ;;  %v6808_v54 = vmul.f32 -1.442695, %v4965_v25 }
 0x67f   : > { %v7193_v36 = vpop.eup %7192  ;;  %v5044_v50 = vadd.f32 1.0, %v7191_v20 }
 0x680   : > { %v5154_v21 = vsel %vm5153_vm6, %v7189_v62, %v5150_v37  ;;  %v5162_v28 = vmul.f32 %v7193_v36, %v5043_v18  ;;  %7194 = vpow2.f32 %v6808_v54  ;;  %vm5167_vm8 = vweird.f32 %v7193_v36 }
 0x681   : > { %v5159_v10 = vsel %vm5156_vm7, %v5158_v56, %v5154_v21  ;;  %7196 = vrcp.f32 %v5044_v50  ;;  %vm5168_vm10 = vmor %vm5166_vm9, %vm5167_vm8  ;;  %v5187_v55 = vand.u32 2147483648, %v5044_v50  ;;  %v5185_v12 = vand.u32 2147483647, %v5044_v50 }
 0x682   : > { %5362 = vst [vmem:[%s10311_s15 + $0x30] sm:$0xff] %v5159_v10  ;;  %v5163_v16 = vsub.f32 1.0, %v5162_v28  ;;  %vm5181_vm13 = vweird.f32 %v5044_v50 }
 0x683   : > { %v4926_v57 = vpop.xlane.xlu1 %4925  ;;  %v5188_v52 = vor.u32 1.1754944e-38, %v5187_v55  ;;  %vm5186_vm15 = vcmp.eq.f32.partialorder %v5185_v12, 8.507059e+37 }
 0x684   : > { %v5164_v4 = vmul.f32 %v7193_v36, %v5163_v16  ;;  %v4966_v23 = vadd.f32 %v10266_v58, %v4926_v57 }
 0x686   : > { %v7195_v46 = vpop.eup %7194  ;;  %v5165_v1 = vadd.f32 %v7193_v36, %v5164_v4  ;;  %v6809_v9 = vmul.f32 -1.442695, %v4966_v23 }
 0x687   : > { %v7197_v19 = vpop.eup %7196  ;;  %v5045_v43 = vadd.f32 1.0, %v7195_v46 }
 0x688   : > { %v5169_v0 = vsel %vm5168_vm10, %v7193_v36, %v5165_v1  ;;  %v5177_v30 = vmul.f32 %v7197_v19, %v5044_v50  ;;  %7198 = vpow2.f32 %v6809_v9  ;;  %vm5182_vm12 = vweird.f32 %v7197_v19 }
 0x689   : > { %v5174_v45 = vsel %vm5171_vm11, %v5173_v41, %v5169_v0  ;;  %7200 = vrcp.f32 %v5045_v43  ;;  %vm5183_vm14 = vmor %vm5181_vm13, %vm5182_vm12  ;;  %v5202_v22 = vand.u32 2147483648, %v5045_v43  ;;  %v5200_v39 = vand.u32 2147483647, %v5045_v43 }
 0x68a   : > { %5363 = vst [vmem:[%s10311_s15 + $0x38] sm:$0xff] %v5174_v45  ;;  %v5178_v31 = vsub.f32 1.0, %v5177_v30  ;;  %vm5196_vm2 = vweird.f32 %v5045_v43 }
 0x68b   : > { %v4929_v38 = vpop.xlane.xlu2 %4928  ;;  %v5203_v6 = vor.u32 1.1754944e-38, %v5202_v22  ;;  %vm5201_vm3 = vcmp.eq.f32.partialorder %v5200_v39, 8.507059e+37 }
 0x68c   : > { %v5179_v35 = vmul.f32 %v7197_v19, %v5178_v31  ;;  %v4967_v53 = vadd.f32 %v10266_v58, %v4929_v38 }
 0x68e   : > { %v7199_v33 = vpop.eup %7198  ;;  %v5180_v42 = vadd.f32 %v7197_v19, %v5179_v35  ;;  %v6810_v11 = vmul.f32 -1.442695, %v4967_v53 }
 0x68f   : > { %v7201_v27 = vpop.eup %7200  ;;  %v5046_v44 = vadd.f32 1.0, %v7199_v33 }
 0x690   : > { %v5184_v61 = vsel %vm5183_vm14, %v7197_v19, %v5180_v42  ;;  %v5192_v29 = vmul.f32 %v7201_v27, %v5045_v43  ;;  %7202 = vpow2.f32 %v6810_v11  ;;  %vm5197_vm1 = vweird.f32 %v7201_v27 }
 0x691   : > { %v5189_v51 = vsel %vm5186_vm15, %v5188_v52, %v5184_v61  ;;  %7204 = vrcp.f32 %v5046_v44  ;;  %vm5198_vm0 = vmor %vm5196_vm2, %vm5197_vm1  ;;  %v5217_v13 = vand.u32 2147483648, %v5046_v44  ;;  %v5215_v40 = vand.u32 2147483647, %v5046_v44 }
 0x692   : > { %5364 = vst [vmem:[%s10311_s15 + $0x40] sm:$0xff] %v5189_v51  ;;  %v5193_v34 = vsub.f32 1.0, %v5192_v29  ;;  %vm5211_vm5 = vweird.f32 %v5046_v44 }
 0x693   : > { %v4932_v7 = vpop.xlane.xlu0 %4931  ;;  %v5218_v37 = vor.u32 1.1754944e-38, %v5217_v13  ;;  %vm5216_vm7 = vcmp.eq.f32.partialorder %v5215_v40, 8.507059e+37 }
 0x694   : > { %v5194_v24 = vmul.f32 %v7201_v27, %v5193_v34  ;;  %v4968_v2 = vadd.f32 %v10266_v58, %v4932_v7 }
 0x696   : > { %v7203_v14 = vpop.eup %7202  ;;  %v5195_v47 = vadd.f32 %v7201_v27, %v5194_v24  ;;  %v6811_v15 = vmul.f32 -1.442695, %v4968_v2 }
 0x697   : > { %v7205_v49 = vpop.eup %7204  ;;  %v5047_v17 = vadd.f32 1.0, %v7203_v14 }
 0x698   : > { %v5199_v62 = vsel %vm5198_vm0, %v7201_v27, %v5195_v47  ;;  %v5207_v32 = vmul.f32 %v7205_v49, %v5046_v44  ;;  %7206 = vpow2.f32 %v6811_v15  ;;  %vm5212_vm4 = vweird.f32 %v7205_v49 }
 0x699   : > { %v5204_v18 = vsel %vm5201_vm3, %v5203_v6, %v5199_v62  ;;  %7208 = vrcp.f32 %v5047_v17  ;;  %vm5213_vm6 = vmor %vm5211_vm5, %vm5212_vm4  ;;  %v5232_v28 = vand.u32 2147483648, %v5047_v17  ;;  %v5230_v8 = vand.u32 2147483647, %v5047_v17 }
 0x69a   : > { %5365 = vst [vmem:[%s10311_s15 + $0x48] sm:$0xff] %v5204_v18  ;;  %v5208_v5 = vsub.f32 1.0, %v5207_v32  ;;  %vm5226_vm9 = vweird.f32 %v5047_v17 }
 0x69b   : > { %v4935_v26 = vpop.xlane.xlu1 %4934  ;;  %v5233_v1 = vor.u32 1.1754944e-38, %v5232_v28  ;;  %vm5231_vm11 = vcmp.eq.f32.partialorder %v5230_v8, 8.507059e+37 }
 0x69c   : > { %v5209_v59 = vmul.f32 %v7205_v49, %v5208_v5  ;;  %v4969_v3 = vadd.f32 %v10266_v58, %v4935_v26 }
 0x69e   : > { %v7207_v63 = vpop.eup %7206  ;;  %v5210_v60 = vadd.f32 %v7205_v49, %v5209_v59  ;;  %v6812_v25 = vmul.f32 -1.442695, %v4969_v3 }
 0x69f   : > { %v7209_v20 = vpop.eup %7208  ;;  %v5048_v54 = vadd.f32 1.0, %v7207_v63 }
 0x6a0   : > { %v5214_v36 = vsel %vm5213_vm6, %v7205_v49, %v5210_v60  ;;  %v5222_v56 = vmul.f32 %v7209_v20, %v5047_v17  ;;  %7210 = vpow2.f32 %v6812_v25  ;;  %vm5227_vm8 = vweird.f32 %v7209_v20 }
 0x6a1   : > { %v5219_v50 = vsel %vm5216_vm7, %v5218_v37, %v5214_v36  ;;  %7212 = vrcp.f32 %v5048_v54  ;;  %vm5228_vm10 = vmor %vm5226_vm9, %vm5227_vm8  ;;  %v5247_v30 = vand.u32 2147483648, %v5048_v54  ;;  %v5245_v55 = vand.u32 2147483647, %v5048_v54 }
 0x6a2   : > { %5366 = vst [vmem:[%s10311_s15 + $0x50] sm:$0xff] %v5219_v50  ;;  %v5223_v21 = vsub.f32 1.0, %v5222_v56  ;;  %vm5241_vm13 = vweird.f32 %v5048_v54 }
 0x6a3   : > { %v4938_v10 = vpop.xlane.xlu2 %4937  ;;  %v5248_v42 = vor.u32 1.1754944e-38, %v5247_v30  ;;  %vm5246_vm15 = vcmp.eq.f32.partialorder %v5245_v55, 8.507059e+37 }
 0x6a4   : > { %v5224_v16 = vmul.f32 %v7209_v20, %v5223_v21  ;;  %v4970_v57 = vadd.f32 %v10266_v58, %v4938_v10 }
 0x6a6   : > { %v7211_v4 = vpop.eup %7210  ;;  %v5225_v48 = vadd.f32 %v7209_v20, %v5224_v16  ;;  %v6813_v23 = vmul.f32 -1.442695, %v4970_v57 }
 0x6a7   : > { %v7213_v46 = vpop.eup %7212  ;;  %v5049_v9 = vadd.f32 1.0, %v7211_v4 }
 0x6a8   : > { %v5229_v19 = vsel %vm5228_vm10, %v7209_v20, %v5225_v48  ;;  %v5237_v41 = vmul.f32 %v7213_v46, %v5048_v54  ;;  %7214 = vpow2.f32 %v6813_v23  ;;  %vm5242_vm12 = vweird.f32 %v7213_v46 }
 0x6a9   : > { %v5234_v43 = vsel %vm5231_vm11, %v5233_v1, %v5229_v19  ;;  %7216 = vrcp.f32 %v5049_v9  ;;  %vm5243_vm14 = vmor %vm5241_vm13, %vm5242_vm12  ;;  %v5262_v29 = vand.u32 2147483648, %v5049_v9  ;;  %v5260_v22 = vand.u32 2147483647, %v5049_v9 }
 0x6aa   : > { %5367 = vst [vmem:[%s10311_s15 + $0x58] sm:$0xff] %v5234_v43  ;;  %v5238_v0 = vsub.f32 1.0, %v5237_v41  ;;  %vm5256_vm2 = vweird.f32 %v5049_v9 }
 0x6ab   : > { %v4941_v45 = vpop.xlane.xlu0 %4940  ;;  %v5263_v47 = vor.u32 1.1754944e-38, %v5262_v29  ;;  %vm5261_vm3 = vcmp.eq.f32.partialorder %v5260_v22, 8.507059e+37 }
 0x6ac   : > { %v5239_v31 = vmul.f32 %v7213_v46, %v5238_v0  ;;  %v4971_v38 = vadd.f32 %v10266_v58, %v4941_v45 }
 0x6ae   : > { %v7215_v35 = vpop.eup %7214  ;;  %v5240_v12 = vadd.f32 %v7213_v46, %v5239_v31  ;;  %v6814_v53 = vmul.f32 -1.442695, %v4971_v38 }
 0x6af   : > { %v7217_v33 = vpop.eup %7216  ;;  %v5050_v11 = vadd.f32 1.0, %v7215_v35 }
 0x6b0   : > { %v5244_v27 = vsel %vm5243_vm14, %v7213_v46, %v5240_v12  ;;  %v5252_v52 = vmul.f32 %v7217_v33, %v5049_v9  ;;  %7218 = vpow2.f32 %v6814_v53  ;;  %vm5257_vm1 = vweird.f32 %v7217_v33 }
 0x6b1   : > { %v5249_v44 = vsel %vm5246_vm15, %v5248_v42, %v5244_v27  ;;  %7220 = vrcp.f32 %v5050_v11  ;;  %vm5258_vm0 = vmor %vm5256_vm2, %vm5257_vm1  ;;  %v5277_v32 = vand.u32 2147483648, %v5050_v11  ;;  %v5275_v5 = vand.u32 2147483647, %v5050_v11 }
 0x6b2   : > { %5368 = vst [vmem:[%s10311_s15 + $0x60] sm:$0xff] %v5249_v44  ;;  %v5253_v61 = vsub.f32 1.0, %v5252_v52  ;;  %vm5271_vm5 = vweird.f32 %v5050_v11 }
 0x6b3   : > { %v4944_v51 = vpop.xlane.xlu1 %4943  ;;  %v5278_v63 = vor.u32 1.1754944e-38, %v5277_v32  ;;  %vm5276_vm7 = vcmp.eq.f32.partialorder %v5275_v5, 8.507059e+37 }
 0x6b4   : > { %v5254_v34 = vmul.f32 %v7217_v33, %v5253_v61  ;;  %v4972_v7 = vadd.f32 %v10266_v58, %v4944_v51 }
 0x6b6   : > { %v7219_v24 = vpop.eup %7218  ;;  %v5255_v39 = vadd.f32 %v7217_v33, %v5254_v34  ;;  %v6815_v2 = vmul.f32 -1.442695, %v4972_v7 }
 0x6b7   : > { %v7221_v14 = vpop.eup %7220  ;;  %v5051_v15 = vadd.f32 1.0, %v7219_v24 }
 0x6b8   : > { %v5259_v49 = vsel %vm5258_vm0, %v7217_v33, %v5255_v39  ;;  %v5267_v6 = vmul.f32 %v7221_v14, %v5050_v11  ;;  %7222 = vpow2.f32 %v6815_v2  ;;  %vm5272_vm4 = vweird.f32 %v7221_v14 }
 0x6b9   : > { %v5264_v17 = vsel %vm5261_vm3, %v5263_v47, %v5259_v49  ;;  %7224 = vrcp.f32 %v5051_v15  ;;  %vm5273_vm6 = vmor %vm5271_vm5, %vm5272_vm4  ;;  %v5292_v56 = vand.u32 2147483648, %v5051_v15  ;;  %v5290_v21 = vand.u32 2147483647, %v5051_v15 }
 0x6ba   : > { %5369 = vst [vmem:[%s10311_s15 + $0x68] sm:$0xff] %v5264_v17  ;;  %v5268_v62 = vsub.f32 1.0, %v5267_v6  ;;  %vm5286_vm9 = vweird.f32 %v5051_v15 }
 0x6bb   : > { %v4947_v13 = vpop.xlane.xlu2 %4946  ;;  %v5293_v57 = vor.u32 1.1754944e-38, %v5292_v56  ;;  %vm5291_vm11 = vcmp.eq.f32.partialorder %v5290_v21, 8.507059e+37 }
 0x6bc   : > { %v5269_v18 = vmul.f32 %v7221_v14, %v5268_v62  ;;  %v4973_v26 = vadd.f32 %v10266_v58, %v4947_v13 }
 0x6be   : > { %v7223_v59 = vpop.eup %7222  ;;  %v5270_v40 = vadd.f32 %v7221_v14, %v5269_v18  ;;  %v6816_v25 = vmul.f32 -1.442695, %v4973_v26 }
 0x6bf   : > { %v7225_v3 = vpop.eup %7224  ;;  %v5052_v60 = vadd.f32 1.0, %v7223_v59 }
 0x6c0   : > { %v5274_v20 = vsel %vm5273_vm6, %v7221_v14, %v5270_v40  ;;  %v5282_v37 = vmul.f32 %v7225_v3, %v5051_v15  ;;  %vm5287_vm8 = vweird.f32 %v7225_v3 }
 0x6c1   : > { %v5279_v54 = vsel %vm5276_vm7, %v5278_v63, %v5274_v20  ;;  %7226 = vrcp.f32 %v5052_v60  ;;  %vm5288_vm10 = vmor %vm5286_vm9, %vm5287_vm8  ;;  %v5307_v41 = vand.u32 2147483648, %v5052_v60  ;;  %v5305_v0 = vand.u32 2147483647, %v5052_v60 }
 0x6c2   : > { %5370 = vst [vmem:[%s10311_s15 + $0x70] sm:$0xff] %v5279_v54  ;;  %v5283_v36 = vsub.f32 1.0, %v5282_v37  ;;  %7228 = vpow2.f32 %v6816_v25  ;;  %vm5301_vm13 = vweird.f32 %v5052_v60 }
 0x6c3   : > { %v4950_v28 = vpop.xlane.xlu0 %4949  ;;  %v5308_v38 = vor.u32 1.1754944e-38, %v5307_v41  ;;  %vm5306_vm15 = vcmp.eq.f32.partialorder %v5305_v0, 8.507059e+37 }
 0x6c4   : > { %v5284_v50 = vmul.f32 %v7225_v3, %v5283_v36  ;;  %v4974_v10 = vadd.f32 %v10266_v58, %v4950_v28 }
 0x6c6   : > { %v5285_v16 = vadd.f32 %v7225_v3, %v5284_v50  ;;  %v6817_v4 = vmul.f32 -1.442695, %v4974_v10 }
 0x6c7   : > { %v7227_v8 = vpop.eup %7226 }
 0x6c8   : > { %v7229_v48 = vpop.eup %7228  ;;  %v5289_v23 = vsel %vm5288_vm10, %v7225_v3, %v5285_v16  ;;  %v5297_v46 = vmul.f32 %v7227_v8, %v5052_v60  ;;  %7230 = vpow2.f32 %v6817_v4  ;;  %vm5302_vm12 = vweird.f32 %v7227_v8 }
 0x6c9   : > { %v5294_v1 = vsel %vm5291_vm11, %v5293_v57, %v5289_v23  ;;  %v5053_v9 = vadd.f32 1.0, %v7229_v48  ;;  %vm5303_vm14 = vmor %vm5301_vm13, %vm5302_vm12 }
 0x6ca   : > { %5371 = vst [vmem:[%s10311_s15 + $0x78] sm:$0xff] %v5294_v1  ;;  %v5298_v19 = vsub.f32 1.0, %v5297_v46 }
 0x6cb   : > { %7232 = vrcp.f32 %v5053_v9  ;;  %v4953_v30 = vpop.xlane.xlu1 %4952  ;;  %v5322_v52 = vand.u32 2147483648, %v5053_v9  ;;  %vm5316_vm2 = vweird.f32 %v5053_v9 }
 0x6cc   : > { %v5299_v43 = vmul.f32 %v7227_v8, %v5298_v19  ;;  %v4975_v45 = vadd.f32 %v10266_v58, %v4953_v30  ;;  %v5320_v58 = vand.u32 2147483647, %v5053_v9 }
 0x6cd   : > { %v5323_v22 = vor.u32 1.1754944e-38, %v5322_v52 }
 0x6ce   : > { %v5300_v31 = vadd.f32 %v7227_v8, %v5299_v43  ;;  %v7231_v55 = vpop.eup %7230  ;;  %v6818_v35 = vmul.f32 -1.442695, %v4975_v45  ;;  %vm5321_vm3 = vcmp.eq.f32.partialorder %v5320_v58, 8.507059e+37 }
 0x6cf   : > { %v5054_v53 = vadd.f32 1.0, %v7231_v55 }
 0x6d0   : > { %v5304_v12 = vsel %vm5303_vm14, %v7227_v8, %v5300_v31  ;;  %7234 = vpow2.f32 %v6818_v35 }
 0x6d1   : > { %v7233_v33 = vpop.eup %7232  ;;  %v5309_v42 = vsel %vm5306_vm15, %v5308_v38, %v5304_v12  ;;  %7236 = vrcp.f32 %v5054_v53  ;;  %v5337_v14 = vand.u32 2147483648, %v5054_v53  ;;  %v5335_v15 = vand.u32 2147483647, %v5054_v53 }
 0x6d2   : > { %5372 = vst [vmem:[%s10311_s15 + $0x80] sm:$0xff] %v5309_v42  ;;  %v5312_v11 = vmul.f32 %v7233_v33, %v5053_v9  ;;  %vm5317_vm1 = vweird.f32 %v7233_v33  ;;  %vm5331_vm5 = vweird.f32 %v5054_v53 }
 0x6d3   : > { %vm5318_vm0 = vmor %vm5316_vm2, %vm5317_vm1  ;;  %v5338_v17 = vor.u32 1.1754944e-38, %v5337_v14  ;;  %vm5336_vm7 = vcmp.eq.f32.partialorder %v5335_v15, 8.507059e+37 }
 0x6d4   : > { %v5313_v27 = vsub.f32 1.0, %v5312_v11 }
 0x6d6   : > { %v5314_v44 = vmul.f32 %v7233_v33, %v5313_v27  ;;  %v7235_v61 = vpop.eup %7234 }
 0x6d7   : > { %v7237_v29 = vpop.eup %7236  ;;  %v5055_v34 = vadd.f32 1.0, %v7235_v61 }
 0x6d8   : > { %v5315_v51 = vadd.f32 %v7233_v33, %v5314_v44  ;;  %v5327_v7 = vmul.f32 %v7237_v29, %v5054_v53  ;;  %vm5332_vm4 = vweird.f32 %v7237_v29 }
 0x6d9   : > { %7238 = vrcp.f32 %v5055_v34  ;;  %vm5333_vm6 = vmor %vm5331_vm5, %vm5332_vm4  ;;  %v5352_v13 = vand.u32 2147483648, %v5055_v34  ;;  %v5350_v59 = vand.u32 2147483647, %v5055_v34  ;;  %vm5346_vm9 = vweird.f32 %v5055_v34 }
 0x6da   : > { %v5319_v24 = vsel %vm5318_vm0, %v7233_v33, %v5315_v51  ;;  %v5328_v2 = vsub.f32 1.0, %v5327_v7 }
 0x6db   : > { %v5324_v39 = vsel %vm5321_vm3, %v5323_v22, %v5319_v24  ;;  %v5353_v3 = vor.u32 1.1754944e-38, %v5352_v13  ;;  %vm5351_vm11 = vcmp.eq.f32.partialorder %v5350_v59, 8.507059e+37 }
 0x6dc   : > { %5373 = vst [vmem:[%s10311_s15 + $0x88] sm:$0xff] %v5324_v39  ;;  %v5329_v47 = vmul.f32 %v7237_v29, %v5328_v2 }
 0x6de   : > { %v5330_v49 = vadd.f32 %v7237_v29, %v5329_v47 }
 0x6df   : > { %v7239_v6 = vpop.eup %7238 }
 0x6e0   : > { %v5334_v62 = vsel %vm5333_vm6, %v7237_v29, %v5330_v49  ;;  %v5342_v32 = vmul.f32 %v7239_v6, %v5055_v34  ;;  %vm5347_vm8 = vweird.f32 %v7239_v6 }
 0x6e1   : > { %v5339_v18 = vsel %vm5336_vm7, %v5338_v17, %v5334_v62  ;;  %vm5348_vm10 = vmor %vm5346_vm9, %vm5347_vm8 }
 0x6e2   : > { %5374 = vst [vmem:[%s10311_s15 + $0x90] sm:$0xff] %v5339_v18  ;;  %v5343_v5 = vsub.f32 1.0, %v5342_v32 }
 0x6e4   : > { %v5344_v26 = vmul.f32 %v7239_v6, %v5343_v5 }
 0x6e6   : > { %v5345_v40 = vadd.f32 %v7239_v6, %v5344_v26 }
 0x6e8   : > { %v5349_v63 = vsel %vm5348_vm10, %v7239_v6, %v5345_v40 }
 0x6e9   : > { %v5354_v60 = vsel %vm5351_vm11, %v5353_v3, %v5349_v63 }
 0x6ea   : > { %5375 = vst [vmem:[%s10311_s15 + $0x98] sm:$0xff] %v5354_v60 }
 0x6eb PF: > { %s18_s26 = sadd.s32 1, %s7248_s26  }
 0x6ec   : > { %p15_p4 = scmp.ge.s32.totalorder %s18_s26, 4  }
 0x6ee   :  { %17 = sbr.rel (!%p15_p4) target bundleno = 2 (0x2), region = 78 }

</bundles_post_ra>
